<compile_context>
chip_gen: v6e
topology: v6e:2x2x1
jax: 0.10.0
libtpu: 0.0.40
codegen_flags: <defaults>
</compile_context>

<pallas_src>
import jax
import jax.numpy as jnp
from jax.experimental import pallas as pl
from jax.experimental.pallas import tpu as pltpu

LANE = 128


def _resblock_kernel(x_ref, w1_ref, w2_ref, s1_ref, t1_ref, s2_ref, t2_ref,
                     o_ref, pad_ref):
    # x_ref   : (1, H, W, Cp)  f32 input block (one batch element, lane-dense channels)
    # w*_ref  : (9, Cp, Cp)    bf16 conv weights, tap-major (kh*3 + kw), rows = Cin
    # s*/t*   : (1, Cp)        f32 folded BN scale / (BN shift + conv bias)
    # o_ref   : (1, H, W, Cp)  bf16 output block
    # pad_ref : (H+2, W+2, Cp) bf16 persistent scratch (shared halo buffer for both convs)
    _, H, W, Cp = o_ref.shape
    Hp, Wp = H + 2, W + 2

    # Re-zero only the 1-wide halo (interior is fully overwritten below).  Correct
    # regardless of how the "parallel" batch axis is sharded across cores.
    zrow = jnp.zeros((1, Wp, Cp), jnp.bfloat16)
    zcol = jnp.zeros((Hp, 1, Cp), jnp.bfloat16)
    pad_ref[0:1, :, :] = zrow
    pad_ref[Hp - 1:Hp, :, :] = zrow
    pad_ref[:, 0:1, :] = zcol
    pad_ref[:, Wp - 1:Wp, :] = zcol

    # Stage the input into the padded scratch as bf16 (cast happens here, not in HBM).
    pad_ref[1:H + 1, 1:W + 1, :] = x_ref[0].astype(jnp.bfloat16)

    def conv3x3(w_ref):
        # 9 accumulated (H*W, Cp) x (Cp, Cp) matmuls — no materialized im2col slab.
        acc = jnp.zeros((H * W, Cp), jnp.float32)
        for dy in range(3):
            for dx in range(3):
                lhs = pad_ref[dy:dy + H, dx:dx + W, :].reshape(H * W, Cp)
                acc = acc + jnp.dot(lhs, w_ref[dy * 3 + dx],
                                    preferred_element_type=jnp.float32)
        return acc

    # ---- conv1 -> BN1 (bias folded into t1) -> LeakyReLU(0.1), post-matmul in f32 ----
    h = conv3x3(w1_ref) * s1_ref[0] + t1_ref[0]
    h = jnp.maximum(h, 0.1 * h)

    # Reuse the same padded scratch for conv2's input (halo stays zero).
    pad_ref[1:H + 1, 1:W + 1, :] = h.reshape(H, W, Cp).astype(jnp.bfloat16)

    # ---- conv2 -> BN2 (bias folded into t2), residual add (exact f32), LeakyReLU(0.1) ----
    y = conv3x3(w2_ref) * s2_ref[0] + t2_ref[0]
    out = x_ref[0].reshape(H * W, Cp) + y
    out = jnp.maximum(out, 0.1 * out)
    o_ref[...] = out.reshape(1, H, W, Cp).astype(o_ref.dtype)


@jax.jit
def resblock_pallas(x_nchw, params, eps=1e-5):
    """x_nchw: (N, C, H, W) f32.  params: PyTorch-style (w_oihw, b, gamma, beta, mean, var) x2."""
    (w1, b1, g1, be1, m1, v1, w2, b2, g2, be2, m2, v2) = params
    N, C, H, W = x_nchw.shape
    Cp = max(LANE, ((C + LANE - 1) // LANE) * LANE)   # lane-dense channel count

    # Fold BN (inference) and the conv bias into per-channel scale / shift.
    s1 = g1 * jax.lax.rsqrt(v1 + eps)
    t1 = be1 + (b1 - m1) * s1
    s2 = g2 * jax.lax.rsqrt(v2 + eps)
    t2 = be2 + (b2 - m2) * s2

    def pad_c(v):                                     # (C,) -> (1, Cp) f32
        return jnp.pad(v, (0, Cp - C)).reshape(1, Cp).astype(jnp.float32)

    def pack_w(w_oihw):                               # OIHW -> (9, Cp, Cp) bf16, tap-major
        w = jnp.transpose(w_oihw, (2, 3, 1, 0))       # (3, 3, Cin, Cout)
        w = jnp.pad(w, ((0, 0), (0, 0), (0, Cp - C), (0, Cp - C)))
        return w.reshape(9, Cp, Cp).astype(jnp.bfloat16)

    # Only unavoidable wrapper-side layout pass: NCHW -> NHWC.  No cast — the kernel reads
    # the f32 activation directly.  Channel zero-pad only when C is not lane-aligned
    # (no-op for production C % 128 == 0; wasteful but correct for tiny test C).
    x_nhwc = jnp.transpose(x_nchw, (0, 2, 3, 1))
    if Cp != C:
        x_nhwc = jnp.pad(x_nhwc, ((0, 0), (0, 0), (0, 0), (0, Cp - C)))

    w1p, w2p = pack_w(w1), pack_w(w2)
    s1r, t1r, s2r, t2r = pad_c(s1), pad_c(t1), pad_c(s2), pad_c(t2)

    # Scoped-VMEM estimate: double-buffered I/O blocks + resident weights + halo scratch +
    # f32 temps, clamped to this generation's physical VMEM minus headroom.
    blk_in = H * W * Cp * 4                      # f32 input block
    blk_out = H * W * Cp * 2                     # bf16 output block
    w_bytes = 2 * 9 * Cp * Cp * 2                # both weight slabs, bf16
    scratch = (H + 2) * (W + 2) * Cp * 2         # halo scratch, bf16
    temps = 6 * H * W * Cp * 4                   # acc / h / residual / relayout temps (f32)
    vmem_needed = 2 * blk_in + 2 * blk_out + 2 * w_bytes + scratch + temps
    try:
        vmem_cap = int(pltpu.get_tpu_info().vmem_capacity_bytes)
    except Exception:
        vmem_cap = 64 * 1024 * 1024              # conservative fallback (v7x per-TC size)
    vmem_limit = int(min(max(2 * vmem_needed, 32 * 1024 * 1024),
                         vmem_cap - 4 * 1024 * 1024))

    const = lambda shape: pl.BlockSpec(shape, lambda b, _s=shape: (0,) * len(_s))

    out = pl.pallas_call(
        _resblock_kernel,
        out_shape=jax.ShapeDtypeStruct((N, H, W, Cp), jnp.bfloat16),
        grid_spec=pltpu.PrefetchScalarGridSpec(
            num_scalar_prefetch=0,
            grid=(N,),
            in_specs=[
                pl.BlockSpec((1, H, W, Cp), lambda b: (b, 0, 0, 0)),    # x (f32)
                const((9, Cp, Cp)),                                     # w1 taps
                const((9, Cp, Cp)),                                     # w2 taps
                const((1, Cp)), const((1, Cp)),                         # s1, t1
                const((1, Cp)), const((1, Cp)),                         # s2, t2
            ],
            out_specs=pl.BlockSpec((1, H, W, Cp), lambda b: (b, 0, 0, 0)),
            scratch_shapes=[pltpu.VMEM((H + 2, W + 2, Cp), jnp.bfloat16)],
        ),
        compiler_params=pltpu.CompilerParams(
            dimension_semantics=("parallel",),      # batch elems independent (v7x megacore)
            vmem_limit_bytes=vmem_limit),
    )(x_nhwc, w1p, w2p, s1r, t1r, s2r, t2r)

    # Drop channel padding, upcast, back to NCHW (small C-wide pass).
    return jnp.transpose(out[..., :C].astype(jnp.float32), (0, 3, 1, 2))


# ------------------------- pure-JAX f32 reference (NCHW) -------------------------
def _ref_conv(x, w_oihw, b):
    y = jax.lax.conv_general_dilated(
        x, w_oihw, window_strides=(1, 1), padding=((1, 1), (1, 1)),
        dimension_numbers=('NCHW', 'OIHW', 'NCHW'))
    return y + b[None, :, None, None]


def _ref_bn(x, gamma, beta, mean, var, eps=1e-5):
    return (x - mean[None, :, None, None]) / jnp.sqrt(var + eps)[None, :, None, None] \
        * gamma[None, :, None, None] + beta[None, :, None, None]


def _ref_resblock(x, params):
    (w1, b1, g1, be1, m1, v1, w2, b2, g2, be2, m2, v2) = params
    leaky = lambda t: jnp.where(t >= 0, t, 0.1 * t)
    h = leaky(_ref_bn(_ref_conv(x, w1, b1), g1, be1, m1, v1))
    y = _ref_bn(_ref_conv(h, w2, b2), g2, be2, m2, v2)
    return leaky(x + y)


if __name__ == "__main__":
    N, C, H, W = 2, 8, 16, 16
    key = jax.random.PRNGKey(0)
    ks = jax.random.split(key, 13)

    x = jax.random.normal(ks[0], (N, C, H, W), jnp.float32)

    # conv weights in PyTorch OIHW layout; BN params per channel
    w1 = 0.1 * jax.random.normal(ks[1], (C, C, 3, 3), jnp.float32)
    b1 = 0.1 * jax.random.normal(ks[2], (C,), jnp.float32)
    g1 = 0.5 + jax.random.uniform(ks[3], (C,), jnp.float32)
    be1 = 0.1 * jax.random.normal(ks[4], (C,), jnp.float32)
    m1 = 0.1 * jax.random.normal(ks[5], (C,), jnp.float32)
    v1 = 0.5 + jax.random.uniform(ks[6], (C,), jnp.float32)

    w2 = 0.1 * jax.random.normal(ks[7], (C, C, 3, 3), jnp.float32)
    b2 = 0.1 * jax.random.normal(ks[8], (C,), jnp.float32)
    g2 = 0.5 + jax.random.uniform(ks[9], (C,), jnp.float32)
    be2 = 0.1 * jax.random.normal(ks[10], (C,), jnp.float32)
    m2 = 0.1 * jax.random.normal(ks[11], (C,), jnp.float32)
    v2 = 0.5 + jax.random.uniform(ks[12], (C,), jnp.float32)

    params = (w1, b1, g1, be1, m1, v1, w2, b2, g2, be2, m2, v2)

    out = resblock_pallas(x, params)
    out = jax.block_until_ready(out)

    ref = _ref_resblock(x, params)
    assert out.shape == (N, C, H, W)
    err = float(jnp.max(jnp.abs(out - ref)))
    # bf16 MXU operands, bf16 conv2 staging, bf16 output writeback; accumulation in f32.
    tol = 3e-2 + 1.5e-2 * float(jnp.max(jnp.abs(ref)))
    assert err < tol, f"mismatch vs reference: {err} (tol {tol})"

    print("KERNEL_OK")
</pallas_src>

<mosaic_0001>
module attributes {stable_mosaic.version = 11 : i64} {
  func.func @_resblock_kernel(%arg0: i32, %arg1: memref<1x16x16x128xf32, #tpu.memory_space<vmem>>, %arg2: memref<9x128x128xbf16, #tpu.memory_space<vmem>>, %arg3: memref<9x128x128xbf16, #tpu.memory_space<vmem>>, %arg4: memref<1x128xf32, #tpu.memory_space<vmem>>, %arg5: memref<1x128xf32, #tpu.memory_space<vmem>>, %arg6: memref<1x128xf32, #tpu.memory_space<vmem>>, %arg7: memref<1x128xf32, #tpu.memory_space<vmem>>, %arg8: memref<1x16x16x128xbf16, #tpu.memory_space<vmem>>, %arg9: memref<18x18x128xbf16, #tpu.memory_space<vmem>>) attributes {dimension_semantics = [#tpu.dimension_semantics<parallel>], iteration_bounds = array<i64: 2>, scalar_prefetch = 0 : i64, scratch_operands = 1 : i64, tpu.core_type = #tpu.core_type<tc>, window_params = [{transform_indices = @transform_0, window_bounds = array<i64: 1, 16, 16, 128>}, {pipeline_mode = #tpu.pipeline_mode<synchronous>, transform_indices = @transform_1, window_bounds = array<i64: 9, 128, 128>}, {pipeline_mode = #tpu.pipeline_mode<synchronous>, transform_indices = @transform_2, window_bounds = array<i64: 9, 128, 128>}, {pipeline_mode = #tpu.pipeline_mode<synchronous>, transform_indices = @transform_3, window_bounds = array<i64: 1, 128>}, {pipeline_mode = #tpu.pipeline_mode<synchronous>, transform_indices = @transform_4, window_bounds = array<i64: 1, 128>}, {pipeline_mode = #tpu.pipeline_mode<synchronous>, transform_indices = @transform_5, window_bounds = array<i64: 1, 128>}, {pipeline_mode = #tpu.pipeline_mode<synchronous>, transform_indices = @transform_6, window_bounds = array<i64: 1, 128>}, {transform_indices = @transform_7, window_bounds = array<i64: 1, 16, 16, 128>}]} {
    %cst = arith.constant 0.000000e+00 : bf16
    %0 = vector.broadcast %cst : bf16 to vector<1x18x128xbf16>
    %cst_0 = arith.constant 0.000000e+00 : bf16
    %1 = vector.broadcast %cst_0 : bf16 to vector<18x1x128xbf16>
    %c0 = arith.constant 0 : index
    %c0_1 = arith.constant 0 : index
    %c0_2 = arith.constant 0 : index
    %2 = vector.load %arg9[%c0, %c0_1, %c0_2] : memref<18x18x128xbf16, #tpu.memory_space<vmem>>, vector<1x18x128xbf16>
    tpu.vector_store %arg9[%c0, %c0_1, %c0_2], %0 {strides = array<i32>} : memref<18x18x128xbf16, #tpu.memory_space<vmem>>, vector<1x18x128xbf16>,
    %c17 = arith.constant 17 : index
    %c0_3 = arith.constant 0 : index
    %c0_4 = arith.constant 0 : index
    %3 = vector.load %arg9[%c17, %c0_3, %c0_4] : memref<18x18x128xbf16, #tpu.memory_space<vmem>>, vector<1x18x128xbf16>
    tpu.vector_store %arg9[%c17, %c0_3, %c0_4], %0 {strides = array<i32>} : memref<18x18x128xbf16, #tpu.memory_space<vmem>>, vector<1x18x128xbf16>,
    %c0_5 = arith.constant 0 : index
    %c0_6 = arith.constant 0 : index
    %c0_7 = arith.constant 0 : index
    %4 = vector.load %arg9[%c0_5, %c0_6, %c0_7] : memref<18x18x128xbf16, #tpu.memory_space<vmem>>, vector<18x1x128xbf16>
    tpu.vector_store %arg9[%c0_5, %c0_6, %c0_7], %1 {strides = array<i32>} : memref<18x18x128xbf16, #tpu.memory_space<vmem>>, vector<18x1x128xbf16>,
    %c0_8 = arith.constant 0 : index
    %c17_9 = arith.constant 17 : index
    %c0_10 = arith.constant 0 : index
    %5 = vector.load %arg9[%c0_8, %c17_9, %c0_10] : memref<18x18x128xbf16, #tpu.memory_space<vmem>>, vector<18x1x128xbf16>
    tpu.vector_store %arg9[%c0_8, %c17_9, %c0_10], %1 {strides = array<i32>} : memref<18x18x128xbf16, #tpu.memory_space<vmem>>, vector<18x1x128xbf16>,
    %c0_11 = arith.constant 0 : index
    %c0_12 = arith.constant 0 : index
    %c0_13 = arith.constant 0 : index
    %c0_14 = arith.constant 0 : index
    %6 = vector.load %arg1[%c0_11, %c0_12, %c0_13, %c0_14] : memref<1x16x16x128xf32, #tpu.memory_space<vmem>>, vector<1x16x16x128xf32>
    %7 = vector.shape_cast %6 : vector<1x16x16x128xf32> to vector<16x16x128xf32>
    %8 = arith.truncf %7 : vector<16x16x128xf32> to vector<16x16x128xbf16>
    %c1 = arith.constant 1 : index
    %c1_15 = arith.constant 1 : index
    %c0_16 = arith.constant 0 : index
    %9 = vector.load %arg9[%c1, %c1_15, %c0_16] : memref<18x18x128xbf16, #tpu.memory_space<vmem>>, vector<16x16x128xbf16>
    tpu.vector_store %arg9[%c1, %c1_15, %c0_16], %8 {strides = array<i32>} : memref<18x18x128xbf16, #tpu.memory_space<vmem>>, vector<16x16x128xbf16>,
    %cst_17 = arith.constant 0.000000e+00 : f32
    %10 = vector.broadcast %cst_17 : f32 to vector<256x128xf32>
    %c0_18 = arith.constant 0 : index
    %c0_19 = arith.constant 0 : index
    %c0_20 = arith.constant 0 : index
    %11 = vector.load %arg9[%c0_18, %c0_19, %c0_20] : memref<18x18x128xbf16, #tpu.memory_space<vmem>>, vector<16x16x128xbf16>
    %12 = vector.shape_cast %11 : vector<16x16x128xbf16> to vector<256x128xbf16>
    %c0_21 = arith.constant 0 : index
    %c0_22 = arith.constant 0 : index
    %c0_23 = arith.constant 0 : index
    %13 = vector.load %arg2[%c0_21, %c0_22, %c0_23] : memref<9x128x128xbf16, #tpu.memory_space<vmem>>, vector<1x128x128xbf16>
    %14 = vector.shape_cast %13 : vector<1x128x128xbf16> to vector<128x128xbf16>
    %cst_24 = arith.constant dense<0.000000e+00> : vector<256x128xf32>
    %15 = tpu.matmul %12, %14, %cst_24 {dimension_numbers = #tpu.dot_dimension_numbers<[1], [0], [0], [1], [0, 0, 1, 1], [], []>} : vector<256x128xbf16>, vector<128x128xbf16>, vector<256x128xf32> -> vector<256x128xf32>
    %16 = arith.addf %10, %15 : vector<256x128xf32>
    %c0_25 = arith.constant 0 : index
    %c1_26 = arith.constant 1 : index
    %c0_27 = arith.constant 0 : index
    %17 = vector.load %arg9[%c0_25, %c1_26, %c0_27] : memref<18x18x128xbf16, #tpu.memory_space<vmem>>, vector<16x16x128xbf16>
    %18 = vector.shape_cast %17 : vector<16x16x128xbf16> to vector<256x128xbf16>
    %c1_28 = arith.constant 1 : index
    %c0_29 = arith.constant 0 : index
    %c0_30 = arith.constant 0 : index
    %19 = vector.load %arg2[%c1_28, %c0_29, %c0_30] : memref<9x128x128xbf16, #tpu.memory_space<vmem>>, vector<1x128x128xbf16>
    %20 = vector.shape_cast %19 : vector<1x128x128xbf16> to vector<128x128xbf16>
    %cst_31 = arith.constant dense<0.000000e+00> : vector<256x128xf32>
    %21 = tpu.matmul %18, %20, %cst_31 {dimension_numbers = #tpu.dot_dimension_numbers<[1], [0], [0], [1], [0, 0, 1, 1], [], []>} : vector<256x128xbf16>, vector<128x128xbf16>, vector<256x128xf32> -> vector<256x128xf32>
    %22 = arith.addf %16, %21 : vector<256x128xf32>
    %c0_32 = arith.constant 0 : index
    %c2 = arith.constant 2 : index
    %c0_33 = arith.constant 0 : index
    %23 = vector.load %arg9[%c0_32, %c2, %c0_33] : memref<18x18x128xbf16, #tpu.memory_space<vmem>>, vector<16x16x128xbf16>
    %24 = vector.shape_cast %23 : vector<16x16x128xbf16> to vector<256x128xbf16>
    %c2_34 = arith.constant 2 : index
    %c0_35 = arith.constant 0 : index
    %c0_36 = arith.constant 0 : index
    %25 = vector.load %arg2[%c2_34, %c0_35, %c0_36] : memref<9x128x128xbf16, #tpu.memory_space<vmem>>, vector<1x128x128xbf16>
    %26 = vector.shape_cast %25 : vector<1x128x128xbf16> to vector<128x128xbf16>
    %cst_37 = arith.constant dense<0.000000e+00> : vector<256x128xf32>
    %27 = tpu.matmul %24, %26, %cst_37 {dimension_numbers = #tpu.dot_dimension_numbers<[1], [0], [0], [1], [0, 0, 1, 1], [], []>} : vector<256x128xbf16>, vector<128x128xbf16>, vector<256x128xf32> -> vector<256x128xf32>
    %28 = arith.addf %22, %27 : vector<256x128xf32>
    %c1_38 = arith.constant 1 : index
    %c0_39 = arith.constant 0 : index
    %c0_40 = arith.constant 0 : index
    %29 = vector.load %arg9[%c1_38, %c0_39, %c0_40] : memref<18x18x128xbf16, #tpu.memory_space<vmem>>, vector<16x16x128xbf16>
    %30 = vector.shape_cast %29 : vector<16x16x128xbf16> to vector<256x128xbf16>
    %c3 = arith.constant 3 : index
    %c0_41 = arith.constant 0 : index
    %c0_42 = arith.constant 0 : index
    %31 = vector.load %arg2[%c3, %c0_41, %c0_42] : memref<9x128x128xbf16, #tpu.memory_space<vmem>>, vector<1x128x128xbf16>
    %32 = vector.shape_cast %31 : vector<1x128x128xbf16> to vector<128x128xbf16>
    %cst_43 = arith.constant dense<0.000000e+00> : vector<256x128xf32>
    %33 = tpu.matmul %30, %32, %cst_43 {dimension_numbers = #tpu.dot_dimension_numbers<[1], [0], [0], [1], [0, 0, 1, 1], [], []>} : vector<256x128xbf16>, vector<128x128xbf16>, vector<256x128xf32> -> vector<256x128xf32>
    %34 = arith.addf %28, %33 : vector<256x128xf32>
    %c1_44 = arith.constant 1 : index
    %c1_45 = arith.constant 1 : index
    %c0_46 = arith.constant 0 : index
    %35 = vector.load %arg9[%c1_44, %c1_45, %c0_46] : memref<18x18x128xbf16, #tpu.memory_space<vmem>>, vector<16x16x128xbf16>
    %36 = vector.shape_cast %35 : vector<16x16x128xbf16> to vector<256x128xbf16>
    %c4 = arith.constant 4 : index
    %c0_47 = arith.constant 0 : index
    %c0_48 = arith.constant 0 : index
    %37 = vector.load %arg2[%c4, %c0_47, %c0_48] : memref<9x128x128xbf16, #tpu.memory_space<vmem>>, vector<1x128x128xbf16>
    %38 = vector.shape_cast %37 : vector<1x128x128xbf16> to vector<128x128xbf16>
    %cst_49 = arith.constant dense<0.000000e+00> : vector<256x128xf32>
    %39 = tpu.matmul %36, %38, %cst_49 {dimension_numbers = #tpu.dot_dimension_numbers<[1], [0], [0], [1], [0, 0, 1, 1], [], []>} : vector<256x128xbf16>, vector<128x128xbf16>, vector<256x128xf32> -> vector<256x128xf32>
    %40 = arith.addf %34, %39 : vector<256x128xf32>
    %c1_50 = arith.constant 1 : index
    %c2_51 = arith.constant 2 : index
    %c0_52 = arith.constant 0 : index
    %41 = vector.load %arg9[%c1_50, %c2_51, %c0_52] : memref<18x18x128xbf16, #tpu.memory_space<vmem>>, vector<16x16x128xbf16>
    %42 = vector.shape_cast %41 : vector<16x16x128xbf16> to vector<256x128xbf16>
    %c5 = arith.constant 5 : index
    %c0_53 = arith.constant 0 : index
    %c0_54 = arith.constant 0 : index
    %43 = vector.load %arg2[%c5, %c0_53, %c0_54] : memref<9x128x128xbf16, #tpu.memory_space<vmem>>, vector<1x128x128xbf16>
    %44 = vector.shape_cast %43 : vector<1x128x128xbf16> to vector<128x128xbf16>
    %cst_55 = arith.constant dense<0.000000e+00> : vector<256x128xf32>
    %45 = tpu.matmul %42, %44, %cst_55 {dimension_numbers = #tpu.dot_dimension_numbers<[1], [0], [0], [1], [0, 0, 1, 1], [], []>} : vector<256x128xbf16>, vector<128x128xbf16>, vector<256x128xf32> -> vector<256x128xf32>
    %46 = arith.addf %40, %45 : vector<256x128xf32>
    %c2_56 = arith.constant 2 : index
    %c0_57 = arith.constant 0 : index
    %c0_58 = arith.constant 0 : index
    %47 = vector.load %arg9[%c2_56, %c0_57, %c0_58] : memref<18x18x128xbf16, #tpu.memory_space<vmem>>, vector<16x16x128xbf16>
    %48 = vector.shape_cast %47 : vector<16x16x128xbf16> to vector<256x128xbf16>
    %c6 = arith.constant 6 : index
    %c0_59 = arith.constant 0 : index
    %c0_60 = arith.constant 0 : index
    %49 = vector.load %arg2[%c6, %c0_59, %c0_60] : memref<9x128x128xbf16, #tpu.memory_space<vmem>>, vector<1x128x128xbf16>
    %50 = vector.shape_cast %49 : vector<1x128x128xbf16> to vector<128x128xbf16>
    %cst_61 = arith.constant dense<0.000000e+00> : vector<256x128xf32>
    %51 = tpu.matmul %48, %50, %cst_61 {dimension_numbers = #tpu.dot_dimension_numbers<[1], [0], [0], [1], [0, 0, 1, 1], [], []>} : vector<256x128xbf16>, vector<128x128xbf16>, vector<256x128xf32> -> vector<256x128xf32>
    %52 = arith.addf %46, %51 : vector<256x128xf32>
    %c2_62 = arith.constant 2 : index
    %c1_63 = arith.constant 1 : index
    %c0_64 = arith.constant 0 : index
    %53 = vector.load %arg9[%c2_62, %c1_63, %c0_64] : memref<18x18x128xbf16, #tpu.memory_space<vmem>>, vector<16x16x128xbf16>
    %54 = vector.shape_cast %53 : vector<16x16x128xbf16> to vector<256x128xbf16>
    %c7 = arith.constant 7 : index
    %c0_65 = arith.constant 0 : index
    %c0_66 = arith.constant 0 : index
    %55 = vector.load %arg2[%c7, %c0_65, %c0_66] : memref<9x128x128xbf16, #tpu.memory_space<vmem>>, vector<1x128x128xbf16>
    %56 = vector.shape_cast %55 : vector<1x128x128xbf16> to vector<128x128xbf16>
    %cst_67 = arith.constant dense<0.000000e+00> : vector<256x128xf32>
    %57 = tpu.matmul %54, %56, %cst_67 {dimension_numbers = #tpu.dot_dimension_numbers<[1], [0], [0], [1], [0, 0, 1, 1], [], []>} : vector<256x128xbf16>, vector<128x128xbf16>, vector<256x128xf32> -> vector<256x128xf32>
    %58 = arith.addf %52, %57 : vector<256x128xf32>
    %c2_68 = arith.constant 2 : index
    %c2_69 = arith.constant 2 : index
    %c0_70 = arith.constant 0 : index
    %59 = vector.load %arg9[%c2_68, %c2_69, %c0_70] : memref<18x18x128xbf16, #tpu.memory_space<vmem>>, vector<16x16x128xbf16>
    %60 = vector.shape_cast %59 : vector<16x16x128xbf16> to vector<256x128xbf16>
    %c8 = arith.constant 8 : index
    %c0_71 = arith.constant 0 : index
    %c0_72 = arith.constant 0 : index
    %61 = vector.load %arg2[%c8, %c0_71, %c0_72] : memref<9x128x128xbf16, #tpu.memory_space<vmem>>, vector<1x128x128xbf16>
    %62 = vector.shape_cast %61 : vector<1x128x128xbf16> to vector<128x128xbf16>
    %cst_73 = arith.constant dense<0.000000e+00> : vector<256x128xf32>
    %63 = tpu.matmul %60, %62, %cst_73 {dimension_numbers = #tpu.dot_dimension_numbers<[1], [0], [0], [1], [0, 0, 1, 1], [], []>} : vector<256x128xbf16>, vector<128x128xbf16>, vector<256x128xf32> -> vector<256x128xf32>
    %64 = arith.addf %58, %63 : vector<256x128xf32>
    %c0_74 = arith.constant 0 : index
    %c0_75 = arith.constant 0 : index
    %65 = vector.load %arg4[%c0_74, %c0_75] : memref<1x128xf32, #tpu.memory_space<vmem>>, vector<1x128xf32>
    %66 = vector.shape_cast %65 : vector<1x128xf32> to vector<128xf32>
    %67 = vector.shape_cast %66 : vector<128xf32> to vector<1x128xf32>
    %68 = vector.broadcast %67 : vector<1x128xf32> to vector<256x128xf32>
    %69 = arith.mulf %64, %68 : vector<256x128xf32>
    %c0_76 = arith.constant 0 : index
    %c0_77 = arith.constant 0 : index
    %70 = vector.load %arg5[%c0_76, %c0_77] : memref<1x128xf32, #tpu.memory_space<vmem>>, vector<1x128xf32>
    %71 = vector.shape_cast %70 : vector<1x128xf32> to vector<128xf32>
    %72 = vector.shape_cast %71 : vector<128xf32> to vector<1x128xf32>
    %73 = vector.broadcast %72 : vector<1x128xf32> to vector<256x128xf32>
    %74 = arith.addf %69, %73 : vector<256x128xf32>
    %cst_78 = arith.constant 1.000000e-01 : f32
    %75 = vector.broadcast %cst_78 : f32 to vector<256x128xf32>
    %76 = arith.mulf %75, %74 : vector<256x128xf32>
    %77 = arith.maximumf %74, %76 : vector<256x128xf32>
    %78 = vector.shape_cast %77 : vector<256x128xf32> to vector<16x16x128xf32>
    %79 = arith.truncf %78 : vector<16x16x128xf32> to vector<16x16x128xbf16>
    %c1_79 = arith.constant 1 : index
    %c1_80 = arith.constant 1 : index
    %c0_81 = arith.constant 0 : index
    %80 = vector.load %arg9[%c1_79, %c1_80, %c0_81] : memref<18x18x128xbf16, #tpu.memory_space<vmem>>, vector<16x16x128xbf16>
    tpu.vector_store %arg9[%c1_79, %c1_80, %c0_81], %79 {strides = array<i32>} : memref<18x18x128xbf16, #tpu.memory_space<vmem>>, vector<16x16x128xbf16>,
    %cst_82 = arith.constant 0.000000e+00 : f32
    %81 = vector.broadcast %cst_82 : f32 to vector<256x128xf32>
    %c0_83 = arith.constant 0 : index
    %c0_84 = arith.constant 0 : index
    %c0_85 = arith.constant 0 : index
    %82 = vector.load %arg9[%c0_83, %c0_84, %c0_85] : memref<18x18x128xbf16, #tpu.memory_space<vmem>>, vector<16x16x128xbf16>
    %83 = vector.shape_cast %82 : vector<16x16x128xbf16> to vector<256x128xbf16>
    %c0_86 = arith.constant 0 : index
    %c0_87 = arith.constant 0 : index
    %c0_88 = arith.constant 0 : index
    %84 = vector.load %arg3[%c0_86, %c0_87, %c0_88] : memref<9x128x128xbf16, #tpu.memory_space<vmem>>, vector<1x128x128xbf16>
    %85 = vector.shape_cast %84 : vector<1x128x128xbf16> to vector<128x128xbf16>
    %cst_89 = arith.constant dense<0.000000e+00> : vector<256x128xf32>
    %86 = tpu.matmul %83, %85, %cst_89 {dimension_numbers = #tpu.dot_dimension_numbers<[1], [0], [0], [1], [0, 0, 1, 1], [], []>} : vector<256x128xbf16>, vector<128x128xbf16>, vector<256x128xf32> -> vector<256x128xf32>
    %87 = arith.addf %81, %86 : vector<256x128xf32>
    %c0_90 = arith.constant 0 : index
    %c1_91 = arith.constant 1 : index
    %c0_92 = arith.constant 0 : index
    %88 = vector.load %arg9[%c0_90, %c1_91, %c0_92] : memref<18x18x128xbf16, #tpu.memory_space<vmem>>, vector<16x16x128xbf16>
    %89 = vector.shape_cast %88 : vector<16x16x128xbf16> to vector<256x128xbf16>
    %c1_93 = arith.constant 1 : index
    %c0_94 = arith.constant 0 : index
    %c0_95 = arith.constant 0 : index
    %90 = vector.load %arg3[%c1_93, %c0_94, %c0_95] : memref<9x128x128xbf16, #tpu.memory_space<vmem>>, vector<1x128x128xbf16>
    %91 = vector.shape_cast %90 : vector<1x128x128xbf16> to vector<128x128xbf16>
    %cst_96 = arith.constant dense<0.000000e+00> : vector<256x128xf32>
    %92 = tpu.matmul %89, %91, %cst_96 {dimension_numbers = #tpu.dot_dimension_numbers<[1], [0], [0], [1], [0, 0, 1, 1], [], []>} : vector<256x128xbf16>, vector<128x128xbf16>, vector<256x128xf32> -> vector<256x128xf32>
    %93 = arith.addf %87, %92 : vector<256x128xf32>
    %c0_97 = arith.constant 0 : index
    %c2_98 = arith.constant 2 : index
    %c0_99 = arith.constant 0 : index
    %94 = vector.load %arg9[%c0_97, %c2_98, %c0_99] : memref<18x18x128xbf16, #tpu.memory_space<vmem>>, vector<16x16x128xbf16>
    %95 = vector.shape_cast %94 : vector<16x16x128xbf16> to vector<256x128xbf16>
    %c2_100 = arith.constant 2 : index
    %c0_101 = arith.constant 0 : index
    %c0_102 = arith.constant 0 : index
    %96 = vector.load %arg3[%c2_100, %c0_101, %c0_102] : memref<9x128x128xbf16, #tpu.memory_space<vmem>>, vector<1x128x128xbf16>
    %97 = vector.shape_cast %96 : vector<1x128x128xbf16> to vector<128x128xbf16>
    %cst_103 = arith.constant dense<0.000000e+00> : vector<256x128xf32>
    %98 = tpu.matmul %95, %97, %cst_103 {dimension_numbers = #tpu.dot_dimension_numbers<[1], [0], [0], [1], [0, 0, 1, 1], [], []>} : vector<256x128xbf16>, vector<128x128xbf16>, vector<256x128xf32> -> vector<256x128xf32>
    %99 = arith.addf %93, %98 : vector<256x128xf32>
    %c1_104 = arith.constant 1 : index
    %c0_105 = arith.constant 0 : index
    %c0_106 = arith.constant 0 : index
    %100 = vector.load %arg9[%c1_104, %c0_105, %c0_106] : memref<18x18x128xbf16, #tpu.memory_space<vmem>>, vector<16x16x128xbf16>
    %101 = vector.shape_cast %100 : vector<16x16x128xbf16> to vector<256x128xbf16>
    %c3_107 = arith.constant 3 : index
    %c0_108 = arith.constant 0 : index
    %c0_109 = arith.constant 0 : index
    %102 = vector.load %arg3[%c3_107, %c0_108, %c0_109] : memref<9x128x128xbf16, #tpu.memory_space<vmem>>, vector<1x128x128xbf16>
    %103 = vector.shape_cast %102 : vector<1x128x128xbf16> to vector<128x128xbf16>
    %cst_110 = arith.constant dense<0.000000e+00> : vector<256x128xf32>
    %104 = tpu.matmul %101, %103, %cst_110 {dimension_numbers = #tpu.dot_dimension_numbers<[1], [0], [0], [1], [0, 0, 1, 1], [], []>} : vector<256x128xbf16>, vector<128x128xbf16>, vector<256x128xf32> -> vector<256x128xf32>
    %105 = arith.addf %99, %104 : vector<256x128xf32>
    %c1_111 = arith.constant 1 : index
    %c1_112 = arith.constant 1 : index
    %c0_113 = arith.constant 0 : index
    %106 = vector.load %arg9[%c1_111, %c1_112, %c0_113] : memref<18x18x128xbf16, #tpu.memory_space<vmem>>, vector<16x16x128xbf16>
    %107 = vector.shape_cast %106 : vector<16x16x128xbf16> to vector<256x128xbf16>
    %c4_114 = arith.constant 4 : index
    %c0_115 = arith.constant 0 : index
    %c0_116 = arith.constant 0 : index
    %108 = vector.load %arg3[%c4_114, %c0_115, %c0_116] : memref<9x128x128xbf16, #tpu.memory_space<vmem>>, vector<1x128x128xbf16>
    %109 = vector.shape_cast %108 : vector<1x128x128xbf16> to vector<128x128xbf16>
    %cst_117 = arith.constant dense<0.000000e+00> : vector<256x128xf32>
    %110 = tpu.matmul %107, %109, %cst_117 {dimension_numbers = #tpu.dot_dimension_numbers<[1], [0], [0], [1], [0, 0, 1, 1], [], []>} : vector<256x128xbf16>, vector<128x128xbf16>, vector<256x128xf32> -> vector<256x128xf32>
    %111 = arith.addf %105, %110 : vector<256x128xf32>
    %c1_118 = arith.constant 1 : index
    %c2_119 = arith.constant 2 : index
    %c0_120 = arith.constant 0 : index
    %112 = vector.load %arg9[%c1_118, %c2_119, %c0_120] : memref<18x18x128xbf16, #tpu.memory_space<vmem>>, vector<16x16x128xbf16>
    %113 = vector.shape_cast %112 : vector<16x16x128xbf16> to vector<256x128xbf16>
    %c5_121 = arith.constant 5 : index
    %c0_122 = arith.constant 0 : index
    %c0_123 = arith.constant 0 : index
    %114 = vector.load %arg3[%c5_121, %c0_122, %c0_123] : memref<9x128x128xbf16, #tpu.memory_space<vmem>>, vector<1x128x128xbf16>
    %115 = vector.shape_cast %114 : vector<1x128x128xbf16> to vector<128x128xbf16>
    %cst_124 = arith.constant dense<0.000000e+00> : vector<256x128xf32>
    %116 = tpu.matmul %113, %115, %cst_124 {dimension_numbers = #tpu.dot_dimension_numbers<[1], [0], [0], [1], [0, 0, 1, 1], [], []>} : vector<256x128xbf16>, vector<128x128xbf16>, vector<256x128xf32> -> vector<256x128xf32>
    %117 = arith.addf %111, %116 : vector<256x128xf32>
    %c2_125 = arith.constant 2 : index
    %c0_126 = arith.constant 0 : index
    %c0_127 = arith.constant 0 : index
    %118 = vector.load %arg9[%c2_125, %c0_126, %c0_127] : memref<18x18x128xbf16, #tpu.memory_space<vmem>>, vector<16x16x128xbf16>
    %119 = vector.shape_cast %118 : vector<16x16x128xbf16> to vector<256x128xbf16>
    %c6_128 = arith.constant 6 : index
    %c0_129 = arith.constant 0 : index
    %c0_130 = arith.constant 0 : index
    %120 = vector.load %arg3[%c6_128, %c0_129, %c0_130] : memref<9x128x128xbf16, #tpu.memory_space<vmem>>, vector<1x128x128xbf16>
    %121 = vector.shape_cast %120 : vector<1x128x128xbf16> to vector<128x128xbf16>
    %cst_131 = arith.constant dense<0.000000e+00> : vector<256x128xf32>
    %122 = tpu.matmul %119, %121, %cst_131 {dimension_numbers = #tpu.dot_dimension_numbers<[1], [0], [0], [1], [0, 0, 1, 1], [], []>} : vector<256x128xbf16>, vector<128x128xbf16>, vector<256x128xf32> -> vector<256x128xf32>
    %123 = arith.addf %117, %122 : vector<256x128xf32>
    %c2_132 = arith.constant 2 : index
    %c1_133 = arith.constant 1 : index
    %c0_134 = arith.constant 0 : index
    %124 = vector.load %arg9[%c2_132, %c1_133, %c0_134] : memref<18x18x128xbf16, #tpu.memory_space<vmem>>, vector<16x16x128xbf16>
    %125 = vector.shape_cast %124 : vector<16x16x128xbf16> to vector<256x128xbf16>
    %c7_135 = arith.constant 7 : index
    %c0_136 = arith.constant 0 : index
    %c0_137 = arith.constant 0 : index
    %126 = vector.load %arg3[%c7_135, %c0_136, %c0_137] : memref<9x128x128xbf16, #tpu.memory_space<vmem>>, vector<1x128x128xbf16>
    %127 = vector.shape_cast %126 : vector<1x128x128xbf16> to vector<128x128xbf16>
    %cst_138 = arith.constant dense<0.000000e+00> : vector<256x128xf32>
    %128 = tpu.matmul %125, %127, %cst_138 {dimension_numbers = #tpu.dot_dimension_numbers<[1], [0], [0], [1], [0, 0, 1, 1], [], []>} : vector<256x128xbf16>, vector<128x128xbf16>, vector<256x128xf32> -> vector<256x128xf32>
    %129 = arith.addf %123, %128 : vector<256x128xf32>
    %c2_139 = arith.constant 2 : index
    %c2_140 = arith.constant 2 : index
    %c0_141 = arith.constant 0 : index
    %130 = vector.load %arg9[%c2_139, %c2_140, %c0_141] : memref<18x18x128xbf16, #tpu.memory_space<vmem>>, vector<16x16x128xbf16>
    %131 = vector.shape_cast %130 : vector<16x16x128xbf16> to vector<256x128xbf16>
    %c8_142 = arith.constant 8 : index
    %c0_143 = arith.constant 0 : index
    %c0_144 = arith.constant 0 : index
    %132 = vector.load %arg3[%c8_142, %c0_143, %c0_144] : memref<9x128x128xbf16, #tpu.memory_space<vmem>>, vector<1x128x128xbf16>
    %133 = vector.shape_cast %132 : vector<1x128x128xbf16> to vector<128x128xbf16>
    %cst_145 = arith.constant dense<0.000000e+00> : vector<256x128xf32>
    %134 = tpu.matmul %131, %133, %cst_145 {dimension_numbers = #tpu.dot_dimension_numbers<[1], [0], [0], [1], [0, 0, 1, 1], [], []>} : vector<256x128xbf16>, vector<128x128xbf16>, vector<256x128xf32> -> vector<256x128xf32>
    %135 = arith.addf %129, %134 : vector<256x128xf32>
    %c0_146 = arith.constant 0 : index
    %c0_147 = arith.constant 0 : index
    %136 = vector.load %arg6[%c0_146, %c0_147] : memref<1x128xf32, #tpu.memory_space<vmem>>, vector<1x128xf32>
    %137 = vector.shape_cast %136 : vector<1x128xf32> to vector<128xf32>
    %138 = vector.shape_cast %137 : vector<128xf32> to vector<1x128xf32>
    %139 = vector.broadcast %138 : vector<1x128xf32> to vector<256x128xf32>
    %140 = arith.mulf %135, %139 : vector<256x128xf32>
    %c0_148 = arith.constant 0 : index
    %c0_149 = arith.constant 0 : index
    %141 = vector.load %arg7[%c0_148, %c0_149] : memref<1x128xf32, #tpu.memory_space<vmem>>, vector<1x128xf32>
    %142 = vector.shape_cast %141 : vector<1x128xf32> to vector<128xf32>
    %143 = vector.shape_cast %142 : vector<128xf32> to vector<1x128xf32>
    %144 = vector.broadcast %143 : vector<1x128xf32> to vector<256x128xf32>
    %145 = arith.addf %140, %144 : vector<256x128xf32>
    %c0_150 = arith.constant 0 : index
    %c0_151 = arith.constant 0 : index
    %c0_152 = arith.constant 0 : index
    %c0_153 = arith.constant 0 : index
    %146 = vector.load %arg1[%c0_150, %c0_151, %c0_152, %c0_153] : memref<1x16x16x128xf32, #tpu.memory_space<vmem>>, vector<1x16x16x128xf32>
    %147 = vector.shape_cast %146 : vector<1x16x16x128xf32> to vector<16x16x128xf32>
    %148 = vector.shape_cast %147 : vector<16x16x128xf32> to vector<256x128xf32>
    %149 = arith.addf %148, %145 : vector<256x128xf32>
    %cst_154 = arith.constant 1.000000e-01 : f32
    %150 = vector.broadcast %cst_154 : f32 to vector<256x128xf32>
    %151 = arith.mulf %150, %149 : vector<256x128xf32>
    %152 = arith.maximumf %149, %151 : vector<256x128xf32>
    %153 = vector.shape_cast %152 : vector<256x128xf32> to vector<1x16x16x128xf32>
    %154 = arith.truncf %153 : vector<1x16x16x128xf32> to vector<1x16x16x128xbf16>
    %c0_155 = arith.constant 0 : index
    %c0_156 = arith.constant 0 : index
    %c0_157 = arith.constant 0 : index
    %c0_158 = arith.constant 0 : index
    %155 = vector.load %arg8[%c0_155, %c0_156, %c0_157, %c0_158] : memref<1x16x16x128xbf16, #tpu.memory_space<vmem>>, vector<1x16x16x128xbf16>
    tpu.vector_store %arg8[%c0_155, %c0_156, %c0_157, %c0_158], %154 {strides = array<i32>} : memref<1x16x16x128xbf16, #tpu.memory_space<vmem>>, vector<1x16x16x128xbf16>,
    return
  }
  func.func @transform_0(%arg0: i32) -> (i32, i32, i32, i32) {
    %c0_i32 = arith.constant 0 : i32
    %c0_i32_0 = arith.constant 0 : i32
    %c0_i32_1 = arith.constant 0 : i32
    %c0_i32_2 = arith.constant 0 : i32
    return %arg0, %c0_i32, %c0_i32_0, %c0_i32_1 : i32, i32, i32, i32
  }
  func.func @transform_1(%arg0: i32) -> (i32, i32, i32) {
    %c0_i32 = arith.constant 0 : i32
    %c0_i32_0 = arith.constant 0 : i32
    %c0_i32_1 = arith.constant 0 : i32
    %c0_i32_2 = arith.constant 0 : i32
    return %c0_i32, %c0_i32_0, %c0_i32_1 : i32, i32, i32
  }
  func.func @transform_2(%arg0: i32) -> (i32, i32, i32) {
    %c0_i32 = arith.constant 0 : i32
    %c0_i32_0 = arith.constant 0 : i32
    %c0_i32_1 = arith.constant 0 : i32
    %c0_i32_2 = arith.constant 0 : i32
    return %c0_i32, %c0_i32_0, %c0_i32_1 : i32, i32, i32
  }
  func.func @transform_3(%arg0: i32) -> (i32, i32) {
    %c0_i32 = arith.constant 0 : i32
    %c0_i32_0 = arith.constant 0 : i32
    %c0_i32_1 = arith.constant 0 : i32
    return %c0_i32, %c0_i32_0 : i32, i32
  }
  func.func @transform_4(%arg0: i32) -> (i32, i32) {
    %c0_i32 = arith.constant 0 : i32
    %c0_i32_0 = arith.constant 0 : i32
    %c0_i32_1 = arith.constant 0 : i32
    return %c0_i32, %c0_i32_0 : i32, i32
  }
  func.func @transform_5(%arg0: i32) -> (i32, i32) {
    %c0_i32 = arith.constant 0 : i32
    %c0_i32_0 = arith.constant 0 : i32
    %c0_i32_1 = arith.constant 0 : i32
    return %c0_i32, %c0_i32_0 : i32, i32
  }
  func.func @transform_6(%arg0: i32) -> (i32, i32) {
    %c0_i32 = arith.constant 0 : i32
    %c0_i32_0 = arith.constant 0 : i32
    %c0_i32_1 = arith.constant 0 : i32
    return %c0_i32, %c0_i32_0 : i32, i32
  }
  func.func @transform_7(%arg0: i32) -> (i32, i32, i32, i32) {
    %c0_i32 = arith.constant 0 : i32
    %c0_i32_0 = arith.constant 0 : i32
    %c0_i32_1 = arith.constant 0 : i32
    %c0_i32_2 = arith.constant 0 : i32
    return %arg0, %c0_i32, %c0_i32_0, %c0_i32_1 : i32, i32, i32, i32
  }
}

</mosaic_0001>

<bundles_post_ra>
// kernel: resblock_pallas.1
= control target key start
LH: loop header
LB: loop body
LE: loop exit
PB: predicated region body
PF: predicated region fallthrough
CT: control target
= control target key end

     0   :  { %s14382_s24 = smov 0   ;;  %s19462_s0 = inlined_call_operand.vmem [shape: f32[2,16,16,128], index: 0, kind: input, shape index: {}]   ;;  %s19463_s1 = inlined_call_operand.vmem [shape: bf16[9,128,128], index: 1, kind: input, shape index: {}]   ;;  %s19464_s2 = inlined_call_operand.vmem [shape: bf16[9,128,128], index: 2, kind: input, shape index: {}]   ;;  %s19465_s3 = inlined_call_operand.vmem [shape: f32[1,128], index: 3, kind: input, shape index: {}]   ;;  %s19466_s4 = inlined_call_operand.vmem [shape: f32[1,128], index: 4, kind: input, shape index: {}]   ;;  %s19467_s5 = inlined_call_operand.vmem [shape: f32[1,128], index: 5, kind: input, shape index: {}]   ;;  %s19468_s6 = inlined_call_operand.vmem [shape: f32[1,128], index: 6, kind: input, shape index: {}]   ;;  %s19469_s7 = inlined_call_operand.vmem [shape: bf16[2,16,16,128], index: 7, kind: output, shape index: {}]  }
   0x1 LB: > { %s11664_s25 = sadd.s32 4294967295, %s14339_s24   ;;  %p11668_p0 = scmp.ge.s32.totalorder %s14339_s24, 1  ;;  %s14339_s24 = sphi %s14382_s24, %s17_s24  }
   0x2   : > { %p237_p1 = scmp.lt.s32.totalorder %s14339_s24, 3 }
   0x4   : > { %p238_p2 = pnand %p11668_p0, %p237_p1 }
   0x6   : > { %241 = sbr.rel (%p238_p2) target bundleno = 1229 (0x4cd), region = 48 }
   0xb   : > { %v14057_v0 = vld [vmem:[%s19463_s1 + $0x78] sm:$0xff]   ;;  %v14341_v2 = vmov 0   ;;  %v14059_v3 = vld [vmem:[%s19463_s1 + $0x70] sm:$0xff]   ;;  %v14061_v5 = vld [vmem:[%s19463_s1 + $0x68] sm:$0xff]   ;;  %p269_p3 = scmp.lt.s32.totalorder %s11664_s25, 1  ;;  %vm287_vm0 = vcmask 1040384  }
   0xc   : > { %v14058_v1 = vld [vmem:[%s19463_s1 + $0x38] sm:$0xff]   ;;  %280 = vst [vmem:[#allocation2] sm:$0xf] %v14341_v2  ;;  %281 = vst [vmem:[#allocation2 + $0x4] sm:$0xf] %v14341_v2  ;;  %13184 = vmatprep.subr.bf16.mxu0 %v14057_v0  ;;  %v14060_v4 = vld [vmem:[%s19463_s1 + $0x30] sm:$0xff]  }
   0xd   : > { %282 = vst [vmem:[#allocation2 + $0x8] sm:$0x1] %v14341_v2  ;;  %284 = vst [vmem:[#allocation2 + $0xcc] sm:$0xf] %v14341_v2  ;;  %13232 = vmatprep.subr.bf16.mxu1 %v14058_v1  ;;  %13185 = vmatpush3.bf16.msra.mxu0 %v14057_v0  ;;  %v14062_v6 = vld [vmem:[%s19463_s1 + $0x28] sm:$0xff]   ;;  %v14063_v7 = vld [vmem:[%s19463_s1 + $0x60] sm:$0xff]  }
   0xe   : > { %285 = vst [vmem:[#allocation2 + $0xd0] sm:$0xf] %v14341_v2  ;;  %286 = vst [vmem:[#allocation2 + $0xd4] sm:$0x1] %v14341_v2  ;;  %13233 = vmatpush3.bf16.msra.mxu1 %v14058_v1  ;;  %13186 = vmatprep.subr.bf16.mxu0 %v14059_v3  ;;  %s19810_s25 = smov (!%p269_p3, %s11664_s25), 1  ;;  %v14064_v8 = vld [vmem:[%s19463_s1 + $0x20] sm:$0xff]  }
   0xf   : > { %13234 = vmatprep.subr.bf16.mxu1 %v14060_v4  ;;  %v14065_v9 = vld [vmem:[%s19463_s1 + $0x58] sm:$0xff]   ;;  %s12559_s21 = sshll.u32 %s19810_s25, 8  ;;  %v14067_v11 = vld [vmem:[%s19463_s1 + $0x50] sm:$0xff]   ;;  %vm288_vm1 = vsmask.f32 256  ;;  %v19496_v14 = vmov 0 }
  0x10   : > { %v14066_v10 = vld [vmem:[%s19463_s1 + $0x18] sm:$0xff]   ;;  %v14068_v12 = vld [vmem:[%s19463_s1 + $0x10] sm:$0xff]   ;;  %s14432_s9 = scalar_lea.vmem %s19462_s0, %s12559_s21  ;;  %vm344_vm2 = vsmask.f32 7938  ;;  %vm14436_vm3 = vmand %vm287_vm0, %vm288_vm1  ;;  %vm851_vm4 = vcmask 1043456   ;;  %v19501_v50 = vmov 0 }
  0x11   : > { %13187 = vmatpush3.bf16.msra.mxu0 %v14059_v3  ;;  %v19497_v14 = vsel %vm14436_vm3, 4294967295, %v19496_v14  ;;  %vm14446_vm5 = vmand %vm287_vm0, %vm344_vm2  ;;  %vm1029_vm6 = vsmask.f32 3328  ;;  %v400_v21 = vld [vmem:[%s14432_s9] sm:$0xff]  ;;  %v14069_v22 = vld [vmem:[%s19463_s1 + $0x48] sm:$0xff]   ;;  %v19504_v58 = vmov 0 }
  0x12   : > { %13235 = vmatpush3.bf16.msra.mxu1 %v14060_v4  ;;  %13188 = vmatprep.subr.bf16.mxu0 %v14061_v5  ;;  %19498 = vst [vmem:[#allocation3_spill] sm:$0xff] %v19497_v14  ;;  %v293_v24 = vld [vmem:[#allocation2 + $0xc] sm:$0x1]  ;;  %v349_v25 = vld [vmem:[#allocation2 + $0x14] sm:$0x1]  ;;  %v12561_v26 = vpack.c.bf16 %v400_v21, %v400_v21  ;;  %v14471_v36 = vld [vmem:[%s19463_s1 + $0x40] sm:$0xff]  }
  0x13   : > { %13236 = vmatprep.subr.bf16.mxu1 %v14062_v6  ;;  %v290_v13 = vld [vmem:[#allocation2] sm:$0x1]  ;;  %v14440_v16 = vld [vmem:[#allocation2 + $0x4] sm:$0xf]  ;;  %v14070_v27 = vld [vmem:[%s19463_s1 + $0x8] sm:$0xff]   ;;  %v294_v30 = vsel %vm14436_vm3, 0, %v293_v24 }
  0x14   : > { %v346_v15 = vld [vmem:[#allocation2 + $0x8] sm:$0x1]  ;;  %v291_v17 = vsel %vm14436_vm3, 0, %v290_v13  ;;  %v1042_v19 = vshll.u32 %v14440_v16, 16  ;;  %v1046_v20 = vshrl.u32 %v14440_v16, 16  ;;  %v350_v31 = vsel %vm14446_vm5, 0, %v349_v25  ;;  %vm14489_vm9 = vmand %vm851_vm4, %vm344_vm2 }
  0x15   : > { %13189 = vmatpush3.bf16.msra.mxu0 %v14061_v5  ;;  %292 = vst [vmem:[#allocation2] sm:$0x1] %v291_v17  ;;  %v347_v23 = vsel %vm14446_vm5, 0, %v346_v15  ;;  %v401_v32 = vld [vmem:[%s14432_s9 + $0x8] sm:$0xff]  ;;  %vm1030_vm7 = vsmask.f32 7440 }
  0x16   : > { %13237 = vmatpush3.bf16.msra.mxu1 %v14062_v6  ;;  %13190 = vmatprep.subr.bf16.mxu0 %v14063_v7  ;;  %348 = vst [vmem:[#allocation2 + $0x8] sm:$0x1] %v347_v23  ;;  %v14461_v28 = vrot.slane %v1042_v19, 5  ;;  %v1048_v29 = vrot.slane %v1046_v20, 4  ;;  %295 = vst [vmem:[#allocation2 + $0xc] sm:$0x1] %v294_v30  ;;  %v12562_v33 = vpack.c.bf16 %v401_v32, %v401_v32 }
  0x17   : > { %13238 = vmatprep.subr.bf16.mxu1 %v14064_v8  ;;  %351 = vst [vmem:[#allocation2 + $0x14] sm:$0x1] %v350_v31  ;;  %v531_v34 = vshrl.u32 %v12561_v26, 16  ;;  %v534_v35 = vshll.u32 %v12561_v26, 16  ;;  %vm528_vm8 = vsmask.f32 4368  ;;  %vm14518_vm11 = vmor %vm1029_vm6, %vm1030_vm7 }
  0x18   : > { %v1049_v37 = vor.u32 %v1048_v29, %v14461_v28  ;;  %v296_v38 = vld [vmem:[#allocation2 + $0x18] sm:$0x1]  ;;  %v14477_v39 = vld [vmem:[%s19463_s1] sm:$0xff]   ;;  %v539_v41 = vshrl.u32 %v12562_v33, 16  ;;  %v542_v42 = vshll.u32 %v12562_v33, 16  ;;  %v402_v47 = vld [vmem:[%s14432_s9 + $0x10] sm:$0xff] }
  0x19   : > { %13191 = vmatpush3.bf16.msra.mxu0 %v14063_v7  ;;  %v533_v40 = vrot.slane %v531_v34, 7  ;;  %v297_v43 = vsel %vm14436_vm3, 0, %v296_v38  ;;  %v352_v44 = vld [vmem:[#allocation2 + $0x20] sm:$0x1]  ;;  %v403_v48 = vld [vmem:[%s14432_s9 + $0x18] sm:$0xff]  ;;  %v19502_v50 = vsel %vm14489_vm9, 4294967295, %v19501_v50  ;;  %v12563_v54 = vpack.c.bf16 %v402_v47, %v402_v47  ;;  %vm14496_vm10 = vmor %vm288_vm1, %vm528_vm8 }
  0x1a   : > { %13239 = vmatpush3.bf16.msra.mxu1 %v14064_v8  ;;  %13192 = vmatprep.subr.bf16.mxu0 %v14065_v9  ;;  %v14481_v45 = vrot.slane %v1049_v37, 4  ;;  %298 = vst [vmem:[#allocation2 + $0x18] sm:$0x1] %v297_v43  ;;  %v353_v46 = vsel %vm14446_vm5, 0, %v352_v44  ;;  %v299_v49 = vld [vmem:[#allocation2 + $0x24] sm:$0x1]  ;;  %v12564_v60 = vpack.c.bf16 %v403_v48, %v403_v48 }
  0x1b   : > { %13240 = vmatprep.subr.bf16.mxu1 %v14066_v10  ;;  %19503 = vst [vmem:[#allocation4_spill] sm:$0xff] %v19502_v50  ;;  %v536_v51 = vor.u32 %v534_v35, %v533_v40  ;;  %v537_v52 = vrot.slane %v533_v40, 4  ;;  %v541_v53 = vrot.slane %v539_v41, 7  ;;  %354 = vst [vmem:[#allocation2 + $0x20] sm:$0x1] %v353_v46  ;;  %v404_v56 = vld [vmem:[%s14432_s9 + $0x20] sm:$0xff] }
  0x1c   : > { %v355_v55 = vld [vmem:[#allocation2 + $0x2c] sm:$0x1]  ;;  %v965_v57 = vld [vmem:[#allocation2] sm:$0xf]  ;;  %v19505_v58 = vsel %vm14496_vm10, 4294967295, %v19504_v58  ;;  %v14503_v59 = vld [vmem:[%s19463_s1 + $0xb8] sm:$0xff]  }
  0x1d   : > { %13193 = vmatpush3.bf16.msra.mxu0 %v14065_v9  ;;  %19506 = vst [vmem:[#allocation5_spill] sm:$0xff] %v19505_v58  ;;  %v300_v61 = vsel %vm14436_vm3, 0, %v299_v49  ;;  %v356_v62 = vsel %vm14446_vm5, 0, %v355_v55  ;;  %v14509_v63 = vld [vmem:[#allocation2 + $0x8] sm:$0x1]  ;;  %v1033_v0 = vshrl.u32 %v965_v57, 16  ;;  %v11745_v2 = vcombine.low %v965_v57, %v14440_v16 }
  0x1e   : > { %13241 = vmatpush3.bf16.msra.mxu1 %v14066_v10  ;;  %13194 = vmatprep.subr.bf16.mxu0 %v14067_v11  ;;  %v1036_v1 = vshll.u32 %v965_v57, 16  ;;  %v544_v3 = vor.u32 %v542_v42, %v541_v53  ;;  %301 = vst [vmem:[#allocation2 + $0x24] sm:$0x1] %v300_v61  ;;  %357 = vst [vmem:[#allocation2 + $0x2c] sm:$0x1] %v356_v62  ;;  %v1052_v4 = vshll.u32 %v14509_v63, 16 }
  0x1f   : > { %13242 = vmatprep.subr.bf16.mxu1 %v14068_v12  ;;  %v546_v5 = vrot.slane %v541_v53, 4  ;;  %v853_v6 = vld [vmem:[#allocation2 + $0xc] sm:$0xf]  ;;  %v548_v7 = vshrl.u32 %v12563_v54, 16  ;;  %v12565_v9 = vpack.c.bf16 %v404_v56, %v404_v56  ;;  %v19507_v10 = vmov 0  ;;  %13248 = vmatprep.mubr.bf16.mxu1 %v11745_v2  ;;  %v14167_v58 = vld [vmem:[%s19463_s1 + $0x218] sm:$0xff]  }
  0x20   : > { %v405_v8 = vld [vmem:[%s14432_s9 + $0x28] sm:$0xff]  ;;  %v19508_v10 = vsel %vm14518_vm11, 4294967295, %v19507_v10  ;;  %v545_v13 = vsel %vm14496_vm10, %v537_v52, %v544_v3  ;;  %v854_v15 = vsel %vm14489_vm9, %v536_v51, %v853_v6  ;;  %v857_v16 = vld [vmem:[#allocation2 + $0x14] sm:$0x1]  ;;  %v1054_v17 = vrot.slane %v1052_v4, 5  ;;  %s12560_s10 = sshll.u32 %s19810_s25, 7 }
  0x21   : > { %13195 = vmatpush3.bf16.msra.mxu0 %v14067_v11  ;;  %19509 = vst [vmem:[#allocation6_spill] sm:$0xff] %v19508_v10  ;;  %v1035_v11 = vrot.slane %v1033_v0, 4  ;;  %855 = vst [vmem:[#allocation2 + $0xc] sm:$0xf] %v854_v15  ;;  %v858_v19 = vsel %vm14436_vm3, %v546_v5, %v857_v16  ;;  %v550_v20 = vrot.slane %v548_v7, 7  ;;  %v551_v21 = vshll.u32 %v12563_v54, 16  ;;  %s19311_s12 = scalar_lea.vmem %s19469_s7, %s12560_s10 }
  0x22   : > { %13243 = vmatpush3.bf16.msra.mxu1 %v14068_v12  ;;  %13196 = vmatprep.subr.bf16.mxu0 %v14069_v22  ;;  %v1038_v12 = vrot.slane %v1036_v1, 5  ;;  %856 = vst [vmem:[#allocation2 + $0x10] sm:$0xf] %v545_v13  ;;  %859 = vst [vmem:[#allocation2 + $0x14] sm:$0x1] %v858_v19  ;;  %v556_v23 = vshrl.u32 %v12564_v60, 16  ;;  %v12566_v26 = vpack.c.bf16 %v405_v8, %v405_v8 }
  0x23   : > { %13244 = vmatprep.subr.bf16.mxu1 %v14070_v27  ;;  %v559_v24 = vshll.u32 %v12564_v60, 16  ;;  %v860_v25 = vld [vmem:[#allocation2 + $0x18] sm:$0xf]  ;;  %v1055_v29 = vsel %vm14518_vm11, %v14481_v45, %v1054_v17  ;;  %v553_v30 = vor.u32 %v551_v21, %v550_v20  ;;  %v554_v31 = vrot.slane %v550_v20, 4  ;;  %v302_v37 = vld [vmem:[#allocation2 + $0x30] sm:$0x1] }
  0x24   : > { %v565_v32 = vshrl.u32 %v12565_v9, 16  ;;  %v558_v34 = vrot.slane %v556_v23, 7  ;;  %v568_v35 = vshll.u32 %v12565_v9, 16  ;;  %v864_v40 = vld [vmem:[#allocation2 + $0x20] sm:$0x1]  ;;  %v303_v53 = vsel %vm14436_vm3, 0, %v302_v37 }
  0x25   : > { %13197 = vmatpush3.bf16.msra.mxu0 %v14069_v22  ;;  %v1039_v22 = vor.u32 %v1038_v12, %v1035_v11  ;;  %v861_v38 = vsel %vm14489_vm9, %v553_v30, %v860_v25  ;;  %v867_v51 = vld [vmem:[#allocation2 + $0x24] sm:$0xf]  ;;  %v871_v52 = vld [vmem:[#allocation2 + $0x2c] sm:$0x1]  ;;  %v358_v54 = vld [vmem:[#allocation2 + $0x38] sm:$0x1] }
  0x26   : > { %13245 = vmatpush3.bf16.msra.mxu1 %v14070_v27  ;;  %13198 = vmatprep.subr.bf16.mxu0 %v14471_v36  ;;  %v406_v27 = vld [vmem:[%s14432_s9 + $0x30] sm:$0xff]  ;;  %v567_v41 = vrot.slane %v565_v32, 7  ;;  %v561_v44 = vor.u32 %v559_v24, %v558_v34  ;;  %v563_v45 = vrot.slane %v558_v34, 4  ;;  %862 = vst [vmem:[#allocation2 + $0x18] sm:$0xf] %v861_v38  ;;  %v2067_v4 = vrot.slane %v14509_v63, 5 }
  0x27   : > { %13246 = vmatprep.subr.bf16.mxu1 %v14477_v39  ;;  %v1040_v33 = vrot.slane %v1039_v22, 4  ;;  %v14537_v42 = vpack.c.bf16 %v406_v27, %v406_v27  ;;  %304 = vst [vmem:[#allocation2 + $0x30] sm:$0x1] %v303_v53  ;;  %v407_v8 = vld [vmem:[%s14432_s9 + $0x38] sm:$0xff]  ;;  %v359_v20 = vsel %vm14446_vm5, 0, %v358_v54  ;;  %v408_v21 = vld [vmem:[%s14432_s9 + $0x40] sm:$0xff] }
  0x28   : > { %v570_v48 = vor.u32 %v568_v35, %v567_v41  ;;  %v571_v49 = vrot.slane %v567_v41, 4  ;;  %v967_v55 = vld [vmem:[#allocation2 + $0xc] sm:$0xf]  ;;  %v562_v57 = vsel %vm14496_vm10, %v554_v31, %v561_v44  ;;  %v305_v15 = vld [vmem:[#allocation2 + $0x3c] sm:$0x1]  ;;  %v14559_v25 = vpack.c.bf16 %v407_v8, %v407_v8  ;;  %v14078_v54 = vld [vmem:[%s19463_s1 + $0xb0] sm:$0xff]  }
  0x29   : > { %13199 = vmatpush3.bf16.msra.mxu0 %v14471_v36  ;;  %v573_v36 = vshrl.u32 %v12566_v26, 16  ;;  %v1045_v43 = vsel %vm14518_vm11, %v1040_v33, %v14461_v28  ;;  %v968_v56 = vld [vmem:[#allocation2 + $0x10] sm:$0xf]  ;;  %v865_v28 = vsel %vm14436_vm3, %v563_v45, %v864_v40  ;;  %v1014_v62 = vld [vmem:[#allocation2 + $0x14] sm:$0x1]  ;;  %v1057_v0 = vshrl.u32 %v967_v55, 16 }
  0x2a   : > { %13247 = vmatpush3.bf16.msra.mxu1 %v14477_v39  ;;  %13280 = vmatprep.subr.bf16.mxu0 %v14503_v59  ;;  %v576_v39 = vshll.u32 %v12566_v26, 16  ;;  %v11721_v47 = vcombine.low %v1045_v43, %v1055_v29  ;;  %v1060_v1 = vshll.u32 %v967_v55, 16  ;;  %v1066_v2 = vshll.u32 %v968_v56, 16  ;;  %863 = vst [vmem:[#allocation2 + $0x1c] sm:$0xf] %v562_v57  ;;  %v409_v27 = vld [vmem:[%s14432_s9 + $0x48] sm:$0xff] }
  0x2b   : > { %v575_v46 = vrot.slane %v573_v36, 7  ;;  %v1070_v3 = vshrl.u32 %v968_v56, 16  ;;  %866 = vst [vmem:[#allocation2 + $0x20] sm:$0x1] %v865_v28  ;;  %v1076_v5 = vshll.u32 %v1014_v62, 16  ;;  %v11746_v6 = vcombine.low %v967_v55, %v968_v56 }
  0x2c   : > { %13200 = vmatprep.mubr.bf16.mxu0 %v11721_v47  ;;  %v1059_v9 = vrot.slane %v1057_v0, 4  ;;  %v1062_v11 = vrot.slane %v1060_v1, 5  ;;  %v1068_v12 = vrot.slane %v1066_v2, 5  ;;  %v868_v17 = vsel %vm14489_vm9, %v570_v48, %v867_v51  ;;  %360 = vst [vmem:[#allocation2 + $0x38] sm:$0x1] %v359_v20  ;;  %v410_v47 = vld [vmem:[%s14432_s9 + $0x50] sm:$0xff] }
  0x2d   : > { %v578_v60 = vor.u32 %v576_v39, %v575_v46  ;;  %v580_v61 = vrot.slane %v575_v46, 4  ;;  %v1072_v13 = vrot.slane %v1070_v3, 4  ;;  %v1078_v16 = vrot.slane %v1076_v5, 5  ;;  %13249 = vmatmul.mubr.bf16.vlgmr.msra.gmra.mxu1 %v11746_v6  ;;  %v969_v24 = vld [vmem:[#allocation2 + $0x18] sm:$0xf] }
  0x2e   : > { %v1063_v22 = vor.u32 %v1062_v11, %v1059_v9  ;;  %869 = vst [vmem:[#allocation2 + $0x24] sm:$0xf] %v868_v17  ;;  %v582_v26 = vshrl.u32 %v14537_v42, 16  ;;  %v1081_v29 = vshrl.u32 %v969_v24, 16  ;;  %v1084_v30 = vshll.u32 %v969_v24, 16 }
  0x2f   : > { %v579_v7 = vsel %vm14496_vm10, %v571_v49, %v578_v60  ;;  %v872_v19 = vsel %vm14436_vm3, %v580_v61, %v871_v52  ;;  %v1073_v23 = vor.u32 %v1072_v13, %v1068_v12  ;;  %v585_v31 = vshll.u32 %v14537_v42, 16  ;;  %v361_v8 = vld [vmem:[#allocation2 + $0x44] sm:$0x1] }
  0x30   : > { %870 = vst [vmem:[#allocation2 + $0x28] sm:$0xf] %v579_v7  ;;  %873 = vst [vmem:[#allocation2 + $0x2c] sm:$0x1] %v872_v19  ;;  %v306_v32 = vsel %vm14436_vm3, 0, %v305_v15  ;;  %v1064_v33 = vrot.slane %v1063_v22, 4  ;;  %v14569_v39 = vpack.c.bf16 %v408_v21, %v408_v21  ;;  %v14571_v43 = vpack.c.bf16 %v409_v27, %v409_v27 }
  0x31   : > { %v1074_v34 = vrot.slane %v1073_v23, 4  ;;  %v14566_v35 = vrot.slane %v582_v26, 7  ;;  %v590_v36 = vshrl.u32 %v14559_v25, 16  ;;  %307 = vst [vmem:[#allocation2 + $0x3c] sm:$0x1] %v306_v32  ;;  %v1083_v40 = vrot.slane %v1081_v29, 4 }
  0x32   : > { %v970_v37 = vld [vmem:[#allocation2 + $0x1c] sm:$0xf]  ;;  %v1015_v38 = vld [vmem:[#allocation2 + $0x20] sm:$0x1]  ;;  %v1086_v41 = vrot.slane %v1084_v30, 5  ;;  %v1069_v42 = vsel %vm14518_vm11, %v1064_v33, %v1068_v12  ;;  %v14582_v2 = vpack.c.bf16 %v410_v47, %v410_v47  ;;  %v593_v26 = vshll.u32 %v14559_v25, 16 }
  0x33   : > { %v1079_v44 = vsel %vm14518_vm11, %v1074_v34, %v1078_v16  ;;  %v1090_v45 = vshll.u32 %v970_v37, 16  ;;  %v1094_v46 = vshrl.u32 %v970_v37, 16  ;;  %v1100_v51 = vshll.u32 %v1015_v38, 16  ;;  %v874_v15 = vld [vmem:[#allocation2 + $0x30] sm:$0xf]  ;;  %v14081_v16 = vld [vmem:[%s19463_s1 + $0xa8] sm:$0xff]  }
  0x34   : > { %v11722_v48 = vcombine.low %v1069_v42, %v1079_v44  ;;  %v1087_v49 = vor.u32 %v1086_v41, %v1083_v40  ;;  %v11747_v52 = vcombine.low %v969_v24, %v970_v37  ;;  %v587_v1 = vor.u32 %v585_v31, %v14566_v35  ;;  %v878_v21 = vld [vmem:[#allocation2 + $0x38] sm:$0x1]  ;;  %v308_v27 = vld [vmem:[#allocation2 + $0x48] sm:$0x1]  ;;  %v14595_v29 = vld [vmem:[%s19463_s1 + $0xa0] sm:$0xff]  }
  0x35   : > { %v1092_v55 = vrot.slane %v1090_v45, 5  ;;  %v1096_v56 = vrot.slane %v1094_v46, 4  ;;  %v1102_v61 = vrot.slane %v1100_v51, 5  ;;  %v971_v62 = vld [vmem:[#allocation2 + $0x24] sm:$0xf]  ;;  %v588_v20 = vrot.slane %v14566_v35, 4 }
  0x36   : > { %13201 = vmatmul.mubr.bf16.vlgmr.msra.gmra.mxu0 %v11722_v48  ;;  %v1088_v60 = vrot.slane %v1087_v49, 4  ;;  %13252 = vmatprep.mubr.bf16.mxu1 %v11747_v52  ;;  %v1105_v5 = vshrl.u32 %v971_v62, 16  ;;  %v1108_v6 = vshll.u32 %v971_v62, 16  ;;  %v592_v24 = vrot.slane %v590_v36, 7  ;;  %v14088_v30 = vld [vmem:[%s19463_s1 + $0xf8] sm:$0xff]   ;;  %v14089_v36 = vld [vmem:[%s19463_s1 + $0xf0] sm:$0xff]  }
  0x37   : > { %v972_v53 = vld [vmem:[#allocation2 + $0x28] sm:$0xf]  ;;  %v1016_v0 = vld [vmem:[#allocation2 + $0x2c] sm:$0x1]  ;;  %13281 = vmatpush3.bf16.msra.mxu0 %v14503_v59  ;;  %v1097_v3 = vor.u32 %v1096_v56, %v1092_v55  ;;  %v875_v33 = vsel %vm14489_vm9, %v587_v1, %v874_v15  ;;  %v362_v25 = vsel %vm14446_vm5, 0, %v361_v8  ;;  %v411_v35 = vld [vmem:[%s14432_s9 + $0x58] sm:$0xff]  ;;  %13328 = vmatprep.subr.bf16.mxu1 %v14088_v30 }
  0x38   : > { %v1114_v57 = vshll.u32 %v972_v53, 16  ;;  %v1118_v28 = vshrl.u32 %v972_v53, 16  ;;  %v1093_v9 = vsel %vm14518_vm11, %v1088_v60, %v1092_v55  ;;  %v1124_v12 = vshll.u32 %v1016_v0, 16  ;;  %13282 = vmatprep.subr.bf16.mxu0 %v14078_v54  ;;  %v364_v34 = vld [vmem:[#allocation2 + $0x50] sm:$0x1]  ;;  %13329 = vmatpush3.bf16.msra.mxu1 %v14088_v30  ;;  %v413_v0 = vld [vmem:[%s14432_s9 + $0x68] sm:$0xff] }
  0x39   : > { %v11748_v13 = vcombine.low %v971_v62, %v972_v53  ;;  %v1098_v17 = vrot.slane %v1097_v3, 4  ;;  %v1107_v19 = vrot.slane %v1105_v5, 4  ;;  %v1110_v59 = vrot.slane %v1108_v6, 5  ;;  %876 = vst [vmem:[#allocation2 + $0x30] sm:$0xf] %v875_v33  ;;  %13330 = vmatprep.subr.bf16.mxu1 %v14089_v36  ;;  %v412_v62 = vld [vmem:[%s14432_s9 + $0x60] sm:$0xff] }
  0x3a   : > { %v1116_v7 = vrot.slane %v1114_v57, 5  ;;  %v1120_v11 = vrot.slane %v1118_v28, 4  ;;  %v1126_v23 = vrot.slane %v1124_v12, 5  ;;  %v595_v40 = vor.u32 %v593_v26, %v592_v24  ;;  %363 = vst [vmem:[#allocation2 + $0x44] sm:$0x1] %v362_v25  ;;  %v14087_v1 = vld [vmem:[%s19463_s1 + $0x98] sm:$0xff]  }
  0x3b   : > { %13253 = vmatmul.mubr.bf16.gmra.mxu1 %v11748_v13  ;;  %v1103_v31 = vsel %vm14518_vm11, %v1098_v17, %v1102_v61  ;;  %v1111_v32 = vor.u32 %v1110_v59, %v1107_v19  ;;  %13283 = vmatpush3.bf16.msra.mxu0 %v14078_v54  ;;  %v597_v41 = vrot.slane %v592_v24, 4  ;;  %v599_v44 = vshrl.u32 %v14569_v39, 16  ;;  %v311_v52 = vld [vmem:[#allocation2 + $0x54] sm:$0x1]  ;;  %v367_v56 = vld [vmem:[#allocation2 + $0x5c] sm:$0x1] }
  0x3c   : > { %v1121_v22 = vor.u32 %v1120_v11, %v1116_v7  ;;  %v11723_v37 = vcombine.low %v1093_v9, %v1103_v31  ;;  %13284 = vmatprep.subr.bf16.mxu0 %v14081_v16  ;;  %v602_v45 = vshll.u32 %v14569_v39, 16  ;;  %v607_v46 = vshrl.u32 %v14571_v43, 16  ;;  %v414_v8 = vld [vmem:[%s14432_s9 + $0x70] sm:$0xff]  ;;  %v415_v9 = vld [vmem:[%s14432_s9 + $0x78] sm:$0xff]  ;;  %13331 = vmatpush3.bf16.msra.mxu1 %v14089_v36  ;;  %v14093_v17 = vld [vmem:[%s19463_s1 + $0xe8] sm:$0xff]  }
  0x3d   : > { %v1112_v42 = vrot.slane %v1111_v32, 4  ;;  %v596_v48 = vsel %vm14496_vm10, %v588_v20, %v595_v40  ;;  %v879_v49 = vsel %vm14436_vm3, %v597_v41, %v878_v21  ;;  %v610_v51 = vshll.u32 %v14571_v43, 16  ;;  %v881_v43 = vld [vmem:[#allocation2 + $0x3c] sm:$0xf]  ;;  %13332 = vmatprep.subr.bf16.mxu1 %v14093_v17 }
  0x3e   : > { %v1122_v38 = vrot.slane %v1121_v22, 4  ;;  %13204 = vmatprep.mubr.bf16.mxu0 %v11723_v37  ;;  %877 = vst [vmem:[#allocation2 + $0x34] sm:$0xf] %v596_v48  ;;  %880 = vst [vmem:[#allocation2 + $0x38] sm:$0x1] %v879_v49  ;;  %v601_v53 = vrot.slane %v599_v44, 7  ;;  %v12572_v60 = vpack.c.bf16 %v411_v35, %v411_v35  ;;  %v12573_v32 = vpack.c.bf16 %v412_v62, %v412_v62 }
  0x3f   : > { %v1117_v39 = vsel %vm14518_vm11, %v1112_v42, %v1116_v7  ;;  %v609_v54 = vrot.slane %v607_v46, 7  ;;  %13285 = vmatpush3.bf16.msra.mxu0 %v14081_v16  ;;  %v309_v55 = vsel %vm14436_vm3, 0, %v308_v27  ;;  %v365_v28 = vsel %vm14446_vm5, 0, %v364_v34  ;;  %v14639_v16 = vld [vmem:[%s19463_s1 + $0x90] sm:$0xff]  }
  0x40   : > { %v1127_v47 = vsel %vm14518_vm11, %v1122_v38, %v1126_v23  ;;  %310 = vst [vmem:[#allocation2 + $0x48] sm:$0x1] %v309_v55  ;;  %v616_v61 = vshrl.u32 %v14582_v2, 16  ;;  %13286 = vmatprep.subr.bf16.mxu0 %v14595_v29  ;;  %v604_v3 = vor.u32 %v602_v45, %v601_v53  ;;  %v605_v5 = vrot.slane %v601_v53, 4  ;;  %366 = vst [vmem:[#allocation2 + $0x50] sm:$0x1] %v365_v28 }
  0x41   : > { %v11724_v57 = vcombine.low %v1117_v39, %v1127_v47  ;;  %v612_v6 = vor.u32 %v610_v51, %v609_v54  ;;  %v614_v7 = vrot.slane %v609_v54, 4  ;;  %v619_v12 = vshll.u32 %v14582_v2, 16  ;;  %v973_v19 = vld [vmem:[#allocation2 + $0x30] sm:$0xf]  ;;  %v885_v21 = vld [vmem:[#allocation2 + $0x44] sm:$0x1]  ;;  %13333 = vmatpush3.bf16.msra.mxu1 %v14093_v17 }
  0x42   : > { %v618_v11 = vrot.slane %v616_v61, 7  ;;  %v624_v13 = vshrl.u32 %v12572_v60, 16  ;;  %v627_v15 = vshll.u32 %v12572_v60, 16  ;;  %v882_v20 = vsel %vm14489_vm9, %v604_v3, %v881_v43  ;;  %v14094_v45 = vld [vmem:[%s19463_s1 + $0xe0] sm:$0xff]   ;;  %v14097_v17 = vld [vmem:[%s19463_s1 + $0x88] sm:$0xff]  }
  0x43   : > { %13205 = vmatmul.mubr.bf16.gmra.mxu0 %v11724_v57  ;;  %v613_v59 = vsel %vm14496_vm10, %v605_v5, %v612_v6  ;;  %v312_v2 = vsel %vm14436_vm3, 0, %v311_v52  ;;  %v368_v22 = vsel %vm14446_vm5, 0, %v367_v56  ;;  %v1129_v23 = vshrl.u32 %v973_v19, 16  ;;  %883 = vst [vmem:[#allocation2 + $0x3c] sm:$0xf] %v882_v20  ;;  %v416_v52 = vld [vmem:[%s14432_s9 + $0x80] sm:$0xff]  ;;  %13334 = vmatprep.subr.bf16.mxu1 %v14094_v45 }
  0x44   : > { %13287 = vmatpush3.bf16.msra.mxu0 %v14595_v29  ;;  %v1132_v24 = vshll.u32 %v973_v19, 16  ;;  %884 = vst [vmem:[#allocation2 + $0x40] sm:$0xf] %v613_v59  ;;  %v886_v26 = vsel %vm14436_vm3, %v614_v7, %v885_v21  ;;  %v621_v27 = vor.u32 %v619_v12, %v618_v11  ;;  %313 = vst [vmem:[#allocation2 + $0x54] sm:$0x1] %v312_v2  ;;  %v622_v30 = vrot.slane %v618_v11, 4 }
  0x45   : > { %369 = vst [vmem:[#allocation2 + $0x5c] sm:$0x1] %v368_v22  ;;  %13288 = vmatprep.subr.bf16.mxu0 %v14087_v1  ;;  %887 = vst [vmem:[#allocation2 + $0x44] sm:$0x1] %v886_v26  ;;  %v626_v31 = vrot.slane %v624_v13, 7  ;;  %v14655_v33 = vpack.c.bf16 %v413_v0, %v413_v0  ;;  %v1131_v34 = vrot.slane %v1129_v23, 4  ;;  %v14657_v36 = vpack.c.bf16 %v414_v8, %v414_v8 }
  0x46   : > { %v974_v29 = vld [vmem:[#allocation2 + $0x34] sm:$0xf]  ;;  %v1017_v25 = vld [vmem:[#allocation2 + $0x38] sm:$0x1]  ;;  %v1134_v35 = vrot.slane %v1132_v24, 5  ;;  %v14659_v37 = vpack.c.bf16 %v415_v9, %v415_v9  ;;  %v633_v55 = vshrl.u32 %v12573_v32, 16  ;;  %13335 = vmatpush3.bf16.msra.mxu1 %v14094_v45  ;;  %v14675_v3 = vpack.c.bf16 %v416_v52, %v416_v52 }
  0x47   : > { %v1138_v38 = vshll.u32 %v974_v29, 16  ;;  %v1142_v40 = vshrl.u32 %v974_v29, 16  ;;  %v1148_v41 = vshll.u32 %v1017_v25, 16  ;;  %v11749_v42 = vcombine.low %v973_v19, %v974_v29  ;;  %v888_v44 = vld [vmem:[#allocation2 + $0x48] sm:$0xf]  ;;  %v14098_v2 = vld [vmem:[%s19463_s1 + $0xd8] sm:$0xff]  }
  0x48   : > { %13289 = vmatpush3.bf16.msra.mxu0 %v14087_v1  ;;  %v1135_v46 = vor.u32 %v1134_v35, %v1131_v34  ;;  %v629_v47 = vor.u32 %v627_v15, %v626_v31  ;;  %v631_v48 = vrot.slane %v626_v31, 4  ;;  %v889_v49 = vsel %vm14489_vm9, %v621_v27, %v888_v44  ;;  %v892_v51 = vld [vmem:[#allocation2 + $0x50] sm:$0x1]  ;;  %v417_v27 = vld [vmem:[%s14432_s9 + $0x88] sm:$0xff]  ;;  %13336 = vmatprep.subr.bf16.mxu1 %v14098_v2 }
  0x49   : > { %13290 = vmatprep.subr.bf16.mxu0 %v14639_v16  ;;  %v1140_v39 = vrot.slane %v1138_v38, 5  ;;  %v1144_v53 = vrot.slane %v1142_v40, 4  ;;  %v1150_v54 = vrot.slane %v1148_v41, 5  ;;  %13256 = vmatprep.mubr.bf16.mxu1 %v11749_v42  ;;  %890 = vst [vmem:[#allocation2 + $0x48] sm:$0xf] %v889_v49  ;;  %v636_v28 = vshll.u32 %v12573_v32, 16 }
  0x4a   : > { %v1136_v56 = vrot.slane %v1135_v46, 4  ;;  %v630_v57 = vsel %vm14496_vm10, %v622_v30, %v629_v47  ;;  %v893_v43 = vsel %vm14436_vm3, %v631_v48, %v892_v51  ;;  %v975_v61 = vld [vmem:[#allocation2 + $0x3c] sm:$0xf]  ;;  %v14672_v0 = vrot.slane %v633_v55, 7  ;;  %v14099_v30 = vld [vmem:[%s19463_s1 + $0xd0] sm:$0xff]   ;;  %13337 = vmatpush3.bf16.msra.mxu1 %v14098_v2 }
  0x4b   : > { %v1145_v60 = vor.u32 %v1144_v53, %v1140_v39  ;;  %v976_v62 = vld [vmem:[#allocation2 + $0x40] sm:$0xf]  ;;  %891 = vst [vmem:[#allocation2 + $0x4c] sm:$0xf] %v630_v57  ;;  %894 = vst [vmem:[#allocation2 + $0x50] sm:$0x1] %v893_v43  ;;  %13338 = vmatprep.subr.bf16.mxu1 %v14099_v30 }
  0x4c   : > { %v641_v1 = vshrl.u32 %v14655_v33, 16  ;;  %13291 = vmatpush3.bf16.msra.mxu0 %v14639_v16  ;;  %v1141_v5 = vsel %vm14518_vm11, %v1136_v56, %v1140_v39  ;;  %v1018_v6 = vld [vmem:[#allocation2 + $0x44] sm:$0x1]  ;;  %v1153_v7 = vshrl.u32 %v975_v61, 16  ;;  %v1156_v8 = vshll.u32 %v975_v61, 16 }
  0x4d   : > { %v1162_v9 = vshll.u32 %v976_v62, 16  ;;  %v1146_v11 = vrot.slane %v1145_v60, 4  ;;  %v1166_v12 = vshrl.u32 %v976_v62, 16  ;;  %v1172_v13 = vshll.u32 %v1018_v6, 16  ;;  %v895_v21 = vld [vmem:[#allocation2 + $0x54] sm:$0xf]  ;;  %13292 = vmatprep.subr.bf16.mxu0 %v14097_v17 }
  0x4e   : > { %v11750_v15 = vcombine.low %v975_v61, %v976_v62  ;;  %v1155_v19 = vrot.slane %v1153_v7, 4  ;;  %v1158_v59 = vrot.slane %v1156_v8, 5  ;;  %v638_v16 = vor.u32 %v636_v28, %v14672_v0  ;;  %v899_v42 = vld [vmem:[#allocation2 + $0x5c] sm:$0x1]  ;;  %v314_v49 = vld [vmem:[#allocation2 + $0x60] sm:$0x1]  ;;  %13339 = vmatpush3.bf16.msra.mxu1 %v14099_v30 }
  0x4f   : > { %v1164_v20 = vrot.slane %v1162_v9, 5  ;;  %v1151_v22 = vsel %vm14518_vm11, %v1146_v11, %v1150_v54  ;;  %v1168_v23 = vrot.slane %v1166_v12, 4  ;;  %v1174_v24 = vrot.slane %v1172_v13, 5  ;;  %v370_v51 = vld [vmem:[#allocation2 + $0x68] sm:$0x1] }
  0x50   : > { %13257 = vmatmul.mubr.bf16.gmra.mxu1 %v11750_v15  ;;  %v639_v26 = vrot.slane %v14672_v0, 4  ;;  %v11725_v31 = vcombine.low %v1141_v5, %v1151_v22  ;;  %v1159_v32 = vor.u32 %v1158_v59, %v1155_v19  ;;  %v977_v29 = vld [vmem:[#allocation2 + $0x48] sm:$0xf]  ;;  %v643_v25 = vrot.slane %v641_v1, 7  ;;  %13293 = vmatpush3.bf16.msra.mxu0 %v14097_v17  ;;  %v317_v7 = vld [vmem:[#allocation2 + $0x6c] sm:$0x1] }
  0x51   : > { %v644_v34 = vshll.u32 %v14655_v33, 16  ;;  %v1169_v35 = vor.u32 %v1168_v23, %v1164_v20  ;;  %v1177_v38 = vshrl.u32 %v977_v29, 16  ;;  %v1180_v40 = vshll.u32 %v977_v29, 16  ;;  %v373_v8 = vld [vmem:[#allocation2 + $0x74] sm:$0x1]  ;;  %v14102_v23 = vld [vmem:[%s19463_s1 + $0x80] sm:$0xff]  }
  0x52   : > { %v896_v41 = vsel %vm14489_vm9, %v638_v16, %v895_v21  ;;  %13208 = vmatprep.mubr.bf16.mxu0 %v11725_v31  ;;  %v1160_v44 = vrot.slane %v1159_v32, 4  ;;  %v978_v45 = vld [vmem:[#allocation2 + $0x4c] sm:$0xf]  ;;  %v1019_v46 = vld [vmem:[#allocation2 + $0x50] sm:$0x1]  ;;  %v648_v48 = vrot.slane %v643_v25, 4  ;;  %v14697_v33 = vpack.c.bf16 %v417_v27, %v417_v27  ;;  %13294 = vmatprep.subr.bf16.mxu0 %v14102_v23 }
  0x53   : > { %v646_v47 = vor.u32 %v644_v34, %v643_v25  ;;  %897 = vst [vmem:[#allocation2 + $0x54] sm:$0xf] %v896_v41  ;;  %v1170_v52 = vrot.slane %v1169_v35, 4  ;;  %v1179_v39 = vrot.slane %v1177_v38, 4  ;;  %v1182_v53 = vrot.slane %v1180_v40, 5 }
  0x54   : > { %v1186_v54 = vshll.u32 %v978_v45, 16  ;;  %v1165_v55 = vsel %vm14518_vm11, %v1160_v44, %v1164_v20  ;;  %v1190_v56 = vshrl.u32 %v978_v45, 16  ;;  %v1196_v57 = vshll.u32 %v1019_v46, 16  ;;  %13295 = vmatpush3.bf16.msra.mxu0 %v14102_v23  ;;  %v14104_v46 = vld [vmem:[%s19463_s1 + $0xc0] sm:$0xff]  }
  0x55   : > { %v11751_v43 = vcombine.low %v977_v29, %v978_v45  ;;  %v1175_v28 = vsel %vm14518_vm11, %v1170_v52, %v1174_v24  ;;  %v1183_v60 = vor.u32 %v1182_v53, %v1179_v39  ;;  %v647_v62 = vsel %vm14496_vm10, %v639_v26, %v646_v47  ;;  %v14103_v29 = vld [vmem:[%s19463_s1 + $0xc8] sm:$0xff]   ;;  %v376_v39 = vld [vmem:[#allocation2 + $0x80] sm:$0x1]  ;;  %v418_v53 = vld [vmem:[%s14432_s9 + $0x90] sm:$0xff] }
  0x56   : > { %v1188_v61 = vrot.slane %v1186_v54, 5  ;;  %v11726_v0 = vcombine.low %v1165_v55, %v1175_v28  ;;  %v1192_v1 = vrot.slane %v1190_v56, 4  ;;  %v1198_v5 = vrot.slane %v1196_v57, 5  ;;  %898 = vst [vmem:[#allocation2 + $0x58] sm:$0xf] %v647_v62  ;;  %13340 = vmatprep.subr.bf16.mxu1 %v14103_v29 }
  0x57   : > { %13260 = vmatprep.mubr.bf16.mxu1 %v11751_v43  ;;  %v900_v6 = vsel %vm14436_vm3, %v648_v48, %v899_v42  ;;  %v1184_v9 = vrot.slane %v1183_v60, 4  ;;  %v315_v11 = vsel %vm14436_vm3, 0, %v314_v49  ;;  %v371_v12 = vsel %vm14446_vm5, 0, %v370_v51  ;;  %13341 = vmatpush3.bf16.msra.mxu1 %v14103_v29  ;;  %v323_v60 = vld [vmem:[#allocation2 + $0x84] sm:$0x1] }
  0x58   : > { %901 = vst [vmem:[#allocation2 + $0x5c] sm:$0x1] %v900_v6  ;;  %v650_v13 = vshrl.u32 %v14657_v36, 16  ;;  %13209 = vmatmul.mubr.bf16.gmra.mxu0 %v11726_v0  ;;  %v1193_v15 = vor.u32 %v1192_v1, %v1188_v61  ;;  %316 = vst [vmem:[#allocation2 + $0x60] sm:$0x1] %v315_v11  ;;  %v653_v17 = vshll.u32 %v14657_v36, 16  ;;  %13342 = vmatprep.subr.bf16.mxu1 %v14104_v46 }
  0x59   : > { %372 = vst [vmem:[#allocation2 + $0x68] sm:$0x1] %v371_v12  ;;  %v658_v19 = vshrl.u32 %v14659_v37, 16  ;;  %v661_v59 = vshll.u32 %v14659_v37, 16  ;;  %v1189_v20 = vsel %vm14518_vm11, %v1184_v9, %v1188_v61  ;;  %v318_v2 = vsel %vm14436_vm3, 0, %v317_v7  ;;  %v14105_v6 = vld [vmem:[%s19463_s1 + $0x138] sm:$0xff]  }
  0x5a   : > { %v979_v16 = vld [vmem:[#allocation2 + $0x54] sm:$0xf]  ;;  %v652_v21 = vrot.slane %v650_v13, 7  ;;  %v374_v22 = vsel %vm14446_vm5, 0, %v373_v8  ;;  %v1194_v36 = vrot.slane %v1193_v15, 4  ;;  %v667_v31 = vshrl.u32 %v14675_v3, 16  ;;  %13376 = vmatprep.subr.bf16.mxu0 %v14105_v6 }
  0x5b   : > { %v1201_v24 = vshrl.u32 %v979_v16, 16  ;;  %v1204_v26 = vshll.u32 %v979_v16, 16  ;;  %v660_v27 = vrot.slane %v658_v19, 7  ;;  %319 = vst [vmem:[#allocation2 + $0x6c] sm:$0x1] %v318_v2  ;;  %v670_v32 = vshll.u32 %v14675_v3, 16  ;;  %13343 = vmatpush3.bf16.msra.mxu1 %v14104_v46 }
  0x5c   : > { %375 = vst [vmem:[#allocation2 + $0x74] sm:$0x1] %v374_v22  ;;  %v655_v37 = vor.u32 %v653_v17, %v652_v21  ;;  %v656_v30 = vrot.slane %v652_v21, 4  ;;  %v1199_v25 = vsel %vm14518_vm11, %v1194_v36, %v1198_v5  ;;  %v669_v44 = vrot.slane %v667_v31, 7  ;;  %v320_v3 = vld [vmem:[#allocation2 + $0x78] sm:$0x1] }
  0x5d   : > { %v1203_v34 = vrot.slane %v1201_v24, 4  ;;  %v1206_v35 = vrot.slane %v1204_v26, 5  ;;  %v663_v38 = vor.u32 %v661_v59, %v660_v27  ;;  %v11727_v40 = vcombine.low %v1189_v20, %v1199_v25  ;;  %v980_v41 = vld [vmem:[#allocation2 + $0x58] sm:$0xf]  ;;  %v379_v5 = vld [vmem:[#allocation2 + $0x8c] sm:$0x1] }
  0x5e   : > { %v665_v42 = vrot.slane %v660_v27, 4  ;;  %v675_v45 = vshrl.u32 %v14697_v33, 16  ;;  %v1210_v49 = vshll.u32 %v980_v41, 16  ;;  %v1214_v51 = vshrl.u32 %v980_v41, 16  ;;  %v419_v13 = vld [vmem:[%s14432_s9 + $0x98] sm:$0xff] }
  0x5f   : > { %v1020_v47 = vld [vmem:[#allocation2 + $0x5c] sm:$0x1]  ;;  %v1207_v48 = vor.u32 %v1206_v35, %v1203_v34  ;;  %v11752_v52 = vcombine.low %v979_v16, %v980_v41  ;;  %13212 = vmatprep.mubr.bf16.mxu0 %v11727_v40  ;;  %v664_v55 = vsel %vm14496_vm10, %v656_v30, %v663_v38  ;;  %v902_v56 = vld [vmem:[#allocation2 + $0x60] sm:$0xf]  ;;  %v672_v43 = vor.u32 %v670_v32, %v669_v44  ;;  %v326_v21 = vld [vmem:[#allocation2 + $0x90] sm:$0x1] }
  0x60   : > { %v1220_v54 = vshll.u32 %v1020_v47, 16  ;;  %v906_v57 = vld [vmem:[#allocation2 + $0x68] sm:$0x1]  ;;  %v673_v28 = vrot.slane %v669_v44, 4  ;;  %v1212_v62 = vrot.slane %v1210_v49, 5  ;;  %v1216_v0 = vrot.slane %v1214_v51, 4 }
  0x61   : > { %v1208_v61 = vrot.slane %v1207_v48, 4  ;;  %13261 = vmatmul.mubr.bf16.gmra.mxu1 %v11752_v52  ;;  %v903_v1 = vsel %vm14489_vm9, %v655_v37, %v902_v56  ;;  %905 = vst [vmem:[#allocation2 + $0x64] sm:$0xf] %v664_v55  ;;  %v907_v8 = vsel %vm14436_vm3, %v665_v42, %v906_v57  ;;  %v677_v9 = vrot.slane %v675_v45, 7  ;;  %v420_v16 = vld [vmem:[%s14432_s9 + $0xa0] sm:$0xff]  ;;  %v421_v37 = vld [vmem:[%s14432_s9 + $0xa8] sm:$0xff] }
  0x62   : > { %v1222_v7 = vrot.slane %v1220_v54, 5  ;;  %904 = vst [vmem:[#allocation2 + $0x60] sm:$0xf] %v903_v1  ;;  %v678_v11 = vshll.u32 %v14697_v33, 16  ;;  %v909_v12 = vld [vmem:[#allocation2 + $0x6c] sm:$0xf]  ;;  %v1217_v17 = vor.u32 %v1216_v0, %v1212_v62  ;;  %v12579_v23 = vpack.c.bf16 %v418_v53, %v418_v53 }
  0x63   : > { %v1213_v15 = vsel %vm14518_vm11, %v1208_v61, %v1212_v62  ;;  %908 = vst [vmem:[#allocation2 + $0x68] sm:$0x1] %v907_v8  ;;  %v910_v19 = vsel %vm14489_vm9, %v672_v43, %v909_v12  ;;  %v913_v59 = vld [vmem:[#allocation2 + $0x74] sm:$0x1]  ;;  %v321_v20 = vsel %vm14436_vm3, 0, %v320_v3  ;;  %v682_v2 = vrot.slane %v677_v9, 4 }
  0x64   : > { %v680_v33 = vor.u32 %v678_v11, %v677_v9  ;;  %911 = vst [vmem:[#allocation2 + $0x6c] sm:$0xf] %v910_v19  ;;  %322 = vst [vmem:[#allocation2 + $0x78] sm:$0x1] %v321_v20  ;;  %v377_v22 = vsel %vm14446_vm5, 0, %v376_v39  ;;  %v1218_v36 = vrot.slane %v1217_v17, 4  ;;  %v12580_v24 = vpack.c.bf16 %v419_v13, %v419_v13 }
  0x65   : > { %378 = vst [vmem:[#allocation2 + $0x80] sm:$0x1] %v377_v22  ;;  %v324_v26 = vsel %vm14436_vm3, 0, %v323_v60  ;;  %v380_v27 = vsel %vm14446_vm5, 0, %v379_v5  ;;  %v914_v31 = vsel %vm14436_vm3, %v682_v2, %v913_v59  ;;  %v684_v32 = vshrl.u32 %v12579_v23, 16 }
  0x66   : > { %v681_v30 = vsel %vm14496_vm10, %v673_v28, %v680_v33  ;;  %v687_v29 = vshll.u32 %v12579_v23, 16  ;;  %325 = vst [vmem:[#allocation2 + $0x84] sm:$0x1] %v324_v26  ;;  %381 = vst [vmem:[#allocation2 + $0x8c] sm:$0x1] %v380_v27  ;;  %v1223_v25 = vsel %vm14518_vm11, %v1218_v36, %v1222_v7  ;;  %v692_v34 = vshrl.u32 %v12580_v24, 16 }
  0x67   : > { %912 = vst [vmem:[#allocation2 + $0x70] sm:$0xf] %v681_v30  ;;  %915 = vst [vmem:[#allocation2 + $0x74] sm:$0x1] %v914_v31  ;;  %v695_v35 = vshll.u32 %v12580_v24, 16  ;;  %v14767_v38 = vpack.c.bf16 %v420_v16, %v420_v16  ;;  %v11728_v40 = vcombine.low %v1213_v15, %v1223_v25  ;;  %v686_v42 = vrot.slane %v684_v32, 7 }
  0x68   : > { %v14769_v41 = vld [vmem:[#allocation2 + $0x64] sm:$0xf]  ;;  %v14771_v44 = vpack.c.bf16 %v421_v37, %v421_v37  ;;  %v327_v45 = vsel %vm14436_vm3, 0, %v326_v21  ;;  %v694_v48 = vrot.slane %v692_v34, 7  ;;  %v382_v36 = vld [vmem:[#allocation2 + $0x98] sm:$0x1] }
  0x69   : > { %v981_v3 = vld [vmem:[#allocation2 + $0x60] sm:$0xf]  ;;  %v1234_v46 = vshll.u32 %v14769_v41, 16  ;;  %v1238_v47 = vshrl.u32 %v14769_v41, 16  ;;  %v701_v49 = vshrl.u32 %v14767_v38, 16  ;;  %13213 = vmatmul.mubr.bf16.gmra.mxu0 %v11728_v40  ;;  %v689_v54 = vor.u32 %v687_v29, %v686_v42  ;;  %v422_v24 = vld [vmem:[%s14432_s9 + $0xb0] sm:$0xff] }
  0x6a   : > { %328 = vst [vmem:[#allocation2 + $0x90] sm:$0x1] %v327_v45  ;;  %v14778_v51 = vld [vmem:[#allocation2 + $0x68] sm:$0x1]  ;;  %v1225_v52 = vshrl.u32 %v981_v3, 16  ;;  %v1228_v39 = vshll.u32 %v981_v3, 16  ;;  %v11753_v53 = vcombine.low %v981_v3, %v14769_v41  ;;  %v697_v7 = vor.u32 %v695_v35, %v694_v48 }
  0x6b   : > { %v1236_v55 = vrot.slane %v1234_v46, 5  ;;  %v1240_v56 = vrot.slane %v1238_v47, 4  ;;  %v1244_v57 = vshll.u32 %v14778_v51, 16  ;;  %v983_v43 = vld [vmem:[#allocation2 + $0x6c] sm:$0xf]  ;;  %v690_v28 = vrot.slane %v686_v42, 4 }
  0x6c   : > { %v1227_v60 = vrot.slane %v1225_v52, 4  ;;  %v1230_v61 = vrot.slane %v1228_v39, 5  ;;  %13264 = vmatprep.mubr.bf16.mxu1 %v11753_v53  ;;  %v1249_v62 = vshrl.u32 %v983_v43, 16  ;;  %v1252_v0 = vshll.u32 %v983_v43, 16  ;;  %v916_v1 = vld [vmem:[#allocation2 + $0x78] sm:$0xf] }
  0x6d   : > { %v1241_v5 = vor.u32 %v1240_v56, %v1236_v55  ;;  %v1246_v6 = vrot.slane %v1244_v57, 5  ;;  %v699_v8 = vrot.slane %v694_v48, 4  ;;  %v917_v17 = vsel %vm14489_vm9, %v689_v54, %v916_v1  ;;  %v920_v21 = vld [vmem:[#allocation2 + $0x80] sm:$0x1]  ;;  %v423_v31 = vld [vmem:[%s14432_s9 + $0xb8] sm:$0xff] }
  0x6e   : > { %v1231_v9 = vor.u32 %v1230_v61, %v1227_v60  ;;  %v14782_v11 = vld [vmem:[#allocation2 + $0x70] sm:$0xf]  ;;  %v14784_v12 = vld [vmem:[#allocation2 + $0x74] sm:$0x1]  ;;  %v1251_v13 = vrot.slane %v1249_v62, 4  ;;  %v1254_v15 = vrot.slane %v1252_v0, 5  ;;  %v698_v23 = vsel %vm14496_vm10, %v690_v28, %v697_v7 }
  0x6f   : > { %v1242_v19 = vrot.slane %v1241_v5, 4  ;;  %v1258_v59 = vshll.u32 %v14782_v11, 16  ;;  %v1262_v20 = vshrl.u32 %v14782_v11, 16  ;;  %v1268_v16 = vshll.u32 %v14784_v12, 16  ;;  %918 = vst [vmem:[#allocation2 + $0x78] sm:$0xf] %v917_v17 }
  0x70   : > { %v1232_v33 = vrot.slane %v1231_v9, 4  ;;  %v1255_v2 = vor.u32 %v1254_v15, %v1251_v13  ;;  %v11754_v22 = vcombine.low %v983_v43, %v14782_v11  ;;  %919 = vst [vmem:[#allocation2 + $0x7c] sm:$0xf] %v698_v23  ;;  %v329_v32 = vld [vmem:[#allocation2 + $0x9c] sm:$0x1]  ;;  %v424_v29 = vld [vmem:[%s14432_s9 + $0xc0] sm:$0xff]  ;;  %v921_v35 = vsel %vm14436_vm3, %v699_v8, %v920_v21 }
  0x71   : > { %v1247_v26 = vsel %vm14518_vm11, %v1242_v19, %v1246_v6  ;;  %v1260_v27 = vrot.slane %v1258_v59, 5  ;;  %v1264_v37 = vrot.slane %v1262_v20, 4  ;;  %v1270_v30 = vrot.slane %v1268_v16, 5  ;;  %922 = vst [vmem:[#allocation2 + $0x80] sm:$0x1] %v921_v35 }
  0x72   : > { %v1237_v25 = vsel %vm14518_vm11, %v1232_v33, %v1236_v55  ;;  %v1256_v34 = vrot.slane %v1255_v2, 4  ;;  %13265 = vmatmul.mubr.bf16.gmra.mxu1 %v11754_v22  ;;  %v703_v40 = vrot.slane %v701_v49, 7  ;;  %v704_v3 = vshll.u32 %v14767_v38, 16  ;;  %v385_v47 = vld [vmem:[#allocation2 + $0xa4] sm:$0x1]  ;;  %v425_v22 = vld [vmem:[%s14432_s9 + $0xc8] sm:$0xff] }
  0x73   : > { %v11729_v42 = vcombine.low %v1237_v25, %v1247_v26  ;;  %v1265_v45 = vor.u32 %v1264_v37, %v1260_v27  ;;  %v709_v46 = vshrl.u32 %v14771_v44, 16  ;;  %v712_v39 = vshll.u32 %v14771_v44, 16  ;;  %v923_v53 = vld [vmem:[#allocation2 + $0x84] sm:$0xf]  ;;  %v927_v5 = vld [vmem:[#allocation2 + $0x8c] sm:$0x1] }
  0x74   : > { %v1261_v48 = vsel %vm14518_vm11, %v1256_v34, %v1260_v27  ;;  %v707_v52 = vrot.slane %v703_v40, 4  ;;  %v383_v54 = vsel %vm14446_vm5, 0, %v382_v36  ;;  %v706_v55 = vor.u32 %v704_v3, %v703_v40 }
  0x75   : > { %13216 = vmatprep.mubr.bf16.mxu0 %v11729_v42  ;;  %v1266_v49 = vrot.slane %v1265_v45, 4  ;;  %v711_v56 = vrot.slane %v709_v46, 7  ;;  %384 = vst [vmem:[#allocation2 + $0x98] sm:$0x1] %v383_v54  ;;  %v12583_v57 = vpack.c.bf16 %v422_v24, %v422_v24  ;;  %v12584_v43 = vpack.c.bf16 %v423_v31, %v423_v31 }
  0x76   : > { %v985_v38 = vld [vmem:[#allocation2 + $0x78] sm:$0xf]  ;;  %v330_v28 = vsel %vm14436_vm3, 0, %v329_v32  ;;  %v386_v60 = vsel %vm14446_vm5, 0, %v385_v47  ;;  %v14814_v61 = vpack.c.bf16 %v424_v29, %v424_v29  ;;  %v924_v9 = vsel %vm14489_vm9, %v706_v55, %v923_v53  ;;  %v930_v32 = vld [vmem:[#allocation2 + $0x90] sm:$0xf] }
  0x77   : > { %v1271_v44 = vsel %vm14518_vm11, %v1266_v49, %v1270_v30  ;;  %v1273_v62 = vshrl.u32 %v985_v38, 16  ;;  %v1276_v0 = vshll.u32 %v985_v38, 16  ;;  %v714_v1 = vor.u32 %v712_v39, %v711_v56  ;;  %331 = vst [vmem:[#allocation2 + $0x9c] sm:$0x1] %v330_v28  ;;  %387 = vst [vmem:[#allocation2 + $0xa4] sm:$0x1] %v386_v60 }
  0x78   : > { %v11730_v6 = vcombine.low %v1261_v48, %v1271_v44  ;;  %v14818_v7 = vld [vmem:[#allocation2 + $0x7c] sm:$0xf]  ;;  %v716_v8 = vrot.slane %v711_v56, 4  ;;  %v718_v13 = vshrl.u32 %v12583_v57, 16  ;;  %925 = vst [vmem:[#allocation2 + $0x84] sm:$0xf] %v924_v9  ;;  %v12586_v35 = vpack.c.bf16 %v425_v22, %v425_v22 }
  0x79   : > { %v1275_v15 = vrot.slane %v1273_v62, 4  ;;  %v1278_v17 = vrot.slane %v1276_v0, 5  ;;  %v1282_v19 = vshll.u32 %v14818_v7, 16  ;;  %v1286_v59 = vshrl.u32 %v14818_v7, 16  ;;  %v14824_v20 = vld [vmem:[#allocation2 + $0x80] sm:$0x1] }
  0x7a   : > { %13217 = vmatmul.mubr.bf16.gmra.mxu0 %v11730_v6  ;;  %v11755_v16 = vcombine.low %v985_v38, %v14818_v7  ;;  %v715_v21 = vsel %vm14496_vm10, %v707_v52, %v714_v1  ;;  %v928_v33 = vsel %vm14436_vm3, %v716_v8, %v927_v5  ;;  %v720_v2 = vrot.slane %v718_v13, 7  ;;  %v388_v8 = vld [vmem:[#allocation2 + $0xb0] sm:$0x1] }
  0x7b   : > { %v1279_v23 = vor.u32 %v1278_v17, %v1275_v15  ;;  %v1284_v36 = vrot.slane %v1282_v19, 5  ;;  %v1288_v24 = vrot.slane %v1286_v59, 4  ;;  %v1292_v26 = vshll.u32 %v14824_v20, 16  ;;  %926 = vst [vmem:[#allocation2 + $0x88] sm:$0xf] %v715_v21  ;;  %v426_v19 = vld [vmem:[%s14432_s9 + $0xd0] sm:$0xff] }
  0x7c   : > { %929 = vst [vmem:[#allocation2 + $0x8c] sm:$0x1] %v928_v33  ;;  %13268 = vmatprep.mubr.bf16.mxu1 %v11755_v16  ;;  %v721_v27 = vshll.u32 %v12583_v57, 16  ;;  %v724_v37 = vrot.slane %v720_v2, 4  ;;  %v726_v30 = vshrl.u32 %v12584_v43, 16  ;;  %v729_v31 = vshll.u32 %v12584_v43, 16 }
  0x7d   : > { %v1280_v29 = vrot.slane %v1279_v23, 4  ;;  %v1289_v25 = vor.u32 %v1288_v24, %v1284_v36  ;;  %v1294_v34 = vrot.slane %v1292_v26, 5  ;;  %v735_v45 = vshrl.u32 %v14814_v61, 16  ;;  %v934_v48 = vld [vmem:[#allocation2 + $0x98] sm:$0x1] }
  0x7e   : > { %v723_v40 = vor.u32 %v721_v27, %v720_v2  ;;  %v728_v42 = vrot.slane %v726_v30, 7  ;;  %v738_v3 = vshll.u32 %v14814_v61, 16  ;;  %v743_v52 = vshrl.u32 %v12586_v35, 16  ;;  %v937_v60 = vld [vmem:[#allocation2 + $0x9c] sm:$0xf] }
  0x7f   : > { %v1285_v46 = vsel %vm14518_vm11, %v1280_v29, %v1284_v36  ;;  %v1290_v47 = vrot.slane %v1289_v25, 4  ;;  %v746_v39 = vshll.u32 %v12586_v35, 16  ;;  %v987_v53 = vld [vmem:[#allocation2 + $0x84] sm:$0xf]  ;;  %v737_v56 = vrot.slane %v735_v45, 7 }
  0x80   : > { %v731_v54 = vor.u32 %v729_v31, %v728_v42  ;;  %v733_v49 = vrot.slane %v728_v42, 4  ;;  %v931_v55 = vsel %vm14489_vm9, %v723_v40, %v930_v32  ;;  %v1297_v38 = vshrl.u32 %v987_v53, 16  ;;  %v332_v61 = vld [vmem:[#allocation2 + $0xa8] sm:$0x1]  ;;  %v335_v59 = vld [vmem:[#allocation2 + $0xb4] sm:$0x1] }
  0x81   : > { %v1295_v57 = vsel %vm14518_vm11, %v1290_v47, %v1294_v34  ;;  %v1300_v43 = vshll.u32 %v987_v53, 16  ;;  %932 = vst [vmem:[#allocation2 + $0x90] sm:$0xf] %v931_v55  ;;  %v745_v28 = vrot.slane %v743_v52, 7  ;;  %v740_v6 = vor.u32 %v738_v3, %v737_v56  ;;  %v941_v22 = vld [vmem:[#allocation2 + $0xa4] sm:$0x1] }
  0x82   : > { %v11731_v44 = vcombine.low %v1285_v46, %v1295_v57  ;;  %v14841_v62 = vld [vmem:[#allocation2 + $0x88] sm:$0xf]  ;;  %v732_v1 = vsel %vm14496_vm10, %v724_v37, %v731_v54  ;;  %v935_v5 = vsel %vm14436_vm3, %v733_v49, %v934_v48  ;;  %v1299_v9 = vrot.slane %v1297_v38, 4  ;;  %v391_v23 = vld [vmem:[#allocation2 + $0xbc] sm:$0x1]  ;;  %v428_v54 = vld [vmem:[%s14432_s9 + $0xe0] sm:$0xff] }
  0x83   : > { %v14843_v0 = vld [vmem:[#allocation2 + $0x8c] sm:$0x1]  ;;  %v1302_v13 = vrot.slane %v1300_v43, 5  ;;  %v1306_v15 = vshll.u32 %v14841_v62, 16  ;;  %v1310_v17 = vshrl.u32 %v14841_v62, 16  ;;  %v11756_v21 = vcombine.low %v987_v53, %v14841_v62  ;;  %v427_v37 = vld [vmem:[%s14432_s9 + $0xd8] sm:$0xff] }
  0x84   : > { %933 = vst [vmem:[#allocation2 + $0x94] sm:$0xf] %v732_v1  ;;  %936 = vst [vmem:[#allocation2 + $0x98] sm:$0x1] %v935_v5  ;;  %13220 = vmatprep.mubr.bf16.mxu0 %v11731_v44  ;;  %v1316_v16 = vshll.u32 %v14843_v0, 16  ;;  %v741_v33 = vrot.slane %v737_v56, 4  ;;  %v748_v2 = vor.u32 %v746_v39, %v745_v28  ;;  %v938_v32 = vsel %vm14489_vm9, %v740_v6, %v937_v60 }
  0x85   : > { %v1303_v36 = vor.u32 %v1302_v13, %v1299_v9  ;;  %v1308_v24 = vrot.slane %v1306_v15, 5  ;;  %v1312_v26 = vrot.slane %v1310_v17, 4  ;;  %v750_v27 = vrot.slane %v745_v28, 4  ;;  %13269 = vmatmul.mubr.bf16.gmra.mxu1 %v11756_v21  ;;  %939 = vst [vmem:[#allocation2 + $0x9c] sm:$0xf] %v938_v32  ;;  %v14877_v49 = vld [vmem:[%s19463_s1 + $0x178] sm:$0xff]  }
  0x86   : > { %v1318_v30 = vrot.slane %v1316_v16, 5  ;;  %v749_v31 = vsel %vm14496_vm10, %v741_v33, %v748_v2  ;;  %v333_v29 = vsel %vm14436_vm3, 0, %v332_v61  ;;  %v389_v40 = vsel %vm14446_vm5, 0, %v388_v8  ;;  %v429_v44 = vld [vmem:[%s14432_s9 + $0xe8] sm:$0xff]  ;;  %13424 = vmatprep.subr.bf16.mxu1 %v14877_v49 }
  0x87   : > { %v1304_v25 = vrot.slane %v1303_v36, 4  ;;  %v1313_v34 = vor.u32 %v1312_v26, %v1308_v24  ;;  %940 = vst [vmem:[#allocation2 + $0xa0] sm:$0xf] %v749_v31  ;;  %v942_v35 = vsel %vm14436_vm3, %v750_v27, %v941_v22  ;;  %334 = vst [vmem:[#allocation2 + $0xa8] sm:$0x1] %v333_v29  ;;  %v12587_v45 = vpack.c.bf16 %v426_v19, %v426_v19 }
  0x88   : > { %v989_v42 = vld [vmem:[#allocation2 + $0x90] sm:$0xf]  ;;  %943 = vst [vmem:[#allocation2 + $0xa4] sm:$0x1] %v942_v35  ;;  %390 = vst [vmem:[#allocation2 + $0xb0] sm:$0x1] %v389_v40  ;;  %v14865_v3 = vpack.c.bf16 %v427_v37, %v427_v37  ;;  %v12589_v33 = vpack.c.bf16 %v428_v54, %v428_v54  ;;  %v12590_v2 = vpack.c.bf16 %v429_v44, %v429_v44 }
  0x89   : > { %v336_v46 = vsel %vm14436_vm3, 0, %v335_v59  ;;  %v392_v47 = vsel %vm14446_vm5, 0, %v391_v23  ;;  %v1309_v48 = vsel %vm14518_vm11, %v1304_v25, %v1308_v24  ;;  %v1314_v52 = vrot.slane %v1313_v34, 4 }
  0x8a   : > { %v1321_v39 = vshrl.u32 %v989_v42, 16  ;;  %v1324_v53 = vshll.u32 %v989_v42, 16  ;;  %337 = vst [vmem:[#allocation2 + $0xb4] sm:$0x1] %v336_v46  ;;  %393 = vst [vmem:[#allocation2 + $0xbc] sm:$0x1] %v392_v47 }
  0x8b   : > { %v14879_v55 = vld [vmem:[#allocation2 + $0x94] sm:$0xf]  ;;  %v14881_v56 = vld [vmem:[#allocation2 + $0x98] sm:$0x1]  ;;  %v752_v57 = vshrl.u32 %v12587_v45, 16  ;;  %v755_v38 = vshll.u32 %v12587_v45, 16  ;;  %v1319_v43 = vsel %vm14518_vm11, %v1314_v52, %v1318_v30 }
  0x8c   : > { %v1323_v28 = vrot.slane %v1321_v39, 4  ;;  %v1326_v60 = vrot.slane %v1324_v53, 5  ;;  %v1330_v61 = vshll.u32 %v14879_v55, 16  ;;  %v11732_v1 = vcombine.low %v1309_v48, %v1319_v43  ;;  %v991_v16 = vld [vmem:[#allocation2 + $0x9c] sm:$0xf] }
  0x8d   : > { %v1334_v5 = vshrl.u32 %v14879_v55, 16  ;;  %v1340_v6 = vshll.u32 %v14881_v56, 16  ;;  %v11757_v8 = vcombine.low %v989_v42, %v14879_v55  ;;  %v754_v15 = vrot.slane %v752_v57, 7 }
  0x8e   : > { %v1327_v9 = vor.u32 %v1326_v60, %v1323_v28  ;;  %v1332_v13 = vrot.slane %v1330_v61, 5  ;;  %v760_v17 = vshrl.u32 %v14865_v3, 16  ;;  %13221 = vmatmul.mubr.bf16.gmra.mxu0 %v11732_v1  ;;  %v14892_v21 = vld [vmem:[#allocation2 + $0xa0] sm:$0xf]  ;;  %v1345_v36 = vshrl.u32 %v991_v16, 16 }
  0x8f   : > { %v1336_v19 = vrot.slane %v1334_v5, 4  ;;  %v1342_v59 = vrot.slane %v1340_v6, 5  ;;  %13272 = vmatprep.mubr.bf16.mxu1 %v11757_v8  ;;  %v14894_v23 = vld [vmem:[#allocation2 + $0xa4] sm:$0x1]  ;;  %v1348_v24 = vshll.u32 %v991_v16, 16  ;;  %v1354_v26 = vshll.u32 %v14892_v21, 16 }
  0x90   : > { %v1328_v22 = vrot.slane %v1327_v9, 4  ;;  %v1358_v37 = vshrl.u32 %v14892_v21, 16  ;;  %v1364_v30 = vshll.u32 %v14894_v23, 16  ;;  %v11758_v31 = vcombine.low %v991_v16, %v14892_v21  ;;  %v944_v35 = vld [vmem:[#allocation2 + $0xa8] sm:$0xf] }
  0x91   : > { %v1337_v27 = vor.u32 %v1336_v19, %v1332_v13  ;;  %v1347_v29 = vrot.slane %v1345_v36, 4  ;;  %v1350_v25 = vrot.slane %v1348_v24, 5  ;;  %v1356_v34 = vrot.slane %v1354_v26, 5  ;;  %v948_v53 = vld [vmem:[#allocation2 + $0xb0] sm:$0x1] }
  0x92   : > { %v1333_v32 = vsel %vm14518_vm11, %v1328_v22, %v1332_v13  ;;  %v1360_v42 = vrot.slane %v1358_v37, 4  ;;  %v1366_v45 = vrot.slane %v1364_v30, 5  ;;  %13273 = vmatmul.mubr.bf16.gmra.mxu1 %v11758_v31  ;;  %v757_v46 = vor.u32 %v755_v38, %v754_v15  ;;  %v2011_v60 = vld [vmem:[#allocation2] sm:$0xe]  ;;  %v951_v38 = vld [vmem:[#allocation2 + $0xb4] sm:$0xf] }
  0x93   : > { %v1338_v40 = vrot.slane %v1337_v27, 4  ;;  %v1351_v47 = vor.u32 %v1350_v25, %v1347_v29  ;;  %v758_v48 = vrot.slane %v754_v15, 4  ;;  %v762_v52 = vrot.slane %v760_v17, 7  ;;  %v2012_v13 = vld [vmem:[#allocation2 + $0xc] sm:$0xe] }
  0x94   : > { %v763_v39 = vshll.u32 %v14865_v3, 16  ;;  %v1361_v57 = vor.u32 %v1360_v42, %v1356_v34  ;;  %v945_v43 = vsel %vm14489_vm9, %v757_v46, %v944_v35  ;;  %v769_v28 = vshrl.u32 %v12589_v33, 16  ;;  %v955_v16 = vld [vmem:[#allocation2 + $0xbc] sm:$0x1]  ;;  %v2013_v29 = vld [vmem:[#allocation2 + $0x18] sm:$0xe] }
  0x95   : > { %v1343_v54 = vsel %vm14518_vm11, %v1338_v40, %v1342_v59  ;;  %v1352_v44 = vrot.slane %v1351_v47, 4  ;;  %v767_v5 = vrot.slane %v762_v52, 4  ;;  %946 = vst [vmem:[#allocation2 + $0xa8] sm:$0xf] %v945_v43  ;;  %v772_v9 = vshll.u32 %v12589_v33, 16 }
  0x96   : > { %v11733_v61 = vcombine.low %v1333_v32, %v1343_v54  ;;  %v765_v1 = vor.u32 %v763_v39, %v762_v52  ;;  %v1362_v6 = vrot.slane %v1361_v57, 4  ;;  %v771_v8 = vrot.slane %v769_v28, 7  ;;  %v14297_v32 = vld [vmem:[#allocation2 + $0x4] sm:$0xf]  ;;  %v14298_v25 = vld [vmem:[#allocation2 + $0x14] sm:$0x1] }
  0x97   : > { %v777_v3 = vshrl.u32 %v12590_v2, 16  ;;  %v1357_v15 = vsel %vm14518_vm11, %v1352_v44, %v1356_v34  ;;  %v949_v19 = vsel %vm14436_vm3, %v767_v5, %v948_v53  ;;  %v780_v59 = vshll.u32 %v12590_v2, 16  ;;  %v14299_v42 = vld [vmem:[#allocation2 + $0x10] sm:$0xf]  ;;  %v14300_v46 = vld [vmem:[#allocation2 + $0x1c] sm:$0xf] }
  0x98   : > { %13224 = vmatprep.mubr.bf16.mxu0 %v11733_v61  ;;  %v766_v17 = vsel %vm14496_vm10, %v758_v48, %v765_v1  ;;  %v1367_v22 = vsel %vm14518_vm11, %v1362_v6, %v1366_v45  ;;  %950 = vst [vmem:[#allocation2 + $0xb0] sm:$0x1] %v949_v19  ;;  %v774_v33 = vor.u32 %v772_v9, %v771_v8  ;;  %v775_v36 = vrot.slane %v771_v8, 4  ;;  %v14301_v5 = vld [vmem:[#allocation2 + $0x20] sm:$0x1] }
  0x99   : > { %947 = vst [vmem:[#allocation2 + $0xac] sm:$0xf] %v766_v17  ;;  %v779_v24 = vrot.slane %v777_v3, 7  ;;  %v11734_v26 = vcombine.low %v1357_v15, %v1367_v22  ;;  %vm2059_vm12 = vcmask 1042432   ;;  %vm2060_vm13 = vcmask 1046532  }
  0x9a   : > { %v11769_v27 = vrot.slane %v2011_v60, 9  ;;  %v952_v31 = vsel %vm14489_vm9, %v774_v33, %v951_v38  ;;  %v2064_v2 = vrot.slane %v14297_v32, 5  ;;  %v2074_v34 = vrot.slane %v14298_v25, 5  ;;  %vm14917_vm14 = vmor %vm2059_vm12, %vm2060_vm13  ;;  %v14925_v60 = vld [vmem:[#allocation2 + $0x24] sm:$0xe] }
  0x9b   : > { %v782_v37 = vor.u32 %v780_v59, %v779_v24  ;;  %v784_v30 = vrot.slane %v779_v24, 4  ;;  %13225 = vmatmul.mubr.bf16.gmra.mxu0 %v11734_v26  ;;  %953 = vst [vmem:[#allocation2 + $0xb4] sm:$0xf] %v952_v31  ;;  %v19510_v35 = vmov 0  ;;  %v11770_v40 = vrot.slane %v2012_v13, 9 }
  0x9c   : > { %v19511_v35 = vsel %vm14917_vm14, 4294967295, %v19510_v35  ;;  %v2071_v45 = vrot.slane %v14299_v42, 5  ;;  %v2078_v47 = vrot.slane %v14300_v46, 5  ;;  %v993_v48 = vld [vmem:[#allocation2 + $0xa8] sm:$0xf]  ;;  %v2066_v53 = vrot.slane %v2064_v2, 4 }
  0x9d   : > { %19512 = vst [vmem:[#allocation7_spill] sm:$0xff] %v19511_v35  ;;  %v783_v52 = vsel %vm14496_vm10, %v775_v36, %v782_v37  ;;  %v956_v39 = vsel %vm14436_vm3, %v784_v30, %v955_v16  ;;  %v1369_v54 = vshrl.u32 %v993_v48, 16  ;;  %v1372_v57 = vshll.u32 %v993_v48, 16  ;;  %v2015_v37 = vld [vmem:[#allocation2 + $0x30] sm:$0xe] }
  0x9e   : > { %954 = vst [vmem:[#allocation2 + $0xb8] sm:$0xf] %v783_v52  ;;  %957 = vst [vmem:[#allocation2 + $0xbc] sm:$0x1] %v956_v39  ;;  %v2073_v43 = vrot.slane %v2071_v45, 4  ;;  %v11771_v28 = vrot.slane %v2013_v29, 9  ;;  %v14929_v61 = vsel %vm14917_vm14, %v11769_v27, %v2064_v2  ;;  %v14935_v44 = vsel %vm14917_vm14, %v2066_v53, %v2067_v4 }
  0x9f   : > { %v2080_v1 = vrot.slane %v2078_v47, 4  ;;  %v2081_v38 = vrot.slane %v14301_v5, 5  ;;  %v14939_v8 = vld [vmem:[#allocation2 + $0xb0] sm:$0x1]  ;;  %v1371_v9 = vrot.slane %v1369_v54, 4  ;;  %v1374_v3 = vrot.slane %v1372_v57, 5 }
  0xa0   : > { %v14937_v6 = vld [vmem:[#allocation2 + $0xac] sm:$0xf]  ;;  %v14943_v13 = vsel %vm14917_vm14, %v11770_v40, %v2071_v45  ;;  %v14947_v63 = vsel %vm14917_vm14, %v2073_v43, %v2074_v34  ;;  %v1388_v17 = vshll.u32 %v14939_v8, 16  ;;  %v11801_v16 = vcombine.low %v14929_v61, %v14935_v44  ;;  %v14302_v2 = vld [vmem:[#allocation2 + $0x28] sm:$0xf] }
  0xa1   : > { %v1378_v4 = vshll.u32 %v14937_v6, 16  ;;  %v1382_v15 = vshrl.u32 %v14937_v6, 16  ;;  %v11759_v19 = vcombine.low %v993_v48, %v14937_v6  ;;  %v1375_v59 = vor.u32 %v1374_v3, %v1371_v9  ;;  %v14303_v46 = vld [vmem:[#allocation2 + $0x2c] sm:$0x1]  ;;  %v2016_v5 = vld [vmem:[#allocation2 + $0x3c] sm:$0xe] }
  0xa2   : > { %v14957_v22 = vsel %vm14917_vm14, %v11771_v28, %v2078_v47  ;;  %v995_v24 = vld [vmem:[#allocation2 + $0xb4] sm:$0xf]  ;;  %v11802_v26 = vcombine.low %v14943_v13, %v14947_v63  ;;  %v11772_v27 = vrot.slane %v14925_v60, 9  ;;  %v2085_v29 = vrot.slane %v14302_v2, 5  ;;  %v14106_v54 = vld [vmem:[#allocation2 + $0xc] sm:$0xff]  }
  0xa3   : > { %v1380_v33 = vrot.slane %v1378_v4, 5  ;;  %v1384_v36 = vrot.slane %v1382_v15, 4  ;;  %13276 = vmatprep.mubr.bf16.mxu1 %v11759_v19  ;;  %v1376_v30 = vrot.slane %v1375_v59, 4  ;;  %v1393_v31 = vshrl.u32 %v995_v24, 16  ;;  %v14304_v19 = vld [vmem:[#allocation2 + $0x34] sm:$0xf] }
  0xa4   : > { %v1396_v32 = vshll.u32 %v995_v24, 16  ;;  %v1390_v34 = vrot.slane %v1388_v17, 5  ;;  %v14968_v45 = vsel %vm14917_vm14, %v2080_v1, %v2081_v38  ;;  %v2088_v47 = vrot.slane %v14303_v46, 5  ;;  %v2022_v44 = vld [vmem:[#allocation2 + $0x84] sm:$0xe] }
  0xa5   : > { %v1385_v25 = vor.u32 %v1384_v36, %v1380_v33  ;;  %v14962_v40 = vld [vmem:[#allocation2 + $0xb8] sm:$0xf]  ;;  %v14964_v42 = vld [vmem:[#allocation2 + $0xbc] sm:$0x1]  ;;  %v1381_v48 = vsel %vm14518_vm11, %v1376_v30, %v1380_v33  ;;  %v1395_v52 = vrot.slane %v1393_v31, 4  ;;  %v2087_v9 = vrot.slane %v2085_v29, 4 }
  0xa6   : > { %v1398_v39 = vrot.slane %v1396_v32, 5  ;;  %v1402_v53 = vshll.u32 %v14962_v40, 16  ;;  %v1406_v43 = vshrl.u32 %v14962_v40, 16  ;;  %v1412_v28 = vshll.u32 %v14964_v42, 16  ;;  %v2017_v33 = vld [vmem:[#allocation2 + $0x48] sm:$0xe] }
  0xa7   : > { %v1386_v57 = vrot.slane %v1385_v25, 4  ;;  %v11760_v60 = vcombine.low %v995_v24, %v14962_v40  ;;  %v11773_v3 = vrot.slane %v2015_v37, 9  ;;  %v11803_v17 = vcombine.low %v14957_v22, %v14968_v45  ;;  %v14305_v37 = vld [vmem:[#allocation2 + $0x38] sm:$0x1]  ;;  %v2018_v32 = vld [vmem:[#allocation2 + $0x54] sm:$0xe] }
  0xa8   : > { %v1399_v1 = vor.u32 %v1398_v39, %v1395_v52  ;;  %v1404_v38 = vrot.slane %v1402_v53, 5  ;;  %v1408_v15 = vrot.slane %v1406_v43, 4  ;;  %v2092_v59 = vrot.slane %v14304_v19, 5  ;;  %v430_v52 = vld [vmem:[%s14432_s9 + $0xf0] sm:$0xff]  ;;  %v14107_v43 = vld [vmem:[#allocation2 + $0x18] sm:$0xff]  }
  0xa9   : > { %v1391_v4 = vsel %vm14518_vm11, %v1386_v57, %v1390_v34  ;;  %13277 = vmatmul.mubr.bf16.gmra.mxu1 %v11760_v60  ;;  %v14982_v24 = vsel %vm14917_vm14, %v11772_v27, %v2085_v29  ;;  %v2095_v31 = vrot.slane %v14305_v37, 5  ;;  %v1414_v25 = vrot.slane %v1412_v28, 5  ;;  %v14306_v29 = vld [vmem:[#allocation2 + $0x40] sm:$0xf]  ;;  %v14307_v60 = vld [vmem:[#allocation2 + $0x4c] sm:$0xf] }
  0xaa   : > { %v11735_v36 = vcombine.low %v1381_v48, %v1391_v4  ;;  %v1400_v30 = vrot.slane %v1399_v1, 4  ;;  %13344 = vmatprep.mubr.bf16.mxu1 %v14106_v54  ;;  %v1409_v2 = vor.u32 %v1408_v15, %v1404_v38  ;;  %v14986_v34 = vsel %vm14917_vm14, %v2087_v9, %v2088_v47  ;;  %v2019_v54 = vld [vmem:[#allocation2 + $0x60] sm:$0xe]  ;;  %v14109_v9 = vld [vmem:[#allocation2 + $0x24] sm:$0xff]   ;;  %v14309_v19 = vld [vmem:[#allocation2 + $0x50] sm:$0x1] }
  0xab   : > { %v2094_v46 = vrot.slane %v2092_v59, 4  ;;  %v14993_v39 = vsel %vm14917_vm14, %v11773_v3, %v2092_v59  ;;  %v11774_v27 = vrot.slane %v2016_v5, 9  ;;  %v2099_v53 = vrot.slane %v14306_v29, 5  ;;  %v14311_v29 = vld [vmem:[#allocation2 + $0x5c] sm:$0x1] }
  0xac   : > { %13228 = vmatprep.mubr.bf16.mxu0 %v11735_v36  ;;  %v1405_v48 = vsel %vm14518_vm11, %v1400_v30, %v1404_v38  ;;  %v1410_v57 = vrot.slane %v1409_v2, 4  ;;  %v11775_v28 = vrot.slane %v2017_v33, 9  ;;  %v2106_v1 = vrot.slane %v14307_v60, 5  ;;  %v14308_v38 = vld [vmem:[#allocation2 + $0x44] sm:$0x1] }
  0xad   : > { %v14997_v47 = vsel %vm14917_vm14, %v2094_v46, %v2095_v31  ;;  %v2101_v4 = vrot.slane %v2099_v53, 4  ;;  %v2102_v15 = vrot.slane %v14308_v38, 5  ;;  %v2109_v3 = vrot.slane %v14309_v19, 5  ;;  %v14310_v2 = vld [vmem:[#allocation2 + $0x58] sm:$0xf] }
  0xae   : > { %v14999_v59 = vpack.c.bf16 %v430_v52, %v430_v52  ;;  %v1415_v5 = vsel %vm14518_vm11, %v1410_v57, %v1414_v25  ;;  %v11804_v36 = vcombine.low %v14982_v24, %v14986_v34  ;;  %v2108_v30 = vrot.slane %v2106_v1, 4  ;;  %v2020_v38 = vld [vmem:[#allocation2 + $0x6c] sm:$0xe]  ;;  %v14121_v52 = vld [vmem:[%s19463_s1 + $0x170] sm:$0xff]   ;;  %v2021_v19 = vld [vmem:[#allocation2 + $0x78] sm:$0xe] }
  0xaf   : > { %v11776_v37 = vrot.slane %v2018_v32, 9  ;;  %v11736_v31 = vcombine.low %v1405_v48, %v1415_v5  ;;  %v11805_v33 = vcombine.low %v14993_v39, %v14997_v47  ;;  %v2113_v46 = vrot.slane %v14310_v2, 5 }
  0xb0   : > { %v2116_v60 = vrot.slane %v14311_v29, 5  ;;  %v15012_v25 = vsel %vm14917_vm14, %v11774_v27, %v2099_v53  ;;  %v15016_v32 = vsel %vm14917_vm14, %v11775_v28, %v2106_v1  ;;  %v11777_v48 = vrot.slane %v2019_v54, 9  ;;  %v2024_v29 = vld [vmem:[#allocation2 + $0x9c] sm:$0xe] }
  0xb1   : > { %13345 = vmatmul.mubr.bf16.vlgmr.msra.gmra.mxu1 %v14107_v43  ;;  %v2120_v57 = vrot.slane %v14769_v41, 5  ;;  %13229 = vmatmul.mubr.bf16.gmra.mxu0 %v11736_v31  ;;  %v15021_v5 = vsel %vm14917_vm14, %v2101_v4, %v2102_v15  ;;  %v15025_v43 = vsel %vm14917_vm14, %v2108_v30, %v2109_v3  ;;  %v2115_v27 = vrot.slane %v2113_v46, 4  ;;  %v14110_v15 = vld [vmem:[#allocation2 + $0x30] sm:$0xff]  }
  0xb2   : > { %13348 = vmatprep.mubr.bf16.mxu1 %v14109_v9  ;;  %v2123_v53 = vrot.slane %v14778_v51, 5  ;;  %13296 = vmatprep.mubr.bf16.mxu0 %v11801_v16  ;;  %v15033_v41 = vsel %vm14917_vm14, %v11776_v37, %v2113_v46  ;;  %v11778_v28 = vrot.slane %v2020_v38, 9  ;;  %v2127_v1 = vrot.slane %v14782_v11, 5  ;;  %v14125_v16 = vld [vmem:[%s19463_s1 + $0x168] sm:$0xff]   ;;  %v2023_v30 = vld [vmem:[#allocation2 + $0x90] sm:$0xe] }
  0xb3   : > { %v2122_v54 = vrot.slane %v2120_v57, 4  ;;  %13425 = vmatpush3.bf16.msra.mxu1 %v14877_v49  ;;  %v15039_v9 = vsel %vm14917_vm14, %v2115_v27, %v2116_v60  ;;  %v2130_v51 = vrot.slane %v14784_v12, 5  ;;  %v11779_v4 = vrot.slane %v2021_v19, 9  ;;  %v14112_v37 = vld [vmem:[#allocation2 + $0x3c] sm:$0xff]   ;;  %v14108_v60 = vld [vmem:[%s19463_s1 + $0x130] sm:$0xff]  }
  0xb4   : > { %13426 = vmatprep.subr.bf16.mxu1 %v14121_v52  ;;  %v2134_v61 = vrot.slane %v14818_v7, 5  ;;  %v11806_v11 = vcombine.low %v15012_v25, %v15021_v5  ;;  %v11807_v49 = vcombine.low %v15016_v32, %v15025_v43  ;;  %v15052_v3 = vsel %vm14917_vm14, %v11777_v48, %v2120_v57  ;;  %v2025_v27 = vld [vmem:[#allocation2 + $0xa8] sm:$0xe]  ;;  %v14119_v25 = vld [vmem:[#allocation2 + $0x78] sm:$0xff]  }
  0xb5   : > { %v2129_v12 = vrot.slane %v2127_v1, 4  ;;  %v11808_v7 = vcombine.low %v15033_v41, %v15039_v9  ;;  %v15058_v31 = vsel %vm14917_vm14, %v2122_v54, %v2123_v53  ;;  %v2137_v46 = vrot.slane %v14824_v20, 5  ;;  %v15292_v9 = vld [vmem:[%s19463_s1 + $0x1b8] sm:$0xff]  }
  0xb6   : > { %v2136_v2 = vrot.slane %v2134_v61, 4  ;;  %v15066_v38 = vsel %vm14917_vm14, %v11778_v28, %v2127_v1  ;;  %v11780_v48 = vrot.slane %v2022_v44, 9  ;;  %v2141_v57 = vrot.slane %v14841_v62, 5  ;;  %v14126_v1 = vld [vmem:[%s19463_s1 + $0x160] sm:$0xff]  }
  0xb7   : > { %13427 = vmatpush3.bf16.msra.mxu1 %v14121_v52  ;;  %v2144_v19 = vrot.slane %v14843_v0, 5  ;;  %v15072_v53 = vsel %vm14917_vm14, %v2129_v12, %v2130_v51  ;;  %v15076_v20 = vsel %vm14917_vm14, %v11779_v4, %v2134_v61  ;;  %v11781_v54 = vrot.slane %v2023_v30, 9  ;;  %v2026_v30 = vld [vmem:[#allocation2 + $0xb4] sm:$0xe] }
  0xb8   : > { %13428 = vmatprep.subr.bf16.mxu1 %v14125_v16  ;;  %v2148_v28 = vrot.slane %v14879_v55, 5  ;;  %v15081_v52 = vsel %vm14917_vm14, %v2136_v2, %v2137_v46  ;;  %v15085_v62 = vsel %vm14917_vm14, %v11780_v48, %v2141_v57  ;;  %v2143_v0 = vrot.slane %v2141_v57, 4  ;;  %v431_v2 = vld [vmem:[%s14432_s9 + $0xf8] sm:$0xff]  ;;  %v2882_v57 = vld [vmem:[#allocation2 + $0xc] sm:$0xf] }
  0xb9   : > { %13349 = vmatmul.mubr.bf16.gmra.mxu1 %v14110_v15  ;;  %v2151_v51 = vrot.slane %v14881_v56, 5  ;;  %13297 = vmatmul.mubr.bf16.vlgmr.msra.gmra.mxu0 %v11802_v26  ;;  %v11782_v61 = vrot.slane %v2024_v29, 9  ;;  %v2155_v44 = vrot.slane %v14892_v21, 5  ;;  %v14312_v15 = vld [vmem:[%s19463_s1 + $0x138] sm:$0xff]   ;;  %v14111_v56 = vld [vmem:[%s19463_s1 + $0x128] sm:$0xff]   ;;  %v2158_v21 = vrot.slane %v14894_v23, 5 }
  0xba   : > { %13352 = vmatprep.mubr.bf16.mxu1 %v14112_v37  ;;  %v15096_v55 = vsel %vm14917_vm14, %v11781_v54, %v2148_v28  ;;  %v2150_v4 = vrot.slane %v2148_v28, 4  ;;  %13377 = vmatpush3.bf16.msra.mxu0 %v14312_v15  ;;  %v15110_v13 = vsel %vm14917_vm14, %v2143_v0, %v2144_v19  ;;  %v11783_v63 = vrot.slane %v2025_v27, 9  ;;  %v338_v37 = vld [vmem:[#allocation2 + $0xc0] sm:$0x1]  ;;  %v14113_v23 = vld [vmem:[#allocation2 + $0x48] sm:$0xff]   ;;  %v14130_v48 = vld [vmem:[%s19463_s1 + $0x158] sm:$0xff]  }
  0xbb   : > { %13300 = vmatprep.mubr.bf16.mxu0 %v11803_v17  ;;  %v2162_v26 = vrot.slane %v14937_v6, 5  ;;  %13378 = vmatprep.subr.bf16.mxu0 %v14108_v60  ;;  %v11809_v12 = vcombine.low %v15052_v3, %v15058_v31  ;;  %v11810_v22 = vcombine.low %v15066_v38, %v15072_v53  ;;  %v2157_v17 = vrot.slane %v2155_v44, 4  ;;  %v14115_v19 = vld [vmem:[#allocation2 + $0x54] sm:$0xff]   ;;  %v15148_v15 = vld [vmem:[#allocation2 + $0x10] sm:$0xf]  ;;  %v14129_v53 = vld [vmem:[#allocation2 + $0xa8] sm:$0xff]  }
  0xbc   : > { %13429 = vmatpush3.bf16.msra.mxu1 %v14125_v16  ;;  %v15120_v45 = vsel %vm14917_vm14, %v2150_v4, %v2151_v51  ;;  %v15131_v16 = vsel %vm14917_vm14, %v11782_v61, %v2155_v44  ;;  %v2165_v28 = vrot.slane %v14939_v8, 5  ;;  %v2169_v0 = vrot.slane %v14962_v40, 5  ;;  %v14131_v40 = vld [vmem:[%s19463_s1 + $0x150] sm:$0xff]   ;;  %v2885_v29 = vld [vmem:[#allocation2 + $0x18] sm:$0xf] }
  0xbd   : > { %13430 = vmatprep.subr.bf16.mxu1 %v14126_v1  ;;  %v15138_v27 = vsel %vm14917_vm14, %v2157_v17, %v2158_v21  ;;  %v2164_v54 = vrot.slane %v2162_v26, 4  ;;  %v15144_v51 = vsel %vm14917_vm14, %v11783_v63, %v2162_v26  ;;  %v11784_v4 = vrot.slane %v2026_v30, 9  ;;  %v14114_v21 = vld [vmem:[%s19463_s1 + $0x120] sm:$0xff]   ;;  %v14122_v6 = vld [vmem:[%s19463_s1 + $0x110] sm:$0xff]  }
  0xbe   : > { %13379 = vmatpush3.bf16.msra.mxu0 %v14108_v60  ;;  %v339_v61 = vsel %vm14436_vm3, 0, %v338_v37  ;;  %v12592_v44 = vpack.c.bf16 %v431_v2, %v431_v2  ;;  %v2171_v60 = vrot.slane %v2169_v0, 4  ;;  %v2172_v63 = vrot.slane %v14964_v42, 5  ;;  %v14124_v31 = vld [vmem:[#allocation2 + $0x90] sm:$0xff]  }
  0xbf   : > { %13380 = vmatprep.subr.bf16.mxu0 %v14111_v56  ;;  %340 = vst [vmem:[#allocation2 + $0xc0] sm:$0x1] %v339_v61  ;;  %v786_v26 = vshrl.u32 %v14999_v59, 16  ;;  %v789_v17 = vshll.u32 %v14999_v59, 16  ;;  %v2931_v2 = vshrl.u32 %v2882_v57, 16  ;;  %v15168_v42 = vsel %vm14917_vm14, %v2164_v54, %v2165_v28  ;;  %v14117_v54 = vld [vmem:[%s19463_s1 + $0x118] sm:$0xff]  }
  0xc0   : > { %13431 = vmatpush3.bf16.msra.mxu1 %v14126_v1  ;;  %v794_v30 = vshrl.u32 %v12592_v44, 16  ;;  %v797_v37 = vshll.u32 %v12592_v44, 16  ;;  %v15161_v1 = vld [vmem:[#allocation2 + $0x14] sm:$0x1]  ;;  %v2934_v8 = vshll.u32 %v2882_v57, 16  ;;  %v15176_v59 = vsel %vm14917_vm14, %v11784_v4, %v2169_v0  ;;  %v14116_v57 = vld [vmem:[#allocation2 + $0x60] sm:$0xff]  }
  0xc1   : > { %13353 = vmatmul.mubr.bf16.gmra.mxu1 %v14113_v23  ;;  %13432 = vmatprep.subr.bf16.mxu1 %v14130_v48  ;;  %v788_v61 = vrot.slane %v786_v26, 7  ;;  %v2940_v23 = vshll.u32 %v15148_v15, 16  ;;  %v2933_v34 = vrot.slane %v2931_v2, 4  ;;  %v15193_v0 = vsel %vm14917_vm14, %v2171_v60, %v2172_v63 }
  0xc2   : > { %13301 = vmatmul.mubr.bf16.gmra.mxu0 %v11804_v36  ;;  %13356 = vmatprep.mubr.bf16.mxu1 %v14115_v19  ;;  %v15178_v24 = vrot.slane %v794_v30, 7  ;;  %v2944_v36 = vshrl.u32 %v15148_v15, 16  ;;  %v15181_v19 = vld [vmem:[#allocation2 + $0x1c] sm:$0xf]  ;;  %v2950_v26 = vshll.u32 %v15161_v1, 16  ;;  %v14118_v30 = vld [vmem:[#allocation2 + $0x6c] sm:$0xff]   ;;  %v19513_v38 = vcombine.low %v15076_v20, %v15081_v52 }
  0xc3   : > { %13304 = vmatprep.mubr.bf16.mxu0 %v11805_v33  ;;  %13381 = vmatpush3.bf16.msra.mxu0 %v14111_v56  ;;  %v791_v39 = vor.u32 %v789_v17, %v788_v61  ;;  %v792_v47 = vrot.slane %v788_v61, 4  ;;  %v14135_v33 = vld [vmem:[%s19463_s1 + $0x148] sm:$0xff]   ;;  %v2936_v56 = vrot.slane %v2934_v8, 5  ;;  %v15189_v28 = vrot.slane %v2940_v23, 5 }
  0xc4   : > { %13382 = vmatprep.subr.bf16.mxu0 %v14114_v21  ;;  %13433 = vmatpush3.bf16.msra.mxu1 %v14130_v48  ;;  %v799_v4 = vor.u32 %v797_v37, %v15178_v24  ;;  %v2946_v44 = vrot.slane %v2944_v36, 4  ;;  %v15197_v48 = vld [vmem:[#allocation2 + $0x20] sm:$0x1]  ;;  %v3636_v17 = vld [vmem:[#allocation2 + $0xc] sm:$0xe]  ;;  %v2955_v61 = vshrl.u32 %v2885_v29, 16 }
  0xc5   : > { %13434 = vmatprep.subr.bf16.mxu1 %v14131_v40  ;;  %v2937_v2 = vor.u32 %v2936_v56, %v2933_v34  ;;  %v2958_v46 = vshll.u32 %v2885_v29, 16  ;;  %v2964_v8 = vshll.u32 %v15181_v19, 16  ;;  %v2952_v37 = vrot.slane %v2950_v26, 5 }
  0xc6   : > { %v800_v23 = vsel %vm14496_vm10, %v792_v47, %v799_v4  ;;  %v958_v60 = vld [vmem:[#allocation2 + $0xc0] sm:$0xf]  ;;  %v2947_v63 = vor.u32 %v2946_v44, %v15189_v28  ;;  %v2968_v36 = vshrl.u32 %v15181_v19, 16  ;;  %v2957_v34 = vrot.slane %v2955_v61, 4 }
  0xc7   : > { %13383 = vmatpush3.bf16.msra.mxu0 %v14114_v21  ;;  %v959_v29 = vsel %vm14489_vm9, %v791_v39, %v958_v60  ;;  %961 = vst [vmem:[#allocation2 + $0xc4] sm:$0xf] %v800_v23  ;;  %v2938_v21 = vrot.slane %v2937_v2, 4  ;;  %v2960_v56 = vrot.slane %v2958_v46, 5  ;;  %v14136_v47 = vld [vmem:[%s19463_s1 + $0x140] sm:$0xff]   ;;  %v15212_v44 = vrot.slane %v2964_v8, 5 }
  0xc8   : > { %13384 = vmatprep.subr.bf16.mxu0 %v14117_v54  ;;  %13435 = vmatpush3.bf16.msra.mxu1 %v14131_v40  ;;  %960 = vst [vmem:[#allocation2 + $0xc0] sm:$0xf] %v959_v29  ;;  %v2948_v4 = vrot.slane %v2947_v63, 4  ;;  %v2970_v26 = vrot.slane %v2968_v36, 4  ;;  %v2974_v40 = vshll.u32 %v15197_v48, 16  ;;  %v14127_v46 = vld [vmem:[%s19463_s1 + $0x108] sm:$0xff]  }
  0xc9   : > { %13357 = vmatmul.mubr.bf16.gmra.mxu1 %v14116_v57  ;;  %13436 = vmatprep.subr.bf16.mxu1 %v14135_v33  ;;  %v2961_v39 = vor.u32 %v2960_v56, %v2957_v34  ;;  %v11905_v2 = vrot.slane %v3636_v17, 9  ;;  %v3702_v61 = vrot.slane %v15148_v15, 5  ;;  %v3637_v8 = vld [vmem:[#allocation2 + $0x18] sm:$0xe]  ;;  %v3705_v23 = vrot.slane %v15161_v1, 5 }
  0xca   : > { %13305 = vmatmul.mubr.bf16.gmra.mxu0 %v11806_v11  ;;  %13360 = vmatprep.mubr.bf16.mxu1 %v14118_v30  ;;  %v2971_v11 = vor.u32 %v2970_v26, %v15212_v44  ;;  %v2976_v30 = vrot.slane %v2974_v40, 5  ;;  %v2888_v60 = vld [vmem:[#allocation2 + $0x24] sm:$0xf]  ;;  %v15231_v63 = vld [vmem:[#allocation2 + $0x28] sm:$0xf]  ;;  %v2943_v32 = vsel %vm14518_vm11, %v2938_v21, %v15189_v28  ;;  %v2953_v43 = vsel %vm14518_vm11, %v2948_v4, %v2952_v37  ;;  %v15249_v28 = vld [vmem:[%s19463_s1 + $0x1f8] sm:$0xff]  }
  0xcb   : > { %13308 = vmatprep.mubr.bf16.mxu0 %v11807_v49  ;;  %13385 = vmatpush3.bf16.msra.mxu0 %v14117_v54  ;;  %v2962_v49 = vrot.slane %v2961_v39, 4  ;;  %v3704_v15 = vrot.slane %v3702_v61, 4  ;;  %v15238_v54 = vld [vmem:[#allocation2 + $0x2c] sm:$0x1]  ;;  %v2891_v17 = vld [vmem:[#allocation2 + $0x30] sm:$0xf]  ;;  %v15243_v29 = vsel %vm14917_vm14, %v11905_v2, %v3702_v61  ;;  %v15257_v40 = vcombine.low %v2943_v32, %v2953_v43 }
  0xcc   : > { %13386 = vmatprep.subr.bf16.mxu0 %v14122_v6  ;;  %13437 = vmatpush3.bf16.msra.mxu1 %v14135_v33  ;;  %v2972_v1 = vrot.slane %v2971_v11, 4  ;;  %v3709_v33 = vrot.slane %v15181_v19, 5  ;;  %v14123_v37 = vld [vmem:[#allocation2 + $0x84] sm:$0xff]   ;;  %v11906_v34 = vrot.slane %v3637_v8, 9  ;;  %v2979_v56 = vshrl.u32 %v2888_v60, 16 }
  0xcd   : > { %13438 = vmatprep.subr.bf16.mxu1 %v14136_v47  ;;  %v15253_v21 = vsel %vm14917_vm14, %v3704_v15, %v3705_v23  ;;  %v2982_v4 = vshll.u32 %v2888_v60, 16  ;;  %v15255_v26 = vld [vmem:[#allocation2 + $0x34] sm:$0xf]  ;;  %v2967_v19 = vsel %vm14518_vm11, %v2962_v49, %v15212_v44  ;;  %v3712_v2 = vrot.slane %v15197_v48, 5  ;;  %v15265_v61 = vld [vmem:[#allocation2 + $0x38] sm:$0x1] }
  0xce   : > { %v2977_v39 = vsel %vm14518_vm11, %v2972_v1, %v2976_v30  ;;  %v14132_v8 = vld [vmem:[%s19463_s1 + $0x100] sm:$0xff]   ;;  %v2981_v11 = vrot.slane %v2979_v56, 4  ;;  %v2988_v44 = vshll.u32 %v15231_v63, 16  ;;  %v3711_v60 = vrot.slane %v3709_v33, 4 }
  0xcf   : > { %13387 = vmatpush3.bf16.msra.mxu0 %v14122_v6  ;;  %v11937_v6 = vcombine.low %v15243_v29, %v15253_v21  ;;  %v2984_v23 = vrot.slane %v2982_v4, 5  ;;  %v2992_v30 = vshrl.u32 %v15231_v63, 16  ;;  %v2998_v48 = vshll.u32 %v15238_v54, 16  ;;  %v3638_v43 = vld [vmem:[#allocation2 + $0x24] sm:$0xe] }
  0xd0   : > { %13388 = vmatprep.subr.bf16.mxu0 %v14127_v46  ;;  %13439 = vmatpush3.bf16.msra.mxu1 %v14136_v47  ;;  %v3003_v32 = vshrl.u32 %v2891_v17, 16  ;;  %v15281_v47 = vsel %vm14917_vm14, %v11906_v34, %v3709_v33  ;;  %v3006_v15 = vshll.u32 %v2891_v17, 16  ;;  %v15286_v1 = vcombine.low %v2967_v19, %v2977_v39 }
  0xd1   : > { %13361 = vmatmul.mubr.bf16.gmra.mxu1 %v14119_v25  ;;  %13520 = vmatprep.subr.bf16.mxu1 %v15249_v28  ;;  %v2985_v49 = vor.u32 %v2984_v23, %v2981_v11  ;;  %v2990_v25 = vrot.slane %v2988_v44, 5  ;;  %v2994_v56 = vrot.slane %v2992_v30, 4  ;;  %v3012_v41 = vshll.u32 %v15255_v26, 16  ;;  %v3639_v30 = vld [vmem:[#allocation2 + $0x30] sm:$0xe] }
  0xd2   : > { %13309 = vmatmul.mubr.bf16.gmra.mxu0 %v11808_v7  ;;  %13364 = vmatprep.mubr.bf16.mxu1 %v14123_v37  ;;  %v3005_v4 = vrot.slane %v3003_v32, 4  ;;  %v3008_v33 = vrot.slane %v3006_v15, 5  ;;  %v3016_v17 = vshrl.u32 %v15255_v26, 16  ;;  %v3022_v3 = vshll.u32 %v15265_v61, 16  ;;  %v2894_v32 = vld [vmem:[#allocation2 + $0x3c] sm:$0xf] }
  0xd3   : > { %13312 = vmatprep.mubr.bf16.mxu0 %v11809_v12  ;;  %13389 = vmatpush3.bf16.msra.mxu0 %v14127_v46  ;;  %v2986_v7 = vrot.slane %v2985_v49, 4  ;;  %v14128_v12 = vld [vmem:[#allocation2 + $0x9c] sm:$0xff]   ;;  %v2995_v46 = vor.u32 %v2994_v56, %v2990_v25  ;;  %v3000_v37 = vrot.slane %v2998_v48, 5  ;;  %v15296_v34 = vrot.slane %v3012_v41, 5 }
  0xd4   : > { %13390 = vmatprep.subr.bf16.mxu0 %v14132_v8  ;;  %v3716_v19 = vrot.slane %v15231_v63, 5  ;;  %v15301_v39 = vsel %vm14917_vm14, %v3711_v60, %v3712_v2  ;;  %v3009_v11 = vor.u32 %v3008_v33, %v3005_v4  ;;  %v3018_v23 = vrot.slane %v3016_v17, 4  ;;  %v15306_v41 = vld [vmem:[#allocation2 + $0x40] sm:$0xf] }
  0xd5   : > { %v11907_v44 = vrot.slane %v3638_v43, 9  ;;  %v2991_v49 = vsel %vm14518_vm11, %v2986_v7, %v2990_v25  ;;  %v2996_v15 = vrot.slane %v2995_v46, 4  ;;  %v3719_v48 = vrot.slane %v15238_v54, 5  ;;  %v15335_v46 = vld [vmem:[#allocation2 + $0x4c] sm:$0xf] }
  0xd6   : > { %v3718_v56 = vrot.slane %v3716_v19, 4  ;;  %v15309_v63 = vrot.slane %v3009_v11, 4  ;;  %v3019_v2 = vor.u32 %v3018_v23, %v15296_v34  ;;  %v15312_v60 = vrot.slane %v3022_v3, 5  ;;  %v15346_v11 = vld [vmem:[#allocation2 + $0x50] sm:$0x1] }
  0xd7   : > { %13391 = vmatpush3.bf16.msra.mxu0 %v14132_v8  ;;  %v3723_v43 = vrot.slane %v15255_v26, 5  ;;  %v15315_v8 = vld [vmem:[#allocation2 + $0x44] sm:$0x1]  ;;  %v3001_v54 = vsel %vm14518_vm11, %v2996_v15, %v3000_v37  ;;  %v11908_v4 = vrot.slane %v3639_v30, 9  ;;  %v3027_v7 = vshrl.u32 %v2894_v32, 16 }
  0xd8   : > { %13472 = vmatprep.subr.bf16.mxu0 %v15292_v9  ;;  %v15324_v33 = vrot.slane %v3019_v2, 4  ;;  %v15328_v26 = vsel %vm14917_vm14, %v11907_v44, %v3716_v19  ;;  %v15332_v17 = vsel %vm14917_vm14, %v3718_v56, %v3719_v48  ;;  %v3726_v3 = vrot.slane %v15265_v61, 5  ;;  %v3640_v61 = vld [vmem:[#allocation2 + $0x3c] sm:$0xe] }
  0xd9   : > { %13365 = vmatmul.mubr.bf16.gmra.mxu1 %v14124_v31  ;;  %v2897_v31 = vld [vmem:[#allocation2 + $0x48] sm:$0xf]  ;;  %v3029_v37 = vrot.slane %v3027_v7, 4  ;;  %v3030_v19 = vshll.u32 %v2894_v32, 16  ;;  %v3725_v23 = vrot.slane %v3723_v43, 4  ;;  %v3036_v44 = vshll.u32 %v15306_v41, 16 }
  0xda   : > { %13313 = vmatmul.mubr.bf16.gmra.mxu0 %v11810_v22  ;;  %13368 = vmatprep.mubr.bf16.mxu1 %v14128_v12  ;;  %v15340_v22 = vcombine.low %v2991_v49, %v3001_v54  ;;  %v3015_v12 = vsel %vm14518_vm11, %v15309_v63, %v15296_v34  ;;  %v3040_v30 = vshrl.u32 %v15306_v41, 16  ;;  %v3046_v20 = vshll.u32 %v15315_v8, 16  ;;  %v14133_v32 = vld [vmem:[#allocation2 + $0xb4] sm:$0xff]  }
  0xdb   : > { %13316 = vmatprep.mubr.bf16.mxu0 %v19513_v38  ;;  %v15355_v49 = vsel %vm14917_vm14, %v11908_v4, %v3723_v43  ;;  %v3032_v34 = vrot.slane %v3030_v19, 5  ;;  %v3051_v15 = vshrl.u32 %v2897_v31, 16  ;;  %v3025_v56 = vsel %vm14518_vm11, %v15324_v33, %v15312_v60  ;;  %v3641_v33 = vld [vmem:[#allocation2 + $0x48] sm:$0xe] }
  0xdc   : > { %v3038_v48 = vrot.slane %v3036_v44, 5  ;;  %v3042_v63 = vrot.slane %v3040_v30, 4  ;;  %v3048_v2 = vrot.slane %v3046_v20, 5  ;;  %v3054_v38 = vshll.u32 %v2897_v31, 16 }
  0xdd   : > { %v3033_v54 = vor.u32 %v3032_v34, %v3029_v37  ;;  %v3053_v7 = vrot.slane %v3051_v15, 4  ;;  %v3060_v36 = vshll.u32 %v15335_v46, 16  ;;  %v3064_v43 = vshrl.u32 %v15335_v46, 16  ;;  %v15382_v34 = vld [vmem:[#allocation2 + $0x58] sm:$0xf] }
  0xde   : > { %v3043_v52 = vor.u32 %v3042_v63, %v3038_v48  ;;  %v3070_v4 = vshll.u32 %v15346_v11, 16  ;;  %v11909_v19 = vrot.slane %v3640_v61, 9  ;;  %v3056_v25 = vrot.slane %v3054_v38, 5  ;;  %v2900_v61 = vld [vmem:[#allocation2 + $0x54] sm:$0xf] }
  0xdf   : > { %v3034_v5 = vrot.slane %v3033_v54, 4  ;;  %v15364_v57 = vrot.slane %v3060_v36, 5  ;;  %v3730_v60 = vrot.slane %v15306_v41, 5  ;;  %v19514_v37 = vcombine.low %v15085_v62, %v15110_v13  ;;  %v15388_v15 = vld [vmem:[#allocation2 + $0x5c] sm:$0x1] }
  0xe0   : > { %v15372_v31 = vsel %vm14917_vm14, %v3725_v23, %v3726_v3  ;;  %v3044_v44 = vrot.slane %v3043_v52, 4  ;;  %v3066_v30 = vrot.slane %v3064_v43, 4  ;;  %v19515_v36 = vcombine.low %v15096_v55, %v15120_v45  ;;  %v14134_v55 = vld [vmem:[#allocation2 + $0xc0] sm:$0xff]  }
  0xe1   : > { %13369 = vmatmul.mubr.bf16.gmra.mxu1 %v14129_v53  ;;  %v3733_v53 = vrot.slane %v15315_v8, 5  ;;  %v3039_v41 = vsel %vm14518_vm11, %v3034_v5, %v3038_v48  ;;  %v3057_v20 = vor.u32 %v3056_v25, %v3053_v7  ;;  %v15380_v62 = vrot.slane %v3070_v4, 5  ;;  %v2903_v48 = vld [vmem:[#allocation2 + $0x60] sm:$0xf] }
  0xe2   : > { %13317 = vmatmul.mubr.bf16.gmra.mxu0 %v19514_v37  ;;  %13372 = vmatprep.mubr.bf16.mxu1 %v14133_v32  ;;  %v3732_v13 = vrot.slane %v3730_v60, 4  ;;  %v3049_v3 = vsel %vm14518_vm11, %v3044_v44, %v3048_v2  ;;  %v3067_v23 = vor.u32 %v3066_v30, %v15364_v57  ;;  %v11910_v8 = vrot.slane %v3641_v33, 9 }
  0xe3   : > { %13320 = vmatprep.mubr.bf16.mxu0 %v19515_v36  ;;  %v3737_v52 = vrot.slane %v15335_v46, 5  ;;  %v15390_v45 = vrot.slane %v3057_v20, 4  ;;  %v15394_v5 = vsel %vm14917_vm14, %v11909_v19, %v3730_v60  ;;  %v3740_v32 = vrot.slane %v15346_v11, 5  ;;  %v2904_v60 = vld [vmem:[#allocation2 + $0x64] sm:$0xf] }
  0xe4   : > { %v15398_v25 = vsel %vm14917_vm14, %v3732_v13, %v3733_v53  ;;  %v15401_v63 = vcombine.low %v3015_v12, %v3025_v56  ;;  %v11940_v46 = vcombine.low %v15355_v49, %v15372_v31  ;;  %v3068_v2 = vrot.slane %v3067_v23, 4  ;;  %v15423_v53 = vld [vmem:[#allocation2 + $0x68] sm:$0x1] }
  0xe5   : > { %v3739_v54 = vrot.slane %v3737_v52, 4  ;;  %v15405_v7 = vcombine.low %v3039_v41, %v3049_v3  ;;  %v3075_v38 = vshrl.u32 %v2900_v61, 16  ;;  %v3078_v43 = vshll.u32 %v2900_v61, 16 }
  0xe6   : > { %v3084_v4 = vshll.u32 %v15382_v34, 16  ;;  %v11941_v19 = vcombine.low %v15394_v5, %v15398_v25  ;;  %v15412_v11 = vsel %vm14917_vm14, %v11910_v8, %v3737_v52  ;;  %v3088_v12 = vshrl.u32 %v15382_v34, 16  ;;  %v3643_v8 = vld [vmem:[#allocation2 + $0x60] sm:$0xe] }
  0xe7   : > { %v3094_v56 = vshll.u32 %v15388_v15, 16  ;;  %v3063_v33 = vsel %vm14518_vm11, %v15390_v45, %v15364_v57  ;;  %v3073_v37 = vsel %vm14518_vm11, %v3068_v2, %v15380_v62  ;;  %v3077_v44 = vrot.slane %v3075_v38, 4  ;;  %v3642_v62 = vld [vmem:[#allocation2 + $0x54] sm:$0xe] }
  0xe8   : > { %v3080_v30 = vrot.slane %v3078_v43, 5  ;;  %v19516_v61 = vcombine.low %v15131_v16, %v15138_v27  ;;  %v15433_v36 = vsel %vm14917_vm14, %v3739_v54, %v3740_v32  ;;  %v3086_v57 = vrot.slane %v3084_v4, 5  ;;  %v14143_v43 = vld [vmem:[%s19463_s1 + $0x1f0] sm:$0xff]  }
  0xe9   : > { %13373 = vmatmul.mubr.bf16.gmra.mxu1 %v14134_v55  ;;  %v3090_v41 = vrot.slane %v3088_v12, 4  ;;  %v3099_v20 = vshrl.u32 %v2903_v48, 16  ;;  %v19517_v13 = vcombine.low %v15144_v51, %v15168_v42  ;;  %v3102_v23 = vshll.u32 %v2903_v48, 16  ;;  %v2906_v48 = vld [vmem:[#allocation2 + $0x6c] sm:$0xf] }
  0xea   : > { %13321 = vmatmul.mubr.bf16.gmra.mxu0 %v19516_v61  ;;  %13440 = vmatprep.mubr.bf16.mxu1 %v11937_v6  ;;  %v3081_v3 = vor.u32 %v3080_v30, %v3077_v44  ;;  %v3108_v16 = vshll.u32 %v2904_v60, 16  ;;  %v3112_v27 = vshrl.u32 %v2904_v60, 16  ;;  %v3096_v29 = vrot.slane %v3094_v56, 5  ;;  %v15449_v30 = vld [vmem:[#allocation2 + $0x70] sm:$0xf] }
  0xeb   : > { %13324 = vmatprep.mubr.bf16.mxu0 %v19517_v13  ;;  %v3091_v52 = vor.u32 %v3090_v41, %v3086_v57  ;;  %v3101_v21 = vrot.slane %v3099_v20, 4  ;;  %v3118_v6 = vshll.u32 %v15423_v53, 16  ;;  %v3104_v45 = vrot.slane %v3102_v23, 5  ;;  %v15455_v20 = vld [vmem:[#allocation2 + $0x74] sm:$0x1] }
  0xec   : > { %v3082_v55 = vrot.slane %v3081_v3, 4  ;;  %v15439_v32 = vrot.slane %v3108_v16, 5  ;;  %v3114_v2 = vrot.slane %v3112_v27, 4  ;;  %v11911_v38 = vrot.slane %v3642_v62, 9  ;;  %v15468_v27 = vld [vmem:[#allocation2 + $0x7c] sm:$0xf] }
  0xed   : > { %v3092_v54 = vrot.slane %v3091_v52, 4  ;;  %v3744_v51 = vrot.slane %v15382_v34, 5  ;;  %v3747_v42 = vrot.slane %v15388_v15, 5  ;;  %v3105_v4 = vor.u32 %v3104_v45, %v3101_v21 }
  0xee   : > { %v3115_v12 = vor.u32 %v3114_v2, %v15439_v32  ;;  %v15447_v56 = vrot.slane %v3118_v6, 5  ;;  %v11912_v44 = vrot.slane %v3643_v8, 9  ;;  %v3087_v61 = vsel %vm14518_vm11, %v3082_v55, %v3086_v57  ;;  %v2909_v57 = vld [vmem:[#allocation2 + $0x78] sm:$0xf]  ;;  %v15509_v2 = vld [vmem:[#allocation2 + $0x80] sm:$0x1] }
  0xef   : > { %v3097_v34 = vsel %vm14518_vm11, %v3092_v54, %v3096_v29  ;;  %v3746_v15 = vrot.slane %v3744_v51, 4  ;;  %v3751_v41 = vrot.slane %v2904_v60, 5  ;;  %v19518_v62 = vcombine.low %v15281_v47, %v15301_v39 }
  0xf0   : > { %v15460_v13 = vcombine.low %v3063_v33, %v3073_v37  ;;  %v11942_v3 = vcombine.low %v15412_v11, %v15433_v36  ;;  %v15464_v23 = vrot.slane %v3105_v4, 4  ;;  %v15466_v16 = vrot.slane %v3115_v12, 4  ;;  %v15622_v11 = vld [vmem:[%s19463_s1 + $0x198] sm:$0xff]  }
  0xf1   : > { %13441 = vmatmul.mubr.bf16.vlgmr.msra.gmra.mxu1 %v19518_v62  ;;  %v19519_v60 = vcombine.low %v15176_v59, %v15193_v0  ;;  %v19520_v47 = vcombine.low %v15328_v26, %v15332_v17  ;;  %v15478_v39 = vsel %vm14917_vm14, %v11911_v38, %v3744_v51  ;;  %v15482_v33 = vsel %vm14917_vm14, %v3746_v15, %v3747_v42  ;;  %v14145_v59 = vld [vmem:[%s19463_s1 + $0x1e8] sm:$0xff]   ;;  %v3645_v62 = vld [vmem:[#allocation2 + $0x78] sm:$0xe] }
  0xf2   : > { %v3754_v37 = vrot.slane %v15423_v53, 5  ;;  %v3123_v8 = vshrl.u32 %v2906_v48, 16  ;;  %v15489_v0 = vcombine.low %v3087_v61, %v3097_v34  ;;  %v15493_v26 = vsel %vm14917_vm14, %v11912_v44, %v3751_v41  ;;  %13521 = vmatpush3.bf16.msra.mxu1 %v15249_v28  ;;  %v3644_v42 = vld [vmem:[#allocation2 + $0x6c] sm:$0xe] }
  0xf3   : > { %13325 = vmatmul.mubr.bf16.gmra.mxu0 %v19519_v60  ;;  %13444 = vmatprep.mubr.bf16.mxu1 %v19520_v47  ;;  %v3753_v17 = vrot.slane %v3751_v41, 4  ;;  %v3126_v52 = vshll.u32 %v2906_v48, 16  ;;  %v3111_v53 = vsel %vm14518_vm11, %v15464_v23, %v15439_v32  ;;  %v3132_v21 = vshll.u32 %v15449_v30, 16  ;;  %v14138_v48 = vld [vmem:[%s19463_s1 + $0x1b0] sm:$0xff]   ;;  %v15519_v23 = vpop.f32.mrf.mxu1 }
  0xf4   : > { %13392 = vmatprep.mubr.bf16.mxu0 %v15257_v40  ;;  %v3121_v40 = vsel %vm14518_vm11, %v15466_v16, %v15447_v56  ;;  %v3125_v29 = vrot.slane %v3123_v8, 4  ;;  %13522 = vmatprep.subr.bf16.mxu1 %v14143_v43  ;;  %v11943_v6 = vcombine.low %v15478_v39, %v15482_v33  ;;  %v3136_v28 = vshrl.u32 %v15449_v30, 16  ;;  %v15531_v8 = vld [vmem:[%s19463_s1 + $0x1a8] sm:$0xff]  }
  0xf5   : > { %v3128_v55 = vrot.slane %v3126_v52, 5  ;;  %v3142_v45 = vshll.u32 %v15455_v20, 16  ;;  %v3134_v32 = vrot.slane %v3132_v21, 5  ;;  %v3147_v54 = vshrl.u32 %v2909_v57, 16 }
  0xf6   : > { %v3150_v38 = vshll.u32 %v2909_v57, 16  ;;  %v3156_v51 = vshll.u32 %v15468_v27, 16  ;;  %v3138_v12 = vrot.slane %v3136_v28, 4  ;;  %v3160_v44 = vshrl.u32 %v15468_v27, 16  ;;  %13523 = vmatpush3.bf16.msra.mxu1 %v14143_v43  ;;  %v14146_v43 = vld [vmem:[%s19463_s1 + $0x1e0] sm:$0xff]  }
  0xf7   : > { %v3129_v4 = vor.u32 %v3128_v55, %v3125_v29  ;;  %v3144_v56 = vrot.slane %v3142_v45, 5  ;;  %v3149_v61 = vrot.slane %v3147_v54, 4  ;;  %v3166_v41 = vshll.u32 %v15509_v2, 16  ;;  %13524 = vmatprep.subr.bf16.mxu1 %v14145_v59  ;;  %v2912_v29 = vld [vmem:[#allocation2 + $0x84] sm:$0xf] }
  0xf8   : > { %v3152_v34 = vrot.slane %v3150_v38, 5  ;;  %v15516_v15 = vrot.slane %v3156_v51, 5  ;;  %v3139_v57 = vor.u32 %v3138_v12, %v3134_v32  ;;  %v3162_v60 = vrot.slane %v3160_v44, 4  ;;  %v2915_v28 = vld [vmem:[#allocation2 + $0x90] sm:$0xf] }
  0xf9   : > { %13445 = vmatmul.mubr.bf16.gmra.mxu1 %v11940_v46  ;;  %v3130_v16 = vrot.slane %v3129_v4, 4  ;;  %v11913_v47 = vrot.slane %v3644_v42, 9  ;;  %v15536_v31 = vrot.slane %v3166_v41, 5  ;;  %v3758_v46 = vrot.slane %v15449_v30, 5 }
  0xfa   : > { %13448 = vmatprep.mubr.bf16.mxu1 %v11941_v19  ;;  %v3153_v49 = vor.u32 %v3152_v34, %v3149_v61  ;;  %v3761_v52 = vrot.slane %v15455_v20, 5  ;;  %v3140_v21 = vrot.slane %v3139_v57, 4  ;;  %v3163_v5 = vor.u32 %v3162_v60, %v15516_v15  ;;  %v15547_v19 = vld [vmem:[#allocation2 + $0x88] sm:$0xf]  ;;  %13525 = vmatpush3.bf16.msra.mxu1 %v14145_v59  ;;  %v15610_v57 = vld [vmem:[#allocation2 + $0x98] sm:$0x1] }
  0xfb   : > { %13393 = vmatmul.mubr.bf16.vlgmr.msra.gmra.mxu0 %v15286_v1  ;;  %v15544_v1 = vsel %vm14917_vm14, %v3753_v17, %v3754_v37  ;;  %v11914_v25 = vrot.slane %v3645_v62, 9  ;;  %v15549_v55 = vcombine.low %v3111_v53, %v3121_v40  ;;  %v3135_v30 = vsel %vm14518_vm11, %v3130_v16, %v3134_v32  ;;  %v15557_v37 = vpop.f32.mrf.mxu1  ;;  %13526 = vmatprep.subr.bf16.mxu1 %v14146_v43  ;;  %v14148_v32 = vld [vmem:[%s19463_s1 + $0x1d8] sm:$0xff]  }
  0xfc   : > { %13473 = vmatpush3.bf16.msra.mxu0 %v15292_v9  ;;  %13396 = vmatprep.mubr.bf16.mxu0 %v15340_v22  ;;  %v15553_v20 = vrot.slane %v3153_v49, 4  ;;  %v3760_v9 = vrot.slane %v3758_v46, 4  ;;  %v15555_v22 = vld [vmem:[#allocation2 + $0x8c] sm:$0x1]  ;;  %v3145_v17 = vsel %vm14518_vm11, %v3140_v21, %v3144_v56  ;;  %v15561_v45 = vrot.slane %v3163_v5, 4 }
  0xfd   : > { %13474 = vmatprep.subr.bf16.mxu0 %v14138_v48  ;;  %v3765_v53 = vrot.slane %v15468_v27, 5  ;;  %v3171_v40 = vshrl.u32 %v2912_v29, 16  ;;  %v11944_v54 = vcombine.low %v15493_v26, %v15544_v1  ;;  %v15571_v59 = vsel %vm14917_vm14, %v11913_v47, %v3758_v46  ;;  %v14140_v27 = vld [vmem:[%s19463_s1 + $0x1a0] sm:$0xff]   ;;  %v15602_v41 = vpop.f32.mrf.mxu1 }
  0xfe   : > { %v15575_v38 = vsel %vm14917_vm14, %v3760_v9, %v3761_v52  ;;  %v3768_v51 = vrot.slane %v15509_v2, 5  ;;  %v15581_v42 = vcombine.low %v3135_v30, %v3145_v17  ;;  %v3159_v4 = vsel %vm14518_vm11, %v15553_v20, %v15516_v15  ;;  %v15600_v15 = vld [vmem:[#allocation2 + $0x94] sm:$0xf]  ;;  %13527 = vmatpush3.bf16.msra.mxu1 %v14146_v43  ;;  %v3646_v46 = vld [vmem:[#allocation2 + $0x84] sm:$0xe] }
  0xff   : > { %v3169_v12 = vsel %vm14518_vm11, %v15561_v45, %v15536_v31  ;;  %v15593_v2 = vsel %vm14917_vm14, %v11914_v25, %v3765_v53  ;;  %v3173_v56 = vrot.slane %v3171_v40, 4  ;;  %v3174_v44 = vshll.u32 %v2912_v29, 16  ;;  %13528 = vmatprep.subr.bf16.mxu1 %v14148_v32  ;;  %v14149_v43 = vld [vmem:[%s19463_s1 + $0x1d0] sm:$0xff]   ;;  %v2918_v17 = vld [vmem:[#allocation2 + $0x9c] sm:$0xf]  ;;  %v14151_v45 = vld [vmem:[%s19463_s1 + $0x1c8] sm:$0xff]  }
 0x100   : > { %13475 = vmatpush3.bf16.msra.mxu0 %v14138_v48  ;;  %v15595_v48 = vpop.f32.mrf.mxu0  ;;  %v3180_v61 = vshll.u32 %v15547_v19, 16  ;;  %v3184_v34 = vshrl.u32 %v15547_v19, 16  ;;  %v11945_v62 = vcombine.low %v15571_v59, %v15575_v38  ;;  %v3190_v16 = vshll.u32 %v15555_v22, 16  ;;  %v15634_v30 = vld [vmem:[#allocation2 + $0x90] sm:$0xe] }
 0x101   : > { %13476 = vmatprep.subr.bf16.mxu0 %v15531_v8  ;;  %13449 = vmatmul.mubr.bf16.gmra.mxu1 %v11942_v3  ;;  %v3195_v60 = vshrl.u32 %v2915_v28, 16  ;;  %v3198_v47 = vshll.u32 %v2915_v28, 16  ;;  %v3767_v36 = vrot.slane %v3765_v53, 4  ;;  %v3176_v3 = vrot.slane %v3174_v44, 5  ;;  %v15701_v38 = vld [vmem:[#allocation2 + $0xb0] sm:$0x1] }
 0x102   : > { %13452 = vmatprep.mubr.bf16.mxu1 %v11943_v6  ;;  %v15624_v49 = vrot.slane %v3180_v61, 5  ;;  %v3186_v31 = vrot.slane %v3184_v34, 4  ;;  %v3204_v39 = vshll.u32 %v15600_v15, 16  ;;  %v15629_v33 = vpop.f32.mrf.mxu0  ;;  %v3208_v5 = vshrl.u32 %v15600_v15, 16  ;;  %13529 = vmatpush3.bf16.msra.mxu1 %v14148_v32 }
 0x103   : > { %13397 = vmatmul.mubr.bf16.gmra.mxu0 %v15401_v63  ;;  %v3192_v63 = vrot.slane %v3190_v16, 5  ;;  %v3197_v52 = vrot.slane %v3195_v60, 4  ;;  %v3200_v29 = vrot.slane %v3198_v47, 5  ;;  %v3177_v6 = vor.u32 %v3176_v3, %v3173_v56  ;;  %13530 = vmatprep.subr.bf16.mxu1 %v14149_v43  ;;  %v14144_v60 = vld [vmem:[%s19463_s1 + $0x190] sm:$0xff]   ;;  %v14152_v47 = vld [vmem:[%s19463_s1 + $0x1c0] sm:$0xff]  }
 0x104   : > { %13400 = vmatprep.mubr.bf16.mxu0 %v15405_v7  ;;  %13477 = vmatpush3.bf16.msra.mxu0 %v15531_v8  ;;  %v3187_v21 = vor.u32 %v3186_v31, %v15624_v49  ;;  %v3214_v25 = vshll.u32 %v15610_v57, 16  ;;  %v15636_v7 = vpop.f32.mrf.mxu1  ;;  %v15638_v20 = vrot.slane %v3204_v39, 5  ;;  %v11915_v9 = vrot.slane %v3646_v46, 9  ;;  %v15653_v16 = vpop.f32.mrf.mxu0  ;;  %v15683_v46 = vld [vmem:[#allocation2 + $0xa4] sm:$0x1] }
 0x105   : > { %13478 = vmatprep.subr.bf16.mxu0 %v14140_v27  ;;  %19521 = vst [vmem:[#allocation8_spill] sm:$0xff] %v15636_v7  ;;  %v3201_v8 = vor.u32 %v3200_v29, %v3197_v52  ;;  %v3772_v28 = vrot.slane %v15547_v19, 5  ;;  %v15644_v53 = vcombine.low %v3159_v4, %v3169_v12  ;;  %v3178_v40 = vrot.slane %v3177_v6, 4  ;;  %v15694_v29 = vld [vmem:[#allocation2 + $0xac] sm:$0xf] }
 0x106   : > { %v3188_v56 = vrot.slane %v3187_v21, 4  ;;  %v3210_v44 = vrot.slane %v3208_v5, 4  ;;  %v15648_v32 = vsel %vm14917_vm14, %v3767_v36, %v3768_v51  ;;  %v15650_v61 = vrot.slane %v3214_v25, 5  ;;  %13531 = vmatpush3.bf16.msra.mxu1 %v14149_v43  ;;  %v15672_v36 = vpop.f32.mrf.mxu1  ;;  %v3648_v21 = vld [vmem:[#allocation2 + $0x9c] sm:$0xe] }
 0x107   : > { %v3774_v34 = vrot.slane %v3772_v28, 4  ;;  %v3775_v19 = vrot.slane %v15555_v22, 5  ;;  %v3183_v4 = vsel %vm14518_vm11, %v3178_v40, %v15624_v49  ;;  %v15661_v12 = vrot.slane %v3201_v8, 4  ;;  %v15667_v22 = vld [vmem:[#allocation2 + $0xa0] sm:$0xf]  ;;  %13532 = vmatprep.subr.bf16.mxu1 %v14151_v45 }
 0x108   : > { %13479 = vmatpush3.bf16.msra.mxu0 %v14140_v27  ;;  %v3193_v27 = vsel %vm14518_vm11, %v3188_v56, %v3192_v63  ;;  %v3211_v51 = vor.u32 %v3210_v44, %v15638_v20  ;;  %v3773_v3 = vsel %vm14917_vm14, %v11915_v9, %v3772_v28  ;;  %v11916_v31 = vrot.slane %v15634_v30, 9  ;;  %v2921_v63 = vld [vmem:[#allocation2 + $0xa8] sm:$0xf]  ;;  %v15713_v5 = vpop.f32.mrf.mxu1 }
 0x109   : > { %13480 = vmatprep.subr.bf16.mxu0 %v15622_v11  ;;  %13453 = vmatmul.mubr.bf16.gmra.mxu1 %v11944_v54  ;;  %v3776_v49 = vsel %vm14917_vm14, %v3774_v34, %v3775_v19  ;;  %v3779_v43 = vrot.slane %v15600_v15, 5  ;;  %v11946_v26 = vcombine.low %v15593_v2, %v15648_v32  ;;  %v3782_v54 = vrot.slane %v15610_v57, 5  ;;  %v14147_v2 = vld [vmem:[%s19463_s1 + $0x188] sm:$0xff]  }
 0x10a   : > { %13456 = vmatprep.mubr.bf16.mxu1 %v11945_v62  ;;  %v15691_v1 = vrot.slane %v3211_v51, 4  ;;  %v3219_v52 = vshrl.u32 %v2918_v17, 16  ;;  %v15698_v15 = vcombine.low %v3183_v4, %v3193_v27  ;;  %v3222_v39 = vshll.u32 %v2918_v17, 16  ;;  %v15706_v62 = vpop.f32.mrf.mxu0  ;;  %13533 = vmatpush3.bf16.msra.mxu1 %v14151_v45  ;;  %v3649_v56 = vld [vmem:[#allocation2 + $0xa8] sm:$0xe] }
 0x10b   : > { %13401 = vmatmul.mubr.bf16.gmra.mxu0 %v15460_v13  ;;  %v3781_v13 = vrot.slane %v3779_v43, 4  ;;  %v3228_v59 = vshll.u32 %v15667_v22, 16  ;;  %19522 = vst [vmem:[#allocation9_spill] sm:$0xff] %v15706_v62  ;;  %v11947_v57 = vcombine.low %v3773_v3, %v3776_v49  ;;  %v3232_v6 = vshrl.u32 %v15667_v22, 16  ;;  %13534 = vmatprep.subr.bf16.mxu1 %v14152_v47 }
 0x10c   : > { %13404 = vmatprep.mubr.bf16.mxu0 %v15489_v0  ;;  %13481 = vmatpush3.bf16.msra.mxu0 %v15622_v11  ;;  %v3207_v0 = vsel %vm14518_vm11, %v15661_v12, %v15638_v20  ;;  %v3221_v11 = vrot.slane %v3219_v52, 4  ;;  %v3217_v25 = vsel %vm14518_vm11, %v15691_v1, %v15650_v61  ;;  %v15721_v30 = vsel %vm14917_vm14, %v11916_v31, %v3779_v43  ;;  %v15732_v4 = vpop.f32.mrf.mxu0  ;;  %v14150_v31 = vld [vmem:[%s19463_s1 + $0x180] sm:$0xff]  }
 0x10d   : > { %13482 = vmatprep.subr.bf16.mxu0 %v14144_v60  ;;  %v3224_v8 = vrot.slane %v3222_v39, 5  ;;  %v15723_v9 = vrot.slane %v3228_v59, 5  ;;  %v15727_v28 = vsel %vm14917_vm14, %v3781_v13, %v3782_v54  ;;  %v3234_v17 = vrot.slane %v3232_v6, 4 }
 0x10e   : > { %v3238_v45 = vshll.u32 %v15683_v46, 16  ;;  %v3243_v40 = vshrl.u32 %v2921_v63, 16  ;;  %v3246_v32 = vshll.u32 %v2921_v63, 16  ;;  %v3252_v34 = vshll.u32 %v15694_v29, 16  ;;  %13535 = vmatpush3.bf16.msra.mxu1 %v14152_v47 }
 0x10f   : > { %v3225_v44 = vor.u32 %v3224_v8, %v3221_v11  ;;  %v3256_v19 = vshrl.u32 %v15694_v29, 16  ;;  %v3235_v27 = vor.u32 %v3234_v17, %v15723_v9  ;;  %v3262_v3 = vshll.u32 %v15701_v38, 16  ;;  %v15758_v8 = vpop.f32.mrf.mxu0 }
 0x110   : > { %13483 = vmatpush3.bf16.msra.mxu0 %v14144_v60  ;;  %v3245_v51 = vrot.slane %v3243_v40, 4  ;;  %v11917_v49 = vrot.slane %v3648_v21, 9  ;;  %v15739_v60 = vpop.f32.mrf.mxu1  ;;  %v3248_v63 = vrot.slane %v3246_v32, 5  ;;  %v15743_v54 = vrot.slane %v3252_v34, 5  ;;  %v2927_v32 = vld [vmem:[#allocation2 + $0xc0] sm:$0xf] }
 0x111   : > { %13484 = vmatprep.subr.bf16.mxu0 %v14147_v2  ;;  %13457 = vmatmul.mubr.bf16.gmra.mxu1 %v11946_v26  ;;  %v15741_v43 = vrot.slane %v3225_v44, 4  ;;  %v3258_v52 = vrot.slane %v3256_v19, 4  ;;  %v11948_v13 = vcombine.low %v15721_v30, %v15727_v28  ;;  %v15748_v39 = vrot.slane %v3238_v45, 5  ;;  %v15765_v28 = vld [vmem:[#allocation2 + $0xbc] sm:$0x1] }
 0x112   : > { %13460 = vmatprep.mubr.bf16.mxu1 %v11947_v57  ;;  %v3786_v59 = vrot.slane %v15667_v22, 5  ;;  %v3789_v47 = vrot.slane %v15683_v46, 5  ;;  %v15753_v26 = vrot.slane %v3235_v27, 4  ;;  %v3249_v11 = vor.u32 %v3248_v63, %v3245_v51  ;;  %v15756_v57 = vld [vmem:[#allocation2 + $0xb8] sm:$0xf]  ;;  %v15772_v17 = vpop.f32.mrf.mxu1 }
 0x113   : > { %13405 = vmatmul.mubr.bf16.gmra.mxu0 %v15549_v55  ;;  %v3259_v6 = vor.u32 %v3258_v52, %v15743_v54  ;;  %v11918_v21 = vrot.slane %v3649_v56, 9  ;;  %v2924_v55 = vld [vmem:[#allocation2 + $0xb4] sm:$0xf]  ;;  %v15760_v30 = vrot.slane %v3262_v3, 5  ;;  %19523 = vst [vmem:[#allocation10_spill] sm:$0xff] %v15772_v17  ;;  %v3231_v45 = vsel %vm14518_vm11, %v15741_v43, %v15723_v9  ;;  %v15797_v43 = vpop.f32.mrf.mxu0 }
 0x114   : > { %13408 = vmatprep.mubr.bf16.mxu0 %v15581_v42  ;;  %13485 = vmatpush3.bf16.msra.mxu0 %v14147_v2  ;;  %v3787_v22 = vsel %vm14917_vm14, %v11917_v49, %v3786_v59  ;;  %v3788_v46 = vrot.slane %v3786_v59, 4  ;;  %v3793_v42 = vrot.slane %v15694_v29, 5  ;;  %v15770_v2 = vld [vmem:[%s19463_s1 + $0x238] sm:$0xff]   ;;  %v15778_v40 = vrot.slane %v3249_v11, 4  ;;  %v394_v44 = vld [vmem:[#allocation2 + $0xc8] sm:$0x1] }
 0x115   : > { %13486 = vmatprep.subr.bf16.mxu0 %v14150_v31  ;;  %v15780_v56 = vrot.slane %v3259_v6, 4  ;;  %v3796_v29 = vrot.slane %v15701_v38, 5  ;;  %v3267_v51 = vshrl.u32 %v2924_v55, 16  ;;  %v3241_v9 = vsel %vm14518_vm11, %v15753_v26, %v15748_v39 }
 0x116   : > { %v3790_v34 = vsel %vm14917_vm14, %v3788_v46, %v3789_v47  ;;  %v15787_v19 = vsel %vm14917_vm14, %v11918_v21, %v3793_v42  ;;  %v3795_v27 = vrot.slane %v3793_v42, 4  ;;  %v3255_v38 = vsel %vm14518_vm11, %v15778_v40, %v15743_v54  ;;  %v15806_v47 = vld [vmem:[#allocation2 + $0xc4] sm:$0xf]  ;;  %v15809_v54 = vpop.f32.mrf.mxu1  ;;  %v3650_v21 = vld [vmem:[#allocation2 + $0xb4] sm:$0xe] }
 0x117   : > { %v11949_v3 = vcombine.low %v3787_v22, %v3790_v34  ;;  %v3270_v49 = vshll.u32 %v2924_v55, 16  ;;  %v3265_v63 = vsel %vm14518_vm11, %v15780_v56, %v15760_v30  ;;  %v3269_v59 = vrot.slane %v3267_v51, 4 }
 0x118   : > { %13487 = vmatpush3.bf16.msra.mxu0 %v14150_v31  ;;  %v3797_v52 = vsel %vm14917_vm14, %v3795_v27, %v3796_v29  ;;  %v3276_v39 = vshll.u32 %v15756_v57, 16  ;;  %v3280_v11 = vshrl.u32 %v15756_v57, 16  ;;  %v3286_v6 = vshll.u32 %v15765_v28, 16  ;;  %v15819_v29 = vpop.f32.mrf.mxu0  ;;  %v15822_v51 = vpop.f32.mrf.mxu1 }
 0x119   : > { %13568 = vmatprep.subr.bf16.mxu0 %v15770_v2  ;;  %13461 = vmatmul.mubr.bf16.gmra.mxu1 %v11948_v13  ;;  %v11950_v31 = vcombine.low %v15787_v19, %v3797_v52  ;;  %v3272_v26 = vrot.slane %v3270_v49, 5  ;;  %v395_v30 = vsel %vm14446_vm5, 0, %v394_v44  ;;  %v3291_v22 = vshrl.u32 %v2927_v32, 16  ;;  %19524 = vst [vmem:[#allocation11_spill] sm:$0xff] %v15819_v29  ;;  %v3651_v49 = vld [vmem:[#allocation2 + $0xc0] sm:$0xe] }
 0x11a   : > { %13464 = vmatprep.mubr.bf16.mxu1 %v11949_v3  ;;  %v3278_v55 = vrot.slane %v3276_v39, 5  ;;  %v3294_v46 = vshll.u32 %v2927_v32, 16  ;;  %v3282_v42 = vrot.slane %v3280_v11, 4  ;;  %v3288_v40 = vrot.slane %v3286_v6, 5  ;;  %396 = vst [vmem:[#allocation2 + $0xc8] sm:$0x1] %v395_v30  ;;  %v15840_v61 = vpop.f32.mrf.mxu0 }
 0x11b   : > { %13409 = vmatmul.mubr.bf16.gmra.mxu0 %v15644_v53  ;;  %v3273_v13 = vor.u32 %v3272_v26, %v3269_v59  ;;  %v3300_v56 = vshll.u32 %v15806_v47, 16  ;;  %v3293_v34 = vrot.slane %v3291_v22, 4  ;;  %v3304_v53 = vshrl.u32 %v15806_v47, 16  ;;  %v4521_v11 = vld [vmem:[#allocation2 + $0x18] sm:$0xf] }
 0x11c   : > { %13412 = vmatprep.mubr.bf16.mxu0 %v15698_v15  ;;  %v3296_v19 = vrot.slane %v3294_v46, 5  ;;  %v11919_v27 = vrot.slane %v3650_v21, 9  ;;  %v3283_v3 = vor.u32 %v3282_v42, %v3278_v55  ;;  %v3800_v15 = vrot.slane %v15756_v57, 5  ;;  %v4522_v22 = vld [vmem:[#allocation2 + $0x1c] sm:$0xf] }
 0x11d   : > { %v3274_v44 = vrot.slane %v3273_v13, 4  ;;  %v15824_v32 = vrot.slane %v3300_v56, 5  ;;  %v11892_v52 = vcombine.low %v3207_v0, %v3217_v25  ;;  %v3306_v39 = vrot.slane %v3304_v53, 4  ;;  %v4523_v46 = vld [vmem:[#allocation2 + $0x20] sm:$0x1] }
 0x11e   : > { %v3297_v59 = vor.u32 %v3296_v19, %v3293_v34  ;;  %v3803_v26 = vrot.slane %v15765_v28, 5  ;;  %v11893_v6 = vcombine.low %v3231_v45, %v3241_v9  ;;  %v3284_v21 = vrot.slane %v3283_v3, 4  ;;  %v4524_v25 = vld [vmem:[#allocation2 + $0x24] sm:$0xf]  ;;  %v15849_v28 = vpop.f32.mrf.mxu1  ;;  %v4525_v13 = vld [vmem:[#allocation2 + $0x28] sm:$0xf] }
 0x11f   : > { %v3801_v57 = vsel %vm14917_vm14, %v11919_v27, %v3800_v15  ;;  %v3802_v30 = vrot.slane %v3800_v15, 4  ;;  %v11894_v1 = vcombine.low %v3255_v38, %v3265_v63  ;;  %v3279_v20 = vsel %vm14518_vm11, %v3274_v44, %v3278_v55  ;;  %v15864_v27 = vpop.f32.mrf.mxu0 }
 0x120   : > { %v3307_v12 = vor.u32 %v3306_v39, %v15824_v32  ;;  %v15847_v0 = vadd.f32 %v15519_v23, %v15595_v48  ;;  %v3289_v45 = vsel %vm14518_vm11, %v3284_v21, %v3288_v40  ;;  %v4570_v38 = vshrl.u32 %v4521_v11, 16 }
 0x121   : > { %13465 = vmatmul.mubr.bf16.gmra.mxu1 %v11950_v31  ;;  %v3804_v9 = vsel %vm14917_vm14, %v3802_v30, %v3803_v26  ;;  %v4573_v63 = vshll.u32 %v4521_v11, 16  ;;  %v962_v55 = vld [vmem:[#allocation2 + $0xc8] sm:$0x1]  ;;  %v15855_v42 = vrot.slane %v3297_v59, 4  ;;  %v11920_v23 = vrot.slane %v3651_v49, 9 }
 0x122   : > { %v11951_v56 = vcombine.low %v3801_v57, %v3804_v9  ;;  %v3807_v48 = vrot.slane %v15806_v47, 5  ;;  %v11895_v34 = vcombine.low %v3279_v20, %v3289_v45  ;;  %v19525_v31 = vrot.slane %v15178_v24, 4  ;;  %v15872_v24 = vld [vmem:[#allocation2 + $0x2c] sm:$0x1]  ;;  %v4527_v30 = vld [vmem:[#allocation2 + $0x30] sm:$0xf] }
 0x123   : > { %13413 = vmatmul.mubr.bf16.gmra.mxu0 %v11892_v52  ;;  %v15862_v19 = vrot.slane %v3307_v12, 4  ;;  %v4572_v53 = vrot.slane %v4570_v38, 4  ;;  %v4575_v44 = vrot.slane %v4573_v63, 5  ;;  %v4579_v3 = vshll.u32 %v4522_v22, 16  ;;  %v15866_v52 = vpop.f32.mrf.mxu1  ;;  %v4528_v45 = vld [vmem:[#allocation2 + $0x34] sm:$0xf] }
 0x124   : > { %13416 = vmatprep.mubr.bf16.mxu0 %v11893_v6  ;;  %v963_v40 = vsel %vm14436_vm3, %v19525_v31, %v962_v55  ;;  %13468 = vmatprep.mubr.bf16.mxu1 %v11951_v56  ;;  %v4583_v15 = vshrl.u32 %v4522_v22, 16  ;;  %v4589_v49 = vshll.u32 %v4523_v46, 16  ;;  %v15870_v47 = vadd.f32 %v15557_v37, %v15629_v33  ;;  %v15878_v37 = vpop.f32.mrf.mxu0 }
 0x125   : > { %964 = vst [vmem:[#allocation2 + $0xc8] sm:$0x1] %v963_v40  ;;  %v4594_v59 = vshrl.u32 %v4524_v25, 16  ;;  %v4597_v39 = vshll.u32 %v4524_v25, 16  ;;  %v4603_v26 = vshll.u32 %v4525_v13, 16  ;;  %v3808_v11 = vsel %vm14917_vm14, %v11920_v23, %v3807_v48  ;;  %v15881_v63 = vpop.f32.mrf.mxu1 }
 0x126   : > { %v4576_v6 = vor.u32 %v4575_v44, %v4572_v53  ;;  %v4581_v21 = vrot.slane %v4579_v3, 5  ;;  %v4585_v57 = vrot.slane %v4583_v15, 4  ;;  %v4607_v12 = vshrl.u32 %v4525_v13, 16 }
 0x127   : > { %v4596_v22 = vrot.slane %v4594_v59, 4  ;;  %v4599_v46 = vrot.slane %v4597_v39, 5  ;;  %v15876_v20 = vrot.slane %v4603_v26, 5  ;;  %v4591_v38 = vrot.slane %v4589_v49, 5  ;;  %v15894_v39 = vpop.f32.mrf.mxu0  ;;  %v4529_v26 = vld [vmem:[#allocation2 + $0x38] sm:$0x1] }
 0x128   : > { %v4577_v33 = vrot.slane %v4576_v6, 4  ;;  %v4586_v9 = vor.u32 %v4585_v57, %v4581_v21  ;;  %v4613_v25 = vshll.u32 %v15872_v24, 16  ;;  %v3809_v55 = vrot.slane %v3807_v48, 4 }
 0x129   : > { %v4600_v56 = vor.u32 %v4599_v46, %v4596_v22  ;;  %v4609_v23 = vrot.slane %v4607_v12, 4  ;;  %v15885_v31 = vadd.f32 %v15602_v41, %v15653_v16  ;;  %v15891_v44 = vadd.f32 %v15672_v36, %v15732_v4 }
 0x12a   : > { %v4582_v13 = vsel %vm14518_vm11, %v4577_v33, %v4581_v21  ;;  %v4587_v40 = vrot.slane %v4586_v9, 4  ;;  %v4615_v53 = vrot.slane %v4613_v25, 5  ;;  %v4618_v49 = vshrl.u32 %v4527_v30, 16  ;;  %v15898_v21 = vpop.f32.mrf.mxu1  ;;  %v4530_v33 = vld [vmem:[#allocation2 + $0x3c] sm:$0xf] }
 0x12b   : > { %13417 = vmatmul.mubr.bf16.gmra.mxu0 %v11894_v1  ;;  %v4601_v15 = vrot.slane %v4600_v56, 4  ;;  %v4610_v48 = vor.u32 %v4609_v23, %v15876_v20  ;;  %v4621_v59 = vshll.u32 %v4527_v30, 16  ;;  %v4627_v6 = vshll.u32 %v4528_v45, 16  ;;  %v4531_v9 = vld [vmem:[#allocation2 + $0x40] sm:$0xf]  ;;  %v14153_v25 = vld [vmem:[#allocation2 + $0x18] sm:$0xff]  }
 0x12c   : > { %13420 = vmatprep.mubr.bf16.mxu0 %v11895_v34  ;;  %v2929_v3 = vld [vmem:[#allocation2 + $0xc8] sm:$0x1]  ;;  %v4592_v1 = vsel %vm14518_vm11, %v4587_v40, %v4591_v38  ;;  %v3303_v36 = vsel %vm14518_vm11, %v15855_v42, %v15824_v32  ;;  %v4620_v57 = vrot.slane %v4618_v49, 4  ;;  %v4631_v23 = vshrl.u32 %v4528_v45, 16  ;;  %v15909_v32 = vpop.f32.mrf.mxu0 }
 0x12d   : > { %v3310_v41 = vshll.u32 %v2929_v3, 16  ;;  %v3810_v16 = vrot.slane %v2929_v3, 5  ;;  %v12017_v4 = vcombine.low %v4582_v13, %v4592_v1  ;;  %v4611_v34 = vrot.slane %v4610_v48, 4  ;;  %v4532_v3 = vld [vmem:[#allocation2 + $0x44] sm:$0x1] }
 0x12e   : > { %v4606_v46 = vsel %vm14518_vm11, %v4601_v15, %v15876_v20  ;;  %v4623_v12 = vrot.slane %v4621_v59, 5  ;;  %v4629_v56 = vrot.slane %v4627_v6, 5  ;;  %v4637_v40 = vshll.u32 %v4529_v26, 16  ;;  %v15926_v6 = vld [vmem:[#allocation2 + $0x4c] sm:$0xf] }
 0x12f   : > { %v3312_v30 = vrot.slane %v3310_v41, 5  ;;  %v3811_v22 = vsel %vm14917_vm14, %v3809_v55, %v3810_v16  ;;  %v4616_v55 = vsel %vm14518_vm11, %v4611_v34, %v4615_v53  ;;  %v15918_v20 = vadd.f32 %v15713_v5, %v15758_v8  ;;  %v4533_v8 = vld [vmem:[#allocation2 + $0x48] sm:$0xf] }
 0x130   : > { %v11952_v38 = vcombine.low %v3808_v11, %v3811_v22  ;;  %v4624_v13 = vor.u32 %v4623_v12, %v4620_v57  ;;  %v15920_v11 = vpop.f32.mrf.mxu1  ;;  %v4633_v45 = vrot.slane %v4631_v23, 4  ;;  %v4639_v48 = vrot.slane %v4637_v40, 5  ;;  %v15930_v22 = vld [vmem:[#allocation2 + $0x50] sm:$0x1] }
 0x131   : > { %v3313_v42 = vsel %vm14518_vm11, %v15862_v19, %v3312_v30  ;;  %v4642_v49 = vshrl.u32 %v4530_v33, 16  ;;  %v4645_v41 = vshll.u32 %v4530_v33, 16  ;;  %v4651_v19 = vshll.u32 %v4531_v9, 16 }
 0x132   : > { %v11896_v15 = vcombine.low %v3303_v36, %v3313_v42  ;;  %13469 = vmatmul.mubr.bf16.gmra.mxu1 %v11952_v38  ;;  %v4625_v59 = vrot.slane %v4624_v13, 4  ;;  %v4655_v16 = vshrl.u32 %v4531_v9, 16  ;;  %v4634_v53 = vor.u32 %v4633_v45, %v4629_v56  ;;  %v15928_v36 = vpop.f32.mrf.mxu0  ;;  %v15932_v12 = vpop.f32.mrf.mxu1  ;;  %v14154_v38 = vld [vmem:[#allocation2 + $0x24] sm:$0xff]   ;;  %v14156_v42 = vld [vmem:[#allocation2 + $0x30] sm:$0xff]  }
 0x133   : > { %13536 = vmatprep.mubr.bf16.mxu1 %v12017_v4  ;;  %v4644_v1 = vrot.slane %v4642_v49, 4  ;;  %v4661_v26 = vshll.u32 %v4532_v3, 16  ;;  %v15924_v5 = vadd.f32 %v15739_v60, %v15797_v43  ;;  %v12018_v34 = vcombine.low %v4606_v46, %v4616_v55  ;;  %19526 = vst [vmem:[#allocation12_spill] sm:$0xff] %v15932_v12 }
 0x134   : > { %13421 = vmatmul.mubr.bf16.gmra.mxu0 %v11896_v15  ;;  %v4647_v4 = vrot.slane %v4645_v41, 5  ;;  %v4653_v57 = vrot.slane %v4651_v19, 5  ;;  %v4657_v30 = vrot.slane %v4655_v16, 4  ;;  %v4630_v33 = vsel %vm14518_vm11, %v4625_v59, %v4629_v56  ;;  %v4536_v15 = vld [vmem:[#allocation2 + $0x54] sm:$0xf]  ;;  %v15945_v45 = vpop.f32.mrf.mxu0 }
 0x135   : > { %13488 = vmatprep.mubr.bf16.mxu0 %v14153_v25  ;;  %v4635_v9 = vrot.slane %v4634_v53, 4  ;;  %v4663_v60 = vrot.slane %v4661_v26, 5  ;;  %v15938_v43 = vadd.f32 %v15809_v54, %v15840_v61  ;;  %v4666_v46 = vshrl.u32 %v4533_v8, 16  ;;  %v14158_v54 = vld [vmem:[%s19463_s1 + $0x230] sm:$0xff]   ;;  %v15950_v19 = vld [vmem:[#allocation2 + $0x58] sm:$0xf] }
 0x136   : > { %v4648_v23 = vor.u32 %v4647_v4, %v4644_v1  ;;  %v4658_v25 = vor.u32 %v4657_v30, %v4653_v57  ;;  %v4669_v40 = vshll.u32 %v4533_v8, 16  ;;  %v4675_v13 = vshll.u32 %v15926_v6, 16  ;;  %v15954_v8 = vld [vmem:[#allocation2 + $0x5c] sm:$0x1] }
 0x137   : > { %v4640_v55 = vsel %vm14518_vm11, %v4635_v9, %v4639_v48  ;;  %v4679_v3 = vshrl.u32 %v15926_v6, 16  ;;  %v4685_v56 = vshll.u32 %v15930_v22, 16  ;;  %v4668_v41 = vrot.slane %v4666_v46, 4  ;;  %v15952_v48 = vpop.f32.mrf.mxu1 }
 0x138   : > { %v12019_v61 = vcombine.low %v4630_v33, %v4640_v55  ;;  %v4649_v49 = vrot.slane %v4648_v23, 4  ;;  %v4659_v59 = vrot.slane %v4658_v25, 4  ;;  %v4671_v16 = vrot.slane %v4669_v40, 5  ;;  %v15964_v40 = vpop.f32.mrf.mxu0 }
 0x139   : > { %v4677_v53 = vrot.slane %v4675_v13, 5  ;;  %v4681_v1 = vrot.slane %v4679_v3, 4  ;;  %v4687_v26 = vrot.slane %v4685_v56, 5  ;;  %v15962_v33 = vadd.f32 %v15822_v51, %v15864_v27  ;;  %19527 = vst [vmem:[#allocation13_spill] sm:$0xff] %v15964_v40  ;;  %v4539_v51 = vld [vmem:[#allocation2 + $0x60] sm:$0xf]  ;;  %v15970_v27 = vpop.f32.mrf.mxu1 }
 0x13a   : > { %13537 = vmatmul.mubr.bf16.vlgmr.msra.gmra.mxu1 %v12018_v34  ;;  %v4654_v4 = vsel %vm14518_vm11, %v4649_v49, %v4653_v57  ;;  %v4664_v30 = vsel %vm14518_vm11, %v4659_v59, %v4663_v60  ;;  %v4690_v9 = vshrl.u32 %v4536_v15, 16  ;;  %v4672_v23 = vor.u32 %v4671_v16, %v4668_v41  ;;  %v15981_v16 = vld [vmem:[#allocation2 + $0x68] sm:$0x1] }
 0x13b   : > { %13540 = vmatprep.mubr.bf16.mxu1 %v12019_v61  ;;  %v12020_v34 = vcombine.low %v4654_v4, %v4664_v30  ;;  %v4682_v25 = vor.u32 %v4681_v1, %v4677_v53  ;;  %v4693_v46 = vshll.u32 %v4536_v15, 16  ;;  %v4699_v57 = vshll.u32 %v15950_v19, 16  ;;  %v14157_v61 = vld [vmem:[#allocation2 + $0x3c] sm:$0xff]   ;;  %v14159_v1 = vld [vmem:[#allocation2 + $0x48] sm:$0xff]  }
 0x13c   : > { %13489 = vmatmul.mubr.bf16.vlgmr.msra.gmra.mxu0 %v14154_v38  ;;  %v4692_v55 = vrot.slane %v4690_v9, 4  ;;  %v4703_v60 = vshrl.u32 %v15950_v19, 16  ;;  %v4709_v13 = vshll.u32 %v15954_v8, 16  ;;  %v14161_v38 = vld [vmem:[%s19463_s1 + $0x228] sm:$0xff]   ;;  %v4673_v3 = vrot.slane %v4672_v23, 4 }
 0x13d   : > { %13569 = vmatpush3.bf16.msra.mxu0 %v15770_v2  ;;  %13492 = vmatprep.mubr.bf16.mxu0 %v14156_v42  ;;  %v4683_v56 = vrot.slane %v4682_v25, 4  ;;  %v4695_v15 = vrot.slane %v4693_v46, 5  ;;  %v15977_v2 = vadd.f32 %v15849_v28, %v15878_v37  ;;  %v15979_v42 = vld [vmem:[#allocation2 + $0x64] sm:$0xf]  ;;  %v4701_v49 = vrot.slane %v4699_v57, 5  ;;  %v13218_v25 = vpop.f32.mrf.mxu0 }
 0x13e   : > { %13570 = vmatprep.subr.bf16.mxu0 %v14158_v54  ;;  %v4705_v59 = vrot.slane %v4703_v60, 4  ;;  %v4711_v41 = vrot.slane %v4709_v13, 5  ;;  %v4678_v4 = vsel %vm14518_vm11, %v4673_v3, %v4677_v53  ;;  %v15989_v28 = vadd.f32 %v15881_v63, %v15909_v32  ;;  %v14164_v37 = vld [vmem:[%s19463_s1 + $0x220] sm:$0xff]   ;;  %v4542_v23 = vld [vmem:[#allocation2 + $0x6c] sm:$0xf]  ;;  %v15996_v3 = vpop.f32.mrf.mxu1 }
 0x13f   : > { %v4688_v30 = vsel %vm14518_vm11, %v4683_v56, %v4687_v26  ;;  %v4696_v9 = vor.u32 %v4695_v15, %v4692_v55  ;;  %v4714_v60 = vshrl.u32 %v4539_v51, 16  ;;  %v4717_v13 = vshll.u32 %v4539_v51, 16  ;;  %v15994_v53 = vld [vmem:[#allocation2 + $0x70] sm:$0xf]  ;;  %v16001_v56 = vld [vmem:[#allocation2 + $0x74] sm:$0x1]  ;;  %v1643_v50 = vpop.f32.mrf.mxu0 }
 0x140   : > { %v12021_v46 = vcombine.low %v4678_v4, %v4688_v30  ;;  %v4706_v57 = vor.u32 %v4705_v59, %v4701_v49  ;;  %v4723_v63 = vshll.u32 %v15979_v42, 16  ;;  %v4727_v32 = vshrl.u32 %v15979_v42, 16 }
 0x141   : > { %13571 = vmatpush3.bf16.msra.mxu0 %v14158_v54  ;;  %v4697_v26 = vrot.slane %v4696_v9, 4  ;;  %v4733_v55 = vshll.u32 %v15981_v16, 16  ;;  %v4716_v15 = vrot.slane %v4714_v60, 4  ;;  %v4719_v59 = vrot.slane %v4717_v13, 5  ;;  %v16014_v60 = vpop.f32.mrf.mxu1 }
 0x142   : > { %13541 = vmatmul.mubr.bf16.gmra.mxu1 %v12020_v34  ;;  %13572 = vmatprep.subr.bf16.mxu0 %v14161_v38  ;;  %v4707_v54 = vrot.slane %v4706_v57, 4  ;;  %v16005_v51 = vadd.f32 %v15898_v21, %v15928_v36  ;;  %v4725_v4 = vrot.slane %v4723_v63, 5  ;;  %v4729_v30 = vrot.slane %v4727_v32, 4  ;;  %19528 = vst [vmem:[#allocation14_spill] sm:$0xff] %v16014_v60  ;;  %v16018_v32 = vld [vmem:[#allocation2 + $0x7c] sm:$0xf] }
 0x143   : > { %13544 = vmatprep.mubr.bf16.mxu1 %v12021_v46  ;;  %v4702_v34 = vsel %vm14518_vm11, %v4697_v26, %v4701_v49  ;;  %v4735_v9 = vrot.slane %v4733_v55, 5  ;;  %v4720_v57 = vor.u32 %v4719_v59, %v4716_v15  ;;  %v4738_v21 = vshrl.u32 %v4542_v23, 16 }
 0x144   : > { %13493 = vmatmul.mubr.bf16.gmra.mxu0 %v14157_v61  ;;  %v4712_v46 = vsel %vm14518_vm11, %v4707_v54, %v4711_v41  ;;  %v4741_v36 = vshll.u32 %v4542_v23, 16  ;;  %v4545_v61 = vld [vmem:[#allocation2 + $0x78] sm:$0xf]  ;;  %v4730_v13 = vor.u32 %v4729_v30, %v4725_v4  ;;  %v4747_v26 = vshll.u32 %v15994_v53, 16  ;;  %v16021_v54 = vld [vmem:[#allocation2 + $0x80] sm:$0x1]  ;;  %v13219_v30 = vpop.f32.mrf.mxu0 }
 0x145   : > { %13496 = vmatprep.mubr.bf16.mxu0 %v14159_v1  ;;  %13573 = vmatpush3.bf16.msra.mxu0 %v14161_v38  ;;  %v12022_v49 = vcombine.low %v4702_v34, %v4712_v46  ;;  %v4751_v63 = vshrl.u32 %v15994_v53, 16  ;;  %v4721_v1 = vrot.slane %v4720_v57, 4  ;;  %v4740_v38 = vrot.slane %v4738_v21, 4  ;;  %v14160_v23 = vld [vmem:[#allocation2 + $0x54] sm:$0xff]   ;;  %v14162_v46 = vld [vmem:[#allocation2 + $0x60] sm:$0xff]   ;;  %v13270_v29 = vpop.f32.mrf.mxu1 }
 0x146   : > { %13574 = vmatprep.subr.bf16.mxu0 %v14164_v37  ;;  %v4743_v55 = vrot.slane %v4741_v36, 5  ;;  %v4757_v41 = vshll.u32 %v16001_v56, 16  ;;  %v4731_v15 = vrot.slane %v4730_v13, 4  ;;  %v4749_v59 = vrot.slane %v4747_v26, 5  ;;  %v4548_v36 = vld [vmem:[#allocation2 + $0x84] sm:$0xf] }
 0x147   : > { %v4753_v60 = vrot.slane %v4751_v63, 4  ;;  %v16025_v34 = vadd.f32 %v15920_v11, %v15945_v45  ;;  %v4726_v17 = vsel %vm14518_vm11, %v4721_v1, %v4725_v4  ;;  %v16032_v63 = vadd.f32 %v15952_v48, %v13218_v25  ;;  %v16034_v45 = vld [vmem:[#allocation2 + $0x88] sm:$0xf]  ;;  %v16037_v1 = vld [vmem:[#allocation2 + $0x8c] sm:$0x1] }
 0x148   : > { %v4744_v57 = vor.u32 %v4743_v55, %v4740_v38  ;;  %v4759_v21 = vrot.slane %v4757_v41, 5  ;;  %v4736_v13 = vsel %vm14518_vm11, %v4731_v15, %v4735_v9  ;;  %v4762_v11 = vshrl.u32 %v4545_v61, 16  ;;  %v16044_v38 = vpop.f32.mrf.mxu0  ;;  %v16051_v15 = vpop.f32.mrf.mxu1 }
 0x149   : > { %19529 = vst [vmem:[#allocation15_spill] sm:$0xff] %v16025_v34  ;;  %13575 = vmatpush3.bf16.msra.mxu0 %v14164_v37  ;;  %v4754_v26 = vor.u32 %v4753_v60, %v4749_v59  ;;  %19530 = vst [vmem:[#allocation16_spill] sm:$0xff] %v16032_v63  ;;  %v12023_v7 = vcombine.low %v4726_v17, %v4736_v13  ;;  %v4765_v4 = vshll.u32 %v4545_v61, 16  ;;  %v4771_v37 = vshll.u32 %v16018_v32, 16  ;;  %v4554_v34 = vld [vmem:[#allocation2 + $0x9c] sm:$0xf] }
 0x14a   : > { %13545 = vmatmul.mubr.bf16.gmra.mxu1 %v12022_v49  ;;  %13576 = vmatprep.subr.bf16.mxu0 %v14167_v58  ;;  %v4745_v62 = vrot.slane %v4744_v57, 4  ;;  %v14170_v49 = vld [vmem:[%s19463_s1 + $0x210] sm:$0xff]   ;;  %v4764_v60 = vrot.slane %v4762_v11, 4  ;;  %v4775_v48 = vshrl.u32 %v16018_v32, 16  ;;  %v4781_v25 = vshll.u32 %v16021_v54, 16  ;;  %19531 = vst [vmem:[#allocation17_spill] sm:$0xff] %v16044_v38 }
 0x14b   : > { %v4755_v9 = vrot.slane %v4754_v26, 4  ;;  %13548 = vmatprep.mubr.bf16.mxu1 %v12023_v7  ;;  %v4767_v61 = vrot.slane %v4765_v4, 5  ;;  %v4773_v55 = vrot.slane %v4771_v37, 5  ;;  %v16049_v41 = vadd.f32 %v15970_v27, %v1643_v50  ;;  %v4551_v11 = vld [vmem:[#allocation2 + $0x90] sm:$0xf]  ;;  %v14173_v7 = vld [vmem:[%s19463_s1 + $0x208] sm:$0xff]  }
 0x14c   : > { %13497 = vmatmul.mubr.bf16.gmra.mxu0 %v14160_v23  ;;  %v4750_v17 = vsel %vm14518_vm11, %v4745_v62, %v4749_v59  ;;  %v4777_v57 = vrot.slane %v4775_v48, 4  ;;  %v4783_v13 = vrot.slane %v4781_v25, 5  ;;  %v4786_v26 = vshrl.u32 %v4548_v36, 16  ;;  %v16059_v27 = vld [vmem:[#allocation2 + $0x94] sm:$0xf]  ;;  %v14163_v4 = vld [vmem:[#allocation2 + $0x6c] sm:$0xff]  }
 0x14d   : > { %13500 = vmatprep.mubr.bf16.mxu0 %v14162_v46  ;;  %19532 = vst [vmem:[#allocation18_spill] sm:$0xff] %v16049_v41  ;;  %v4760_v23 = vsel %vm14518_vm11, %v4755_v9, %v4759_v21  ;;  %13577 = vmatpush3.bf16.msra.mxu0 %v14167_v58  ;;  %v4768_v59 = vor.u32 %v4767_v61, %v4764_v60  ;;  %v4789_v46 = vshll.u32 %v4548_v36, 16  ;;  %v4795_v50 = vshll.u32 %v16034_v45, 16  ;;  %v14165_v25 = vld [vmem:[#allocation2 + $0x78] sm:$0xff]  }
 0x14e   : > { %v12024_v62 = vcombine.low %v4750_v17, %v4760_v23  ;;  %13578 = vmatprep.subr.bf16.mxu0 %v14170_v49  ;;  %v4778_v37 = vor.u32 %v4777_v57, %v4773_v55  ;;  %v4788_v21 = vrot.slane %v4786_v26, 4  ;;  %v4799_v9 = vshrl.u32 %v16034_v45, 16  ;;  %v13222_v48 = vpop.f32.mrf.mxu0  ;;  %v16066_v36 = vld [vmem:[#allocation2 + $0x98] sm:$0x1]  ;;  %v13271_v17 = vpop.f32.mrf.mxu1 }
 0x14f   : > { %v4805_v58 = vshll.u32 %v16037_v1, 16  ;;  %v4769_v38 = vrot.slane %v4768_v59, 4  ;;  %v4791_v41 = vrot.slane %v4789_v46, 5  ;;  %v4797_v63 = vrot.slane %v4795_v50, 5 }
 0x150   : > { %v16064_v60 = vadd.f32 %v15996_v3, %v13219_v30  ;;  %v4779_v61 = vrot.slane %v4778_v37, 4  ;;  %v4801_v23 = vrot.slane %v4799_v9, 4  ;;  %v1659_v26 = vpop.f32.mrf.mxu0  ;;  %v16070_v59 = vadd.f32 %v13270_v29, %v13222_v48  ;;  %v14176_v3 = vld [vmem:[%s19463_s1 + $0x200] sm:$0xff]  }
 0x151   : > { %v4807_v57 = vrot.slane %v4805_v58, 5  ;;  %13579 = vmatpush3.bf16.msra.mxu0 %v14170_v49  ;;  %v4774_v12 = vsel %vm14518_vm11, %v4769_v38, %v4773_v55  ;;  %v4792_v40 = vor.u32 %v4791_v41, %v4788_v21  ;;  %v4810_v46 = vshrl.u32 %v4551_v11, 16  ;;  %v16078_v37 = vld [vmem:[#allocation2 + $0xa0] sm:$0xf]  ;;  %v16081_v21 = vld [vmem:[#allocation2 + $0xa4] sm:$0x1]  ;;  %v16083_v58 = vpop.f32.mrf.mxu1 }
 0x152   : > { %19533 = vst [vmem:[#allocation19_spill] sm:$0xff] %v16064_v60  ;;  %13549 = vmatmul.mubr.bf16.gmra.mxu1 %v12024_v62  ;;  %19534 = vst [vmem:[#allocation20_spill] sm:$0xff] %v16070_v59  ;;  %13580 = vmatprep.subr.bf16.mxu0 %v14173_v7  ;;  %v4784_v30 = vsel %vm14518_vm11, %v4779_v61, %v4783_v13  ;;  %v4802_v62 = vor.u32 %v4801_v23, %v4797_v63  ;;  %v4813_v49 = vshll.u32 %v4551_v11, 16  ;;  %v13223_v9 = vpop.f32.mrf.mxu0  ;;  %v16093_v59 = vld [vmem:[#allocation2 + $0xac] sm:$0xf] }
 0x153   : > { %v4819_v50 = vshll.u32 %v16059_v27, 16  ;;  %v12025_v38 = vcombine.low %v4774_v12, %v4784_v30  ;;  %v4793_v29 = vrot.slane %v4792_v40, 4  ;;  %v4812_v55 = vrot.slane %v4810_v46, 4  ;;  %19535 = vst [vmem:[#allocation21_spill] sm:$0xff] %v16081_v21  ;;  %19536 = vst [vmem:[#allocation22_spill] sm:$0xff] %v16083_v58  ;;  %v14168_v40 = vld [vmem:[#allocation2 + $0x90] sm:$0xff]  }
 0x154   : > { %13501 = vmatmul.mubr.bf16.gmra.mxu0 %v14163_v4  ;;  %v4823_v41 = vshrl.u32 %v16059_v27, 16  ;;  %v14166_v4 = vld [vmem:[#allocation2 + $0x84] sm:$0xff]   ;;  %v4803_v48 = vrot.slane %v4802_v62, 4  ;;  %v4815_v13 = vrot.slane %v4813_v49, 5  ;;  %v4829_v11 = vshll.u32 %v16066_v36, 16 }
 0x155   : > { %13504 = vmatprep.mubr.bf16.mxu0 %v14165_v25  ;;  %v4821_v61 = vrot.slane %v4819_v50, 5  ;;  %13581 = vmatpush3.bf16.msra.mxu0 %v14173_v7  ;;  %v4798_v12 = vsel %vm14518_vm11, %v4793_v29, %v4797_v63  ;;  %v16089_v23 = vadd.f32 %v16051_v15, %v1659_v26  ;;  %v4834_v46 = vshrl.u32 %v4554_v34, 16  ;;  %v4557_v58 = vld [vmem:[#allocation2 + $0xa8] sm:$0xf]  ;;  %v16096_v29 = vpop.f32.mrf.mxu0  ;;  %v13274_v15 = vpop.f32.mrf.mxu1 }
 0x156   : > { %13552 = vmatprep.mubr.bf16.mxu1 %v12025_v38  ;;  %v4825_v25 = vrot.slane %v4823_v41, 4  ;;  %13582 = vmatprep.subr.bf16.mxu0 %v14176_v3  ;;  %v4808_v30 = vsel %vm14518_vm11, %v4803_v48, %v4807_v57  ;;  %v4816_v62 = vor.u32 %v4815_v13, %v4812_v55  ;;  %v4831_v49 = vrot.slane %v4829_v11, 5  ;;  %19538 = vst [vmem:[#allocation24_spill] sm:$0xff] %v16096_v29  ;;  %v16102_v13 = vld [vmem:[#allocation2 + $0xb0] sm:$0x1] }
 0x157   : > { %19537 = vst [vmem:[#allocation23_spill] sm:$0xff] %v16089_v23  ;;  %v4837_v50 = vshll.u32 %v4554_v34, 16  ;;  %v12026_v7 = vcombine.low %v4798_v12, %v4808_v30  ;;  %v4836_v60 = vrot.slane %v4834_v46, 4  ;;  %v4843_v63 = vshll.u32 %v16078_v37, 16  ;;  %19540 = vst [vmem:[#allocation26_spill] sm:$0xff] %v16102_v13 }
 0x158   : > { %v4826_v38 = vor.u32 %v4825_v25, %v4821_v61  ;;  %v4817_v26 = vrot.slane %v4816_v62, 4  ;;  %v4847_v23 = vshrl.u32 %v16078_v37, 16  ;;  %v4853_v57 = vshll.u32 %v16081_v21, 16  ;;  %v4560_v30 = vld [vmem:[#allocation2 + $0xb4] sm:$0xf] }
 0x159   : > { %v4839_v41 = vrot.slane %v4837_v50, 5  ;;  %13583 = vmatpush3.bf16.msra.mxu0 %v14176_v3  ;;  %v4845_v55 = vrot.slane %v4843_v63, 5  ;;  %v16100_v48 = vadd.f32 %v13271_v17, %v13223_v9  ;;  %v4858_v50 = vshrl.u32 %v4557_v58, 16  ;;  %v1980_v9 = vpop.f32.mrf.mxu1 }
 0x15a   : > { %13553 = vmatmul.mubr.bf16.gmra.mxu1 %v12026_v7  ;;  %v4827_v34 = vrot.slane %v4826_v38, 4  ;;  %v4822_v11 = vsel %vm14518_vm11, %v4817_v26, %v4821_v61  ;;  %v4849_v25 = vrot.slane %v4847_v23, 4  ;;  %v4855_v46 = vrot.slane %v4853_v57, 5  ;;  %v16109_v38 = vld [vmem:[#allocation2 + $0xb8] sm:$0xf] }
 0x15b   : > { %19539 = vst [vmem:[#allocation25_spill] sm:$0xff] %v16100_v48  ;;  %v4840_v12 = vor.u32 %v4839_v41, %v4836_v60  ;;  %v13226_v3 = vpop.f32.mrf.mxu0  ;;  %v4861_v7 = vshll.u32 %v4557_v58, 16  ;;  %v4867_v17 = vshll.u32 %v16093_v59, 16  ;;  %19541 = vst [vmem:[#allocation27_spill] sm:$0xff] %v16109_v38  ;;  %v4860_v23 = vrot.slane %v4858_v50, 4 }
 0x15c   : > { %13505 = vmatmul.mubr.bf16.gmra.mxu0 %v14166_v4  ;;  %v4832_v62 = vsel %vm14518_vm11, %v4827_v34, %v4831_v49  ;;  %v14169_v4 = vld [vmem:[#allocation2 + $0x9c] sm:$0xff]   ;;  %v4850_v61 = vor.u32 %v4849_v25, %v4845_v55  ;;  %v16111_v60 = vadd.f32 %v13274_v15, %v13226_v3  ;;  %v4871_v41 = vshrl.u32 %v16093_v59, 16  ;;  %v341_v50 = vld [vmem:[#allocation2 + $0xcc] sm:$0x1] }
 0x15d   : > { %13508 = vmatprep.mubr.bf16.mxu0 %v14168_v40  ;;  %v12027_v63 = vcombine.low %v4822_v11, %v4832_v62  ;;  %v4841_v29 = vrot.slane %v4840_v12, 4  ;;  %v4863_v26 = vrot.slane %v4861_v7, 5  ;;  %v4869_v40 = vrot.slane %v4867_v17, 5  ;;  %v1675_v49 = vpop.f32.mrf.mxu0  ;;  %v16114_v57 = vld [vmem:[#allocation2 + $0xbc] sm:$0x1]  ;;  %v14171_v12 = vld [vmem:[#allocation2 + $0xa8] sm:$0xff]  }
 0x15e   : > { %19542 = vst [vmem:[#allocation28_spill] sm:$0xff] %v16111_v60  ;;  %19543 = vst [vmem:[#allocation29_spill] sm:$0xff] %v16114_v57  ;;  %v4851_v34 = vrot.slane %v4850_v61, 4  ;;  %v4877_v48 = vshll.u32 %v16102_v13, 16  ;;  %v16119_v11 = vadd.f32 %v1980_v9, %v1675_v49  ;;  %v4873_v25 = vrot.slane %v4871_v41, 4 }
 0x15f   : > { %13556 = vmatprep.mubr.bf16.mxu1 %v12027_v63  ;;  %v4846_v58 = vsel %vm14518_vm11, %v4841_v29, %v4845_v55  ;;  %v4864_v15 = vor.u32 %v4863_v26, %v4860_v23  ;;  %v4882_v62 = vshrl.u32 %v4560_v30, 16  ;;  %v4885_v3 = vshll.u32 %v4560_v30, 16  ;;  %v13227_v29 = vpop.f32.mrf.mxu0  ;;  %v13275_v55 = vpop.f32.mrf.mxu1  ;;  %v4563_v61 = vld [vmem:[#allocation2 + $0xc0] sm:$0xf]  ;;  %v16125_v13 = vld [vmem:[#allocation2 + $0xc4] sm:$0xf] }
 0x160   : > { %19544 = vst [vmem:[#allocation30_spill] sm:$0xff] %v16119_v11  ;;  %v4856_v7 = vsel %vm14518_vm11, %v4851_v34, %v4855_v46  ;;  %v4879_v17 = vrot.slane %v4877_v48, 5  ;;  %v4891_v63 = vshll.u32 %v16109_v38, 16  ;;  %v4895_v60 = vshrl.u32 %v16109_v38, 16  ;;  %19545 = vst [vmem:[#allocation31_spill] sm:$0xff] %v16125_v13 }
 0x161   : > { %v12028_v9 = vcombine.low %v4846_v58, %v4856_v7  ;;  %v4865_v49 = vrot.slane %v4864_v15, 4  ;;  %v4874_v23 = vor.u32 %v4873_v25, %v4869_v40  ;;  %v4884_v26 = vrot.slane %v4882_v62, 4  ;;  %v16128_v48 = vld [vmem:[#allocation2 + $0xc8] sm:$0x1]  ;;  %v397_v58 = vld [vmem:[#allocation2 + $0xd4] sm:$0x1] }
 0x162   : > { %v4887_v30 = vrot.slane %v4885_v3, 5  ;;  %v4893_v41 = vrot.slane %v4891_v63, 5  ;;  %v4897_v11 = vrot.slane %v4895_v60, 4  ;;  %v4901_v46 = vshll.u32 %v16114_v57, 16  ;;  %19546 = vst [vmem:[#allocation32_spill] sm:$0xff] %v16128_v48  ;;  %v14172_v7 = vld [vmem:[#allocation2 + $0xb4] sm:$0xff]  }
 0x163   : > { %13557 = vmatmul.mubr.bf16.gmra.mxu1 %v12028_v9  ;;  %v4870_v34 = vsel %vm14518_vm11, %v4865_v49, %v4869_v40  ;;  %v4875_v38 = vrot.slane %v4874_v23, 4  ;;  %v16132_v21 = vadd.f32 %v13275_v55, %v13227_v29  ;;  %v342_v60 = vsel %vm14436_vm3, 0, %v341_v50  ;;  %v16138_v3 = vld [vmem:[#allocation2 + $0xd0] sm:$0xf]  ;;  %v5275_v55 = vld [vmem:[#allocation2 + $0x18] sm:$0xe] }
 0x164   : > { %13509 = vmatmul.mubr.bf16.gmra.mxu0 %v14169_v4  ;;  %v4888_v15 = vor.u32 %v4887_v30, %v4884_v26  ;;  %v4898_v25 = vor.u32 %v4897_v11, %v4893_v41  ;;  %v4903_v62 = vrot.slane %v4901_v46, 5  ;;  %v16134_v4 = vpop.f32.mrf.mxu1  ;;  %19549 = vst [vmem:[#allocation35_spill] sm:$0xff] %v16138_v3  ;;  %343 = vst [vmem:[#allocation2 + $0xcc] sm:$0x1] %v342_v60  ;;  %v4906_v40 = vshrl.u32 %v4563_v61, 16  ;;  %v14174_v23 = vld [vmem:[#allocation2 + $0xc0] sm:$0xff]  }
 0x165   : > { %13512 = vmatprep.mubr.bf16.mxu0 %v14171_v12  ;;  %19547 = vst [vmem:[#allocation33_spill] sm:$0xff] %v16132_v21  ;;  %19548 = vst [vmem:[#allocation34_spill] sm:$0xff] %v16134_v4  ;;  %v4880_v12 = vsel %vm14518_vm11, %v4875_v38, %v4879_v17  ;;  %v4909_v63 = vshll.u32 %v4563_v61, 16  ;;  %v4915_v29 = vshll.u32 %v16125_v13, 16  ;;  %v4919_v26 = vshrl.u32 %v16125_v13, 16 }
 0x166   : > { %v12029_v9 = vcombine.low %v4870_v34, %v4880_v12  ;;  %v4889_v11 = vrot.slane %v4888_v15, 4  ;;  %v4899_v49 = vrot.slane %v4898_v25, 4  ;;  %v4908_v30 = vrot.slane %v4906_v40, 4  ;;  %v16145_v4 = vld [vmem:[#allocation2 + $0x24] sm:$0xe] }
 0x167   : > { %v4911_v50 = vrot.slane %v4909_v63, 5  ;;  %v4917_v46 = vrot.slane %v4915_v29, 5  ;;  %v4925_v14 = vshll.u32 %v16128_v48, 16  ;;  %v4921_v34 = vrot.slane %v4919_v26, 4  ;;  %v16154_v63 = vld [vmem:[#allocation2 + $0x30] sm:$0xe] }
 0x168   : > { %13560 = vmatprep.mubr.bf16.mxu1 %v12029_v9  ;;  %v4894_v38 = vsel %vm14518_vm11, %v4889_v11, %v4893_v41  ;;  %v4904_v17 = vsel %vm14518_vm11, %v4899_v49, %v4903_v62  ;;  %v398_v15 = vsel %vm14446_vm5, 0, %v397_v58  ;;  %v4939_v40 = vshll.u32 %v16138_v3, 16  ;;  %v14313_v62 = vld [vmem:[#allocation2 + $0x1c] sm:$0xf] }
 0x169   : > { %v13278_v61 = vpop.f32.mrf.mxu1  ;;  %v12030_v25 = vcombine.low %v4894_v38, %v4904_v17  ;;  %v4912_v60 = vor.u32 %v4911_v50, %v4908_v30  ;;  %v4927_v12 = vrot.slane %v4925_v14, 5  ;;  %399 = vst [vmem:[#allocation2 + $0xd4] sm:$0x1] %v398_v15  ;;  %v4922_v29 = vor.u32 %v4921_v34, %v4917_v46  ;;  %v14314_v14 = vld [vmem:[#allocation2 + $0x20] sm:$0x1]  ;;  %v16161_v15 = vpop.f32.mrf.mxu0 }
 0x16a   : > { %v4943_v41 = vshrl.u32 %v16138_v3, 16  ;;  %v12041_v11 = vrot.slane %v5275_v55, 9  ;;  %v5341_v49 = vrot.slane %v14313_v62, 5  ;;  %v5351_v26 = vrot.slane %v15872_v24, 5  ;;  %19550 = vst [vmem:[#allocation36_spill] sm:$0xff] %v16161_v15 }
 0x16b   : > { %v1996_v9 = vpop.f32.mrf.mxu1  ;;  %13561 = vmatmul.mubr.bf16.gmra.mxu1 %v12030_v25  ;;  %v4913_v18 = vrot.slane %v4912_v60, 4  ;;  %v4941_v58 = vrot.slane %v4939_v40, 5  ;;  %v5344_v30 = vrot.slane %v14314_v14, 5  ;;  %v4923_v50 = vrot.slane %v4922_v29, 4  ;;  %v4566_v38 = vld [vmem:[#allocation2 + $0xcc] sm:$0xf] }
 0x16c   : > { %13513 = vmatmul.mubr.bf16.gmra.mxu0 %v14172_v7  ;;  %v5342_v7 = vsel %vm14917_vm14, %v12041_v11, %v5341_v49  ;;  %v12042_v34 = vrot.slane %v16145_v4, 9  ;;  %v4930_v24 = vshrl.u32 %v4566_v38, 16  ;;  %v4933_v25 = vshll.u32 %v4566_v38, 16  ;;  %v14175_v60 = vld [vmem:[#allocation2 + $0xcc] sm:$0xff]   ;;  %v14315_v14 = vld [vmem:[#allocation2 + $0x28] sm:$0xf] }
 0x16d   : > { %13516 = vmatprep.mubr.bf16.mxu0 %v14174_v23  ;;  %v13279_v17 = vpop.f32.mrf.mxu1  ;;  %v4918_v55 = vsel %vm14518_vm11, %v4913_v18, %v4917_v46  ;;  %v4945_v23 = vrot.slane %v4943_v41, 4  ;;  %v4928_v40 = vsel %vm14518_vm11, %v4923_v50, %v4927_v12  ;;  %v5343_v62 = vrot.slane %v5341_v49, 4  ;;  %v14316_v38 = vld [vmem:[#allocation2 + $0x34] sm:$0xf]  ;;  %v5278_v50 = vld [vmem:[#allocation2 + $0x3c] sm:$0xe] }
 0x16e   : > { %v5348_v21 = vrot.slane %v14315_v14, 5  ;;  %v12043_v11 = vrot.slane %v16154_v63, 9  ;;  %v12031_v4 = vcombine.low %v4918_v55, %v4928_v40  ;;  %v4932_v3 = vrot.slane %v4930_v24, 4 }
 0x16f   : > { %v16167_v29 = vpop.f32.mrf.mxu1  ;;  %v4935_v15 = vrot.slane %v4933_v25, 5  ;;  %v4946_v48 = vor.u32 %v4945_v23, %v4941_v58  ;;  %v5345_v46 = vsel %vm14917_vm14, %v5343_v62, %v5344_v30  ;;  %v5355_v12 = vrot.slane %v14316_v38, 5 }
 0x170   : > { %19551 = vst [vmem:[#allocation37_spill] sm:$0xff] %v16167_v29  ;;  %v16170_v57 = vld [vmem:[#allocation2 + $0xd4] sm:$0x1]  ;;  %v5350_v41 = vrot.slane %v5348_v21, 4  ;;  %13564 = vmatprep.mubr.bf16.mxu1 %v12031_v4  ;;  %v12073_v55 = vcombine.low %v5342_v7, %v5345_v46  ;;  %v5349_v25 = vsel %vm14917_vm14, %v12042_v34, %v5348_v21  ;;  %v5279_v21 = vld [vmem:[#allocation2 + $0x48] sm:$0xe] }
 0x171   : > { %v13346_v18 = vpop.f32.mrf.mxu1  ;;  %v13230_v29 = vpop.f32.mrf.mxu0  ;;  %v4936_v49 = vor.u32 %v4935_v15, %v4932_v3  ;;  %v4947_v14 = vrot.slane %v4946_v48, 4  ;;  %v4949_v63 = vshll.u32 %v16170_v57, 16  ;;  %v5357_v30 = vrot.slane %v5355_v12, 4  ;;  %v14317_v3 = vld [vmem:[#allocation2 + $0x38] sm:$0x1] }
 0x172   : > { %v16175_v24 = vadd.f32 %v13278_v61, %v13230_v29  ;;  %v5352_v4 = vsel %vm14917_vm14, %v5350_v41, %v5351_v26  ;;  %v5358_v48 = vrot.slane %v14317_v3, 5  ;;  %v5356_v61 = vsel %vm14917_vm14, %v12043_v11, %v5355_v12  ;;  %v14319_v3 = vld [vmem:[#allocation2 + $0x44] sm:$0x1] }
 0x173   : > { %v2723_v23 = vpop.f32.mrf.mxu1  ;;  %v1691_v40 = vpop.f32.mrf.mxu0  ;;  %v4937_v62 = vrot.slane %v4936_v49, 4  ;;  %v4951_v13 = vrot.slane %v4949_v63, 5  ;;  %v12044_v41 = vrot.slane %v5278_v50, 9  ;;  %v12074_v63 = vcombine.low %v5349_v25, %v5352_v4 }
 0x174   : > { %13517 = vmatmul.mubr.bf16.gmra.mxu0 %v14175_v60  ;;  %v16181_v15 = vadd.f32 %v1996_v9, %v1691_v40  ;;  %v14318_v60 = vld [vmem:[#allocation2 + $0x40] sm:$0xf]  ;;  %v5359_v26 = vsel %vm14917_vm14, %v5357_v30, %v5358_v48  ;;  %v5372_v30 = vrot.slane %v15930_v22, 5  ;;  %v5383_v22 = vrot.slane %v15979_v42, 5 }
 0x175   : > { %13584 = vmatprep.mubr.bf16.mxu0 %v12073_v55  ;;  %v13347_v7 = vpop.f32.mrf.mxu1  ;;  %v5362_v29 = vrot.slane %v14318_v60, 5  ;;  %v4942_v34 = vsel %vm14518_vm11, %v4937_v62, %v4941_v58  ;;  %v4952_v46 = vsel %vm14518_vm11, %v4947_v14, %v4951_v13  ;;  %v13231_v38 = vpop.f32.mrf.mxu0  ;;  %v12075_v12 = vcombine.low %v5356_v61, %v5359_v26  ;;  %v5281_v60 = vld [vmem:[#allocation2 + $0x60] sm:$0xe] }
 0x176   : > { %v12032_v9 = vcombine.low %v4942_v34, %v4952_v46  ;;  %v16191_v49 = vadd.f32 %v13279_v17, %v13231_v38  ;;  %v5365_v58 = vrot.slane %v14319_v3, 5  ;;  %v5369_v62 = vrot.slane %v15926_v6, 5  ;;  %v5280_v17 = vld [vmem:[#allocation2 + $0x54] sm:$0xe] }
 0x177   : > { %v16193_v55 = vpop.f32.mrf.mxu1  ;;  %v16195_v11 = vpop.f32.mrf.mxu0  ;;  %v5364_v40 = vrot.slane %v5362_v29, 4  ;;  %v12045_v14 = vrot.slane %v5279_v21, 9  ;;  %v5363_v61 = vsel %vm14917_vm14, %v12044_v41, %v5362_v29  ;;  %v5376_v21 = vrot.slane %v15950_v19, 5 }
 0x178   : > { %13565 = vmatmul.mubr.bf16.gmra.mxu1 %v12032_v9  ;;  %v5371_v48 = vrot.slane %v5369_v62, 4  ;;  %v12046_v42 = vrot.slane %v5280_v17, 9  ;;  %v5379_v3 = vrot.slane %v15954_v8, 5  ;;  %v5283_v17 = vld [vmem:[#allocation2 + $0x78] sm:$0xe] }
 0x179   : > { %v13350_v13 = vpop.f32.mrf.mxu1  ;;  %v13298_v50 = vpop.f32.mrf.mxu0  ;;  %v5366_v6 = vsel %vm14917_vm14, %v5364_v40, %v5365_v58  ;;  %v5370_v26 = vsel %vm14917_vm14, %v12045_v14, %v5369_v62  ;;  %v12047_v58 = vrot.slane %v5281_v60, 9 }
 0x17a   : > { %v2466_v25 = vadd.f32 %v13298_v50, %v15847_v0  ;;  %v5373_v9 = vsel %vm14917_vm14, %v5371_v48, %v5372_v30  ;;  %v5385_v30 = vrot.slane %v5383_v22, 4  ;;  %v5386_v50 = vrot.slane %v15981_v16, 5 }
 0x17b   : > { %v2739_v4 = vpop.f32.mrf.mxu1  ;;  %v2337_v34 = vpop.f32.mrf.mxu0  ;;  %v5390_v16 = vrot.slane %v15994_v53, 5 }
 0x17c   : > { %13585 = vmatmul.mubr.bf16.vlgmr.msra.gmra.mxu0 %v12074_v63  ;;  %v2464_v46 = vadd.f32 %v2337_v34, %v15870_v47  ;;  %v16207_v38 = vadd.f32 %v13346_v18, %v2466_v25  ;;  %v12077_v47 = vcombine.low %v5370_v26, %v5373_v9  ;;  %v5378_v18 = vrot.slane %v5376_v21, 4 }
 0x17d   : > { %13588 = vmatprep.mubr.bf16.mxu0 %v12075_v12  ;;  %v13351_v0 = vpop.f32.mrf.mxu1  ;;  %v13299_v63 = vpop.f32.mrf.mxu0  ;;  %v12076_v12 = vcombine.low %v5363_v61, %v5366_v6  ;;  %v5377_v61 = vsel %vm14917_vm14, %v12046_v42, %v5376_v21  ;;  %v5397_v26 = vrot.slane %v16018_v32, 5  ;;  %v5393_v42 = vrot.slane %v16001_v56, 5 }
 0x17e   : > { %v2467_v29 = vadd.f32 %v13299_v63, %v15885_v31  ;;  %v16214_v41 = vadd.f32 %v2723_v23, %v2464_v46  ;;  %v5282_v23 = vld [vmem:[#allocation2 + $0x6c] sm:$0xe]  ;;  %v5380_v8 = vsel %vm14917_vm14, %v5378_v18, %v5379_v3  ;;  %v5387_v46 = vsel %vm14917_vm14, %v5385_v30, %v5386_v50 }
 0x17f   : > { %v16216_v19 = vpop.f32.mrf.mxu1  ;;  %v16218_v40 = vpop.f32.mrf.mxu0  ;;  %v12048_v21 = vrot.slane %v5282_v23, 9  ;;  %v5399_v32 = vrot.slane %v5397_v26, 4 }
 0x180   : > { %v16221_v62 = vadd.f32 %v13347_v7, %v2467_v29  ;;  %v5384_v7 = vsel %vm14917_vm14, %v12047_v58, %v5383_v22  ;;  %v5400_v58 = vrot.slane %v16021_v54, 5  ;;  %v5285_v54 = vld [vmem:[#allocation2 + $0x90] sm:$0xe] }
 0x181   : > { %v13354_v14 = vpop.f32.mrf.mxu1  ;;  %v5391_v23 = vsel %vm14917_vm14, %v12048_v21, %v5390_v16 }
 0x182   : > { %v13302_v31 = vpop.f32.mrf.mxu0 }
 0x183   : > { %v2470_v48 = vadd.f32 %v13302_v31, %v15891_v44  ;;  %v2755_v25 = vpop.f32.mrf.mxu1 }
 0x184   : > { %13589 = vmatmul.mubr.bf16.gmra.mxu0 %v12076_v12  ;;  %v2353_v34 = vpop.f32.mrf.mxu0  ;;  %v12078_v12 = vcombine.low %v5377_v61, %v5380_v8  ;;  %v5401_v61 = vsel %vm14917_vm14, %v5399_v32, %v5400_v58  ;;  %v5411_v8 = vrot.slane %v16059_v27, 5 }
 0x185   : > { %13592 = vmatprep.mubr.bf16.mxu0 %v12077_v47  ;;  %v2468_v60 = vadd.f32 %v2353_v34, %v15918_v20  ;;  %v16233_v6 = vadd.f32 %v13350_v13, %v2470_v48  ;;  %v13355_v44 = vpop.f32.mrf.mxu1  ;;  %v12079_v20 = vcombine.low %v5384_v7, %v5387_v46  ;;  %v5392_v13 = vrot.slane %v5390_v16, 4 }
 0x186   : > { %v13303_v9 = vpop.f32.mrf.mxu0  ;;  %v12049_v47 = vrot.slane %v5283_v17, 9  ;;  %v5404_v48 = vrot.slane %v16034_v45, 5 }
 0x187   : > { %v2471_v63 = vadd.f32 %v13303_v9, %v15924_v5  ;;  %v16239_v29 = vadd.f32 %v2739_v4, %v2468_v60  ;;  %v16241_v22 = vpop.f32.mrf.mxu1  ;;  %v5284_v5 = vld [vmem:[#allocation2 + $0x84] sm:$0xe]  ;;  %v5394_v56 = vsel %vm14917_vm14, %v5392_v13, %v5393_v42  ;;  %v1920_v60 = vadd.f32 %v15866_v52, %v15894_v39 }
 0x188   : > { %v16243_v53 = vpop.f32.mrf.mxu0  ;;  %v12050_v16 = vrot.slane %v5284_v5, 9  ;;  %v12080_v45 = vcombine.low %v5391_v23, %v5394_v56  ;;  %v5406_v21 = vrot.slane %v5404_v48, 4  ;;  %v5413_v42 = vrot.slane %v5411_v8, 4  ;;  %v19553_v23 = vld [vmem:[#allocation12_spill] sm:$0xff] }
 0x189   : > { %v16246_v18 = vadd.f32 %v13351_v0, %v2471_v63  ;;  %v13358_v3 = vpop.f32.mrf.mxu1  ;;  %v5398_v0 = vsel %vm14917_vm14, %v12049_v47, %v5397_v26  ;;  %v5407_v63 = vrot.slane %v16037_v1, 5  ;;  %v5414_v52 = vrot.slane %v16066_v36, 5  ;;  %v5287_v1 = vld [vmem:[#allocation2 + $0xa8] sm:$0xe] }
 0x18a   : > { %v13306_v30 = vpop.f32.mrf.mxu0  ;;  %v5425_v47 = vrot.slane %v16093_v59, 5 }
 0x18b   : > { %v2474_v4 = vadd.f32 %v13306_v30, %v15938_v43  ;;  %v2771_v50 = vpop.f32.mrf.mxu1  ;;  %v5408_v5 = vsel %vm14917_vm14, %v5406_v21, %v5407_v63 }
 0x18c   : > { %13593 = vmatmul.mubr.bf16.gmra.mxu0 %v12078_v12  ;;  %v2369_v31 = vpop.f32.mrf.mxu0  ;;  %v12051_v12 = vrot.slane %v5285_v54, 9  ;;  %v19554_v54 = vld [vmem:[#allocation15_spill] sm:$0xff]  ;;  %v5427_v63 = vrot.slane %v5425_v47, 4 }
 0x18d   : > { %13596 = vmatprep.mubr.bf16.mxu0 %v12079_v20  ;;  %v2472_v17 = vadd.f32 %v2369_v31, %v15962_v33  ;;  %v16258_v34 = vadd.f32 %v13354_v14, %v2474_v4  ;;  %v13359_v43 = vpop.f32.mrf.mxu1  ;;  %v12081_v14 = vcombine.low %v5398_v0, %v5401_v61  ;;  %v19552_v31 = vld [vmem:[#allocation13_spill] sm:$0xff] }
 0x18e   : > { %v13307_v7 = vpop.f32.mrf.mxu0  ;;  %v5412_v59 = vsel %vm14917_vm14, %v12051_v12, %v5411_v8  ;;  %v1936_v56 = vadd.f32 %v19553_v23, %v19552_v31  ;;  %v19556_v12 = vld [vmem:[#allocation26_spill] sm:$0xff] }
 0x18f   : > { %v2475_v46 = vadd.f32 %v13307_v7, %v15977_v2  ;;  %v16266_v26 = vadd.f32 %v2755_v25, %v2472_v17  ;;  %v16268_v9 = vpop.f32.mrf.mxu1  ;;  %v5286_v2 = vld [vmem:[#allocation2 + $0x9c] sm:$0xe]  ;;  %v5418_v25 = vrot.slane %v16078_v37, 5 }
 0x190   : > { %v2372_v33 = vpop.f32.mrf.mxu0 }
 0x191   : > { %v16271_v20 = vadd.f32 %v2372_v33, %v1920_v60  ;;  %v16273_v27 = vadd.f32 %v13355_v44, %v2475_v46  ;;  %v13362_v13 = vpop.f32.mrf.mxu1  ;;  %v5405_v44 = vsel %vm14917_vm14, %v12050_v16, %v5404_v48  ;;  %v5420_v60 = vrot.slane %v5418_v25, 4  ;;  %v19555_v46 = vld [vmem:[#allocation21_spill] sm:$0xff] }
 0x192   : > { %v13310_v39 = vpop.f32.mrf.mxu0  ;;  %v12082_v61 = vcombine.low %v5405_v44, %v5408_v5  ;;  %v5421_v8 = vrot.slane %v19555_v46, 5  ;;  %v19558_v44 = vld [vmem:[#allocation27_spill] sm:$0xff] }
 0x193   : > { %v2478_v32 = vadd.f32 %v13310_v39, %v15989_v28  ;;  %v2787_v58 = vpop.f32.mrf.mxu1  ;;  %v5415_v28 = vsel %vm14917_vm14, %v5413_v42, %v5414_v52  ;;  %v5428_v42 = vrot.slane %v19556_v12, 5  ;;  %v19557_v52 = vld [vmem:[#allocation16_spill] sm:$0xff]  ;;  %v5432_v5 = vrot.slane %v19558_v44, 5 }
 0x194   : > { %13597 = vmatmul.mubr.bf16.gmra.mxu0 %v12080_v45  ;;  %v2385_v30 = vpop.f32.mrf.mxu0  ;;  %v12083_v16 = vcombine.low %v5412_v59, %v5415_v28  ;;  %v12053_v45 = vrot.slane %v5287_v1, 9  ;;  %v5422_v1 = vsel %vm14917_vm14, %v5420_v60, %v5421_v8 }
 0x195   : > { %13600 = vmatprep.mubr.bf16.mxu0 %v12081_v14  ;;  %v2476_v36 = vadd.f32 %v2385_v30, %v16005_v51  ;;  %v16284_v4 = vadd.f32 %v13358_v3, %v2478_v32  ;;  %v13363_v37 = vpop.f32.mrf.mxu1  ;;  %v12052_v51 = vrot.slane %v5286_v2, 9  ;;  %v5429_v23 = vsel %vm14917_vm14, %v5427_v63, %v5428_v42 }
 0x196   : > { %v13311_v0 = vpop.f32.mrf.mxu0  ;;  %v5434_v8 = vrot.slane %v5432_v5, 4 }
 0x197   : > { %v2479_v48 = vadd.f32 %v13311_v0, %v19554_v54  ;;  %v16293_v17 = vadd.f32 %v2771_v50, %v2476_v36  ;;  %v16295_v7 = vpop.f32.mrf.mxu1  ;;  %v5419_v30 = vsel %vm14917_vm14, %v12052_v51, %v5418_v25  ;;  %v19559_v36 = vld [vmem:[#allocation18_spill] sm:$0xff]  ;;  %v19560_v0 = vld [vmem:[#allocation31_spill] sm:$0xff] }
 0x198   : > { %v2388_v3 = vpop.f32.mrf.mxu0  ;;  %v5439_v54 = vrot.slane %v19560_v0, 5 }
 0x199   : > { %v16298_v33 = vadd.f32 %v2388_v3, %v1936_v56  ;;  %v16300_v14 = vadd.f32 %v13359_v43, %v2479_v48  ;;  %v13366_v21 = vpop.f32.mrf.mxu1  ;;  %v5426_v43 = vsel %vm14917_vm14, %v12053_v45, %v5425_v47  ;;  %v5288_v56 = vld [vmem:[#allocation2 + $0xb4] sm:$0xe]  ;;  %v5289_v48 = vld [vmem:[#allocation2 + $0xc0] sm:$0xe]  ;;  %v12084_v47 = vcombine.low %v5419_v30, %v5422_v1  ;;  %v19562_v45 = vld [vmem:[#allocation29_spill] sm:$0xff] }
 0x19a   : > { %v13314_v50 = vpop.f32.mrf.mxu0  ;;  %v12054_v46 = vrot.slane %v5288_v56, 9  ;;  %v5435_v12 = vrot.slane %v19562_v45, 5  ;;  %v19566_v56 = vld [vmem:[#allocation23_spill] sm:$0xff]  ;;  %v19567_v45 = vld [vmem:[#allocation25_spill] sm:$0xff] }
 0x19b   : > { %v2482_v39 = vadd.f32 %v13314_v50, %v19557_v52  ;;  %v2803_v32 = vpop.f32.mrf.mxu1  ;;  %v12055_v50 = vrot.slane %v5289_v48, 9  ;;  %v5441_v52 = vrot.slane %v5439_v54, 4 }
 0x19c   : > { %13601 = vmatmul.mubr.bf16.gmra.mxu0 %v12082_v61  ;;  %v2401_v2 = vpop.f32.mrf.mxu0  ;;  %v19561_v61 = vld [vmem:[#allocation19_spill] sm:$0xff] }
 0x19d   : > { %13604 = vmatprep.mubr.bf16.mxu0 %v12083_v16  ;;  %v2480_v59 = vadd.f32 %v2401_v2, %v19559_v36  ;;  %v16312_v28 = vadd.f32 %v13362_v13, %v2482_v39  ;;  %v13367_v31 = vpop.f32.mrf.mxu1  ;;  %v12085_v13 = vcombine.low %v5426_v43, %v5429_v23  ;;  %v19563_v39 = vld [vmem:[#allocation32_spill] sm:$0xff]  ;;  %v5433_v43 = vsel %vm14917_vm14, %v12054_v46, %v5432_v5 }
 0x19e   : > { %v13315_v25 = vpop.f32.mrf.mxu0  ;;  %v5442_v2 = vrot.slane %v19563_v39, 5 }
 0x19f   : > { %v2483_v51 = vadd.f32 %v13315_v25, %v19561_v61  ;;  %v16318_v3 = vadd.f32 %v2787_v58, %v2480_v59  ;;  %v16320_v16 = vpop.f32.mrf.mxu1  ;;  %v19564_v58 = vld [vmem:[#allocation20_spill] sm:$0xff]  ;;  %v5436_v59 = vsel %vm14917_vm14, %v5434_v8, %v5435_v12  ;;  %v5440_v61 = vsel %vm14917_vm14, %v12055_v50, %v5439_v54  ;;  %v14177_v54 = vld [vmem:[%s19464_s2 + $0x78] sm:$0xff]  }
 0x1a0   : > { %v16322_v60 = vpop.f32.mrf.mxu0  ;;  %v12086_v8 = vcombine.low %v5433_v43, %v5436_v59  ;;  %13616 = vmatprep.subr.bf16.mxu1 %v14177_v54 }
 0x1a1   : > { %v16325_v63 = vadd.f32 %v13363_v37, %v2483_v51  ;;  %v13370_v42 = vpop.f32.mrf.mxu1  ;;  %v19565_v37 = vld [vmem:[#allocation35_spill] sm:$0xff]  ;;  %v5443_v51 = vsel %vm14917_vm14, %v5441_v52, %v5442_v2  ;;  %13617 = vmatpush3.bf16.msra.mxu1 %v14177_v54 }
 0x1a2   : > { %v13318_v44 = vpop.f32.mrf.mxu0  ;;  %v5446_v23 = vrot.slane %v19565_v37, 5 }
 0x1a3   : > { %v2486_v36 = vadd.f32 %v13318_v44, %v19564_v58  ;;  %v2819_v30 = vpop.f32.mrf.mxu1 }
 0x1a4   : > { %13605 = vmatmul.mubr.bf16.gmra.mxu0 %v12084_v47  ;;  %v2417_v1 = vpop.f32.mrf.mxu0  ;;  %v5290_v47 = vld [vmem:[#allocation2 + $0xcc] sm:$0xe]  ;;  %v5448_v58 = vrot.slane %v5446_v23, 4 }
 0x1a5   : > { %13608 = vmatprep.mubr.bf16.mxu0 %v12085_v13  ;;  %v2484_v0 = vadd.f32 %v2417_v1, %v19566_v56  ;;  %v16335_v25 = vadd.f32 %v13366_v21, %v2486_v36  ;;  %v13371_v48 = vpop.f32.mrf.mxu1  ;;  %v12087_v21 = vcombine.low %v5440_v61, %v5443_v51  ;;  %v12056_v44 = vrot.slane %v5290_v47, 9  ;;  %v19569_v56 = vld [vmem:[#allocation30_spill] sm:$0xff]  ;;  %v19570_v47 = vld [vmem:[#allocation33_spill] sm:$0xff] }
 0x1a6   : > { %v13319_v13 = vpop.f32.mrf.mxu0  ;;  %v5449_v36 = vrot.slane %v16170_v57, 5 }
 0x1a7   : > { %v2487_v5 = vadd.f32 %v13319_v13, %v19567_v45  ;;  %v16342_v46 = vadd.f32 %v2803_v32, %v2484_v0  ;;  %v16344_v12 = vpop.f32.mrf.mxu1  ;;  %v19568_v32 = vld [vmem:[#allocation28_spill] sm:$0xff]  ;;  %v5447_v37 = vsel %vm14917_vm14, %v12056_v44, %v5446_v23  ;;  %v14178_v23 = vld [vmem:[%s19464_s2 + $0x70] sm:$0xff]  }
 0x1a8   : > { %v16346_v39 = vpop.f32.mrf.mxu0  ;;  %v5450_v57 = vsel %vm14917_vm14, %v5448_v58, %v5449_v36  ;;  %13618 = vmatprep.subr.bf16.mxu1 %v14178_v23 }
 0x1a9   : > { %v16352_v50 = vadd.f32 %v13367_v31, %v2487_v5  ;;  %v13374_v52 = vpop.f32.mrf.mxu1  ;;  %v12088_v5 = vcombine.low %v5447_v37, %v5450_v57  ;;  %13619 = vmatpush3.bf16.msra.mxu1 %v14178_v23 }
 0x1aa   : > { %v13322_v2 = vpop.f32.mrf.mxu0 }
 0x1ab   : > { %v2490_v1 = vadd.f32 %v13322_v2, %v19568_v32  ;;  %v2835_v43 = vpop.f32.mrf.mxu1 }
 0x1ac   : > { %13609 = vmatmul.mubr.bf16.gmra.mxu0 %v12086_v8  ;;  %v2433_v59 = vpop.f32.mrf.mxu0 }
 0x1ad   : > { %13612 = vmatprep.mubr.bf16.mxu0 %v12087_v21  ;;  %v2488_v0 = vadd.f32 %v2433_v59, %v19569_v56  ;;  %v16360_v31 = vadd.f32 %v13370_v42, %v2490_v1  ;;  %v13375_v61 = vpop.f32.mrf.mxu1 }
 0x1ae   : > { %v13323_v51 = vpop.f32.mrf.mxu0 }
 0x1af   : > { %v2491_v13 = vadd.f32 %v13323_v51, %v19570_v47  ;;  %v16363_v45 = vadd.f32 %v2819_v30, %v2488_v0  ;;  %v16365_v8 = vpop.f32.mrf.mxu1 }
 0x1b0   : > { %v16367_v21 = vpop.f32.mrf.mxu0 }
 0x1b1   : > { %v16372_v44 = vadd.f32 %v13371_v48, %v2491_v13  ;;  %v16374_v58 = vpop.f32.mrf.mxu1 }
 0x1b3   : > { %v13326_v42 = vpop.f32.mrf.mxu0  ;;  %v16377_v30 = vpop.f32.mrf.mxu1 }
 0x1b4   : > { %v2494_v36 = vadd.f32 %v13326_v42, %v16175_v24  ;;  %13613 = vmatmul.mubr.bf16.gmra.mxu0 %v12088_v5 }
 0x1b5   : > { %v2449_v54 = vpop.f32.mrf.mxu0  ;;  %v16382_v1 = vpop.f32.mrf.mxu1 }
 0x1b6   : > { %v2492_v2 = vadd.f32 %v2449_v54, %v16181_v15  ;;  %v16380_v32 = vadd.f32 %v13374_v52, %v2494_v36  ;;  %v14180_v36 = vld [vmem:[%s19464_s2 + $0x38] sm:$0xff]  }
 0x1b7   : > { %v13327_v59 = vpop.f32.mrf.mxu0  ;;  %v16387_v57 = vpop.f32.mrf.mxu1  ;;  %13664 = vmatprep.subr.bf16.mxu0 %v14180_v36 }
 0x1b8   : > { %v2495_v48 = vadd.f32 %v13327_v59, %v16191_v49  ;;  %v16385_v37 = vadd.f32 %v2835_v43, %v2492_v2  ;;  %19571 = vst [vmem:[#allocation13_spill] sm:$0xff] %v16387_v57  ;;  %v14179_v49 = vld [vmem:[%s19464_s2 + $0x68] sm:$0xff]   ;;  %13665 = vmatpush3.bf16.msra.mxu0 %v14180_v36 }
 0x1b9   : > { %v16389_v56 = vpop.f32.mrf.mxu0  ;;  %v16393_v0 = vpop.f32.mrf.mxu1  ;;  %13620 = vmatprep.subr.bf16.mxu1 %v14179_v49 }
 0x1ba   : > { %v16391_v24 = vadd.f32 %v13375_v61, %v2495_v48  ;;  %19572 = vst [vmem:[#allocation12_spill] sm:$0xff] %v16393_v0  ;;  %13621 = vmatpush3.bf16.msra.mxu1 %v14179_v49 }
 0x1bb   : > { %v13394_v51 = vpop.f32.mrf.mxu0  ;;  %v16398_v52 = vpop.f32.mrf.mxu1 }
 0x1bc   : > { %v16396_v15 = vadd.f32 %v13394_v51, %v16207_v38  ;;  %19573 = vst [vmem:[#allocation15_spill] sm:$0xff] %v16398_v52  ;;  %v14182_v51 = vld [vmem:[%s19464_s2 + $0x30] sm:$0xff]  }
 0x1bd   : > { %v3477_v47 = vpop.f32.mrf.mxu0  ;;  %v13447_v13 = vpop.f32.mrf.mxu1  ;;  %13666 = vmatprep.subr.bf16.mxu0 %v14182_v51 }
 0x1be   : > { %v16404_v43 = vadd.f32 %v3477_v47, %v16214_v41  ;;  %13667 = vmatpush3.bf16.msra.mxu0 %v14182_v51 }
 0x1bf   : > { %v13395_v5 = vpop.f32.mrf.mxu0  ;;  %v16409_v23 = vpop.f32.mrf.mxu1 }
 0x1c0   : > { %v16407_v61 = vadd.f32 %v13395_v5, %v16221_v62  ;;  %19574 = vst [vmem:[#allocation21_spill] sm:$0xff] %v16409_v23 }
 0x1c1   : > { %v16411_v38 = vpop.f32.mrf.mxu0  ;;  %v13450_v42 = vpop.f32.mrf.mxu1 }
 0x1c3   : > { %v13398_v54 = vpop.f32.mrf.mxu0  ;;  %v4007_v2 = vpop.f32.mrf.mxu1 }
 0x1c4   : > { %v16417_v41 = vadd.f32 %v13398_v54, %v16233_v6 }
 0x1c5   : > { %v3493_v59 = vpop.f32.mrf.mxu0  ;;  %v13451_v48 = vpop.f32.mrf.mxu1 }
 0x1c6   : > { %19575 = vst [vmem:[#allocation26_spill] sm:$0xff] %v16417_v41  ;;  %v16420_v62 = vadd.f32 %v3493_v59, %v16239_v29  ;;  %v14183_v29 = vld [vmem:[%s19464_s2 + $0x28] sm:$0xff]  }
 0x1c7   : > { %v13399_v47 = vpop.f32.mrf.mxu0  ;;  %v16426_v5 = vpop.f32.mrf.mxu1  ;;  %13668 = vmatprep.subr.bf16.mxu0 %v14183_v29 }
 0x1c8   : > { %19576 = vst [vmem:[#allocation16_spill] sm:$0xff] %v16420_v62  ;;  %v3611_v49 = vadd.f32 %v13399_v47, %v16246_v18  ;;  %19577 = vst [vmem:[#allocation27_spill] sm:$0xff] %v16426_v5  ;;  %13669 = vmatpush3.bf16.msra.mxu0 %v14183_v29 }
 0x1c9   : > { %v16428_v6 = vpop.f32.mrf.mxu0  ;;  %v13454_v36 = vpop.f32.mrf.mxu1 }
 0x1ca   : > { %v16430_v54 = vadd.f32 %v13447_v13, %v3611_v49 }
 0x1cb   : > { %v13402_v59 = vpop.f32.mrf.mxu0  ;;  %v4023_v23 = vpop.f32.mrf.mxu1 }
 0x1cc   : > { %v3614_v35 = vadd.f32 %v13402_v59, %v16258_v34 }
 0x1cd   : > { %v3509_v52 = vpop.f32.mrf.mxu0  ;;  %v13455_v5 = vpop.f32.mrf.mxu1 }
 0x1ce   : > { %v3612_v18 = vadd.f32 %v3509_v52, %v16266_v26  ;;  %v16437_v47 = vadd.f32 %v13450_v42, %v3614_v35  ;;  %v14185_v26 = vld [vmem:[%s19464_s2 + $0x20] sm:$0xff]  }
 0x1cf   : > { %v13403_v51 = vpop.f32.mrf.mxu0  ;;  %v16442_v62 = vpop.f32.mrf.mxu1  ;;  %13670 = vmatprep.subr.bf16.mxu0 %v14185_v26 }
 0x1d0   : > { %v3615_v13 = vadd.f32 %v13403_v51, %v16273_v27  ;;  %v16440_v49 = vadd.f32 %v4007_v2, %v3612_v18  ;;  %19578 = vst [vmem:[#allocation18_spill] sm:$0xff] %v16442_v62  ;;  %v14181_v27 = vld [vmem:[%s19464_s2 + $0x60] sm:$0xff]   ;;  %13671 = vmatpush3.bf16.msra.mxu0 %v14185_v26  ;;  %v14184_v26 = vld [vmem:[%s19464_s2 + $0x58] sm:$0xff]  }
 0x1d1   : > { %v16444_v0 = vpop.f32.mrf.mxu0  ;;  %v13458_v34 = vpop.f32.mrf.mxu1  ;;  %13622 = vmatprep.subr.bf16.mxu1 %v14181_v27 }
 0x1d2   : > { %19579 = vst [vmem:[#allocation31_spill] sm:$0xff] %v16444_v0  ;;  %v16446_v41 = vadd.f32 %v13451_v48, %v3615_v13  ;;  %13623 = vmatpush3.bf16.msra.mxu1 %v14181_v27  ;;  %v14188_v27 = vld [vmem:[%s19464_s2 + $0x10] sm:$0xff]  }
 0x1d3   : > { %v13406_v59 = vpop.f32.mrf.mxu0  ;;  %v4039_v52 = vpop.f32.mrf.mxu1  ;;  %13624 = vmatprep.subr.bf16.mxu1 %v14184_v26 }
 0x1d4   : > { %v3618_v35 = vadd.f32 %v13406_v59, %v16284_v4  ;;  %v14186_v59 = vld [vmem:[%s19464_s2 + $0x18] sm:$0xff]  }
 0x1d5   : > { %v3525_v42 = vpop.f32.mrf.mxu0  ;;  %v13459_v48 = vpop.f32.mrf.mxu1  ;;  %13672 = vmatprep.subr.bf16.mxu0 %v14186_v59 }
 0x1d6   : > { %v3616_v2 = vadd.f32 %v3525_v42, %v16293_v17  ;;  %v16456_v29 = vadd.f32 %v13454_v36, %v3618_v35  ;;  %13673 = vmatpush3.bf16.msra.mxu0 %v14186_v59  ;;  %13625 = vmatpush3.bf16.msra.mxu1 %v14184_v26  ;;  %v14187_v26 = vld [vmem:[%s19464_s2 + $0x50] sm:$0xff]  }
 0x1d7   : > { %v13407_v18 = vpop.f32.mrf.mxu0  ;;  %v16461_v4 = vpop.f32.mrf.mxu1  ;;  %13674 = vmatprep.subr.bf16.mxu0 %v14188_v27  ;;  %13626 = vmatprep.subr.bf16.mxu1 %v14187_v26 }
 0x1d8   : > { %v3619_v51 = vadd.f32 %v13407_v18, %v16300_v14  ;;  %v16459_v13 = vadd.f32 %v4023_v23, %v3616_v2  ;;  %19580 = vst [vmem:[#allocation19_spill] sm:$0xff] %v16461_v4 }
 0x1d9   : > { %v16466_v62 = vpop.f32.mrf.mxu0  ;;  %v13462_v36 = vpop.f32.mrf.mxu1 }
 0x1da   : > { %19581 = vst [vmem:[#allocation29_spill] sm:$0xff] %v16466_v62  ;;  %v16468_v17 = vadd.f32 %v13455_v5, %v3619_v51  ;;  %13675 = vmatpush3.bf16.msra.mxu0 %v14188_v27  ;;  %13627 = vmatpush3.bf16.msra.mxu1 %v14187_v26  ;;  %v6442_v26 = vld [vmem:[#allocation2] sm:$0xf] }
 0x1db   : > { %v13410_v35 = vpop.f32.mrf.mxu0  ;;  %v4055_v23 = vpop.f32.mrf.mxu1 }
 0x1dc   : > { %v3622_v14 = vadd.f32 %v13410_v35, %v16312_v28 }
 0x1dd   : > { %v3541_v42 = vpop.f32.mrf.mxu0  ;;  %v13463_v18 = vpop.f32.mrf.mxu1 }
 0x1de   : > { %v3620_v5 = vadd.f32 %v3541_v42, %v16318_v3  ;;  %v16478_v2 = vadd.f32 %v13458_v34, %v3622_v14 }
 0x1df   : > { %v13411_v51 = vpop.f32.mrf.mxu0  ;;  %v16483_v28 = vpop.f32.mrf.mxu1 }
 0x1e0   : > { %v3623_v59 = vadd.f32 %v13411_v51, %v16325_v63  ;;  %v16481_v4 = vadd.f32 %v4039_v52, %v3620_v5  ;;  %19582 = vst [vmem:[#allocation32_spill] sm:$0xff] %v16483_v28 }
 0x1e1   : > { %v16485_v35 = vpop.f32.mrf.mxu0  ;;  %v13466_v0 = vpop.f32.mrf.mxu1 }
 0x1e2   : > { %v16487_v62 = vadd.f32 %v13459_v48, %v3623_v59  ;;  %v14189_v48 = vld [vmem:[%s19464_s2 + $0x8] sm:$0xff]   ;;  %v14191_v59 = vld [vmem:[%s19464_s2] sm:$0xff]  }
 0x1e3   : > { %v13414_v57 = vpop.f32.mrf.mxu0  ;;  %v4071_v52 = vpop.f32.mrf.mxu1  ;;  %13676 = vmatprep.subr.bf16.mxu0 %v14189_v48 }
 0x1e4   : > { %v3626_v3 = vadd.f32 %v13414_v57, %v16335_v25  ;;  %13677 = vmatpush3.bf16.msra.mxu0 %v14189_v48 }
 0x1e5   : > { %v3557_v34 = vpop.f32.mrf.mxu0  ;;  %13678 = vmatprep.subr.bf16.mxu0 %v14191_v59 }
 0x1e6   : > { %v3624_v14 = vadd.f32 %v3557_v34, %v16342_v46  ;;  %v16494_v63 = vadd.f32 %v13462_v36, %v3626_v3  ;;  %v13467_v46 = vpop.f32.mrf.mxu1 }
 0x1e7   : > { %v13415_v27 = vpop.f32.mrf.mxu0 }
 0x1e8   : > { %v3627_v42 = vadd.f32 %v13415_v27, %v16352_v50  ;;  %v16500_v5 = vadd.f32 %v4055_v23, %v3624_v14  ;;  %v16513_v34 = vpop.f32.mrf.mxu1  ;;  %13679 = vmatpush3.bf16.msra.mxu0 %v14191_v59 }
 0x1e9   : > { %v16502_v25 = vpop.f32.mrf.mxu0  ;;  %19583 = vst [vmem:[#allocation20_spill] sm:$0xff] %v16513_v34 }
 0x1ea   : > { %v16504_v57 = vadd.f32 %v13463_v18, %v3627_v42  ;;  %v6443_v18 = vld [vmem:[#allocation2 + $0x4] sm:$0xf]  ;;  %v14190_v42 = vld [vmem:[%s19464_s2 + $0x48] sm:$0xff]  }
 0x1eb   : > { %v13418_v36 = vpop.f32.mrf.mxu0  ;;  %v12171_v27 = vcombine.low %v6442_v26, %v6443_v18  ;;  %13628 = vmatprep.subr.bf16.mxu1 %v14190_v42 }
 0x1ec   : > { %v3630_v51 = vadd.f32 %v13418_v36, %v16360_v31  ;;  %13629 = vmatpush3.bf16.msra.mxu1 %v14190_v42 }
 0x1ed   : > { %v3573_v3 = vpop.f32.mrf.mxu0  ;;  %13680 = vmatprep.mubr.bf16.mxu0 %v12171_v27 }
 0x1ee   : > { %v3628_v50 = vadd.f32 %v3573_v3, %v16363_v45  ;;  %v16511_v23 = vadd.f32 %v13466_v0, %v3630_v51 }
 0x1ef   : > { %v13419_v14 = vpop.f32.mrf.mxu0 }
 0x1f0   : > { %v3631_v48 = vadd.f32 %v13419_v14, %v16372_v44  ;;  %v16516_v31 = vadd.f32 %v4071_v52, %v3628_v50 }
 0x1f1   : > { %v16521_v36 = vpop.f32.mrf.mxu0 }
 0x1f2   : > { %19584 = vst [vmem:[#allocation35_spill] sm:$0xff] %v16521_v36  ;;  %v16523_v45 = vadd.f32 %v13467_v46, %v3631_v48  ;;  %v13470_v0 = vpop.f32.mrf.mxu1 }
 0x1f4   : > { %v13422_v51 = vpop.f32.mrf.mxu0  ;;  %v4087_v3 = vpop.f32.mrf.mxu1 }
 0x1f5   : > { %v3634_v59 = vadd.f32 %v13422_v51, %v16380_v32 }
 0x1f6   : > { %v3589_v34 = vpop.f32.mrf.mxu0  ;;  %v13471_v44 = vpop.f32.mrf.mxu1 }
 0x1f7   : > { %v3632_v52 = vadd.f32 %v3589_v34, %v16385_v37  ;;  %v16527_v50 = vadd.f32 %v13470_v0, %v3634_v59  ;;  %v6507_v59 = vshrl.u32 %v6442_v26, 16 }
 0x1f8   : > { %v13423_v14 = vpop.f32.mrf.mxu0  ;;  %v16529_v28 = vpop.f32.mrf.mxu1 }
 0x1f9   : > { %19585 = vst [vmem:[#allocation23_spill] sm:$0xff] %v16529_v28  ;;  %v3635_v27 = vadd.f32 %v13423_v14, %v16391_v24  ;;  %v16532_v46 = vadd.f32 %v4087_v3, %v3632_v52  ;;  %v14194_v24 = vld [vmem:[%s19464_s2 + $0x40] sm:$0xff]   ;;  %v6510_v52 = vshll.u32 %v6442_v26, 16 }
 0x1fa   : > { %v16534_v48 = vpop.f32.mrf.mxu0  ;;  %v16536_v42 = vpop.f32.mrf.mxu1  ;;  %13630 = vmatprep.subr.bf16.mxu1 %v14194_v24 }
 0x1fb   : > { %19586 = vst [vmem:[#allocation25_spill] sm:$0xff] %v16532_v46  ;;  %19587 = vst [vmem:[#allocation28_spill] sm:$0xff] %v16534_v48  ;;  %v16538_v36 = vadd.f32 %v13471_v44, %v3635_v27  ;;  %13631 = vmatpush3.bf16.msra.mxu1 %v14194_v24  ;;  %v6520_v27 = vshrl.u32 %v6443_v18, 16  ;;  %v6512_v28 = vrot.slane %v6510_v52, 5 }
 0x1fc   : > { %19588 = vst [vmem:[#allocation30_spill] sm:$0xff] %v16536_v42  ;;  %v16540_v32 = vpop.f32.mrf.mxu0  ;;  %v16542_v51 = vpop.f32.mrf.mxu1  ;;  %v6509_v42 = vrot.slane %v6507_v59, 4 }
 0x1fd   : > { %19589 = vst [vmem:[#allocation33_spill] sm:$0xff] %v16538_v36  ;;  %19590 = vst [vmem:[#allocation38_spill] sm:$0xff] %v16540_v32  ;;  %v6516_v36 = vshll.u32 %v6443_v18, 16  ;;  %v6522_v26 = vrot.slane %v6520_v27, 4 }
 0x1fe   : > { %19591 = vst [vmem:[#allocation39_spill] sm:$0xff] %v16542_v51  ;;  %v16544_v37 = vpop.f32.mrf.mxu0  ;;  %v16546_v34 = vpop.f32.mrf.mxu1 }
 0x1ff   : > { %19592 = vst [vmem:[#allocation40_spill] sm:$0xff] %v16544_v37  ;;  %19593 = vst [vmem:[#allocation41_spill] sm:$0xff] %v16546_v34  ;;  %v6490_v37 = vld [vmem:[#allocation2 + $0x8] sm:$0x1] }
 0x200   : > { %v16551_v0 = vpop.f32.mrf.mxu0  ;;  %v16553_v3 = vpop.f32.mrf.mxu1  ;;  %v6526_v48 = vshll.u32 %v6490_v37, 16 }
 0x201   : > { %19594 = vst [vmem:[#allocation42_spill] sm:$0xff] %v16551_v0  ;;  %19595 = vst [vmem:[#allocation43_spill] sm:$0xff] %v16553_v3  ;;  %v6518_v3 = vrot.slane %v6516_v36, 5 }
 0x202   : > { %v16555_v44 = vpop.f32.mrf.mxu0  ;;  %v16557_v14 = vpop.f32.mrf.mxu1 }
 0x203   : > { %19596 = vst [vmem:[#allocation44_spill] sm:$0xff] %v16555_v44  ;;  %19597 = vst [vmem:[#allocation45_spill] sm:$0xff] %v16557_v14  ;;  %v6513_v44 = vor.u32 %v6512_v28, %v6509_v42  ;;  %v6523_v14 = vor.u32 %v6522_v26, %v6518_v3 }
 0x204   : > { %v16559_v51 = vpop.f32.mrf.mxu0  ;;  %v16561_v34 = vpop.f32.mrf.mxu1 }
 0x205   : > { %19598 = vst [vmem:[#allocation46_spill] sm:$0xff] %v16559_v51  ;;  %19599 = vst [vmem:[#allocation47_spill] sm:$0xff] %v16561_v34  ;;  %v6514_v18 = vrot.slane %v6513_v44, 4  ;;  %v6524_v52 = vrot.slane %v6523_v14, 4 }
 0x206   : > { %v16563_v46 = vpop.f32.mrf.mxu0  ;;  %v16565_v0 = vpop.f32.mrf.mxu1 }
 0x207   : > { %19600 = vst [vmem:[#allocation48_spill] sm:$0xff] %v16563_v46  ;;  %19601 = vst [vmem:[#allocation49_spill] sm:$0xff] %v16565_v0  ;;  %v6528_v46 = vrot.slane %v6526_v48, 5  ;;  %v6519_v27 = vsel %vm14518_vm11, %v6514_v18, %v6518_v3 }
 0x208   : > { %v13495_v24 = vpop.f32.mrf.mxu0  ;;  %v16567_v32 = vpop.f32.mrf.mxu1 }
 0x209   : > { %v16570_v51 = vadd.f32 %v13495_v24, %v16430_v54  ;;  %v6529_v28 = vsel %vm14518_vm11, %v6524_v52, %v6528_v46 }
 0x20a   : > { %v16572_v34 = vpop.f32.mrf.mxu0  ;;  %v16574_v59 = vpop.f32.mrf.mxu1  ;;  %v12147_v54 = vcombine.low %v6519_v27, %v6529_v28 }
 0x20c   : > { %v13498_v0 = vpop.f32.mrf.mxu0  ;;  %v16576_v36 = vpop.f32.mrf.mxu1  ;;  %13632 = vmatprep.mubr.bf16.mxu1 %v12147_v54 }
 0x20d   : > { %v16583_v42 = vadd.f32 %v13498_v0, %v16437_v47 }
 0x20e   : > { %v4394_v37 = vpop.f32.mrf.mxu0  ;;  %v16585_v26 = vpop.f32.mrf.mxu1 }
 0x20f   : > { %v16588_v44 = vadd.f32 %v4394_v37, %v16440_v49  ;;  %v14198_v49 = vld [vmem:[%s19464_s2 + $0xb8] sm:$0xff]  }
 0x210   : > { %v13499_v48 = vpop.f32.mrf.mxu0  ;;  %v16590_v14 = vpop.f32.mrf.mxu1  ;;  %13712 = vmatprep.subr.bf16.mxu1 %v14198_v49 }
 0x211   : > { %v16593_v24 = vadd.f32 %v13499_v48, %v16446_v41 }
 0x212   : > { %v16595_v3 = vpop.f32.mrf.mxu0  ;;  %v16597_v46 = vpop.f32.mrf.mxu1 }
 0x214   : > { %v13502_v47 = vpop.f32.mrf.mxu0  ;;  %v16599_v0 = vpop.f32.mrf.mxu1 }
 0x215   : > { %19602 = vst [vmem:[#allocation50_spill] sm:$0xff] %v16599_v0  ;;  %v16602_v18 = vadd.f32 %v13502_v47, %v16456_v29 }
 0x216   : > { %v4410_v52 = vpop.f32.mrf.mxu0  ;;  %v16607_v27 = vpop.f32.mrf.mxu1 }
 0x217   : > { %19603 = vst [vmem:[#allocation51_spill] sm:$0xff] %v16607_v27  ;;  %v16610_v41 = vadd.f32 %v4410_v52, %v16459_v13 }
 0x218   : > { %v13503_v28 = vpop.f32.mrf.mxu0  ;;  %v16612_v54 = vpop.f32.mrf.mxu1 }
 0x219   : > { %19604 = vst [vmem:[#allocation52_spill] sm:$0xff] %v16610_v41  ;;  %19605 = vst [vmem:[#allocation53_spill] sm:$0xff] %v16612_v54  ;;  %v16615_v37 = vadd.f32 %v13503_v28, %v16468_v17  ;;  %v19628_v41 = vld [vmem:[#allocation36_spill] sm:$0xff] }
 0x21a   : > { %v16617_v48 = vpop.f32.mrf.mxu0  ;;  %v16619_v29 = vpop.f32.mrf.mxu1 }
 0x21b   : > { %19606 = vst [vmem:[#allocation54_spill] sm:$0xff] %v16615_v37  ;;  %19607 = vst [vmem:[#allocation55_spill] sm:$0xff] %v16619_v29  ;;  %v19624_v37 = vld [vmem:[#allocation17_spill] sm:$0xff] }
 0x21c   : > { %v13506_v47 = vpop.f32.mrf.mxu0  ;;  %v16624_v0 = vpop.f32.mrf.mxu1 }
 0x21d   : > { %v16622_v10 = vadd.f32 %v13506_v47, %v16478_v2  ;;  %19609 = vst [vmem:[#allocation57_spill] sm:$0xff] %v16624_v0 }
 0x21e   : > { %v4426_v27 = vpop.f32.mrf.mxu0  ;;  %v16629_v49 = vpop.f32.mrf.mxu1 }
 0x21f   : > { %19608 = vst [vmem:[#allocation56_spill] sm:$0xff] %v16622_v10  ;;  %v16627_v13 = vadd.f32 %v4426_v27, %v16481_v4  ;;  %19611 = vst [vmem:[#allocation59_spill] sm:$0xff] %v16629_v49  ;;  %v19616_v10 = vld [vmem:[#allocation9_spill] sm:$0xff]  ;;  %v19617_v4 = vld [vmem:[#allocation8_spill] sm:$0xff] }
 0x220   : > { %v13507_v52 = vpop.f32.mrf.mxu0  ;;  %v16634_v28 = vpop.f32.mrf.mxu1  ;;  %v1888_v27 = vadd.f32 %v19617_v4, %v19616_v10  ;;  %v19625_v10 = vld [vmem:[#allocation14_spill] sm:$0xff] }
 0x221   : > { %19610 = vst [vmem:[#allocation58_spill] sm:$0xff] %v16627_v13  ;;  %v16632_v17 = vadd.f32 %v13507_v52, %v16487_v62  ;;  %19613 = vst [vmem:[#allocation61_spill] sm:$0xff] %v16634_v28  ;;  %v1952_v4 = vadd.f32 %v19625_v10, %v19624_v37 }
 0x222   : > { %v16636_v54 = vpop.f32.mrf.mxu0  ;;  %v2465_v52 = vadd.f32 %v16218_v40, %v1888_v27  ;;  %v19629_v40 = vld [vmem:[#allocation34_spill] sm:$0xff] }
 0x223   : > { %19612 = vst [vmem:[#allocation60_spill] sm:$0xff] %v16632_v17  ;;  %v16641_v47 = vpop.f32.mrf.mxu1  ;;  %v1984_v27 = vadd.f32 %v19629_v40, %v19628_v41 }
 0x224   : > { %v13510_v29 = vpop.f32.mrf.mxu0  ;;  %19615 = vst [vmem:[#allocation63_spill] sm:$0xff] %v16641_v47 }
 0x225   : > { %v16639_v2 = vadd.f32 %v13510_v29, %v16494_v63  ;;  %v16648_v13 = vpop.f32.mrf.mxu1  ;;  %v19622_v63 = vld [vmem:[#allocation11_spill] sm:$0xff]  ;;  %v19623_v29 = vld [vmem:[#allocation10_spill] sm:$0xff] }
 0x226   : > { %v4442_v0 = vpop.f32.mrf.mxu0  ;;  %19619 = vst [vmem:[#allocation8_spill] sm:$0xff] %v16648_v13  ;;  %v1904_v47 = vadd.f32 %v19623_v29, %v19622_v63  ;;  %v19627_v13 = vld [vmem:[#allocation22_spill] sm:$0xff]  ;;  %v2851_v63 = vadd.f32 %v16193_v55, %v2465_v52  ;;  %v2481_v29 = vadd.f32 %v16322_v60, %v1952_v4  ;;  %v19636_v4 = vld [vmem:[#allocation31_spill] sm:$0xff] }
 0x227   : > { %19614 = vst [vmem:[#allocation62_spill] sm:$0xff] %v16639_v2  ;;  %v16646_v49 = vadd.f32 %v4442_v0, %v16500_v5  ;;  %v16654_v17 = vpop.f32.mrf.mxu1  ;;  %v19626_v0 = vld [vmem:[#allocation24_spill] sm:$0xff] }
 0x228   : > { %v13511_v62 = vpop.f32.mrf.mxu0  ;;  %19621 = vst [vmem:[#allocation65_spill] sm:$0xff] %v16654_v17  ;;  %v2469_v17 = vadd.f32 %v16243_v53, %v1904_v47 }
 0x229   : > { %19618 = vst [vmem:[#allocation9_spill] sm:$0xff] %v16646_v49  ;;  %v16652_v28 = vadd.f32 %v13511_v62, %v16504_v57  ;;  %v16662_v5 = vpop.f32.mrf.mxu1  ;;  %v1968_v49 = vadd.f32 %v19627_v13, %v19626_v0  ;;  %v19630_v57 = vld [vmem:[#allocation37_spill] sm:$0xff]  ;;  %v2489_v0 = vadd.f32 %v16367_v21, %v1984_v27  ;;  %v2867_v21 = vadd.f32 %v16295_v7, %v2481_v29 }
 0x22a   : > { %v16658_v2 = vpop.f32.mrf.mxu0  ;;  %v2000_v62 = vadd.f32 %v19630_v57, %v16195_v11  ;;  %v3605_v11 = vadd.f32 %v16411_v38, %v2851_v63  ;;  %v2855_v60 = vadd.f32 %v16216_v19, %v2469_v17  ;;  %v19631_v7 = vld [vmem:[#allocation13_spill] sm:$0xff] }
 0x22b   : > { %19620 = vst [vmem:[#allocation64_spill] sm:$0xff] %v16652_v28  ;;  %v16676_v10 = vpop.f32.mrf.mxu1  ;;  %v2485_v13 = vadd.f32 %v16346_v39, %v1968_v49  ;;  %v2863_v39 = vadd.f32 %v16268_v9, %v16298_v33  ;;  %v4102_v9 = vadd.f32 %v16377_v30, %v16404_v43  ;;  %v19637_v57 = vld [vmem:[#allocation29_spill] sm:$0xff] }
 0x22c   : > { %v13514_v28 = vpop.f32.mrf.mxu0  ;;  %v2493_v41 = vadd.f32 %v16389_v56, %v2000_v62  ;;  %v3609_v19 = vadd.f32 %v16428_v6, %v2855_v60  ;;  %v4103_v33 = vadd.f32 %v19631_v7, %v3605_v11  ;;  %v19635_v6 = vld [vmem:[#allocation15_spill] sm:$0xff]  ;;  %v19642_v11 = vld [vmem:[#allocation40_spill] sm:$0xff]  ;;  %v19646_v7 = vld [vmem:[#allocation25_spill] sm:$0xff] }
 0x22d   : > { %v16674_v37 = vadd.f32 %v13514_v28, %v16511_v23  ;;  %v16685_v55 = vpop.f32.mrf.mxu1  ;;  %v2859_v28 = vadd.f32 %v16241_v22, %v16271_v20  ;;  %v2871_v38 = vadd.f32 %v16320_v16, %v2485_v13  ;;  %v4104_v22 = vadd.f32 %v16374_v58, %v16396_v15  ;;  %v19632_v16 = vld [vmem:[#allocation26_spill] sm:$0xff]  ;;  %v19638_v15 = vld [vmem:[#allocation35_spill] sm:$0xff]  ;;  %v19640_v13 = vld [vmem:[#allocation28_spill] sm:$0xff] }
 0x22e   : > { %v4458_v40 = vpop.f32.mrf.mxu0  ;;  %v2879_v49 = vadd.f32 %v16365_v8, %v2493_v41  ;;  %v4105_v20 = vadd.f32 %v16382_v1, %v16407_v61  ;;  %v3617_v62 = vadd.f32 %v19637_v57, %v2863_v39  ;;  %v3621_v58 = vadd.f32 %v16485_v35, %v2867_v21  ;;  %v19639_v61 = vld [vmem:[#allocation21_spill] sm:$0xff]  ;;  %v19641_v41 = vld [vmem:[#allocation38_spill] sm:$0xff]  ;;  %v19644_v21 = vld [vmem:[#allocation44_spill] sm:$0xff] }
 0x22f   : > { %v16683_v53 = vadd.f32 %v4458_v40, %v16516_v31  ;;  %v2875_v31 = vadd.f32 %v16344_v12, %v2489_v0  ;;  %v16702_v47 = vpop.f32.mrf.mxu1  ;;  %v19633_v12 = vld [vmem:[#allocation12_spill] sm:$0xff]  ;;  %v3613_v27 = vadd.f32 %v19636_v4, %v2859_v28  ;;  %v3625_v30 = vadd.f32 %v16502_v25, %v2871_v38  ;;  %v19643_v39 = vld [vmem:[#allocation42_spill] sm:$0xff]  ;;  %v19650_v4 = vld [vmem:[#allocation19_spill] sm:$0xff] }
 0x230   : > { %v13515_v23 = vpop.f32.mrf.mxu0  ;;  %v4108_v8 = vadd.f32 %v19633_v12, %v19632_v16  ;;  %v4107_v29 = vadd.f32 %v19639_v61, %v3609_v19  ;;  %v3633_v0 = vadd.f32 %v19640_v13, %v2879_v49  ;;  %v4491_v40 = vadd.f32 %v19641_v41, %v4104_v22  ;;  %v19645_v38 = vld [vmem:[#allocation46_spill] sm:$0xff]  ;;  %v19647_v16 = vld [vmem:[#allocation27_spill] sm:$0xff]  ;;  %v19653_v61 = vld [vmem:[#allocation33_spill] sm:$0xff] }
 0x231   : > { %v16694_v56 = vadd.f32 %v13515_v23, %v16523_v45  ;;  %v19634_v45 = vld [vmem:[#allocation16_spill] sm:$0xff]  ;;  %v3629_v43 = vadd.f32 %v19638_v15, %v2875_v31  ;;  %v4489_v60 = vadd.f32 %v19642_v11, %v4102_v9  ;;  %v16727_v23 = vpop.f32.mrf.mxu1  ;;  %v4492_v35 = vadd.f32 %v19643_v39, %v4105_v20  ;;  %v19648_v12 = vld [vmem:[#allocation18_spill] sm:$0xff]  ;;  %v19654_v13 = vld [vmem:[#allocation23_spill] sm:$0xff] }
 0x232   : > { %v16700_v17 = vpop.f32.mrf.mxu0  ;;  %v4106_v52 = vadd.f32 %v19635_v6, %v19634_v45  ;;  %v4490_v25 = vadd.f32 %v19644_v21, %v4103_v33  ;;  %v4495_v31 = vadd.f32 %v19645_v38, %v4108_v8  ;;  %v4111_v19 = vadd.f32 %v19647_v16, %v3613_v27  ;;  %v19649_v45 = vld [vmem:[#allocation48_spill] sm:$0xff]  ;;  %v19655_v11 = vld [vmem:[#allocation30_spill] sm:$0xff]  ;;  %v19660_v16 = vld [vmem:[#allocation47_spill] sm:$0xff] }
 0x233   : > { %v4115_v49 = vadd.f32 %v19648_v12, %v3617_v62  ;;  %v4494_v9 = vadd.f32 %v16572_v34, %v4107_v29  ;;  %v4119_v57 = vadd.f32 %v19650_v4, %v3621_v58  ;;  %v19652_v15 = vld [vmem:[#allocation20_spill] sm:$0xff]  ;;  %v4131_v41 = vadd.f32 %v19654_v13, %v3633_v0  ;;  %v19657_v29 = vld [vmem:[#allocation41_spill] sm:$0xff]  ;;  %v19658_v58 = vld [vmem:[#allocation43_spill] sm:$0xff] }
 0x234   : > { %v13518_v63 = vpop.f32.mrf.mxu0  ;;  %v4493_v22 = vadd.f32 %v19649_v45, %v4106_v52  ;;  %v4127_v33 = vadd.f32 %v19652_v15, %v3629_v43  ;;  %v5245_v27 = vadd.f32 %v19655_v11, %v4491_v40  ;;  %v4498_v52 = vadd.f32 %v16595_v3, %v4111_v19  ;;  %v19661_v0 = vld [vmem:[#allocation49_spill] sm:$0xff]  ;;  %v19667_v4 = vld [vmem:[#allocation56_spill] sm:$0xff]  ;;  %v19672_v13 = vld [vmem:[#allocation59_spill] sm:$0xff] }
 0x235   : > { %v16721_v1 = vadd.f32 %v13518_v63, %v16527_v50  ;;  %v19651_v63 = vld [vmem:[#allocation32_spill] sm:$0xff]  ;;  %v5246_v21 = vadd.f32 %v19657_v29, %v4492_v35  ;;  %v5244_v38 = vadd.f32 %v19658_v58, %v4490_v25  ;;  %v4502_v43 = vadd.f32 %v16617_v48, %v4115_v49  ;;  %v19674_v29 = vld [vmem:[#allocation62_spill] sm:$0xff]  ;;  %v19675_v58 = vld [vmem:[#allocation63_spill] sm:$0xff] }
 0x236   : > { %v4474_v28 = vpop.f32.mrf.mxu0  ;;  %v4123_v20 = vadd.f32 %v19651_v63, %v3625_v30  ;;  %v19659_v30 = vld [vmem:[#allocation45_spill] sm:$0xff]  ;;  %v5247_v12 = vadd.f32 %v19660_v16, %v4493_v22  ;;  %v16756_v45 = vadd.f32 %v19661_v0, %v16570_v51  ;;  %v16759_v40 = vadd.f32 %v16567_v32, %v4494_v9  ;;  %v16765_v35 = vld [vmem:[%s19465_s3] ss:$0 sm:$0xff]  ;;  %v19665_v22 = vld [vmem:[#allocation51_spill] sm:$0xff] }
 0x237   : > { %v16733_v50 = vadd.f32 %v4474_v28, %v19646_v7  ;;  %v19656_v28 = vld [vmem:[#allocation39_spill] sm:$0xff]  ;;  %v5249_v7 = vadd.f32 %v19659_v30, %v4495_v31  ;;  %v4506_v3 = vadd.f32 %v16636_v54, %v4119_v57  ;;  %v16769_v48 = vadd.f32 %v16574_v59, %v16583_v42  ;;  %v19662_v49 = vld [vmem:[#allocation52_spill] sm:$0xff]  ;;  %v19663_v59 = vld [vmem:[#allocation50_spill] sm:$0xff] }
 0x238   : > { %v13519_v6 = vpop.f32.mrf.mxu0  ;;  %v5243_v62 = vadd.f32 %v19656_v28, %v4489_v60  ;;  %v13566_v39 = vpop.f32.mrf.mxu1  ;;  %v16773_v25 = vadd.f32 %v16576_v36, %v16588_v44  ;;  %v16777_v32 = vadd.f32 %v16585_v26, %v16593_v24  ;;  %v16780_v31 = vadd.f32 %v16590_v14, %v4498_v52  ;;  %v16794_v26 = vld [vmem:[%s19466_s4] ss:$0 sm:$0xff]  ;;  %v19664_v24 = vld [vmem:[#allocation54_spill] sm:$0xff]  ;;  %v19666_v9 = vld [vmem:[#allocation53_spill] sm:$0xff] }
 0x239   : > { %v16743_v8 = vadd.f32 %v13519_v6, %v19653_v61  ;;  %v16784_v19 = vadd.f32 %v16597_v46, %v16602_v18  ;;  %v16788_v42 = vadd.f32 %v19663_v59, %v19662_v49  ;;  %v4510_v36 = vadd.f32 %v16658_v2, %v4123_v20  ;;  %v19668_v57 = vld [vmem:[#allocation55_spill] sm:$0xff]  ;;  %v19669_v2 = vld [vmem:[#allocation58_spill] sm:$0xff]  ;;  %v19670_v20 = vld [vmem:[#allocation57_spill] sm:$0xff] }
 0x23a   : > { %v4477_v34 = vpop.f32.mrf.mxu0  ;;  %v5228_v51 = vpop.f32.mrf.mxu1  ;;  %v16798_v14 = vadd.f32 %v19665_v22, %v19664_v24  ;;  %v16801_v6 = vadd.f32 %v19666_v9, %v4502_v43  ;;  %v16806_v63 = vadd.f32 %v19668_v57, %v19667_v4  ;;  %v16810_v15 = vadd.f32 %v19670_v20, %v19669_v2  ;;  %v19671_v61 = vld [vmem:[#allocation60_spill] sm:$0xff] }
 0x23b   : > { %v16814_v11 = vadd.f32 %v19672_v13, %v19671_v61  ;;  %v16821_v30 = vadd.f32 %v19675_v58, %v19674_v29  ;;  %v19678_v59 = vld [vmem:[#allocation64_spill] sm:$0xff]  ;;  %v4514_v22 = vadd.f32 %v16700_v17, %v4127_v33  ;;  %v16841_v57 = vadd.f32 %v16676_v10, %v16674_v37 }
 0x23c   : > { %v13586_v60 = vpop.f32.mrf.mxu0  ;;  %v16845_v2 = vadd.f32 %v16685_v55, %v16683_v53  ;;  %v4518_v17 = vadd.f32 %v4477_v34, %v4131_v41  ;;  %v16857_v10 = vadd.f32 %v13566_v39, %v16721_v1  ;;  %v16860_v53 = vadd.f32 %v5228_v51, %v16733_v50 }
 0x23d   : > { %v5743_v54 = vadd.f32 %v13586_v60, %v5245_v27  ;;  %v19673_v27 = vld [vmem:[#allocation61_spill] sm:$0xff]  ;;  %v16854_v37 = vadd.f32 %v16727_v23, %v4514_v22  ;;  %v6337_v22 = vld [vmem:[#allocation2 + $0x18] sm:$0xf] }
 0x23e   : > { %v5614_v44 = vpop.f32.mrf.mxu0  ;;  %v16817_v28 = vadd.f32 %v19673_v27, %v4506_v3  ;;  %v19676_v60 = vld [vmem:[#allocation9_spill] sm:$0xff]  ;;  %v16834_v3 = vadd.f32 %v16662_v5, %v4510_v36  ;;  %v16849_v5 = vadd.f32 %v16702_v47, %v16694_v56 }
 0x23f   : > { %v5782_v46 = vmul.f32 %v16765_v35, %v5743_v54  ;;  %v5741_v18 = vadd.f32 %v5614_v44, %v5243_v62  ;;  %v13567_v62 = vpop.f32.mrf.mxu1  ;;  %v19677_v54 = vld [vmem:[#allocation8_spill] sm:$0xff]  ;;  %v19679_v44 = vld [vmem:[#allocation65_spill] sm:$0xff] }
 0x240   : > { %v13587_v52 = vpop.f32.mrf.mxu0  ;;  %v16827_v49 = vadd.f32 %v19677_v54, %v19676_v60  ;;  %v16831_v24 = vadd.f32 %v19679_v44, %v19678_v59 }
 0x241   : > { %v5821_v43 = vadd.f32 %v16794_v26, %v5782_v46  ;;  %v5780_v16 = vmul.f32 %v16765_v35, %v5741_v18  ;;  %v5744_v0 = vadd.f32 %v13587_v52, %v5246_v21  ;;  %v5231_v36 = vpop.f32.mrf.mxu1  ;;  %v16864_v52 = vadd.f32 %v13567_v62, %v16743_v8 }
 0x242   : > { %v5617_v9 = vpop.f32.mrf.mxu0  ;;  %v16866_v29 = vadd.f32 %v5231_v36, %v4518_v17 }
 0x243   : > { %v5853_v4 = vmul.f32 0.1, %v5821_v43  ;;  %v5819_v46 = vadd.f32 %v16794_v26, %v5780_v16  ;;  %v5783_v18 = vmul.f32 %v16765_v35, %v5744_v0  ;;  %v5742_v21 = vadd.f32 %v5617_v9, %v5244_v38 }
 0x244   : > { %v13590_v33 = vpop.f32.mrf.mxu0 }
 0x245   : > { %v5885_v20 = vmax.f32 %v5821_v43, %v5853_v4  ;;  %v5851_v61 = vmul.f32 0.1, %v5819_v46  ;;  %v5822_v13 = vadd.f32 %v16794_v26, %v5783_v18  ;;  %v5781_v38 = vmul.f32 %v16765_v35, %v5742_v21 }
 0x246   : > { %v5747_v55 = vadd.f32 %v13590_v33, %v5249_v7  ;;  %v5630_v56 = vpop.f32.mrf.mxu0 }
 0x247   : > { %v12595_v47 = vpack.c.bf16 %v5885_v20, %v5885_v20  ;;  %v5883_v41 = vmax.f32 %v5819_v46, %v5851_v61  ;;  %v5854_v34 = vmul.f32 0.1, %v5822_v13  ;;  %v5820_v27 = vadd.f32 %v16794_v26, %v5781_v38 }
 0x248   : > { %v5786_v23 = vmul.f32 %v16765_v35, %v5747_v55  ;;  %v5745_v58 = vadd.f32 %v5630_v56, %v5247_v12  ;;  %v13591_v1 = vpop.f32.mrf.mxu0 }
 0x249   : > { %v6029_v39 = vshrl.u32 %v12595_v47, 16  ;;  %v6032_v43 = vshll.u32 %v12595_v47, 16  ;;  %v12593_v50 = vpack.c.bf16 %v5883_v41, %v5883_v41  ;;  %v5886_v51 = vmax.f32 %v5822_v13, %v5854_v34 }
 0x24a   : > { %v5852_v7 = vmul.f32 0.1, %v5820_v27  ;;  %v5825_v16 = vadd.f32 %v16794_v26, %v5786_v23  ;;  %v5784_v0 = vmul.f32 %v16765_v35, %v5745_v58  ;;  %v5748_v60 = vadd.f32 %v13591_v1, %v16756_v45  ;;  %v5633_v54 = vpop.f32.mrf.mxu0 }
 0x24b   : > { %v6031_v8 = vrot.slane %v6029_v39, 7  ;;  %v6012_v62 = vshrl.u32 %v12593_v50, 16  ;;  %v6015_v59 = vshll.u32 %v12593_v50, 16  ;;  %v12596_v44 = vpack.c.bf16 %v5886_v51, %v5886_v51  ;;  %v14320_v50 = vld [vmem:[#allocation2 + $0xc] sm:$0xf] }
 0x24c   : > { %v5884_v9 = vmax.f32 %v5820_v27, %v5852_v7  ;;  %v5857_v12 = vmul.f32 0.1, %v5825_v16  ;;  %v5823_v4 = vadd.f32 %v16794_v26, %v5784_v0  ;;  %v5787_v46 = vmul.f32 %v16765_v35, %v5748_v60  ;;  %v13594_v18 = vpop.f32.mrf.mxu0  ;;  %v6341_v27 = vld [vmem:[#allocation2 + $0x20] sm:$0x1] }
 0x24d   : > { %v6034_v21 = vor.u32 %v6032_v43, %v6031_v8  ;;  %v6035_v17 = vrot.slane %v6031_v8, 4  ;;  %v6014_v33 = vrot.slane %v6012_v62, 7  ;;  %v6037_v36 = vshrl.u32 %v12596_v44, 16 }
 0x24e   : > { %v6040_v20 = vshll.u32 %v12596_v44, 16  ;;  %v12594_v61 = vpack.c.bf16 %v5884_v9, %v5884_v9  ;;  %v5889_v45 = vmax.f32 %v5825_v16, %v5857_v12  ;;  %v5855_v13 = vmul.f32 0.1, %v5823_v4  ;;  %v5646_v38 = vpop.f32.mrf.mxu0 }
 0x24f   : > { %v6338_v56 = vsel %vm14489_vm9, %v6034_v21, %v6337_v22  ;;  %v6017_v47 = vor.u32 %v6015_v59, %v6014_v33  ;;  %v6018_v41 = vrot.slane %v6014_v33, 4  ;;  %v6039_v34 = vrot.slane %v6037_v36, 7  ;;  %v16882_v22 = vld [vmem:[%s19464_s2 + $0xf8] sm:$0xff]   ;;  %v6334_v33 = vld [vmem:[#allocation2 + $0x14] sm:$0x1] }
 0x250   : > { %6339 = vst [vmem:[#allocation2 + $0x18] sm:$0xf] %v6338_v56  ;;  %v6020_v23 = vshrl.u32 %v12594_v61, 16  ;;  %v6023_v58 = vshll.u32 %v12594_v61, 16  ;;  %v12599_v1 = vpack.c.bf16 %v5889_v45, %v5889_v45  ;;  %v5887_v39 = vmax.f32 %v5823_v4, %v5855_v13  ;;  %v13595_v43 = vpop.f32.mrf.mxu0  ;;  %13760 = vmatprep.subr.bf16.mxu0 %v16882_v22 }
 0x251   : > { %v6331_v51 = vsel %vm14489_vm9, %v6017_v47, %v14320_v50  ;;  %v6042_v7 = vor.u32 %v6040_v20, %v6039_v34  ;;  %v6044_v16 = vrot.slane %v6039_v34, 4  ;;  %v5826_v0 = vadd.f32 %v16794_v26, %v5787_v46  ;;  %v6351_v47 = vld [vmem:[#allocation2 + $0x30] sm:$0xf] }
 0x252   : > { %6332 = vst [vmem:[#allocation2 + $0xc] sm:$0xf] %v6331_v51  ;;  %v6022_v60 = vrot.slane %v6020_v23, 7  ;;  %v6063_v8 = vshrl.u32 %v12599_v1, 16  ;;  %v6066_v62 = vshll.u32 %v12599_v1, 16  ;;  %v12597_v59 = vpack.c.bf16 %v5887_v39, %v5887_v39  ;;  %v5649_v44 = vpop.f32.mrf.mxu0 }
 0x253   : > { %v6043_v12 = vsel %vm14496_vm10, %v6035_v17, %v6042_v7  ;;  %v6342_v21 = vsel %vm14436_vm3, %v6044_v16, %v6341_v27  ;;  %v5858_v36 = vmul.f32 0.1, %v5826_v0  ;;  %v5746_v46 = vadd.f32 %v5633_v54, %v16759_v40 }
 0x254   : > { %6340 = vst [vmem:[#allocation2 + $0x1c] sm:$0xf] %v6043_v12  ;;  %6343 = vst [vmem:[#allocation2 + $0x20] sm:$0x1] %v6342_v21  ;;  %v6025_v20 = vor.u32 %v6023_v58, %v6022_v60  ;;  %v6027_v61 = vrot.slane %v6022_v60, 4  ;;  %v6065_v45 = vrot.slane %v6063_v8, 7  ;;  %v13598_v56 = vpop.f32.mrf.mxu0  ;;  %v5751_v27 = vadd.f32 %v13594_v18, %v16769_v48 }
 0x255   : > { %v6046_v13 = vshrl.u32 %v12597_v59, 16  ;;  %v6049_v34 = vshll.u32 %v12597_v59, 16  ;;  %v5890_v23 = vmax.f32 %v5826_v0, %v5858_v36  ;;  %v5785_v17 = vmul.f32 %v16765_v35, %v5746_v46  ;;  %v6344_v18 = vld [vmem:[#allocation2 + $0x24] sm:$0xf] }
 0x256   : > { %v6026_v1 = vsel %vm14496_vm10, %v6018_v41, %v6025_v20  ;;  %v6335_v40 = vsel %vm14436_vm3, %v6027_v61, %v6334_v33  ;;  %v6068_v54 = vor.u32 %v6066_v62, %v6065_v45  ;;  %v6069_v58 = vrot.slane %v6065_v45, 4  ;;  %v5662_v16 = vpop.f32.mrf.mxu0 }
 0x257   : > { %6333 = vst [vmem:[#allocation2 + $0x10] sm:$0xf] %v6026_v1  ;;  %6336 = vst [vmem:[#allocation2 + $0x14] sm:$0x1] %v6335_v40  ;;  %v16896_v39 = vrot.slane %v6046_v13, 7  ;;  %v12600_v50 = vpack.c.bf16 %v5890_v23, %v5890_v23  ;;  %v5824_v51 = vadd.f32 %v16794_v26, %v5785_v17  ;;  %v5790_v7 = vmul.f32 %v16765_v35, %v5751_v27 }
 0x258   : > { %v6352_v48 = vsel %vm14489_vm9, %v6068_v54, %v6351_v47  ;;  %v5749_v41 = vadd.f32 %v5646_v38, %v16773_v25  ;;  %v5752_v0 = vadd.f32 %v13595_v43, %v16777_v32  ;;  %v5750_v60 = vadd.f32 %v5649_v44, %v16780_v31  ;;  %v6355_v38 = vld [vmem:[#allocation2 + $0x38] sm:$0x1]  ;;  %v16914_v44 = vpop.f32.mrf.mxu0 }
 0x259   : > { %6353 = vst [vmem:[#allocation2 + $0x30] sm:$0xf] %v6352_v48  ;;  %v6051_v8 = vor.u32 %v6049_v34, %v16896_v39  ;;  %v6052_v62 = vrot.slane %v16896_v39, 4  ;;  %v6071_v59 = vshrl.u32 %v12600_v50, 16  ;;  %v6074_v12 = vshll.u32 %v12600_v50, 16 }
 0x25a   : > { %v5856_v21 = vmul.f32 0.1, %v5824_v51  ;;  %v5829_v33 = vadd.f32 %v16794_v26, %v5790_v7  ;;  %v5788_v36 = vmul.f32 %v16765_v35, %v5749_v41  ;;  %v5791_v46 = vmul.f32 %v16765_v35, %v5752_v0 }
 0x25b   : > { %v6345_v25 = vsel %vm14489_vm9, %v6051_v8, %v6344_v18  ;;  %v6073_v32 = vrot.slane %v6071_v59, 7  ;;  %v5789_v31 = vmul.f32 %v16765_v35, %v5750_v60  ;;  %v5755_v43 = vadd.f32 %v13598_v56, %v16784_v19 }
 0x25c   : > { %6346 = vst [vmem:[#allocation2 + $0x24] sm:$0xf] %v6345_v25  ;;  %v5888_v20 = vmax.f32 %v5824_v51, %v5856_v21  ;;  %v5861_v61 = vmul.f32 0.1, %v5829_v33  ;;  %v5827_v45 = vadd.f32 %v16794_v26, %v5788_v36  ;;  %v5830_v13 = vadd.f32 %v16794_v26, %v5791_v46  ;;  %v16925_v51 = vpop.f32.mrf.mxu0  ;;  %v6348_v36 = vld [vmem:[#allocation2 + $0x2c] sm:$0x1] }
 0x25d   : > { %v6076_v47 = vor.u32 %v6074_v12, %v6073_v32  ;;  %v6078_v34 = vrot.slane %v6073_v32, 4  ;;  %v5828_v23 = vadd.f32 %v16794_v26, %v5789_v31  ;;  %v5794_v17 = vmul.f32 %v16765_v35, %v5755_v43 }
 0x25e   : > { %v12598_v27 = vpack.c.bf16 %v5888_v20, %v5888_v20  ;;  %v5893_v1 = vmax.f32 %v5829_v33, %v5861_v61  ;;  %v5859_v40 = vmul.f32 0.1, %v5827_v45  ;;  %v5862_v54 = vmul.f32 0.1, %v5830_v13  ;;  %v13602_v31 = vpop.f32.mrf.mxu0 }
 0x25f   : > { %v6077_v19 = vsel %vm14496_vm10, %v6069_v58, %v6076_v47  ;;  %v6356_v56 = vsel %vm14436_vm3, %v6078_v34, %v6355_v38  ;;  %v5860_v39 = vmul.f32 0.1, %v5828_v23  ;;  %v5833_v50 = vadd.f32 %v16794_v26, %v5794_v17 }
 0x260   : > { %6354 = vst [vmem:[#allocation2 + $0x34] sm:$0xf] %v6077_v19  ;;  %6357 = vst [vmem:[#allocation2 + $0x38] sm:$0x1] %v6356_v56  ;;  %v6054_v7 = vshrl.u32 %v12598_v27, 16  ;;  %v6057_v48 = vshll.u32 %v12598_v27, 16  ;;  %v12603_v18 = vpack.c.bf16 %v5893_v1, %v5893_v1  ;;  %v5891_v41 = vmax.f32 %v5827_v45, %v5859_v40 }
 0x261   : > { %v5894_v0 = vmax.f32 %v5830_v13, %v5862_v54  ;;  %v5892_v60 = vmax.f32 %v5828_v23, %v5860_v39  ;;  %v5865_v8 = vmul.f32 0.1, %v5833_v50  ;;  %v5753_v59 = vadd.f32 %v5662_v16, %v16788_v42  ;;  %v6365_v13 = vld [vmem:[#allocation2 + $0x48] sm:$0xf]  ;;  %v5678_v39 = vpop.f32.mrf.mxu0 }
 0x262   : > { %v6056_v58 = vrot.slane %v6054_v7, 7  ;;  %v6097_v12 = vshrl.u32 %v12603_v18, 16  ;;  %v6100_v21 = vshll.u32 %v12603_v18, 16  ;;  %v12601_v33 = vpack.c.bf16 %v5891_v41, %v5891_v41  ;;  %v6358_v7 = vld [vmem:[#allocation2 + $0x3c] sm:$0xf] }
 0x263   : > { %v12604_v46 = vpack.c.bf16 %v5894_v0, %v5894_v0  ;;  %v12602_v25 = vpack.c.bf16 %v5892_v60, %v5892_v60  ;;  %v5897_v32 = vmax.f32 %v5833_v50, %v5865_v8  ;;  %v5792_v38 = vmul.f32 %v16765_v35, %v5753_v59 }
 0x264   : > { %v6059_v43 = vor.u32 %v6057_v48, %v6056_v58  ;;  %v6061_v20 = vrot.slane %v6056_v58, 4  ;;  %v6099_v61 = vrot.slane %v6097_v12, 7  ;;  %v6080_v45 = vshrl.u32 %v12601_v33, 16  ;;  %v6369_v48 = vld [vmem:[#allocation2 + $0x50] sm:$0x1] }
 0x265   : > { %v6083_v47 = vshll.u32 %v12601_v33, 16  ;;  %v6105_v34 = vshrl.u32 %v12604_v46, 16  ;;  %v6108_v23 = vshll.u32 %v12604_v46, 16  ;;  %v6088_v42 = vshrl.u32 %v12602_v25, 16  ;;  %v6362_v58 = vld [vmem:[#allocation2 + $0x44] sm:$0x1] }
 0x266   : > { %v6060_v16 = vsel %vm14496_vm10, %v6052_v62, %v6059_v43  ;;  %v6349_v17 = vsel %vm14436_vm3, %v6061_v20, %v6348_v36  ;;  %v6102_v27 = vor.u32 %v6100_v21, %v6099_v61  ;;  %v6103_v1 = vrot.slane %v6099_v61, 4 }
 0x267   : > { %6347 = vst [vmem:[#allocation2 + $0x28] sm:$0xf] %v6060_v16  ;;  %6350 = vst [vmem:[#allocation2 + $0x2c] sm:$0x1] %v6349_v17  ;;  %v6082_v40 = vrot.slane %v6080_v45, 7  ;;  %v6107_v54 = vrot.slane %v6105_v34, 7  ;;  %v12607_v18 = vpack.c.bf16 %v5897_v32, %v5897_v32  ;;  %v5831_v62 = vadd.f32 %v16794_v26, %v5792_v38 }
 0x268   : > { %v6090_v19 = vrot.slane %v6088_v42, 7  ;;  %v6091_v56 = vshll.u32 %v12602_v25, 16  ;;  %v6366_v50 = vsel %vm14489_vm9, %v6102_v27, %v6365_v13  ;;  %v5756_v41 = vadd.f32 %v16914_v44, %v16798_v14  ;;  %v13603_v44 = vpop.f32.mrf.mxu0  ;;  %v6379_v45 = vld [vmem:[#allocation2 + $0x60] sm:$0xf]  ;;  %v16955_v42 = vld [vmem:[#allocation2 + $0xc] sm:$0xf] }
 0x269   : > { %6367 = vst [vmem:[#allocation2 + $0x48] sm:$0xf] %v6366_v50  ;;  %v6085_v0 = vor.u32 %v6083_v47, %v6082_v40  ;;  %v6086_v60 = vrot.slane %v6082_v40, 4  ;;  %v6110_v8 = vor.u32 %v6108_v23, %v6107_v54  ;;  %v6112_v59 = vrot.slane %v6107_v54, 4 }
 0x26a   : > { %v6093_v12 = vor.u32 %v6091_v56, %v6090_v19  ;;  %v6095_v21 = vrot.slane %v6090_v19, 4  ;;  %v6131_v33 = vshrl.u32 %v12607_v18, 16  ;;  %v6134_v36 = vshll.u32 %v12607_v18, 16 }
 0x26b   : > { %v6359_v46 = vsel %vm14489_vm9, %v6085_v0, %v6358_v7  ;;  %v6111_v25 = vsel %vm14496_vm10, %v6103_v1, %v6110_v8  ;;  %v6370_v32 = vsel %vm14436_vm3, %v6112_v59, %v6369_v48  ;;  %v5863_v14 = vmul.f32 0.1, %v5831_v62  ;;  %v16970_v7 = vld [vmem:[#allocation2 + $0x10] sm:$0xf]  ;;  %v6372_v48 = vld [vmem:[#allocation2 + $0x54] sm:$0xf] }
 0x26c   : > { %6360 = vst [vmem:[#allocation2 + $0x3c] sm:$0xf] %v6359_v46  ;;  %6368 = vst [vmem:[#allocation2 + $0x4c] sm:$0xf] %v6111_v25  ;;  %v6094_v38 = vsel %vm14496_vm10, %v6086_v60, %v6093_v12  ;;  %v6363_v43 = vsel %vm14436_vm3, %v6095_v21, %v6362_v58  ;;  %v16948_v20 = vrot.slane %v6131_v33, 7  ;;  %v5795_v61 = vmul.f32 %v16765_v35, %v5756_v41  ;;  %v16979_v12 = vpop.f32.mrf.mxu0 }
 0x26d   : > { %6371 = vst [vmem:[#allocation2 + $0x50] sm:$0x1] %v6370_v32  ;;  %6361 = vst [vmem:[#allocation2 + $0x40] sm:$0xf] %v6094_v38  ;;  %v5895_v13 = vmax.f32 %v5831_v62, %v5863_v14  ;;  %v5754_v47 = vadd.f32 %v16925_v51, %v16801_v6  ;;  %v5759_v34 = vadd.f32 %v13602_v31, %v16806_v63  ;;  %v6531_v31 = vshrl.u32 %v16955_v42, 16 }
 0x26e   : > { %6364 = vst [vmem:[#allocation2 + $0x44] sm:$0x1] %v6363_v43  ;;  %v5757_v23 = vadd.f32 %v5678_v39, %v16810_v15  ;;  %v6136_v16 = vor.u32 %v6134_v36, %v16948_v20  ;;  %v6137_v17 = vrot.slane %v16948_v20, 4  ;;  %v5834_v27 = vadd.f32 %v16794_v26, %v5795_v61 }
 0x26f   : > { %v5760_v1 = vadd.f32 %v13603_v44, %v16814_v11  ;;  %v12605_v40 = vpack.c.bf16 %v5895_v13, %v5895_v13  ;;  %v5793_v54 = vmul.f32 %v16765_v35, %v5754_v47  ;;  %v5798_v19 = vmul.f32 %v16765_v35, %v5759_v34  ;;  %v6383_v47 = vld [vmem:[#allocation2 + $0x68] sm:$0x1] }
 0x270   : > { %v5796_v6 = vmul.f32 %v16765_v35, %v5757_v23  ;;  %v6380_v63 = vsel %vm14489_vm9, %v6136_v16, %v6379_v45  ;;  %v5866_v15 = vmul.f32 0.1, %v5834_v27  ;;  %v16974_v0 = vrot.slane %v6531_v31, 4 }
 0x271   : > { %v5799_v51 = vmul.f32 %v16765_v35, %v5760_v1  ;;  %6381 = vst [vmem:[#allocation2 + $0x60] sm:$0xf] %v6380_v63  ;;  %v6114_v56 = vshrl.u32 %v12605_v40, 16  ;;  %v6117_v39 = vshll.u32 %v12605_v40, 16  ;;  %v5832_v11 = vadd.f32 %v16794_v26, %v5793_v54  ;;  %v14209_v63 = vld [vmem:[%s19464_s2 + $0xf0] sm:$0xff]  }
 0x272   : > { %v5837_v50 = vadd.f32 %v16794_v26, %v5798_v19  ;;  %v5898_v18 = vmax.f32 %v5834_v27, %v5866_v15  ;;  %v5835_v62 = vadd.f32 %v16794_v26, %v5796_v6  ;;  %v6534_v58 = vshll.u32 %v16955_v42, 16  ;;  %v16988_v27 = vpop.f32.mrf.mxu0  ;;  %v16992_v6 = vld [vmem:[#allocation2 + $0x18] sm:$0xf] }
 0x273   : > { %v5838_v41 = vadd.f32 %v16794_v26, %v5799_v51  ;;  %v16976_v60 = vrot.slane %v6114_v56, 7  ;;  %v5864_v8 = vmul.f32 0.1, %v5832_v11  ;;  %v6544_v46 = vshrl.u32 %v16970_v7, 16 }
 0x274   : > { %v5869_v59 = vmul.f32 0.1, %v5837_v50  ;;  %v12608_v21 = vpack.c.bf16 %v5898_v18, %v5898_v18  ;;  %v5867_v33 = vmul.f32 0.1, %v5835_v62  ;;  %v16986_v16 = vrot.slane %v6534_v58, 5 }
 0x275   : > { %v5870_v36 = vmul.f32 0.1, %v5838_v41  ;;  %v6119_v25 = vor.u32 %v6117_v39, %v16976_v60  ;;  %v6120_v32 = vrot.slane %v16976_v60, 4  ;;  %v5896_v14 = vmax.f32 %v5832_v11, %v5864_v8  ;;  %v6393_v60 = vld [vmem:[#allocation2 + $0x78] sm:$0xf] }
 0x276   : > { %v5901_v44 = vmax.f32 %v5837_v50, %v5869_v59  ;;  %v6139_v38 = vshrl.u32 %v12608_v21, 16  ;;  %v6142_v43 = vshll.u32 %v12608_v21, 16  ;;  %v5899_v61 = vmax.f32 %v5835_v62, %v5867_v33  ;;  %v6376_v50 = vld [vmem:[#allocation2 + $0x5c] sm:$0x1]  ;;  %v5694_v59 = vpop.f32.mrf.mxu0 }
 0x277   : > { %v5902_v45 = vmax.f32 %v5838_v41, %v5870_v36  ;;  %v6373_v13 = vsel %vm14489_vm9, %v6119_v25, %v6372_v48  ;;  %v12606_v34 = vpack.c.bf16 %v5896_v14, %v5896_v14  ;;  %v12172_v19 = vcombine.low %v16955_v42, %v16970_v7  ;;  %v6386_v36 = vld [vmem:[#allocation2 + $0x6c] sm:$0xf] }
 0x278   : > { %v12611_v23 = vpack.c.bf16 %v5901_v44, %v5901_v44  ;;  %6374 = vst [vmem:[#allocation2 + $0x54] sm:$0xf] %v6373_v13  ;;  %v6141_v1 = vrot.slane %v6139_v38, 7  ;;  %v12609_v40 = vpack.c.bf16 %v5899_v61, %v5899_v61  ;;  %v6555_v25 = vshrl.u32 %v16992_v6, 16  ;;  %v14211_v14 = vld [vmem:[%s19464_s2 + $0xe8] sm:$0xff]  }
 0x279   : > { %v12612_v54 = vpack.c.bf16 %v5902_v45, %v5902_v45  ;;  %v6122_v15 = vshrl.u32 %v12606_v34, 16  ;;  %v6125_v51 = vshll.u32 %v12606_v34, 16  ;;  %13681 = vmatmul.mubr.bf16.vlgmr.msra.gmra.mxu0 %v12172_v19  ;;  %v14214_v19 = vld [vmem:[%s19464_s2 + $0xe0] sm:$0xff]  }
 0x27a   : > { %v6165_v31 = vshrl.u32 %v12611_v23, 16  ;;  %v6168_v56 = vshll.u32 %v12611_v23, 16  ;;  %v6144_v39 = vor.u32 %v6142_v43, %v6141_v1  ;;  %v6146_v11 = vrot.slane %v6141_v1, 4  ;;  %13761 = vmatpush3.bf16.msra.mxu0 %v16882_v22  ;;  %v6397_v1 = vld [vmem:[#allocation2 + $0x80] sm:$0x1] }
 0x27b   : > { %v6148_v48 = vshrl.u32 %v12609_v40, 16  ;;  %v6151_v18 = vshll.u32 %v12609_v40, 16  ;;  %v6124_v62 = vrot.slane %v6122_v15, 7  ;;  %v6173_v42 = vshrl.u32 %v12612_v54, 16  ;;  %13762 = vmatprep.subr.bf16.mxu0 %v14209_v63 }
 0x27c   : > { %v6167_v41 = vrot.slane %v6165_v31, 7  ;;  %v6176_v8 = vshll.u32 %v12612_v54, 16  ;;  %v6145_v58 = vsel %vm14496_vm10, %v6137_v17, %v6144_v39  ;;  %v6384_v21 = vsel %vm14436_vm3, %v6146_v11, %v6383_v47  ;;  %v17010_v17 = vld [vmem:[#allocation2 + $0x1c] sm:$0xf]  ;;  %v13607_v54 = vpop.f32.mrf.mxu0  ;;  %v17029_v39 = vld [vmem:[#allocation2 + $0x28] sm:$0xf] }
 0x27d   : > { %v17004_v33 = vrot.slane %v6148_v48, 7  ;;  %6382 = vst [vmem:[#allocation2 + $0x64] sm:$0xf] %v6145_v58  ;;  %6385 = vst [vmem:[#allocation2 + $0x68] sm:$0x1] %v6384_v21  ;;  %v6127_v22 = vor.u32 %v6125_v51, %v6124_v62  ;;  %v6129_v20 = vrot.slane %v6124_v62, 4  ;;  %v12173_v11 = vcombine.low %v16992_v6, %v17010_v17 }
 0x27e   : > { %v6170_v44 = vor.u32 %v6168_v56, %v6167_v41  ;;  %v6171_v38 = vrot.slane %v6167_v41, 4  ;;  %v6175_v45 = vrot.slane %v6173_v42, 7  ;;  %v17014_v13 = vrot.slane %v6555_v25, 4  ;;  %13763 = vmatpush3.bf16.msra.mxu0 %v14209_v63  ;;  %v6448_v56 = vld [vmem:[#allocation2 + $0x24] sm:$0xf] }
 0x27f   : > { %v6153_v43 = vor.u32 %v6151_v18, %v17004_v33  ;;  %v6154_v61 = vrot.slane %v17004_v33, 4  ;;  %v6128_v47 = vsel %vm14496_vm10, %v6120_v32, %v6127_v22  ;;  %v6377_v34 = vsel %vm14436_vm3, %v6129_v20, %v6376_v50  ;;  %13764 = vmatprep.subr.bf16.mxu0 %v14211_v14  ;;  %13684 = vmatprep.mubr.bf16.mxu0 %v12173_v11  ;;  %v14204_v33 = vld [vmem:[%s19464_s2 + $0xa8] sm:$0xff]  }
 0x280   : > { %v6394_v23 = vsel %vm14489_vm9, %v6170_v44, %v6393_v60  ;;  %v6558_v40 = vshll.u32 %v16992_v6, 16  ;;  %6375 = vst [vmem:[#allocation2 + $0x58] sm:$0xf] %v6128_v47  ;;  %6378 = vst [vmem:[#allocation2 + $0x5c] sm:$0x1] %v6377_v34  ;;  %v6178_v15 = vor.u32 %v6176_v8, %v6175_v45  ;;  %v6180_v51 = vrot.slane %v6175_v45, 4 }
 0x281   : > { %6395 = vst [vmem:[#allocation2 + $0x78] sm:$0xf] %v6394_v23  ;;  %v6387_v32 = vsel %vm14489_vm9, %v6153_v43, %v6386_v36  ;;  %v6568_v31 = vshrl.u32 %v17010_v17, 16  ;;  %v5758_v50 = vadd.f32 %v16979_v12, %v16817_v28  ;;  %v5763_v48 = vadd.f32 %v16988_v27, %v16821_v30  ;;  %v17065_v44 = vld [vmem:[#allocation2 + $0x30] sm:$0xf]  ;;  %v17072_v23 = vpop.f32.mrf.mxu0 }
 0x282   : > { %6388 = vst [vmem:[#allocation2 + $0x6c] sm:$0xf] %v6387_v32  ;;  %v17031_v63 = vrot.slane %v6558_v40, 5  ;;  %v6179_v18 = vsel %vm14496_vm10, %v6171_v38, %v6178_v15  ;;  %v6398_v62 = vsel %vm14436_vm3, %v6180_v51, %v6397_v1  ;;  %v5761_v41 = vadd.f32 %v5694_v59, %v16827_v49  ;;  %13765 = vmatpush3.bf16.msra.mxu0 %v14211_v14  ;;  %v6491_v59 = vld [vmem:[#allocation2 + $0x14] sm:$0x1] }
 0x283   : > { %v5764_v60 = vadd.f32 %v13607_v54, %v16831_v24  ;;  %6396 = vst [vmem:[#allocation2 + $0x7c] sm:$0xf] %v6179_v18  ;;  %6399 = vst [vmem:[#allocation2 + $0x80] sm:$0x1] %v6398_v62  ;;  %v5797_v6 = vmul.f32 %v16765_v35, %v5758_v50  ;;  %v5802_v28 = vmul.f32 %v16765_v35, %v5763_v48  ;;  %v6579_v12 = vshrl.u32 %v6448_v56, 16  ;;  %v14216_v24 = vld [vmem:[%s19464_s2 + $0xd8] sm:$0xff]  }
 0x284   : > { %v6582_v42 = vshll.u32 %v6448_v56, 16  ;;  %v5800_v30 = vmul.f32 %v16765_v35, %v5761_v41  ;;  %v6592_v8 = vshrl.u32 %v17029_v39, 16  ;;  %v12174_v49 = vcombine.low %v6448_v56, %v17029_v39  ;;  %13766 = vmatprep.subr.bf16.mxu0 %v14214_v19  ;;  %v14219_v38 = vld [vmem:[%s19464_s2 + $0xd0] sm:$0xff]   ;;  %v17082_v41 = vpop.f32.mrf.mxu0 }
 0x285   : > { %v5803_v27 = vmul.f32 %v16765_v35, %v5764_v60  ;;  %v5836_v58 = vadd.f32 %v16794_v26, %v5797_v6  ;;  %v5841_v21 = vadd.f32 %v16794_v26, %v5802_v28  ;;  %v17056_v36 = vrot.slane %v6579_v12, 4  ;;  %v17074_v15 = vld [vmem:[#allocation2 + $0x34] sm:$0xf] }
 0x286   : > { %v17058_v25 = vrot.slane %v6582_v42, 5  ;;  %v5839_v35 = vadd.f32 %v16794_v26, %v5800_v30  ;;  %13685 = vmatmul.mubr.bf16.gmra.mxu0 %v12174_v49  ;;  %v6537_v22 = vor.u32 %v16986_v16, %v16974_v0  ;;  %v6540_v20 = vshll.u32 %v16970_v7, 16  ;;  %v14221_v42 = vld [vmem:[%s19464_s2 + $0xc8] sm:$0xff]  }
 0x287   : > { %v5842_v14 = vadd.f32 %v16794_v26, %v5803_v27  ;;  %v5868_v43 = vmul.f32 0.1, %v5836_v58  ;;  %v5873_v45 = vmul.f32 0.1, %v5841_v21  ;;  %v6546_v47 = vrot.slane %v6544_v46, 4  ;;  %13767 = vmatpush3.bf16.msra.mxu0 %v14214_v19 }
 0x288   : > { %v6550_v34 = vshll.u32 %v6491_v59, 16  ;;  %v5871_v26 = vmul.f32 0.1, %v5839_v35  ;;  %v6538_v0 = vrot.slane %v6537_v22, 4  ;;  %v6542_v16 = vrot.slane %v6540_v20, 5  ;;  %13768 = vmatprep.subr.bf16.mxu0 %v14216_v24 }
 0x289   : > { %v5874_v1 = vmul.f32 0.1, %v5842_v14  ;;  %v5900_v40 = vmax.f32 %v5836_v58, %v5868_v43  ;;  %v5905_v54 = vmax.f32 %v5841_v21, %v5873_v45  ;;  %v6603_v51 = vshrl.u32 %v17065_v44, 16 }
 0x28a   : > { %v6552_v32 = vrot.slane %v6550_v34, 5  ;;  %v5903_v56 = vmax.f32 %v5839_v35, %v5871_v26  ;;  %v6543_v46 = vsel %vm14518_vm11, %v6538_v0, %v6542_v16  ;;  %v6547_v50 = vor.u32 %v6546_v47, %v6542_v16  ;;  %v5710_v47 = vpop.f32.mrf.mxu0  ;;  %v6407_v34 = vld [vmem:[#allocation2 + $0x90] sm:$0xf] }
 0x28b   : > { %v5906_v11 = vmax.f32 %v5842_v14, %v5874_v1  ;;  %v12610_v48 = vpack.c.bf16 %v5900_v40, %v5900_v40  ;;  %v12615_v19 = vpack.c.bf16 %v5905_v54, %v5905_v54  ;;  %v17079_v18 = vrot.slane %v6603_v51, 4  ;;  %13769 = vmatpush3.bf16.msra.mxu0 %v14216_v24  ;;  %v6390_v24 = vld [vmem:[#allocation2 + $0x74] sm:$0x1] }
 0x28c   : > { %v6606_v62 = vshll.u32 %v17065_v44, 16  ;;  %v12613_v60 = vpack.c.bf16 %v5903_v56, %v5903_v56  ;;  %v6548_v28 = vrot.slane %v6547_v50, 4  ;;  %v6616_v12 = vshrl.u32 %v17074_v15, 16  ;;  %13770 = vmatprep.subr.bf16.mxu0 %v14219_v38  ;;  %v14201_v40 = vld [vmem:[%s19464_s2 + $0xb0] sm:$0xff]   ;;  %v6411_v50 = vld [vmem:[#allocation2 + $0x98] sm:$0x1] }
 0x28d   : > { %v12616_v6 = vpack.c.bf16 %v5906_v11, %v5906_v11  ;;  %v6156_v30 = vshrl.u32 %v12610_v48, 16  ;;  %v6159_v27 = vshll.u32 %v12610_v48, 16  ;;  %v6199_v49 = vshrl.u32 %v12615_v19, 16  ;;  %v6400_v11 = vld [vmem:[#allocation2 + $0x84] sm:$0xf] }
 0x28e   : > { %v6202_v59 = vshll.u32 %v12615_v19, 16  ;;  %v6182_v58 = vshrl.u32 %v12613_v60, 16  ;;  %v6185_v21 = vshll.u32 %v12613_v60, 16  ;;  %v6553_v43 = vsel %vm14518_vm11, %v6548_v28, %v6552_v32 }
 0x28f   : > { %v6207_v35 = vshrl.u32 %v12616_v6, 16  ;;  %v6210_v14 = vshll.u32 %v12616_v6, 16  ;;  %v6158_v22 = vrot.slane %v6156_v30, 7  ;;  %v6201_v20 = vrot.slane %v6199_v49, 7  ;;  %13771 = vmatpush3.bf16.msra.mxu0 %v14219_v38  ;;  %v13611_v49 = vpop.f32.mrf.mxu0 }
 0x290   : > { %v17090_v45 = vrot.slane %v6606_v62, 5  ;;  %v17092_v26 = vrot.slane %v6182_v58, 7  ;;  %v12148_v0 = vcombine.low %v6543_v46, %v6553_v43  ;;  %v12175_v16 = vcombine.low %v17065_v44, %v17074_v15  ;;  %13772 = vmatprep.subr.bf16.mxu0 %v14221_v42  ;;  %v6492_v44 = vld [vmem:[#allocation2 + $0x20] sm:$0x1]  ;;  %v6452_v58 = vld [vmem:[#allocation2 + $0x3c] sm:$0xf] }
 0x291   : > { %v6209_v1 = vrot.slane %v6207_v35, 7  ;;  %v6161_v54 = vor.u32 %v6159_v27, %v6158_v22  ;;  %v6163_v51 = vrot.slane %v6158_v22, 4  ;;  %v6204_v32 = vor.u32 %v6202_v59, %v6201_v20  ;;  %v14224_v62 = vld [vmem:[%s19464_s2 + $0xc0] sm:$0xff]   ;;  %v14321_v27 = vld [vmem:[%s19464_s2 + $0xb8] sm:$0xff]  }
 0x292   : > { %v6205_v56 = vrot.slane %v6201_v20, 4  ;;  %v6187_v38 = vor.u32 %v6185_v21, %v17092_v26  ;;  %v6188_v48 = vrot.slane %v17092_v26, 4  ;;  %13633 = vmatmul.mubr.bf16.vlgmr.msra.gmra.mxu1 %v12148_v0  ;;  %13688 = vmatprep.mubr.bf16.mxu0 %v12175_v16  ;;  %v5762_v30 = vadd.f32 %v17072_v23, %v16834_v3  ;;  %v17131_v21 = vld [vmem:[%s19465_s3] ss:$0 sm:$0xff] }
 0x293   : > { %v6212_v19 = vor.u32 %v6210_v14, %v6209_v1  ;;  %v6214_v46 = vrot.slane %v6209_v1, 4  ;;  %v6162_v60 = vsel %vm14496_vm10, %v6154_v61, %v6161_v54  ;;  %v6391_v6 = vsel %vm14436_vm3, %v6163_v51, %v6390_v24  ;;  %13713 = vmatpush3.bf16.msra.mxu1 %v14321_v27  ;;  %13773 = vmatpush3.bf16.msra.mxu0 %v14221_v42  ;;  %v14208_v16 = vld [vmem:[%s19464_s2 + $0xa0] sm:$0xff]  }
 0x294   : > { %v6408_v28 = vsel %vm14489_vm9, %v6204_v32, %v6407_v34  ;;  %6389 = vst [vmem:[#allocation2 + $0x70] sm:$0xf] %v6162_v60  ;;  %6392 = vst [vmem:[#allocation2 + $0x74] sm:$0x1] %v6391_v6  ;;  %v6401_v61 = vsel %vm14489_vm9, %v6187_v38, %v6400_v11  ;;  %v6561_v23 = vor.u32 %v17031_v63, %v17014_v13  ;;  %13714 = vmatprep.subr.bf16.mxu1 %v14201_v40  ;;  %v17144_v34 = vld [vmem:[%s19464_s2 + $0x178] sm:$0xff]  }
 0x295   : > { %6409 = vst [vmem:[#allocation2 + $0x90] sm:$0xf] %v6408_v28  ;;  %v6213_v59 = vsel %vm14496_vm10, %v6205_v56, %v6212_v19  ;;  %v6412_v3 = vsel %vm14436_vm3, %v6214_v46, %v6411_v50  ;;  %6402 = vst [vmem:[#allocation2 + $0x84] sm:$0xf] %v6401_v61  ;;  %v5801_v35 = vmul.f32 %v17131_v21, %v5762_v30  ;;  %v6564_v14 = vshll.u32 %v17010_v17, 16 }
 0x296   : > { %6410 = vst [vmem:[#allocation2 + $0x94] sm:$0xf] %v6213_v59  ;;  %6413 = vst [vmem:[#allocation2 + $0x98] sm:$0x1] %v6412_v3  ;;  %v6570_v22 = vrot.slane %v6568_v31, 4  ;;  %v6574_v24 = vshll.u32 %v6492_v44, 16  ;;  %v5767_v63 = vadd.f32 %v17082_v41, %v16841_v57  ;;  %v5765_v20 = vadd.f32 %v5710_v47, %v16845_v2  ;;  %13774 = vmatprep.subr.bf16.mxu0 %v14224_v62 }
 0x297   : > { %v6562_v13 = vrot.slane %v6561_v23, 4  ;;  %v5768_v43 = vadd.f32 %v13611_v49, %v16849_v5  ;;  %v17149_v17 = vld [vmem:[%s19466_s4] ss:$0 sm:$0xff]  ;;  %v6566_v42 = vrot.slane %v6564_v14, 5  ;;  %v6627_v2 = vshrl.u32 %v6452_v58, 16  ;;  %13715 = vmatpush3.bf16.msra.mxu1 %v14201_v40  ;;  %13775 = vmatpush3.bf16.msra.mxu0 %v14224_v62  ;;  %v14213_v62 = vld [vmem:[%s19464_s2 + $0x98] sm:$0xff]   ;;  %v17177_v49 = vpop.f32.mrf.mxu0 }
 0x298   : > { %v5840_v31 = vadd.f32 %v17149_v17, %v5801_v35  ;;  %v6576_v1 = vrot.slane %v6574_v24, 5  ;;  %v17152_v57 = vld [vmem:[#allocation2 + $0x40] sm:$0xf]  ;;  %v5806_v5 = vmul.f32 %v17131_v21, %v5767_v63  ;;  %v5804_v41 = vmul.f32 %v17131_v21, %v5765_v20  ;;  %13716 = vmatprep.subr.bf16.mxu1 %v14204_v33  ;;  %13856 = vmatprep.subr.bf16.mxu0 %v17144_v34  ;;  %v17181_v3 = vld [vmem:[#allocation2 + $0x2c] sm:$0x1] }
 0x299   : > { %v5807_v47 = vmul.f32 %v17131_v21, %v5768_v43  ;;  %v6630_v0 = vshll.u32 %v6452_v58, 16  ;;  %v6567_v51 = vsel %vm14518_vm11, %v6562_v13, %v6566_v42  ;;  %v6571_v32 = vor.u32 %v6570_v22, %v6566_v42 }
 0x29a   : > { %v5872_v54 = vmul.f32 0.1, %v5840_v31  ;;  %v17162_v56 = vrot.slane %v6627_v2, 4  ;;  %v5845_v40 = vadd.f32 %v17149_v17, %v5806_v5  ;;  %v5843_v11 = vadd.f32 %v17149_v17, %v5804_v41 }
 0x29b   : > { %v5846_v50 = vadd.f32 %v17149_v17, %v5807_v47  ;;  %v17167_v38 = vrot.slane %v6630_v0, 5  ;;  %v6572_v46 = vrot.slane %v6571_v32, 4  ;;  %v6640_v44 = vshrl.u32 %v17152_v57, 16  ;;  %13717 = vmatpush3.bf16.msra.mxu1 %v14204_v33  ;;  %v6404_v47 = vld [vmem:[#allocation2 + $0x8c] sm:$0x1] }
 0x29c   : > { %v5904_v19 = vmax.f32 %v5840_v31, %v5872_v54  ;;  %v12176_v60 = vcombine.low %v6452_v58, %v17152_v57  ;;  %v5877_v6 = vmul.f32 0.1, %v5845_v40  ;;  %v5875_v28 = vmul.f32 0.1, %v5843_v11  ;;  %13718 = vmatprep.subr.bf16.mxu1 %v14208_v16  ;;  %v17309_v55 = vld [vmem:[#allocation2 + $0x70] sm:$0xf] }
 0x29d   : > { %v5878_v30 = vmul.f32 0.1, %v5846_v50  ;;  %v6585_v27 = vor.u32 %v17058_v25, %v17056_v36  ;;  %v6577_v59 = vsel %vm14518_vm11, %v6572_v46, %v6576_v1  ;;  %v6588_v33 = vshll.u32 %v17029_v39, 16  ;;  %v17186_v36 = vld [vmem:[#allocation2 + $0x48] sm:$0xf]  ;;  %v17189_v1 = vpop.f32.mrf.mxu0  ;;  %v14218_v39 = vld [vmem:[%s19464_s2 + $0x90] sm:$0xff]  }
 0x29e   : > { %v12614_v61 = vpack.c.bf16 %v5904_v19, %v5904_v19  ;;  %13689 = vmatmul.mubr.bf16.gmra.mxu0 %v12176_v60  ;;  %v6594_v23 = vrot.slane %v6592_v8, 4  ;;  %v12149_v58 = vcombine.low %v6567_v51, %v6577_v59  ;;  %v5909_v35 = vmax.f32 %v5845_v40, %v5877_v6 }
 0x29f   : > { %v5907_v14 = vmax.f32 %v5843_v11, %v5875_v28  ;;  %v5910_v22 = vmax.f32 %v5846_v50, %v5878_v30  ;;  %v6586_v13 = vrot.slane %v6585_v27, 4  ;;  %v6590_v63 = vrot.slane %v6588_v33, 5  ;;  %13719 = vmatpush3.bf16.msra.mxu1 %v14208_v16  ;;  %v6421_v11 = vld [vmem:[#allocation2 + $0xa8] sm:$0xf]  ;;  %v5726_v30 = vpop.f32.mrf.mxu0 }
 0x2a0   : > { %v6190_v25 = vshrl.u32 %v12614_v61, 16  ;;  %v6193_v24 = vshll.u32 %v12614_v61, 16  ;;  %13636 = vmatprep.mubr.bf16.mxu1 %v12149_v58  ;;  %v12619_v20 = vpack.c.bf16 %v5909_v35, %v5909_v35  ;;  %v6598_v42 = vshll.u32 %v17181_v3, 16  ;;  %13720 = vmatprep.subr.bf16.mxu1 %v14213_v62  ;;  %v14222_v27 = vld [vmem:[%s19464_s2 + $0x88] sm:$0xff]  }
 0x2a1   : > { %v12617_v43 = vpack.c.bf16 %v5907_v14, %v5907_v14  ;;  %v12620_v31 = vpack.c.bf16 %v5910_v22, %v5910_v22  ;;  %v6591_v2 = vsel %vm14518_vm11, %v6586_v13, %v6590_v63  ;;  %v6595_v5 = vor.u32 %v6594_v23, %v6590_v63  ;;  %v17208_v23 = vld [vmem:[#allocation2 + $0x4c] sm:$0xf] }
 0x2a2   : > { %v6192_v8 = vrot.slane %v6190_v25, 7  ;;  %v6651_v41 = vshrl.u32 %v17186_v36, 16  ;;  %v6233_v0 = vshrl.u32 %v12619_v20, 16  ;;  %v6236_v16 = vshll.u32 %v12619_v20, 16  ;;  %v6425_v25 = vld [vmem:[#allocation2 + $0xb0] sm:$0x1] }
 0x2a3   : > { %v6216_v54 = vshrl.u32 %v12617_v43, 16  ;;  %v6219_v51 = vshll.u32 %v12617_v43, 16  ;;  %v6241_v50 = vshrl.u32 %v12620_v31, 16  ;;  %v6244_v19 = vshll.u32 %v12620_v31, 16  ;;  %13721 = vmatpush3.bf16.msra.mxu1 %v14213_v62  ;;  %v6414_v62 = vld [vmem:[#allocation2 + $0x9c] sm:$0xf] }
 0x2a4   : > { %v6195_v32 = vor.u32 %v6193_v24, %v6192_v8  ;;  %v6197_v40 = vrot.slane %v6192_v8, 4  ;;  %v6235_v46 = vrot.slane %v6233_v0, 7  ;;  %v6596_v6 = vrot.slane %v6595_v5, 4  ;;  %13722 = vmatprep.subr.bf16.mxu1 %v14218_v39  ;;  %v17222_v8 = vld [vmem:[#allocation2 + $0x38] sm:$0x1]  ;;  %v13615_v5 = vpop.f32.mrf.mxu0 }
 0x2a5   : > { %v17197_v60 = vrot.slane %v6216_v54, 7  ;;  %v6600_v28 = vrot.slane %v6598_v42, 5  ;;  %v6243_v33 = vrot.slane %v6241_v50, 7  ;;  %v17210_v58 = vrot.slane %v6651_v41, 4  ;;  %v14226_v41 = vld [vmem:[%s19464_s2 + $0x80] sm:$0xff]  }
 0x2a6   : > { %v6196_v61 = vsel %vm14496_vm10, %v6188_v48, %v6195_v32  ;;  %v6405_v59 = vsel %vm14436_vm3, %v6197_v40, %v6404_v47  ;;  %v6238_v35 = vor.u32 %v6236_v16, %v6235_v46  ;;  %v6239_v14 = vrot.slane %v6235_v46, 4  ;;  %v6456_v16 = vld [vmem:[#allocation2 + $0x54] sm:$0xf] }
 0x2a7   : > { %6403 = vst [vmem:[#allocation2 + $0x88] sm:$0xf] %v6196_v61  ;;  %6406 = vst [vmem:[#allocation2 + $0x8c] sm:$0x1] %v6405_v59  ;;  %v6221_v22 = vor.u32 %v6219_v51, %v17197_v60  ;;  %v6222_v26 = vrot.slane %v17197_v60, 4  ;;  %v6246_v24 = vor.u32 %v6244_v19, %v6243_v33  ;;  %v6248_v48 = vrot.slane %v6243_v33, 4  ;;  %13723 = vmatpush3.bf16.msra.mxu1 %v14218_v39 }
 0x2a8   : > { %v6601_v13 = vsel %vm14518_vm11, %v6596_v6, %v6600_v28  ;;  %v6654_v63 = vshll.u32 %v17186_v36, 16  ;;  %v6422_v20 = vsel %vm14489_vm9, %v6238_v35, %v6421_v11  ;;  %v6664_v42 = vshrl.u32 %v17208_v23, 16  ;;  %13724 = vmatprep.subr.bf16.mxu1 %v14222_v27 }
 0x2a9   : > { %v6415_v43 = vsel %vm14489_vm9, %v6221_v22, %v6414_v62  ;;  %v12150_v31 = vcombine.low %v6591_v2, %v6601_v13  ;;  %6423 = vst [vmem:[#allocation2 + $0xa8] sm:$0xf] %v6422_v20  ;;  %v6247_v39 = vsel %vm14496_vm10, %v6239_v14, %v6246_v24  ;;  %v6426_v47 = vsel %vm14436_vm3, %v6248_v48, %v6425_v25 }
 0x2aa   : > { %6416 = vst [vmem:[#allocation2 + $0x9c] sm:$0xf] %v6415_v43  ;;  %v17231_v0 = vrot.slane %v6654_v63, 5  ;;  %v12177_v2 = vcombine.low %v17186_v36, %v17208_v23  ;;  %6424 = vst [vmem:[#allocation2 + $0xac] sm:$0xf] %v6247_v39  ;;  %v5766_v54 = vadd.f32 %v17177_v49, %v16854_v37  ;;  %v6609_v51 = vor.u32 %v17090_v45, %v17079_v18 }
 0x2ab   : > { %6427 = vst [vmem:[#allocation2 + $0xb0] sm:$0x1] %v6426_v47  ;;  %13637 = vmatmul.mubr.bf16.gmra.mxu1 %v12150_v31  ;;  %v6612_v32 = vshll.u32 %v17074_v15, 16  ;;  %v6618_v40 = vrot.slane %v6616_v12, 4  ;;  %v6622_v11 = vshll.u32 %v17222_v8, 16  ;;  %v5771_v36 = vadd.f32 %v17189_v1, %v16857_v10  ;;  %v17251_v15 = vld [vmem:[%s19464_s2 + $0x138] sm:$0xff]  }
 0x2ac   : > { %13692 = vmatprep.mubr.bf16.mxu0 %v12177_v2  ;;  %v5769_v50 = vadd.f32 %v5726_v30, %v16860_v53  ;;  %v5772_v19 = vadd.f32 %v13615_v5, %v16864_v52  ;;  %13725 = vmatpush3.bf16.msra.mxu1 %v14222_v27  ;;  %v5805_v37 = vmul.f32 %v17131_v21, %v5766_v54  ;;  %v6610_v49 = vrot.slane %v6609_v51, 4  ;;  %v17256_v52 = vld [vmem:[#allocation2 + $0x58] sm:$0xf]  ;;  %v17275_v31 = vld [vmem:[#allocation2 + $0x44] sm:$0x1] }
 0x2ad   : > { %v6614_v18 = vrot.slane %v6612_v32, 5  ;;  %v6675_v45 = vshrl.u32 %v6456_v16, 16  ;;  %13726 = vmatprep.subr.bf16.mxu1 %v14226_v41  ;;  %v6624_v12 = vrot.slane %v6622_v11, 5  ;;  %v5810_v46 = vmul.f32 %v17131_v21, %v5771_v36 }
 0x2ae   : > { %v5808_v10 = vmul.f32 %v17131_v21, %v5769_v50  ;;  %v5811_v53 = vmul.f32 %v17131_v21, %v5772_v19  ;;  %v5844_v1 = vadd.f32 %v17149_v17, %v5805_v37  ;;  %v6678_v62 = vshll.u32 %v6456_v16, 16 }
 0x2af   : > { %v6615_v6 = vsel %vm14518_vm11, %v6610_v49, %v6614_v18  ;;  %v6619_v28 = vor.u32 %v6618_v40, %v6614_v18  ;;  %v17261_v30 = vrot.slane %v6675_v45, 4  ;;  %v5849_v27 = vadd.f32 %v17149_v17, %v5810_v46  ;;  %v6458_v49 = vld [vmem:[#allocation2 + $0x60] sm:$0xf] }
 0x2b0   : > { %v5847_v61 = vadd.f32 %v17149_v17, %v5808_v10  ;;  %v5850_v59 = vadd.f32 %v17149_v17, %v5811_v53  ;;  %13727 = vmatpush3.bf16.msra.mxu1 %v14226_v41  ;;  %v5876_v33 = vmul.f32 0.1, %v5844_v1  ;;  %v6688_v14 = vshrl.u32 %v17256_v52, 16 }
 0x2b1   : > { %v6620_v35 = vrot.slane %v6619_v28, 4  ;;  %v12178_v22 = vcombine.low %v6456_v16, %v17256_v52  ;;  %13808 = vmatprep.subr.bf16.mxu1 %v17251_v15  ;;  %v5881_v25 = vmul.f32 0.1, %v5849_v27  ;;  %v6633_v13 = vor.u32 %v17167_v38, %v17162_v56  ;;  %v6435_v28 = vld [vmem:[#allocation2 + $0xc0] sm:$0xf] }
 0x2b2   : > { %v5879_v24 = vmul.f32 0.1, %v5847_v61  ;;  %v5882_v48 = vmul.f32 0.1, %v5850_v59  ;;  %v5908_v63 = vmax.f32 %v5844_v1, %v5876_v33  ;;  %v17273_v43 = vrot.slane %v6678_v62, 5 }
 0x2b3   : > { %v6625_v20 = vsel %vm14518_vm11, %v6620_v35, %v6624_v12  ;;  %13693 = vmatmul.mubr.bf16.gmra.mxu0 %v12178_v22  ;;  %v6636_v5 = vshll.u32 %v17152_v57, 16  ;;  %v5913_v39 = vmax.f32 %v5849_v27, %v5881_v25  ;;  %v6634_v54 = vrot.slane %v6633_v13, 4  ;;  %v6418_v57 = vld [vmem:[#allocation2 + $0xa4] sm:$0x1]  ;;  %v6428_v35 = vld [vmem:[#allocation2 + $0xb4] sm:$0xf] }
 0x2b4   : > { %v12151_v41 = vcombine.low %v6615_v6, %v6625_v20  ;;  %v5911_v47 = vmax.f32 %v5847_v61, %v5879_v24  ;;  %v5914_v2 = vmax.f32 %v5850_v59, %v5882_v48  ;;  %v12618_v16 = vpack.c.bf16 %v5908_v63, %v5908_v63  ;;  %v6439_v20 = vld [vmem:[#allocation2 + $0xc8] sm:$0x1] }
 0x2b5   : > { %v6638_v51 = vrot.slane %v6636_v5, 5  ;;  %v6642_v56 = vrot.slane %v6640_v44, 4  ;;  %v12623_v38 = vpack.c.bf16 %v5913_v39, %v5913_v39  ;;  %v6646_v11 = vshll.u32 %v17275_v31, 16 }
 0x2b6   : > { %13640 = vmatprep.mubr.bf16.mxu1 %v12151_v41  ;;  %v12621_v32 = vpack.c.bf16 %v5911_v47, %v5911_v47  ;;  %v12624_v40 = vpack.c.bf16 %v5914_v2, %v5914_v2  ;;  %v6224_v36 = vshrl.u32 %v12618_v16, 16  ;;  %v6227_v50 = vshll.u32 %v12618_v16, 16  ;;  %v17293_v2 = vld [vmem:[#allocation2 + $0x64] sm:$0xf]  ;;  %v5729_v16 = vpop.f32.mrf.mxu0 }
 0x2b7   : > { %v6639_v19 = vsel %vm14518_vm11, %v6634_v54, %v6638_v51  ;;  %v6643_v37 = vor.u32 %v6642_v56, %v6638_v51  ;;  %v6267_v18 = vshrl.u32 %v12623_v38, 16  ;;  %v6270_v45 = vshll.u32 %v12623_v38, 16  ;;  %v17303_v56 = vld [vmem:[#allocation2 + $0x50] sm:$0x1]  ;;  %v6460_v38 = vld [vmem:[#allocation2 + $0x6c] sm:$0xf] }
 0x2b8   : > { %v6250_v12 = vshrl.u32 %v12621_v32, 16  ;;  %v6253_v46 = vshll.u32 %v12621_v32, 16  ;;  %v6226_v10 = vrot.slane %v6224_v36, 7  ;;  %v6275_v44 = vshrl.u32 %v12624_v40, 16 }
 0x2b9   : > { %v6278_v53 = vshll.u32 %v12624_v40, 16  ;;  %v6644_v1 = vrot.slane %v6643_v37, 4  ;;  %v6269_v6 = vrot.slane %v6267_v18, 7  ;;  %v6648_v61 = vrot.slane %v6646_v11, 5 }
 0x2ba   : > { %v17283_v27 = vrot.slane %v6250_v12, 7  ;;  %v6699_v59 = vshrl.u32 %v6458_v49, 16  ;;  %v6229_v62 = vor.u32 %v6227_v50, %v6226_v10  ;;  %v6231_v33 = vrot.slane %v6226_v10, 4  ;;  %v17316_v12 = vld [vmem:[#allocation2 + $0x5c] sm:$0x1] }
 0x2bb   : > { %v6277_v22 = vrot.slane %v6275_v44, 7  ;;  %v6702_v25 = vshll.u32 %v6458_v49, 16  ;;  %v6272_v24 = vor.u32 %v6270_v45, %v6269_v6  ;;  %v6273_v48 = vrot.slane %v6269_v6, 4 }
 0x2bc   : > { %v6255_v13 = vor.u32 %v6253_v46, %v17283_v27  ;;  %v6256_v63 = vrot.slane %v17283_v27, 4  ;;  %v6230_v5 = vsel %vm14496_vm10, %v6222_v26, %v6229_v62  ;;  %v6419_v41 = vsel %vm14436_vm3, %v6231_v33, %v6418_v57  ;;  %v17333_v62 = vld [vmem:[#allocation2 + $0x7c] sm:$0xf] }
 0x2bd   : > { %v6280_v39 = vor.u32 %v6278_v53, %v6277_v22  ;;  %v6282_v47 = vrot.slane %v6277_v22, 4  ;;  %6417 = vst [vmem:[#allocation2 + $0xa0] sm:$0xf] %v6230_v5  ;;  %6420 = vst [vmem:[#allocation2 + $0xa4] sm:$0x1] %v6419_v41  ;;  %v6436_v54 = vsel %vm14489_vm9, %v6272_v24, %v6435_v28  ;;  %v6649_v60 = vsel %vm14518_vm11, %v6644_v1, %v6648_v61 }
 0x2be   : > { %v6429_v51 = vsel %vm14489_vm9, %v6255_v13, %v6428_v35  ;;  %v17301_v26 = vrot.slane %v6699_v59, 4  ;;  %6437 = vst [vmem:[#allocation2 + $0xc0] sm:$0xf] %v6436_v54  ;;  %v12152_v11 = vcombine.low %v6639_v19, %v6649_v60  ;;  %v6704_v36 = vrot.slane %v6702_v25, 5  ;;  %v6462_v28 = vld [vmem:[#allocation2 + $0x78] sm:$0xf] }
 0x2bf   : > { %6430 = vst [vmem:[#allocation2 + $0xb4] sm:$0xf] %v6429_v51  ;;  %v6281_v32 = vsel %vm14496_vm10, %v6273_v48, %v6280_v39  ;;  %v6440_v40 = vsel %vm14436_vm3, %v6282_v47, %v6439_v20  ;;  %v6712_v50 = vshrl.u32 %v17293_v2, 16  ;;  %v12179_v37 = vcombine.low %v6458_v49, %v17293_v2  ;;  %v17340_v20 = vld [vmem:[#allocation2 + $0x68] sm:$0x1] }
 0x2c0   : > { %6438 = vst [vmem:[#allocation2 + $0xc4] sm:$0xf] %v6281_v32  ;;  %6441 = vst [vmem:[#allocation2 + $0xc8] sm:$0x1] %v6440_v40  ;;  %v5770_v18 = vadd.f32 %v5729_v16, %v16866_v29  ;;  %v6657_v45 = vor.u32 %v17231_v0, %v17210_v58  ;;  %13641 = vmatmul.mubr.bf16.gmra.mxu1 %v12152_v11  ;;  %v6660_v46 = vshll.u32 %v17208_v23, 16  ;;  %v6666_v19 = vrot.slane %v6664_v42, 4 }
 0x2c1   : > { %v6670_v10 = vshll.u32 %v17303_v56, 16  ;;  %v6723_v57 = vshrl.u32 %v6460_v38, 16  ;;  %13696 = vmatprep.mubr.bf16.mxu0 %v12179_v37  ;;  %v6726_v53 = vshll.u32 %v6460_v38, 16  ;;  %v6736_v29 = vshrl.u32 %v17309_v55, 16  ;;  %v6464_v39 = vld [vmem:[#allocation2 + $0x84] sm:$0xf] }
 0x2c2   : > { %v5809_v44 = vmul.f32 %v17131_v21, %v5770_v18  ;;  %v6658_v49 = vrot.slane %v6657_v45, 4  ;;  %v6662_v1 = vrot.slane %v6660_v46, 5  ;;  %v12180_v6 = vcombine.low %v6460_v38, %v17309_v55 }
 0x2c3   : > { %v6672_v58 = vrot.slane %v6670_v10, 5  ;;  %v17324_v0 = vrot.slane %v6723_v57, 4  ;;  %v17328_v42 = vrot.slane %v6726_v53, 5  ;;  %v6681_v59 = vor.u32 %v17273_v43, %v17261_v30  ;;  %v17355_v10 = vld [vmem:[#allocation2 + $0x88] sm:$0xf] }
 0x2c4   : > { %v5848_v61 = vadd.f32 %v17149_v17, %v5809_v44  ;;  %v6684_v21 = vshll.u32 %v17256_v52, 16  ;;  %v6663_v33 = vsel %vm14518_vm11, %v6658_v49, %v6662_v1  ;;  %v6667_v35 = vor.u32 %v6666_v19, %v6662_v1  ;;  %13697 = vmatmul.mubr.bf16.gmra.mxu0 %v12180_v6 }
 0x2c5   : > { %v6690_v22 = vrot.slane %v6688_v14, 4  ;;  %v6694_v25 = vshll.u32 %v17316_v12, 16  ;;  %v6682_v24 = vrot.slane %v6681_v59, 4  ;;  %v6747_v13 = vshrl.u32 %v6462_v28, 16 }
 0x2c6   : > { %v5880_v17 = vmul.f32 0.1, %v5848_v61  ;;  %v6686_v48 = vrot.slane %v6684_v21, 5  ;;  %v6668_v30 = vrot.slane %v6667_v35, 4  ;;  %v6750_v5 = vshll.u32 %v6462_v28, 16 }
 0x2c7   : > { %v6696_v43 = vrot.slane %v6694_v25, 5  ;;  %v6760_v41 = vshrl.u32 %v17333_v62, 16  ;;  %v17345_v14 = vrot.slane %v6747_v13, 4  ;;  %v12181_v38 = vcombine.low %v6462_v28, %v17333_v62  ;;  %v17364_v21 = vld [vmem:[#allocation2 + $0x74] sm:$0x1] }
 0x2c8   : > { %v5912_v47 = vmax.f32 %v5848_v61, %v5880_v17  ;;  %v6687_v16 = vsel %vm14518_vm11, %v6682_v24, %v6686_v48  ;;  %v6691_v54 = vor.u32 %v6690_v22, %v6686_v48  ;;  %v6673_v51 = vsel %vm14518_vm11, %v6668_v30, %v6672_v58  ;;  %v6432_v35 = vld [vmem:[#allocation2 + $0xbc] sm:$0x1] }
 0x2c9   : > { %v17349_v60 = vrot.slane %v6750_v5, 5  ;;  %v6705_v32 = vor.u32 %v6704_v36, %v17301_v26  ;;  %v12153_v11 = vcombine.low %v6663_v33, %v6673_v51  ;;  %v6708_v18 = vshll.u32 %v17293_v2, 16  ;;  %13700 = vmatprep.mubr.bf16.mxu0 %v12181_v38  ;;  %v6466_v33 = vld [vmem:[#allocation2 + $0x90] sm:$0xf]  ;;  %v17374_v5 = vld [vmem:[#allocation2 + $0x94] sm:$0xf] }
 0x2ca   : > { %v12622_v40 = vpack.c.bf16 %v5912_v47, %v5912_v47  ;;  %v6692_v37 = vrot.slane %v6691_v54, 4  ;;  %v6714_v46 = vrot.slane %v6712_v50, 4  ;;  %v6718_v19 = vshll.u32 %v17340_v20, 16  ;;  %v6468_v38 = vld [vmem:[#allocation2 + $0x9c] sm:$0xf] }
 0x2cb   : > { %v6706_v45 = vrot.slane %v6705_v32, 4  ;;  %v6771_v57 = vshrl.u32 %v6464_v39, 16  ;;  %13644 = vmatprep.mubr.bf16.mxu1 %v12153_v11  ;;  %v6710_v26 = vrot.slane %v6708_v18, 5  ;;  %v6774_v6 = vshll.u32 %v6464_v39, 16 }
 0x2cc   : > { %v6258_v44 = vshrl.u32 %v12622_v40, 16  ;;  %v6261_v49 = vshll.u32 %v12622_v40, 16  ;;  %v6697_v53 = vsel %vm14518_vm11, %v6692_v37, %v6696_v43  ;;  %v6720_v1 = vrot.slane %v6718_v19, 5  ;;  %v17387_v40 = vld [vmem:[#allocation2 + $0xa0] sm:$0xf] }
 0x2cd   : > { %v12154_v36 = vcombine.low %v6687_v16, %v6697_v53  ;;  %v17359_v58 = vrot.slane %v6771_v57, 4  ;;  %v6711_v50 = vsel %vm14518_vm11, %v6706_v45, %v6710_v26  ;;  %v6715_v61 = vor.u32 %v6714_v46, %v6710_v26 }
 0x2ce   : > { %v6260_v28 = vrot.slane %v6258_v44, 7  ;;  %v6784_v59 = vshrl.u32 %v17355_v10, 16  ;;  %v17366_v22 = vrot.slane %v6774_v6, 5  ;;  %v12182_v25 = vcombine.low %v6464_v39, %v17355_v10  ;;  %v17377_v39 = vld [vmem:[#allocation2 + $0x80] sm:$0x1] }
 0x2cf   : > { %13645 = vmatmul.mubr.bf16.gmra.mxu1 %v12154_v36  ;;  %v6729_v17 = vor.u32 %v17328_v42, %v17324_v0  ;;  %v6732_v24 = vshll.u32 %v17309_v55, 16  ;;  %v6716_v30 = vrot.slane %v6715_v61, 4  ;;  %v6738_v43 = vrot.slane %v6736_v29, 4 }
 0x2d0   : > { %v6263_v48 = vor.u32 %v6261_v49, %v6260_v28  ;;  %v6265_v13 = vrot.slane %v6260_v28, 4  ;;  %13701 = vmatmul.mubr.bf16.gmra.mxu0 %v12182_v25  ;;  %v6742_v54 = vshll.u32 %v17364_v21, 16  ;;  %v6795_v51 = vshrl.u32 %v6466_v33, 16  ;;  %v17405_v25 = vld [vmem:[#allocation2 + $0xac] sm:$0xf] }
 0x2d1   : > { %v6730_v47 = vrot.slane %v6729_v17, 4  ;;  %v6734_v16 = vrot.slane %v6732_v24, 5  ;;  %v6721_v29 = vsel %vm14518_vm11, %v6716_v30, %v6720_v1  ;;  %v6798_v32 = vshll.u32 %v6466_v33, 16 }
 0x2d2   : > { %v6264_v0 = vsel %vm14496_vm10, %v6256_v63, %v6263_v48  ;;  %v6433_v42 = vsel %vm14436_vm3, %v6265_v13, %v6432_v35  ;;  %v12155_v11 = vcombine.low %v6711_v50, %v6721_v29  ;;  %v6744_v27 = vrot.slane %v6742_v54, 5  ;;  %v17413_v54 = vld [vmem:[#allocation2 + $0x98] sm:$0x1]  ;;  %v6472_v29 = vld [vmem:[#allocation2 + $0xb4] sm:$0xf] }
 0x2d3   : > { %6431 = vst [vmem:[#allocation2 + $0xb8] sm:$0xf] %v6264_v0  ;;  %6434 = vst [vmem:[#allocation2 + $0xbc] sm:$0x1] %v6433_v42  ;;  %v6735_v37 = vsel %vm14518_vm11, %v6730_v47, %v6734_v16  ;;  %v6739_v18 = vor.u32 %v6738_v43, %v6734_v16  ;;  %v6797_v45 = vrot.slane %v6795_v51, 4  ;;  %v6800_v9 = vrot.slane %v6798_v32, 5 }
 0x2d4   : > { %v6808_v63 = vshrl.u32 %v17374_v5, 16  ;;  %v12183_v4 = vcombine.low %v6466_v33, %v17374_v5  ;;  %13648 = vmatprep.mubr.bf16.mxu1 %v12155_v11  ;;  %v6753_v19 = vor.u32 %v17349_v60, %v17345_v14  ;;  %v6756_v57 = vshll.u32 %v17333_v62, 16  ;;  %v17403_v14 = vld [vmem:[#allocation2 + $0x8c] sm:$0x1]  ;;  %v6470_v60 = vld [vmem:[#allocation2 + $0xa8] sm:$0xf] }
 0x2d5   : > { %v6740_v46 = vrot.slane %v6739_v18, 4  ;;  %v6762_v44 = vrot.slane %v6760_v41, 4  ;;  %v6766_v49 = vshll.u32 %v17377_v39, 16  ;;  %v6819_v53 = vshrl.u32 %v6468_v38, 16 }
 0x2d6   : > { %13704 = vmatprep.mubr.bf16.mxu0 %v12183_v4  ;;  %v6822_v26 = vshll.u32 %v6468_v38, 16  ;;  %v6832_v36 = vshrl.u32 %v17387_v40, 16  ;;  %v6754_v6 = vrot.slane %v6753_v19, 4  ;;  %v6758_v28 = vrot.slane %v6756_v57, 5 }
 0x2d7   : > { %v6745_v1 = vsel %vm14518_vm11, %v6740_v46, %v6744_v27  ;;  %v12184_v50 = vcombine.low %v6468_v38, %v17387_v40  ;;  %v6768_v33 = vrot.slane %v6766_v49, 5  ;;  %v6821_v41 = vrot.slane %v6819_v53, 4 }
 0x2d8   : > { %v12156_v61 = vcombine.low %v6735_v37, %v6745_v1  ;;  %v6824_v35 = vrot.slane %v6822_v26, 5  ;;  %v6759_v17 = vsel %vm14518_vm11, %v6754_v6, %v6758_v28  ;;  %v6763_v24 = vor.u32 %v6762_v44, %v6758_v28 }
 0x2d9   : > { %13705 = vmatmul.mubr.bf16.gmra.mxu0 %v12184_v50  ;;  %v6777_v48 = vor.u32 %v17366_v22, %v17359_v58  ;;  %v6780_v13 = vshll.u32 %v17355_v10, 16  ;;  %v6786_v30 = vrot.slane %v6784_v59, 4  ;;  %v6790_v43 = vshll.u32 %v17403_v14, 16 }
 0x2da   : > { %13649 = vmatmul.mubr.bf16.gmra.mxu1 %v12156_v61  ;;  %v6843_v47 = vshrl.u32 %v6470_v60, 16  ;;  %v6846_v16 = vshll.u32 %v6470_v60, 16  ;;  %v6764_v51 = vrot.slane %v6763_v24, 4  ;;  %v6856_v42 = vshrl.u32 %v17405_v25, 16  ;;  %v17421_v4 = vld [vmem:[#allocation2 + $0xb8] sm:$0xf] }
 0x2db   : > { %v6778_v38 = vrot.slane %v6777_v48, 4  ;;  %v6782_v0 = vrot.slane %v6780_v13, 5  ;;  %v6792_v32 = vrot.slane %v6790_v43, 5  ;;  %v12185_v58 = vcombine.low %v6470_v60, %v17405_v25  ;;  %v17434_v43 = vld [vmem:[#allocation2 + $0xb0] sm:$0x1] }
 0x2dc   : > { %v6845_v11 = vrot.slane %v6843_v47, 4  ;;  %v6848_v37 = vrot.slane %v6846_v16, 5  ;;  %v6769_v59 = vsel %vm14518_vm11, %v6764_v51, %v6768_v33  ;;  %v6801_v27 = vor.u32 %v6800_v9, %v6797_v45  ;;  %v17427_v9 = vld [vmem:[#allocation2 + $0xa4] sm:$0x1] }
 0x2dd   : > { %v6783_v22 = vsel %vm14518_vm11, %v6778_v38, %v6782_v0  ;;  %v6787_v18 = vor.u32 %v6786_v30, %v6782_v0  ;;  %v12157_v46 = vcombine.low %v6759_v17, %v6769_v59  ;;  %13708 = vmatprep.mubr.bf16.mxu0 %v12185_v58  ;;  %v6804_v19 = vshll.u32 %v17374_v5, 16  ;;  %v14223_v17 = vld [vmem:[#allocation2 + $0xc] sm:$0xff]  }
 0x2de   : > { %v6810_v57 = vrot.slane %v6808_v63, 4  ;;  %v6814_v44 = vshll.u32 %v17413_v54, 16  ;;  %v6802_v53 = vrot.slane %v6801_v27, 4  ;;  %v6867_v26 = vshrl.u32 %v6472_v29, 16 }
 0x2df   : > { %v6788_v49 = vrot.slane %v6787_v18, 4  ;;  %v6870_v1 = vshll.u32 %v6472_v29, 16  ;;  %13652 = vmatprep.mubr.bf16.mxu1 %v12157_v46  ;;  %v6806_v6 = vrot.slane %v6804_v19, 5  ;;  %v6880_v50 = vshrl.u32 %v17421_v4, 16 }
 0x2e0   : > { %v6816_v28 = vrot.slane %v6814_v44, 5  ;;  %v12186_v45 = vcombine.low %v6472_v29, %v17421_v4  ;;  %v6869_v61 = vrot.slane %v6867_v26, 4  ;;  %v6825_v33 = vor.u32 %v6824_v35, %v6821_v41 }
 0x2e1   : > { %v6793_v60 = vsel %vm14518_vm11, %v6788_v49, %v6792_v32  ;;  %v6872_v63 = vrot.slane %v6870_v1, 5  ;;  %v6807_v48 = vsel %vm14518_vm11, %v6802_v53, %v6806_v6  ;;  %v6811_v13 = vor.u32 %v6810_v57, %v6806_v6  ;;  %v7486_v49 = vld [vmem:[#allocation2 + $0xc] sm:$0xe]  ;;  %v14225_v6 = vld [vmem:[#allocation2 + $0x18] sm:$0xff]  }
 0x2e2   : > { %v12158_v24 = vcombine.low %v6783_v22, %v6793_v60  ;;  %13709 = vmatmul.mubr.bf16.gmra.mxu0 %v12186_v45  ;;  %v6828_v30 = vshll.u32 %v17387_v40, 16  ;;  %v6826_v47 = vrot.slane %v6825_v33, 4  ;;  %v6834_v16 = vrot.slane %v6832_v36, 4  ;;  %v14241_v45 = vld [vmem:[%s19464_s2 + $0x170] sm:$0xff]  }
 0x2e3   : > { %v6838_v51 = vshll.u32 %v17427_v9, 16  ;;  %13776 = vmatprep.mubr.bf16.mxu0 %v14223_v17  ;;  %v6849_v38 = vor.u32 %v6848_v37, %v6845_v11  ;;  %v6812_v41 = vrot.slane %v6811_v13, 4  ;;  %v6852_v0 = vshll.u32 %v17405_v25, 16  ;;  %v17445_v11 = vld [vmem:[#allocation2 + $0xbc] sm:$0x1] }
 0x2e4   : > { %13653 = vmatmul.mubr.bf16.gmra.mxu1 %v12158_v24  ;;  %v6830_v35 = vrot.slane %v6828_v30, 5  ;;  %v6858_v29 = vrot.slane %v6856_v42, 4  ;;  %v6862_v59 = vshll.u32 %v17434_v43, 16  ;;  %v6873_v22 = vor.u32 %v6872_v63, %v6869_v61  ;;  %v7485_v37 = vld [vmem:[#allocation2] sm:$0xe]  ;;  %v14227_v63 = vld [vmem:[#allocation2 + $0x24] sm:$0xff]  }
 0x2e5   : > { %v6840_v32 = vrot.slane %v6838_v51, 5  ;;  %v6850_v58 = vrot.slane %v6849_v38, 4  ;;  %v6817_v18 = vsel %vm14518_vm11, %v6812_v41, %v6816_v28  ;;  %v6854_v46 = vrot.slane %v6852_v0, 5  ;;  %v14324_v17 = vld [vmem:[#allocation2 + $0x4] sm:$0xf] }
 0x2e6   : > { %v6831_v36 = vsel %vm14518_vm11, %v6826_v47, %v6830_v35  ;;  %v6835_v27 = vor.u32 %v6834_v16, %v6830_v35  ;;  %v12159_v19 = vcombine.low %v6807_v48, %v6817_v18  ;;  %v6864_v57 = vrot.slane %v6862_v59, 5  ;;  %v14325_v30 = vld [vmem:[#allocation2 + $0x8] sm:$0x1]  ;;  %v7487_v16 = vld [vmem:[#allocation2 + $0x18] sm:$0xe] }
 0x2e7   : > { %v6874_v44 = vrot.slane %v6873_v22, 4  ;;  %v6876_v42 = vshll.u32 %v17421_v4, 16  ;;  %v6855_v26 = vsel %vm14518_vm11, %v6850_v58, %v6854_v46  ;;  %v6859_v1 = vor.u32 %v6858_v29, %v6854_v46  ;;  %v14326_v59 = vld [vmem:[#allocation2 + $0x10] sm:$0xf]  ;;  %v7488_v18 = vld [vmem:[#allocation2 + $0x24] sm:$0xe] }
 0x2e8   : > { %v6836_v53 = vrot.slane %v6835_v27, 4  ;;  %v6882_v28 = vrot.slane %v6880_v50, 4  ;;  %13656 = vmatprep.mubr.bf16.mxu1 %v12159_v19  ;;  %v6886_v61 = vshll.u32 %v17445_v11, 16  ;;  %v12195_v33 = vrot.slane %v7485_v37, 9 }
 0x2e9   : > { %v6878_v60 = vrot.slane %v6876_v42, 5  ;;  %v7535_v24 = vrot.slane %v14324_v17, 5  ;;  %v6860_v13 = vrot.slane %v6859_v1, 4  ;;  %v7538_v47 = vrot.slane %v14325_v30, 5  ;;  %v7489_v1 = vld [vmem:[#allocation2 + $0x30] sm:$0xe] }
 0x2ea   : > { %v6841_v48 = vsel %vm14518_vm11, %v6836_v53, %v6840_v32  ;;  %13777 = vmatmul.mubr.bf16.vlgmr.msra.gmra.mxu0 %v14225_v6  ;;  %v12196_v50 = vrot.slane %v7486_v49, 9  ;;  %v6888_v35 = vrot.slane %v6886_v61, 5  ;;  %v7542_v22 = vrot.slane %v14326_v59, 5  ;;  %v14328_v49 = vld [vmem:[#allocation2 + $0x1c] sm:$0xf]  ;;  %v14228_v17 = vld [vmem:[#allocation2 + $0x30] sm:$0xff]  }
 0x2eb   : > { %v12160_v51 = vcombine.low %v6831_v36, %v6841_v48  ;;  %v6879_v38 = vsel %vm14518_vm11, %v6874_v44, %v6878_v60  ;;  %v6883_v41 = vor.u32 %v6882_v28, %v6878_v60  ;;  %13780 = vmatprep.mubr.bf16.mxu0 %v14227_v63  ;;  %13857 = vmatpush3.bf16.msra.mxu0 %v17144_v34  ;;  %v7537_v58 = vrot.slane %v7535_v24, 4  ;;  %v14243_v36 = vld [vmem:[%s19464_s2 + $0x168] sm:$0xff]   ;;  %v14327_v34 = vld [vmem:[#allocation2 + $0x14] sm:$0x1]  ;;  %v14329_v28 = vld [vmem:[#allocation2 + $0x20] sm:$0x1] }
 0x2ec   : > { %v6865_v0 = vsel %vm14518_vm11, %v6860_v13, %v6864_v57  ;;  %v17463_v32 = vsel %vm14917_vm14, %v12195_v33, %v7535_v24  ;;  %13858 = vmatprep.subr.bf16.mxu0 %v14241_v45  ;;  %v7545_v37 = vrot.slane %v14327_v34, 5  ;;  %v12197_v19 = vrot.slane %v7487_v16, 9  ;;  %v7490_v63 = vld [vmem:[#allocation2 + $0x3c] sm:$0xe]  ;;  %v14246_v30 = vld [vmem:[%s19464_s2 + $0x160] sm:$0xff]  }
 0x2ed   : > { %13657 = vmatmul.mubr.bf16.gmra.mxu1 %v12160_v51  ;;  %v12161_v27 = vcombine.low %v6855_v26, %v6865_v0  ;;  %v6884_v46 = vrot.slane %v6883_v41, 4  ;;  %v7539_v57 = vsel %vm14917_vm14, %v7537_v58, %v7538_v47  ;;  %v17472_v44 = vsel %vm14917_vm14, %v12196_v50, %v7542_v22  ;;  %v14330_v50 = vld [vmem:[#allocation2 + $0x28] sm:$0xf]  ;;  %v14331_v0 = vld [vmem:[#allocation2 + $0x34] sm:$0xf] }
 0x2ee   : > { %v7544_v42 = vrot.slane %v7542_v22, 4  ;;  %v7549_v53 = vrot.slane %v14328_v49, 5  ;;  %v12227_v26 = vcombine.low %v17463_v32, %v7539_v57  ;;  %v7552_v60 = vrot.slane %v14329_v28, 5  ;;  %v7491_v41 = vld [vmem:[#allocation2 + $0x48] sm:$0xe] }
 0x2ef   : > { %13660 = vmatprep.mubr.bf16.mxu1 %v12161_v27  ;;  %v6889_v6 = vsel %vm14518_vm11, %v6884_v46, %v6888_v35  ;;  %v12198_v61 = vrot.slane %v7488_v18, 9  ;;  %13859 = vmatpush3.bf16.msra.mxu0 %v14241_v45  ;;  %v14229_v45 = vld [vmem:[#allocation2 + $0x3c] sm:$0xff]   ;;  %v7556_v16 = vrot.slane %v14330_v50, 5  ;;  %v7559_v51 = vrot.slane %v17181_v3, 5  ;;  %v7492_v34 = vld [vmem:[#allocation2 + $0x54] sm:$0xe] }
 0x2f0   : > { %v12162_v33 = vcombine.low %v6879_v38, %v6889_v6  ;;  %v17479_v24 = vsel %vm14917_vm14, %v7544_v42, %v7545_v37  ;;  %v17483_v48 = vsel %vm14917_vm14, %v12197_v19, %v7549_v53  ;;  %v7551_v13 = vrot.slane %v7549_v53, 4  ;;  %13860 = vmatprep.subr.bf16.mxu0 %v14243_v36  ;;  %v14332_v27 = vld [vmem:[#allocation2 + $0x40] sm:$0xf]  ;;  %v14248_v42 = vld [vmem:[%s19464_s2 + $0x158] sm:$0xff]  }
 0x2f1   : > { %v12228_v47 = vcombine.low %v17472_v44, %v17479_v24  ;;  %v12199_v38 = vrot.slane %v7489_v1, 9  ;;  %v7563_v32 = vrot.slane %v14331_v0, 5  ;;  %v7566_v58 = vrot.slane %v17222_v8, 5  ;;  %v7493_v6 = vld [vmem:[#allocation2 + $0x60] sm:$0xe] }
 0x2f2   : > { %13781 = vmatmul.mubr.bf16.gmra.mxu0 %v14228_v17  ;;  %v17493_v35 = vsel %vm14917_vm14, %v7551_v13, %v7552_v60  ;;  %v12200_v59 = vrot.slane %v7490_v63, 9  ;;  %v17500_v18 = vsel %vm14917_vm14, %v12198_v61, %v7556_v16  ;;  %v7558_v3 = vrot.slane %v7556_v16, 4  ;;  %v7494_v63 = vld [vmem:[#allocation2 + $0x6c] sm:$0xe] }
 0x2f3   : > { %13784 = vmatprep.mubr.bf16.mxu0 %v14229_v45  ;;  %v12229_v22 = vcombine.low %v17483_v48, %v17493_v35  ;;  %v7570_v46 = vrot.slane %v14332_v27, 5  ;;  %13861 = vmatpush3.bf16.msra.mxu0 %v14243_v36  ;;  %v17504_v37 = vsel %vm14917_vm14, %v12199_v38, %v7563_v32  ;;  %v7565_v19 = vrot.slane %v7563_v32, 4  ;;  %v14251_v38 = vld [vmem:[%s19464_s2 + $0x150] sm:$0xff]   ;;  %v7496_v27 = vld [vmem:[#allocation2 + $0x84] sm:$0xe]  ;;  %v14236_v48 = vld [vmem:[%s19464_s2 + $0x128] sm:$0xff]  }
 0x2f4   : > { %v7573_v8 = vrot.slane %v17275_v31, 5  ;;  %v12201_v57 = vrot.slane %v7491_v41, 9  ;;  %13862 = vmatprep.subr.bf16.mxu0 %v14246_v30  ;;  %v17512_v49 = vsel %vm14917_vm14, %v7558_v3, %v7559_v51  ;;  %v7577_v1 = vrot.slane %v17208_v23, 5  ;;  %v7495_v51 = vld [vmem:[#allocation2 + $0x78] sm:$0xe] }
 0x2f5   : > { %13661 = vmatmul.mubr.bf16.gmra.mxu1 %v12162_v33  ;;  %v17516_v36 = vsel %vm14917_vm14, %v12200_v59, %v7570_v46  ;;  %v7572_v53 = vrot.slane %v7570_v46, 4  ;;  %v12230_v31 = vcombine.low %v17500_v18, %v17512_v49  ;;  %v17523_v28 = vsel %vm14917_vm14, %v7565_v19, %v7566_v58  ;;  %v14231_v33 = vld [vmem:[#allocation2 + $0x48] sm:$0xff]   ;;  %v14232_v41 = vld [vmem:[#allocation2 + $0x54] sm:$0xff]  }
 0x2f6   : > { %13728 = vmatprep.mubr.bf16.mxu1 %v12227_v26  ;;  %v7580_v60 = vrot.slane %v17303_v56, 5  ;;  %v12202_v61 = vrot.slane %v7492_v34, 9  ;;  %v12231_v17 = vcombine.low %v17504_v37, %v17523_v28  ;;  %v17534_v26 = vsel %vm14917_vm14, %v12201_v57, %v7577_v1 }
 0x2f7   : > { %v17530_v23 = vsel %vm14917_vm14, %v7572_v53, %v7573_v8  ;;  %v7579_v13 = vrot.slane %v7577_v1, 4  ;;  %13863 = vmatpush3.bf16.msra.mxu0 %v14246_v30  ;;  %v7584_v56 = vrot.slane %v17256_v52, 5  ;;  %v7587_v50 = vrot.slane %v17316_v12, 5  ;;  %v7497_v1 = vld [vmem:[#allocation2 + $0x90] sm:$0xe] }
 0x2f8   : > { %v12232_v45 = vcombine.low %v17516_v36, %v17530_v23  ;;  %v12203_v16 = vrot.slane %v7493_v6, 9  ;;  %13864 = vmatprep.subr.bf16.mxu0 %v14248_v42  ;;  %v7591_v30 = vrot.slane %v17293_v2, 5  ;;  %v7594_v32 = vrot.slane %v17340_v20, 5  ;;  %v14233_v2 = vld [vmem:[%s19464_s2 + $0x130] sm:$0xff]   ;;  %v14253_v6 = vld [vmem:[%s19464_s2 + $0x148] sm:$0xff]  }
 0x2f9   : > { %v17545_v0 = vsel %vm14917_vm14, %v7579_v13, %v7580_v60  ;;  %v12204_v58 = vrot.slane %v7494_v63, 9  ;;  %v17553_v12 = vsel %vm14917_vm14, %v12202_v61, %v7584_v56  ;;  %v7586_v59 = vrot.slane %v7584_v56, 4  ;;  %v7498_v61 = vld [vmem:[#allocation2 + $0x9c] sm:$0xe]  ;;  %v9107_v63 = vld [vmem:[#allocation2 + $0xc] sm:$0xe] }
 0x2fa   : > { %13785 = vmatmul.mubr.bf16.gmra.mxu0 %v14231_v33  ;;  %v12233_v52 = vcombine.low %v17534_v26, %v17545_v0  ;;  %v7598_v3 = vrot.slane %v17309_v55, 5  ;;  %v17561_v20 = vsel %vm14917_vm14, %v12203_v16, %v7591_v30  ;;  %v7593_v46 = vrot.slane %v7591_v30, 4  ;;  %v17607_v13 = vld [vmem:[#allocation2 + $0x10] sm:$0xf]  ;;  %v14234_v56 = vld [vmem:[#allocation2 + $0x60] sm:$0xff]  }
 0x2fb   : > { %13788 = vmatprep.mubr.bf16.mxu0 %v14232_v41  ;;  %v7601_v34 = vrot.slane %v17364_v21, 5  ;;  %v12205_v19 = vrot.slane %v7495_v51, 9  ;;  %13865 = vmatpush3.bf16.msra.mxu0 %v14248_v42  ;;  %v17566_v8 = vsel %vm14917_vm14, %v7586_v59, %v7587_v50  ;;  %v7605_v53 = vrot.slane %v17333_v62, 5  ;;  %v17615_v30 = vld [vmem:[#allocation2 + $0x14] sm:$0x1] }
 0x2fc   : > { %v17570_v55 = vsel %vm14917_vm14, %v12204_v58, %v7598_v3  ;;  %v7600_v57 = vrot.slane %v7598_v3, 4  ;;  %13866 = vmatprep.subr.bf16.mxu0 %v14251_v38  ;;  %v12234_v21 = vcombine.low %v17553_v12, %v17566_v8  ;;  %v17583_v42 = vsel %vm14917_vm14, %v7593_v46, %v7594_v32  ;;  %v7499_v59 = vld [vmem:[#allocation2 + $0xa8] sm:$0xe] }
 0x2fd   : > { %13729 = vmatmul.mubr.bf16.vlgmr.msra.gmra.mxu1 %v12228_v47  ;;  %v7608_v60 = vrot.slane %v17377_v39, 5  ;;  %v12206_v62 = vrot.slane %v7496_v27, 9  ;;  %v12235_v44 = vcombine.low %v17561_v20, %v17583_v42  ;;  %v17598_v47 = vsel %vm14917_vm14, %v12205_v19, %v7605_v53 }
 0x2fe   : > { %13732 = vmatprep.mubr.bf16.mxu1 %v12229_v22  ;;  %13809 = vmatpush3.bf16.msra.mxu1 %v17251_v15  ;;  %v17594_v24 = vsel %vm14917_vm14, %v7600_v57, %v7601_v34  ;;  %v7607_v39 = vrot.slane %v7605_v53, 4  ;;  %v7612_v35 = vrot.slane %v17355_v10, 5  ;;  %v7615_v22 = vrot.slane %v17403_v14, 5  ;;  %v14235_v10 = vld [vmem:[#allocation2 + $0x6c] sm:$0xff]   ;;  %v9108_v34 = vld [vmem:[#allocation2 + $0x18] sm:$0xe] }
 0x2ff   : > { %13810 = vmatprep.subr.bf16.mxu1 %v14233_v2  ;;  %v12236_v15 = vcombine.low %v17570_v55, %v17594_v24  ;;  %v12207_v33 = vrot.slane %v7497_v1, 9  ;;  %13867 = vmatpush3.bf16.msra.mxu0 %v14251_v38  ;;  %v7619_v16 = vrot.slane %v17374_v5, 5  ;;  %v7622_v51 = vrot.slane %v17413_v54, 5  ;;  %v14255_v5 = vld [vmem:[%s19464_s2 + $0x140] sm:$0xff]   ;;  %v8365_v55 = vld [vmem:[#allocation2 + $0x3c] sm:$0xf] }
 0x300   : > { %v17611_v50 = vsel %vm14917_vm14, %v7607_v39, %v7608_v60  ;;  %13868 = vmatprep.subr.bf16.mxu0 %v14253_v6  ;;  %v12208_v41 = vrot.slane %v7498_v61, 9  ;;  %v17621_v38 = vsel %vm14917_vm14, %v12206_v62, %v7612_v35  ;;  %v7614_v32 = vrot.slane %v7612_v35, 4  ;;  %v17653_v39 = vld [vmem:[#allocation2 + $0x20] sm:$0x1] }
 0x301   : > { %v12237_v14 = vcombine.low %v17598_v47, %v17611_v50  ;;  %v7626_v58 = vrot.slane %v17387_v40, 5  ;;  %v17629_v54 = vsel %vm14917_vm14, %v12207_v33, %v7619_v16  ;;  %v7621_v3 = vrot.slane %v7619_v16, 4  ;;  %v14240_v40 = vld [vmem:[%s19464_s2 + $0x120] sm:$0xff]  }
 0x302   : > { %13811 = vmatpush3.bf16.msra.mxu1 %v14233_v2  ;;  %13789 = vmatmul.mubr.bf16.gmra.mxu0 %v14234_v56  ;;  %v7629_v27 = vrot.slane %v17427_v9, 5  ;;  %v12331_v46 = vrot.slane %v9107_v63, 9  ;;  %v17637_v19 = vsel %vm14917_vm14, %v7614_v32, %v7615_v22  ;;  %v9173_v53 = vrot.slane %v17607_v13, 5  ;;  %v17644_v9 = vld [vmem:[#allocation2 + $0x1c] sm:$0xf]  ;;  %v14252_v47 = vld [vmem:[#allocation2 + $0xc0] sm:$0xff]  }
 0x303   : > { %13792 = vmatprep.mubr.bf16.mxu0 %v14235_v10  ;;  %13812 = vmatprep.subr.bf16.mxu1 %v14236_v48  ;;  %v17641_v2 = vsel %vm14917_vm14, %v12208_v41, %v7626_v58  ;;  %v7628_v57 = vrot.slane %v7626_v58, 4  ;;  %v12238_v1 = vcombine.low %v17621_v38, %v17637_v19  ;;  %v17650_v60 = vsel %vm14917_vm14, %v7621_v3, %v7622_v51  ;;  %v7500_v63 = vld [vmem:[#allocation2 + $0xb4] sm:$0xe]  ;;  %v17671_v56 = vld [vmem:[%s19464_s2 + $0x1f8] sm:$0xff]   ;;  %v9109_v51 = vld [vmem:[#allocation2 + $0x24] sm:$0xe] }
 0x304   : > { %13869 = vmatpush3.bf16.msra.mxu0 %v14253_v6  ;;  %v9176_v62 = vrot.slane %v17615_v30, 5  ;;  %v12209_v61 = vrot.slane %v7499_v59, 9  ;;  %v12239_v35 = vcombine.low %v17629_v54, %v17650_v60  ;;  %v17666_v6 = vsel %vm14917_vm14, %v12331_v46, %v9173_v53  ;;  %v8353_v41 = vld [vmem:[#allocation2 + $0xc] sm:$0xf]  ;;  %v14245_v10 = vld [vmem:[%s19464_s2 + $0x118] sm:$0xff]   ;;  %v14239_v46 = vld [vmem:[#allocation2 + $0x84] sm:$0xff]  }
 0x305   : > { %13733 = vmatmul.mubr.bf16.gmra.mxu1 %v12230_v31  ;;  %v17662_v22 = vsel %vm14917_vm14, %v7628_v57, %v7629_v27  ;;  %v9175_v33 = vrot.slane %v9173_v53, 4  ;;  %13870 = vmatprep.subr.bf16.mxu0 %v14255_v5  ;;  %v7633_v49 = vrot.slane %v17405_v25, 5  ;;  %v7636_v31 = vrot.slane %v17434_v43, 5  ;;  %v17689_v25 = vld [vmem:[#allocation2 + $0x28] sm:$0xf]  ;;  %v14237_v43 = vld [vmem:[#allocation2 + $0x78] sm:$0xff]  }
 0x306   : > { %13736 = vmatprep.mubr.bf16.mxu1 %v12231_v17  ;;  %13813 = vmatpush3.bf16.msra.mxu1 %v14236_v48  ;;  %v12332_v16 = vrot.slane %v9108_v34, 9  ;;  %v9180_v28 = vrot.slane %v17644_v9, 5  ;;  %v9183_v17 = vrot.slane %v17653_v39, 5  ;;  %v12210_v48 = vrot.slane %v7500_v63, 9  ;;  %v17698_v27 = vld [vmem:[#allocation2 + $0x2c] sm:$0x1] }
 0x307   : > { %13814 = vmatprep.subr.bf16.mxu1 %v14240_v40  ;;  %v17685_v37 = vsel %vm14917_vm14, %v9175_v33, %v9176_v62  ;;  %v17695_v58 = vsel %vm14917_vm14, %v12209_v61, %v7633_v49  ;;  %v7635_v59 = vrot.slane %v7633_v49, 4  ;;  %v7640_v3 = vrot.slane %v17421_v4, 5 }
 0x308   : > { %v12363_v32 = vcombine.low %v17666_v6, %v17685_v37  ;;  %13871 = vmatpush3.bf16.msra.mxu0 %v14255_v5  ;;  %v17702_v34 = vsel %vm14917_vm14, %v12332_v16, %v9180_v28  ;;  %v9182_v57 = vrot.slane %v9180_v28, 4  ;;  %v7643_v53 = vrot.slane %v17445_v11, 5  ;;  %v14250_v11 = vld [vmem:[%s19464_s2 + $0x110] sm:$0xff]  }
 0x309   : > { %v12333_v62 = vrot.slane %v9109_v51, 9  ;;  %13952 = vmatprep.subr.bf16.mxu0 %v17671_v56  ;;  %v17708_v5 = vsel %vm14917_vm14, %v7635_v59, %v7636_v31  ;;  %v17712_v4 = vsel %vm14917_vm14, %v12210_v48, %v7640_v3  ;;  %v7642_v61 = vrot.slane %v7640_v3, 4  ;;  %v9110_v16 = vld [vmem:[#allocation2 + $0x30] sm:$0xe]  ;;  %v17735_v59 = vld [vmem:[#allocation2 + $0x34] sm:$0xf] }
 0x30a   : > { %13793 = vmatmul.mubr.bf16.gmra.mxu0 %v14237_v43  ;;  %13815 = vmatpush3.bf16.msra.mxu1 %v14240_v40  ;;  %v9187_v63 = vrot.slane %v17689_v25, 5  ;;  %v17722_v33 = vsel %vm14917_vm14, %v9182_v57, %v9183_v17  ;;  %v9190_v49 = vrot.slane %v17698_v27, 5  ;;  %v8402_v31 = vshrl.u32 %v8353_v41, 16  ;;  %v8356_v17 = vld [vmem:[#allocation2 + $0x18] sm:$0xf] }
 0x30b   : > { %13796 = vmatprep.mubr.bf16.mxu0 %v14239_v46  ;;  %13816 = vmatprep.subr.bf16.mxu1 %v14245_v10  ;;  %v17729_v28 = vsel %vm14917_vm14, %v7642_v61, %v7643_v53  ;;  %v8405_v57 = vshll.u32 %v8353_v41, 16  ;;  %v8411_v53 = vshll.u32 %v17607_v13, 16  ;;  %v17743_v61 = vld [vmem:[#allocation2 + $0x38] sm:$0x1]  ;;  %v8415_v36 = vshrl.u32 %v17607_v13, 16  ;;  %v14254_v41 = vld [vmem:[%s19464_s2 + $0x108] sm:$0xff]  }
 0x30c   : > { %v17733_v48 = vsel %vm14917_vm14, %v12333_v62, %v9187_v63  ;;  %v9189_v43 = vrot.slane %v9187_v63, 4  ;;  %v8404_v46 = vrot.slane %v8402_v31, 4  ;;  %v8421_v23 = vshll.u32 %v17615_v30, 16  ;;  %v14244_v30 = vld [vmem:[#allocation2 + $0x9c] sm:$0xff]  }
 0x30d   : > { %13737 = vmatmul.mubr.bf16.gmra.mxu1 %v12232_v45  ;;  %v12334_v45 = vrot.slane %v9110_v16, 9  ;;  %v8407_v26 = vrot.slane %v8405_v57, 5  ;;  %v8413_v0 = vrot.slane %v8411_v53, 5  ;;  %v9197_v13 = vrot.slane %v17743_v61, 5  ;;  %v17765_v51 = vld [vmem:[#allocation2 + $0x40] sm:$0xf] }
 0x30e   : > { %13740 = vmatprep.mubr.bf16.mxu1 %v12233_v52  ;;  %13817 = vmatpush3.bf16.msra.mxu1 %v14245_v10  ;;  %v17750_v62 = vsel %vm14917_vm14, %v9189_v43, %v9190_v49  ;;  %v9194_v52 = vrot.slane %v17735_v59, 5  ;;  %v14242_v10 = vld [vmem:[#allocation2 + $0x90] sm:$0xff]   ;;  %v8417_v49 = vrot.slane %v8415_v36, 4  ;;  %v8423_v31 = vrot.slane %v8421_v23, 5  ;;  %v9111_v63 = vld [vmem:[#allocation2 + $0x3c] sm:$0xe] }
 0x30f   : > { %13818 = vmatprep.subr.bf16.mxu1 %v14250_v11  ;;  %v8426_v43 = vshrl.u32 %v8356_v17, 16  ;;  %v8408_v16 = vor.u32 %v8407_v26, %v8404_v46  ;;  %v8429_v18 = vshll.u32 %v8356_v17, 16  ;;  %v8435_v36 = vshll.u32 %v17644_v9, 16  ;;  %v14256_v46 = vld [vmem:[%s19464_s2 + $0x100] sm:$0xff]  }
 0x310   : > { %v17763_v3 = vsel %vm14917_vm14, %v12334_v45, %v9194_v52  ;;  %v9196_v40 = vrot.slane %v9194_v52, 4  ;;  %v8418_v57 = vor.u32 %v8417_v49, %v8413_v0  ;;  %v8439_v23 = vshrl.u32 %v17644_v9, 16  ;;  %v17777_v52 = vld [vmem:[#allocation2 + $0x44] sm:$0x1] }
 0x311   : > { %v8428_v53 = vrot.slane %v8426_v43, 4  ;;  %v8409_v45 = vrot.slane %v8408_v16, 4  ;;  %v8431_v26 = vrot.slane %v8429_v18, 5  ;;  %v8437_v49 = vrot.slane %v8435_v36, 5 }
 0x312   : > { %13797 = vmatmul.mubr.bf16.gmra.mxu0 %v14242_v10  ;;  %13819 = vmatpush3.bf16.msra.mxu1 %v14250_v11  ;;  %v17774_v17 = vsel %vm14917_vm14, %v9196_v40, %v9197_v13  ;;  %v8445_v11 = vshll.u32 %v17653_v39, 16  ;;  %v8419_v10 = vrot.slane %v8418_v57, 4  ;;  %v8441_v43 = vrot.slane %v8439_v23, 4 }
 0x313   : > { %13800 = vmatprep.mubr.bf16.mxu0 %v14244_v30  ;;  %13820 = vmatprep.subr.bf16.mxu1 %v14254_v41  ;;  %v12366_v9 = vcombine.low %v17763_v3, %v17774_v17  ;;  %v8359_v30 = vld [vmem:[#allocation2 + $0x24] sm:$0xf]  ;;  %v8414_v40 = vsel %vm14518_vm11, %v8409_v45, %v8413_v0  ;;  %v8432_v13 = vor.u32 %v8431_v26, %v8428_v53  ;;  %v12335_v16 = vrot.slane %v9111_v63, 9  ;;  %v17798_v63 = vld [vmem:[%s19464_s2 + $0x1b8] sm:$0xff]   ;;  %v17807_v45 = vld [vmem:[#allocation2 + $0x50] sm:$0x1] }
 0x314   : > { %v8447_v18 = vrot.slane %v8445_v11, 5  ;;  %v8424_v39 = vsel %vm14518_vm11, %v8419_v10, %v8423_v31  ;;  %v8442_v57 = vor.u32 %v8441_v43, %v8437_v49  ;;  %v9201_v36 = vrot.slane %v17765_v51, 5  ;;  %v14249_v26 = vld [vmem:[#allocation2 + $0xb4] sm:$0xff]  }
 0x315   : > { %13741 = vmatmul.mubr.bf16.gmra.mxu1 %v12234_v21  ;;  %v9204_v12 = vrot.slane %v17777_v52, 5  ;;  %v17793_v8 = vcombine.low %v8414_v40, %v8424_v39  ;;  %v8433_v21 = vrot.slane %v8432_v13, 4  ;;  %v8450_v20 = vshrl.u32 %v8359_v30, 16  ;;  %v9112_v40 = vld [vmem:[#allocation2 + $0x48] sm:$0xe] }
 0x316   : > { %13744 = vmatprep.mubr.bf16.mxu1 %v12235_v44  ;;  %13821 = vmatpush3.bf16.msra.mxu1 %v14254_v41  ;;  %v8453_v42 = vshll.u32 %v8359_v30, 16  ;;  %v17800_v44 = vld [vmem:[#allocation2 + $0x4c] sm:$0xf]  ;;  %v8443_v0 = vrot.slane %v8442_v57, 4  ;;  %v17804_v31 = vsel %vm14917_vm14, %v12335_v16, %v9201_v36  ;;  %v9203_v53 = vrot.slane %v9201_v36, 4 }
 0x317   : > { %13822 = vmatprep.subr.bf16.mxu1 %v14256_v46  ;;  %v14247_v41 = vld [vmem:[#allocation2 + $0xa8] sm:$0xff]   ;;  %v8459_v23 = vshll.u32 %v17689_v25, 16  ;;  %v8438_v11 = vsel %vm14518_vm11, %v8433_v21, %v8437_v49  ;;  %v8452_v10 = vrot.slane %v8450_v20, 4  ;;  %v8463_v30 = vshrl.u32 %v17689_v25, 16  ;;  %v8362_v36 = vld [vmem:[#allocation2 + $0x30] sm:$0xf] }
 0x318   : > { %v8455_v43 = vrot.slane %v8453_v42, 5  ;;  %v8448_v13 = vsel %vm14518_vm11, %v8443_v0, %v8447_v18  ;;  %v17816_v16 = vsel %vm14917_vm14, %v9203_v53, %v9204_v12  ;;  %v8469_v57 = vshll.u32 %v17698_v27, 16 }
 0x319   : > { %v8461_v39 = vrot.slane %v8459_v23, 5  ;;  %v17819_v49 = vcombine.low %v8438_v11, %v8448_v13  ;;  %v12367_v25 = vcombine.low %v17804_v31, %v17816_v16  ;;  %v8465_v21 = vrot.slane %v8463_v30, 4  ;;  %v17840_v13 = vld [vmem:[#allocation2 + $0x58] sm:$0xf] }
 0x31a   : > { %13801 = vmatmul.mubr.bf16.gmra.mxu0 %v14247_v41  ;;  %13823 = vmatpush3.bf16.msra.mxu1 %v14256_v46  ;;  %v8456_v46 = vor.u32 %v8455_v43, %v8452_v10  ;;  %v8471_v20 = vrot.slane %v8469_v57, 5  ;;  %v12336_v18 = vrot.slane %v9112_v40, 9  ;;  %v9208_v42 = vrot.slane %v17800_v44, 5  ;;  %v9113_v43 = vld [vmem:[#allocation2 + $0x54] sm:$0xe]  ;;  %v14266_v31 = vld [vmem:[%s19464_s2 + $0x1d8] sm:$0xff]  }
 0x31b   : > { %13804 = vmatprep.mubr.bf16.mxu0 %v14249_v26  ;;  %13904 = vmatprep.subr.bf16.mxu1 %v17798_v63  ;;  %v9211_v12 = vrot.slane %v17807_v45, 5  ;;  %v8466_v41 = vor.u32 %v8465_v21, %v8461_v39  ;;  %v8474_v0 = vshrl.u32 %v8362_v36, 16  ;;  %v8477_v53 = vshll.u32 %v8362_v36, 16 }
 0x31c   : > { %v8457_v27 = vrot.slane %v8456_v46, 4  ;;  %v17834_v23 = vsel %vm14917_vm14, %v12336_v18, %v9208_v42  ;;  %v9210_v26 = vrot.slane %v9208_v42, 4  ;;  %v8483_v11 = vshll.u32 %v17735_v59, 16 }
 0x31d   : > { %13745 = vmatmul.mubr.bf16.gmra.mxu1 %v12236_v15  ;;  %v8487_v10 = vshrl.u32 %v17735_v59, 16  ;;  %v8467_v15 = vrot.slane %v8466_v41, 4  ;;  %v8476_v30 = vrot.slane %v8474_v0, 4  ;;  %v8479_v40 = vrot.slane %v8477_v53, 5  ;;  %v17847_v59 = vld [vmem:[#allocation2 + $0x5c] sm:$0x1] }
 0x31e   : > { %13748 = vmatprep.mubr.bf16.mxu1 %v12237_v14  ;;  %v8462_v24 = vsel %vm14518_vm11, %v8457_v27, %v8461_v39  ;;  %v17844_v50 = vsel %vm14917_vm14, %v9210_v26, %v9211_v12  ;;  %v8485_v14 = vrot.slane %v8483_v11, 5  ;;  %v8493_v36 = vshll.u32 %v17743_v61, 16  ;;  %v9114_v26 = vld [vmem:[#allocation2 + $0x60] sm:$0xe] }
 0x31f   : > { %v8489_v57 = vrot.slane %v8487_v10, 4  ;;  %v8472_v46 = vsel %vm14518_vm11, %v8467_v15, %v8471_v20  ;;  %v12368_v39 = vcombine.low %v17834_v23, %v17844_v50  ;;  %v8480_v21 = vor.u32 %v8479_v40, %v8476_v30  ;;  %v17865_v15 = vld [vmem:[#allocation2 + $0x64] sm:$0xf]  ;;  %v17873_v30 = vld [vmem:[#allocation2 + $0x68] sm:$0x1] }
 0x320   : > { %v12337_v18 = vrot.slane %v9113_v43, 9  ;;  %v17853_v42 = vcombine.low %v8462_v24, %v8472_v46  ;;  %v8495_v12 = vrot.slane %v8493_v36, 5  ;;  %v9215_v41 = vrot.slane %v17840_v13, 5  ;;  %v9118_v50 = vld [vmem:[#allocation2 + $0x90] sm:$0xe] }
 0x321   : > { %v8490_v27 = vor.u32 %v8489_v57, %v8485_v14  ;;  %v8481_v61 = vrot.slane %v8480_v21, 4  ;;  %v9218_v0 = vrot.slane %v17847_v59, 5  ;;  %v8498_v20 = vshrl.u32 %v8365_v55, 16  ;;  %v14262_v21 = vld [vmem:[%s19464_s2 + $0x1f0] sm:$0xff]  }
 0x322   : > { %13805 = vmatmul.mubr.bf16.gmra.mxu0 %v14252_v47  ;;  %v8501_v53 = vshll.u32 %v8365_v55, 16  ;;  %v17862_v10 = vsel %vm14917_vm14, %v12337_v18, %v9215_v41  ;;  %v9217_v43 = vrot.slane %v9215_v41, 4  ;;  %v8507_v24 = vshll.u32 %v17765_v51, 16  ;;  %v8368_v47 = vld [vmem:[#allocation2 + $0x48] sm:$0xf] }
 0x323   : > { %13872 = vmatprep.mubr.bf16.mxu0 %v12363_v32  ;;  %v8491_v11 = vrot.slane %v8490_v27, 4  ;;  %v8486_v6 = vsel %vm14518_vm11, %v8481_v61, %v8485_v14  ;;  %v8500_v37 = vrot.slane %v8498_v20, 4  ;;  %v8511_v55 = vshrl.u32 %v17765_v51, 16 }
 0x324   : > { %v8503_v32 = vrot.slane %v8501_v53, 5  ;;  %v17882_v38 = vsel %vm14917_vm14, %v9217_v43, %v9218_v0  ;;  %v8509_v19 = vrot.slane %v8507_v24, 5  ;;  %v12338_v60 = vrot.slane %v9114_v26, 9  ;;  %v9115_v26 = vld [vmem:[#allocation2 + $0x6c] sm:$0xe] }
 0x325   : > { %13749 = vmatmul.mubr.bf16.gmra.mxu1 %v12238_v1  ;;  %v8496_v40 = vsel %vm14518_vm11, %v8491_v11, %v8495_v12  ;;  %v8517_v1 = vshll.u32 %v17777_v52, 16  ;;  %v12369_v51 = vcombine.low %v17862_v10, %v17882_v38  ;;  %v8513_v36 = vrot.slane %v8511_v55, 4  ;;  %v8371_v11 = vld [vmem:[#allocation2 + $0x54] sm:$0xf] }
 0x326   : > { %13752 = vmatprep.mubr.bf16.mxu1 %v12239_v35  ;;  %v17885_v14 = vcombine.low %v8486_v6, %v8496_v40  ;;  %v8504_v57 = vor.u32 %v8503_v32, %v8500_v37  ;;  %v9222_v35 = vrot.slane %v17865_v15, 5  ;;  %v9225_v46 = vrot.slane %v17873_v30, 5  ;;  %v17908_v37 = vld [vmem:[#allocation2 + $0x70] sm:$0xf]  ;;  %v18018_v38 = vld [vmem:[#allocation2 + $0x94] sm:$0xf] }
 0x327   : > { %v8519_v54 = vrot.slane %v8517_v1, 5  ;;  %v8514_v52 = vor.u32 %v8513_v36, %v8509_v19  ;;  %v8522_v27 = vshrl.u32 %v8368_v47, 16  ;;  %v8525_v12 = vshll.u32 %v8368_v47, 16 }
 0x328   : > { %v8505_v18 = vrot.slane %v8504_v57, 4  ;;  %v19685_v41 = vcombine.low %v17702_v34, %v17722_v33  ;;  %v17899_v61 = vsel %vm14917_vm14, %v12338_v60, %v9222_v35  ;;  %v9224_v0 = vrot.slane %v9222_v35, 4 }
 0x329   : > { %v8531_v20 = vshll.u32 %v17800_v44, 16  ;;  %v8535_v53 = vshrl.u32 %v17800_v44, 16  ;;  %v19686_v43 = vcombine.low %v17733_v48, %v17750_v62  ;;  %v8515_v34 = vrot.slane %v8514_v52, 4  ;;  %v17916_v48 = vld [vmem:[#allocation2 + $0x74] sm:$0x1]  ;;  %v14263_v62 = vld [vmem:[%s19464_s2 + $0x1e8] sm:$0xff]  }
 0x32a   : > { %13873 = vmatmul.mubr.bf16.vlgmr.msra.gmra.mxu0 %v19685_v41  ;;  %v8510_v24 = vsel %vm14518_vm11, %v8505_v18, %v8509_v19  ;;  %v8524_v33 = vrot.slane %v8522_v27, 4  ;;  %v8527_v6 = vrot.slane %v8525_v12, 5  ;;  %v17913_v32 = vsel %vm14917_vm14, %v9224_v0, %v9225_v46  ;;  %v9116_v52 = vld [vmem:[#allocation2 + $0x78] sm:$0xe]  ;;  %v17940_v41 = vld [vmem:[#allocation2 + $0x7c] sm:$0xf] }
 0x32b   : > { %13876 = vmatprep.mubr.bf16.mxu0 %v19686_v43  ;;  %13953 = vmatpush3.bf16.msra.mxu0 %v17671_v56  ;;  %v8533_v44 = vrot.slane %v8531_v20, 5  ;;  %v8537_v55 = vrot.slane %v8535_v53, 4  ;;  %v8541_v40 = vshll.u32 %v17807_v45, 16  ;;  %v19687_v19 = vcombine.low %v17641_v2, %v17662_v22  ;;  %v14265_v0 = vld [vmem:[%s19464_s2 + $0x1e0] sm:$0xff]  }
 0x32c   : > { %13954 = vmatprep.subr.bf16.mxu0 %v14262_v21  ;;  %v8520_v56 = vsel %vm14518_vm11, %v8515_v34, %v8519_v54  ;;  %v12370_v1 = vcombine.low %v17899_v61, %v17913_v32  ;;  %v8528_v47 = vor.u32 %v8527_v6, %v8524_v33  ;;  %v12339_v57 = vrot.slane %v9115_v26, 9  ;;  %v8374_v6 = vld [vmem:[#allocation2 + $0x60] sm:$0xf] }
 0x32d   : > { %13753 = vmatmul.mubr.bf16.gmra.mxu1 %v19687_v19  ;;  %v19688_v45 = vcombine.low %v17695_v58, %v17708_v5  ;;  %v17931_v36 = vcombine.low %v8510_v24, %v8520_v56  ;;  %v8538_v60 = vor.u32 %v8537_v55, %v8533_v44  ;;  %v8543_v35 = vrot.slane %v8541_v40, 5  ;;  %v14261_v61 = vld [vmem:[%s19464_s2 + $0x1a0] sm:$0xff]  }
 0x32e   : > { %v9229_v46 = vrot.slane %v17908_v37, 5  ;;  %v8529_v2 = vrot.slane %v8528_v47, 4  ;;  %v9232_v22 = vrot.slane %v17916_v48, 5  ;;  %v8546_v18 = vshrl.u32 %v8371_v11, 16 }
 0x32f   : > { %13756 = vmatprep.mubr.bf16.mxu1 %v19688_v45  ;;  %v8549_v54 = vshll.u32 %v8371_v11, 16  ;;  %13955 = vmatpush3.bf16.msra.mxu0 %v14262_v21  ;;  %v8539_v27 = vrot.slane %v8538_v60, 4  ;;  %v8555_v5 = vshll.u32 %v17840_v13, 16  ;;  %v8559_v26 = vshrl.u32 %v17840_v13, 16  ;;  %v17948_v11 = vld [vmem:[#allocation2 + $0x80] sm:$0x1] }
 0x330   : > { %v17937_v12 = vsel %vm14917_vm14, %v12339_v57, %v9229_v46  ;;  %v9231_v58 = vrot.slane %v9229_v46, 4  ;;  %13956 = vmatprep.subr.bf16.mxu0 %v14263_v62  ;;  %v8534_v20 = vsel %vm14518_vm11, %v8529_v2, %v8533_v44  ;;  %v8548_v53 = vrot.slane %v8546_v18, 4  ;;  %v8377_v46 = vld [vmem:[#allocation2 + $0x6c] sm:$0xf]  ;;  %v17984_v18 = vld [vmem:[#allocation2 + $0x88] sm:$0xf] }
 0x331   : > { %v8551_v21 = vrot.slane %v8549_v54, 5  ;;  %v8544_v43 = vsel %vm14518_vm11, %v8539_v27, %v8543_v35  ;;  %v8557_v34 = vrot.slane %v8555_v5, 5  ;;  %v8565_v33 = vshll.u32 %v17847_v59, 16  ;;  %v9117_v35 = vld [vmem:[#allocation2 + $0x84] sm:$0xe] }
 0x332   : > { %13877 = vmatmul.mubr.bf16.gmra.mxu0 %v12366_v9  ;;  %v17957_v24 = vsel %vm14917_vm14, %v9231_v58, %v9232_v22  ;;  %v17963_v13 = vcombine.low %v8534_v20, %v8544_v43  ;;  %v8561_v9 = vrot.slane %v8559_v26, 4  ;;  %v12340_v55 = vrot.slane %v9116_v52, 9  ;;  %v14268_v58 = vld [vmem:[%s19464_s2 + $0x1d0] sm:$0xff]  }
 0x333   : > { %13880 = vmatprep.mubr.bf16.mxu0 %v12367_v25  ;;  %v12371_v3 = vcombine.low %v17937_v12, %v17957_v24  ;;  %v8552_v17 = vor.u32 %v8551_v21, %v8548_v53  ;;  %13957 = vmatpush3.bf16.msra.mxu0 %v14263_v62  ;;  %v8567_v44 = vrot.slane %v8565_v33, 5  ;;  %v9236_v40 = vrot.slane %v17940_v41, 5 }
 0x334   : > { %v9239_v19 = vrot.slane %v17948_v11, 5  ;;  %13958 = vmatprep.subr.bf16.mxu0 %v14265_v0  ;;  %v19689_v16 = vcombine.low %v17712_v4, %v17729_v28  ;;  %v8562_v59 = vor.u32 %v8561_v9, %v8557_v34  ;;  %v8570_v56 = vshrl.u32 %v8374_v6, 16 }
 0x335   : > { %v8553_v25 = vrot.slane %v8552_v17, 4  ;;  %v8573_v47 = vshll.u32 %v8374_v6, 16  ;;  %v17978_v62 = vsel %vm14917_vm14, %v12340_v55, %v9236_v40  ;;  %v9238_v57 = vrot.slane %v9236_v40, 4 }
 0x336   : > { %13757 = vmatmul.mubr.bf16.gmra.mxu1 %v19689_v16  ;;  %v8579_v45 = vshll.u32 %v17865_v15, 16  ;;  %v8583_v60 = vshrl.u32 %v17865_v15, 16  ;;  %v8563_v28 = vrot.slane %v8562_v59, 4  ;;  %v8572_v2 = vrot.slane %v8570_v56, 4  ;;  %v17991_v15 = vld [vmem:[#allocation2 + $0x8c] sm:$0x1] }
 0x337   : > { %13824 = vmatprep.mubr.bf16.mxu1 %v17793_v8  ;;  %v8558_v4 = vsel %vm14518_vm11, %v8553_v25, %v8557_v34  ;;  %v8575_v22 = vrot.slane %v8573_v47, 5  ;;  %13959 = vmatpush3.bf16.msra.mxu0 %v14265_v0  ;;  %v17988_v8 = vsel %vm14917_vm14, %v9238_v57, %v9239_v19  ;;  %v8589_v27 = vshll.u32 %v17873_v30, 16  ;;  %v14258_v34 = vld [vmem:[%s19464_s2 + $0x1b0] sm:$0xff]   ;;  %v18027_v16 = vld [vmem:[#allocation2 + $0x98] sm:$0x1] }
 0x338   : > { %v8581_v54 = vrot.slane %v8579_v45, 5  ;;  %v8585_v52 = vrot.slane %v8583_v60, 4  ;;  %13960 = vmatprep.subr.bf16.mxu0 %v14266_v31  ;;  %v8568_v5 = vsel %vm14518_vm11, %v8563_v28, %v8567_v44  ;;  %v12372_v0 = vcombine.low %v17978_v62, %v17988_v8  ;;  %v8380_v47 = vld [vmem:[#allocation2 + $0x78] sm:$0xf] }
 0x339   : > { %v8576_v20 = vor.u32 %v8575_v22, %v8572_v2  ;;  %v12341_v53 = vrot.slane %v9117_v35, 9  ;;  %v18003_v30 = vcombine.low %v8558_v4, %v8568_v5  ;;  %v8591_v26 = vrot.slane %v8589_v27, 5 }
 0x33a   : > { %13881 = vmatmul.mubr.bf16.gmra.mxu0 %v12368_v39  ;;  %v8586_v21 = vor.u32 %v8585_v52, %v8581_v54  ;;  %v9243_v43 = vrot.slane %v17984_v18, 5  ;;  %v9246_v6 = vrot.slane %v17991_v15, 5  ;;  %v8594_v17 = vshrl.u32 %v8377_v46, 16 }
 0x33b   : > { %13884 = vmatprep.mubr.bf16.mxu0 %v12369_v51  ;;  %v8577_v33 = vrot.slane %v8576_v20, 4  ;;  %v8597_v23 = vshll.u32 %v8377_v46, 16  ;;  %13961 = vmatpush3.bf16.msra.mxu0 %v14266_v31  ;;  %v8603_v10 = vshll.u32 %v17908_v37, 16  ;;  %v14269_v51 = vld [vmem:[%s19464_s2 + $0x1c8] sm:$0xff]   ;;  %v8607_v31 = vshrl.u32 %v17908_v37, 16 }
 0x33c   : > { %v8587_v39 = vrot.slane %v8586_v21, 4  ;;  %v18015_v9 = vsel %vm14917_vm14, %v12341_v53, %v9243_v43  ;;  %v9245_v44 = vrot.slane %v9243_v43, 4  ;;  %13962 = vmatprep.subr.bf16.mxu0 %v14268_v58  ;;  %v8596_v40 = vrot.slane %v8594_v17, 4  ;;  %v14259_v37 = vld [vmem:[%s19464_s2 + $0x1a8] sm:$0xff]   ;;  %v9119_v20 = vld [vmem:[#allocation2 + $0x9c] sm:$0xe] }
 0x33d   : > { %v8582_v55 = vsel %vm14518_vm11, %v8577_v33, %v8581_v54  ;;  %v8599_v19 = vrot.slane %v8597_v23, 5  ;;  %v8613_v56 = vshll.u32 %v17916_v48, 16  ;;  %v8609_v45 = vrot.slane %v8607_v31, 4  ;;  %v14271_v54 = vld [vmem:[%s19464_s2 + $0x1c0] sm:$0xff]   ;;  %v9120_v31 = vld [vmem:[#allocation2 + $0xa8] sm:$0xe] }
 0x33e   : > { %13825 = vmatmul.mubr.bf16.vlgmr.msra.gmra.mxu1 %v17819_v49  ;;  %v8592_v25 = vsel %vm14518_vm11, %v8587_v39, %v8591_v26  ;;  %v18035_v59 = vsel %vm14917_vm14, %v9245_v44, %v9246_v6  ;;  %v8605_v49 = vrot.slane %v8603_v10, 5  ;;  %v12342_v35 = vrot.slane %v9118_v50, 9  ;;  %v8383_v53 = vld [vmem:[#allocation2 + $0x84] sm:$0xf]  ;;  %v18067_v43 = vld [vmem:[#allocation2 + $0xa0] sm:$0xf]  ;;  %v18081_v50 = vpop.f32.mrf.mxu0 }
 0x33f   : > { %13828 = vmatprep.mubr.bf16.mxu1 %v17853_v42  ;;  %13905 = vmatpush3.bf16.msra.mxu1 %v17798_v63  ;;  %v18041_v57 = vcombine.low %v8582_v55, %v8592_v25  ;;  %v12373_v63 = vcombine.low %v18015_v9, %v18035_v59  ;;  %v8600_v42 = vor.u32 %v8599_v19, %v8596_v40  ;;  %v8615_v60 = vrot.slane %v8613_v56, 5  ;;  %v14264_v55 = vld [vmem:[%s19464_s2 + $0x198] sm:$0xff]  }
 0x340   : > { %13906 = vmatprep.subr.bf16.mxu1 %v14258_v34  ;;  %13963 = vmatpush3.bf16.msra.mxu0 %v14268_v58  ;;  %v9250_v46 = vrot.slane %v18018_v38, 5  ;;  %v9253_v48 = vrot.slane %v18027_v16, 5  ;;  %v8610_v28 = vor.u32 %v8609_v45, %v8605_v49  ;;  %v8618_v2 = vshrl.u32 %v8380_v47, 16 }
 0x341   : > { %13964 = vmatprep.subr.bf16.mxu0 %v14269_v51  ;;  %v8601_v4 = vrot.slane %v8600_v42, 4  ;;  %v8621_v22 = vshll.u32 %v8380_v47, 16  ;;  %v8627_v58 = vshll.u32 %v17940_v41, 16  ;;  %v8631_v5 = vshrl.u32 %v17940_v41, 16  ;;  %v18096_v47 = vld [vmem:[#allocation2 + $0xac] sm:$0xf] }
 0x342   : > { %13885 = vmatmul.mubr.bf16.gmra.mxu0 %v12370_v1  ;;  %v18055_v52 = vsel %vm14917_vm14, %v12342_v35, %v9250_v46  ;;  %v9252_v27 = vrot.slane %v9250_v46, 4  ;;  %v8611_v1 = vrot.slane %v8610_v28, 4  ;;  %v8620_v21 = vrot.slane %v8618_v2, 4  ;;  %v18101_v35 = vld [vmem:[#allocation2 + $0xb0] sm:$0x1]  ;;  %v18103_v46 = vpop.f32.mrf.mxu0 }
 0x343   : > { %13907 = vmatpush3.bf16.msra.mxu1 %v14258_v34  ;;  %13888 = vmatprep.mubr.bf16.mxu0 %v12371_v3  ;;  %v8606_v32 = vsel %vm14518_vm11, %v8601_v4, %v8605_v49  ;;  %v8623_v26 = vrot.slane %v8621_v22, 5  ;;  %v8629_v34 = vrot.slane %v8627_v58, 5  ;;  %v8633_v12 = vrot.slane %v8631_v5, 4  ;;  %v18074_v3 = vld [vmem:[#allocation2 + $0xa4] sm:$0x1] }
 0x344   : > { %13908 = vmatprep.subr.bf16.mxu1 %v14259_v37  ;;  %v18071_v41 = vsel %vm14917_vm14, %v9252_v27, %v9253_v48  ;;  %v8637_v24 = vshll.u32 %v17948_v11, 16  ;;  %13965 = vmatpush3.bf16.msra.mxu0 %v14269_v51  ;;  %v8616_v33 = vsel %vm14518_vm11, %v8611_v1, %v8615_v60  ;;  %v12343_v23 = vrot.slane %v9119_v20, 9  ;;  %v8386_v22 = vld [vmem:[#allocation2 + $0x90] sm:$0xf] }
 0x345   : > { %v12374_v6 = vcombine.low %v18055_v52, %v18071_v41  ;;  %v8624_v17 = vor.u32 %v8623_v26, %v8620_v21  ;;  %13966 = vmatprep.subr.bf16.mxu0 %v14271_v54  ;;  %v18084_v11 = vcombine.low %v8606_v32, %v8616_v33  ;;  %v8634_v39 = vor.u32 %v8633_v12, %v8629_v34  ;;  %v9121_v26 = vld [vmem:[#allocation2 + $0xb4] sm:$0xe]  ;;  %v14272_v52 = vld [vmem:[%s19464_s2 + $0x180] sm:$0xff]  }
 0x346   : > { %13829 = vmatmul.mubr.bf16.gmra.mxu1 %v17885_v14  ;;  %v8639_v44 = vrot.slane %v8637_v24, 5  ;;  %v9257_v14 = vrot.slane %v18067_v43, 5  ;;  %v9260_v51 = vrot.slane %v18074_v3, 5  ;;  %v8642_v40 = vshrl.u32 %v8383_v53, 16 }
 0x347   : > { %13832 = vmatprep.mubr.bf16.mxu1 %v17931_v36  ;;  %13909 = vmatpush3.bf16.msra.mxu1 %v14259_v37  ;;  %v8625_v10 = vrot.slane %v8624_v17, 4  ;;  %v8645_v19 = vshll.u32 %v8383_v53, 16  ;;  %v8635_v25 = vrot.slane %v8634_v39, 4  ;;  %v8651_v56 = vshll.u32 %v17984_v18, 16  ;;  %v18125_v53 = vpop.f32.mrf.mxu0  ;;  %v18136_v17 = vld [vmem:[#allocation2 + $0xb8] sm:$0xf] }
 0x348   : > { %13910 = vmatprep.subr.bf16.mxu1 %v14261_v61  ;;  %v18093_v36 = vsel %vm14917_vm14, %v12343_v23, %v9257_v14  ;;  %v9259_v49 = vrot.slane %v9257_v14, 4  ;;  %13967 = vmatpush3.bf16.msra.mxu0 %v14271_v54  ;;  %v8644_v42 = vrot.slane %v8642_v40, 4  ;;  %v8655_v60 = vshrl.u32 %v17984_v18, 16  ;;  %v14267_v54 = vld [vmem:[%s19464_s2 + $0x190] sm:$0xff]   ;;  %v18144_v14 = vld [vmem:[#allocation2 + $0xbc] sm:$0x1] }
 0x349   : > { %v8630_v37 = vsel %vm14518_vm11, %v8625_v10, %v8629_v34  ;;  %v8647_v45 = vrot.slane %v8645_v19, 5  ;;  %v8640_v48 = vsel %vm14518_vm11, %v8635_v25, %v8639_v44  ;;  %v8653_v28 = vrot.slane %v8651_v56, 5  ;;  %v18149_v19 = vpop.f32.mrf.mxu0 }
 0x34a   : > { %13889 = vmatmul.mubr.bf16.gmra.mxu0 %v12372_v0  ;;  %v9261_v4 = vsel %vm14917_vm14, %v9259_v49, %v9260_v51  ;;  %v8661_v2 = vshll.u32 %v17991_v15, 16  ;;  %v18116_v18 = vcombine.low %v8630_v37, %v8640_v48  ;;  %v8657_v0 = vrot.slane %v8655_v60, 4 }
 0x34b   : > { %13911 = vmatpush3.bf16.msra.mxu1 %v14261_v61  ;;  %13892 = vmatprep.mubr.bf16.mxu0 %v12373_v63  ;;  %v12375_v62 = vcombine.low %v18093_v36, %v9261_v4  ;;  %v8648_v8 = vor.u32 %v8647_v45, %v8644_v42  ;;  %v12344_v58 = vrot.slane %v9120_v31, 9  ;;  %v9264_v15 = vrot.slane %v18096_v47, 5  ;;  %v9122_v45 = vld [vmem:[#allocation2 + $0xc0] sm:$0xe]  ;;  %v18164_v4 = vld [vmem:[#allocation2 + $0xc4] sm:$0xf] }
 0x34c   : > { %13912 = vmatprep.subr.bf16.mxu1 %v14264_v55  ;;  %v8663_v27 = vrot.slane %v8661_v2, 5  ;;  %v9267_v5 = vrot.slane %v18101_v35, 5  ;;  %v8658_v59 = vor.u32 %v8657_v0, %v8653_v28  ;;  %v8666_v63 = vshrl.u32 %v8386_v22, 16  ;;  %v18172_v0 = vpop.f32.mrf.mxu0 }
 0x34d   : > { %v8649_v9 = vrot.slane %v8648_v8, 4  ;;  %v8669_v20 = vshll.u32 %v8386_v22, 16  ;;  %v18130_v61 = vsel %vm14917_vm14, %v12344_v58, %v9264_v15  ;;  %v9266_v32 = vrot.slane %v9264_v15, 4  ;;  %v18170_v8 = vld [vmem:[#allocation2 + $0xc8] sm:$0x1] }
 0x34e   : > { %13833 = vmatmul.mubr.bf16.gmra.mxu1 %v17963_v13  ;;  %v8675_v1 = vshll.u32 %v18018_v38, 16  ;;  %v8679_v21 = vshrl.u32 %v18018_v38, 16  ;;  %v8389_v13 = vld [vmem:[#allocation2 + $0x9c] sm:$0xf]  ;;  %v8659_v12 = vrot.slane %v8658_v59, 4  ;;  %v8668_v24 = vrot.slane %v8666_v63, 4 }
 0x34f   : > { %13836 = vmatprep.mubr.bf16.mxu1 %v18003_v30  ;;  %13913 = vmatpush3.bf16.msra.mxu1 %v14264_v55  ;;  %v8654_v34 = vsel %vm14518_vm11, %v8649_v9, %v8653_v28  ;;  %v8671_v33 = vrot.slane %v8669_v20, 5  ;;  %v14270_v30 = vld [vmem:[%s19464_s2 + $0x188] sm:$0xff]   ;;  %v9268_v23 = vsel %vm14917_vm14, %v9266_v32, %v9267_v5  ;;  %v8685_v44 = vshll.u32 %v18027_v16, 16 }
 0x350   : > { %13914 = vmatprep.subr.bf16.mxu1 %v14267_v54  ;;  %v8677_v39 = vrot.slane %v8675_v1, 5  ;;  %v8681_v38 = vrot.slane %v8679_v21, 4  ;;  %v8664_v10 = vsel %vm14518_vm11, %v8659_v12, %v8663_v27  ;;  %v12376_v51 = vcombine.low %v18130_v61, %v9268_v23  ;;  %v8392_v15 = vld [vmem:[#allocation2 + $0xa8] sm:$0xf] }
 0x351   : > { %v8672_v55 = vor.u32 %v8671_v33, %v8668_v24  ;;  %v12345_v40 = vrot.slane %v9121_v26, 9  ;;  %v18154_v31 = vcombine.low %v8654_v34, %v8664_v10  ;;  %v8687_v36 = vrot.slane %v8685_v44, 5 }
 0x352   : > { %13893 = vmatmul.mubr.bf16.gmra.mxu0 %v12374_v6  ;;  %v8682_v25 = vor.u32 %v8681_v38, %v8677_v39  ;;  %v9271_v16 = vrot.slane %v18136_v17, 5  ;;  %v9274_v56 = vrot.slane %v18144_v14, 5  ;;  %v8690_v37 = vshrl.u32 %v8389_v13, 16 }
 0x353   : > { %13915 = vmatpush3.bf16.msra.mxu1 %v14267_v54  ;;  %13896 = vmatprep.mubr.bf16.mxu0 %v12375_v62  ;;  %v8673_v49 = vrot.slane %v8672_v55, 4  ;;  %v8693_v42 = vshll.u32 %v8389_v13, 16  ;;  %v8699_v48 = vshll.u32 %v18067_v43, 16  ;;  %v8703_v62 = vshrl.u32 %v18067_v43, 16  ;;  %v18189_v13 = vpop.f32.mrf.mxu0 }
 0x354   : > { %13916 = vmatprep.subr.bf16.mxu1 %v14270_v30  ;;  %v8683_v41 = vrot.slane %v8682_v25, 4  ;;  %v9272_v6 = vsel %vm14917_vm14, %v12345_v40, %v9271_v16  ;;  %v9273_v60 = vrot.slane %v9271_v16, 4  ;;  %v8692_v2 = vrot.slane %v8690_v37, 4  ;;  %v18201_v25 = vld [vmem:[#allocation2 + $0x1c] sm:$0xf] }
 0x355   : > { %v8678_v28 = vsel %vm14518_vm11, %v8673_v49, %v8677_v39  ;;  %v8695_v22 = vrot.slane %v8693_v42, 5  ;;  %v8709_v58 = vshll.u32 %v18074_v3, 16  ;;  %v8705_v59 = vrot.slane %v8703_v62, 4  ;;  %v18206_v49 = vld [vmem:[#allocation2 + $0x20] sm:$0x1]  ;;  %v18208_v42 = vpop.f32.mrf.mxu0 }
 0x356   : > { %13837 = vmatmul.mubr.bf16.gmra.mxu1 %v18041_v57  ;;  %v8688_v54 = vsel %vm14518_vm11, %v8683_v41, %v8687_v36  ;;  %v9275_v27 = vsel %vm14917_vm14, %v9273_v60, %v9274_v56  ;;  %v8701_v57 = vrot.slane %v8699_v48, 5  ;;  %v12346_v20 = vrot.slane %v9122_v45, 9  ;;  %v8395_v37 = vld [vmem:[#allocation2 + $0xb4] sm:$0xf] }
 0x357   : > { %13840 = vmatprep.mubr.bf16.mxu1 %v18084_v11  ;;  %13917 = vmatpush3.bf16.msra.mxu1 %v14270_v30  ;;  %v18180_v5 = vcombine.low %v8678_v28, %v8688_v54  ;;  %v12377_v43 = vcombine.low %v9272_v6, %v9275_v27  ;;  %v8696_v9 = vor.u32 %v8695_v22, %v8692_v2  ;;  %v18185_v11 = vld [vmem:[%s19464_s2 + $0x238] sm:$0xff]   ;;  %v8711_v63 = vrot.slane %v8709_v58, 5  ;;  %v9994_v58 = vld [vmem:[#allocation2 + $0x24] sm:$0xf] }
 0x358   : > { %13918 = vmatprep.subr.bf16.mxu1 %v14272_v52  ;;  %v9278_v61 = vrot.slane %v18164_v4, 5  ;;  %v9281_v32 = vrot.slane %v18170_v8, 5  ;;  %v8706_v1 = vor.u32 %v8705_v59, %v8701_v57  ;;  %v8714_v21 = vshrl.u32 %v8392_v15, 16  ;;  %v9991_v30 = vld [vmem:[#allocation2 + $0x18] sm:$0xf] }
 0x359   : > { %v8697_v3 = vrot.slane %v8696_v9, 4  ;;  %v8717_v26 = vshll.u32 %v8392_v15, 16  ;;  %v8723_v24 = vshll.u32 %v18096_v47, 16  ;;  %v8727_v33 = vshrl.u32 %v18096_v47, 16  ;;  %v18216_v15 = vpop.f32.mrf.mxu1 }
 0x35a   : > { %13897 = vmatmul.mubr.bf16.gmra.mxu0 %v12376_v51  ;;  %v9279_v34 = vsel %vm14917_vm14, %v12346_v20, %v9278_v61  ;;  %v9280_v12 = vrot.slane %v9278_v61, 4  ;;  %v8707_v39 = vrot.slane %v8706_v1, 4  ;;  %v8716_v38 = vrot.slane %v8714_v21, 4 }
 0x35b   : > { %13919 = vmatpush3.bf16.msra.mxu1 %v14272_v52  ;;  %13900 = vmatprep.mubr.bf16.mxu0 %v12377_v43  ;;  %v8702_v23 = vsel %vm14518_vm11, %v8697_v3, %v8701_v57  ;;  %v8719_v44 = vrot.slane %v8717_v26, 5  ;;  %v8725_v51 = vrot.slane %v8723_v24, 5  ;;  %v8729_v55 = vrot.slane %v8727_v33, 4  ;;  %v18218_v43 = vpop.f32.mrf.mxu0 }
 0x35c   : > { %14000 = vmatprep.subr.bf16.mxu1 %v18185_v11  ;;  %v9282_v10 = vsel %vm14917_vm14, %v9280_v12, %v9281_v32  ;;  %v8733_v40 = vshll.u32 %v18101_v35, 16  ;;  %v8712_v47 = vsel %vm14518_vm11, %v8707_v39, %v8711_v63  ;;  %v10040_v56 = vshrl.u32 %v9991_v30, 16  ;;  %19690 = vst [vmem:[#allocation11_spill] sm:$0xff] %v18218_v43  ;;  %v18225_v12 = vld [vmem:[#allocation2 + $0x28] sm:$0xf] }
 0x35d   : > { %v12378_v36 = vcombine.low %v9279_v34, %v9282_v10  ;;  %v8720_v16 = vor.u32 %v8719_v44, %v8716_v38  ;;  %v12319_v45 = vcombine.low %v8702_v23, %v8712_v47  ;;  %v8730_v52 = vor.u32 %v8729_v55, %v8725_v51  ;;  %v18228_v39 = vld [vmem:[#allocation2 + $0x2c] sm:$0x1]  ;;  %v18230_v44 = vpop.f32.mrf.mxu1 }
 0x35e   : > { %13841 = vmatmul.mubr.bf16.gmra.mxu1 %v18116_v18  ;;  %v8735_v35 = vrot.slane %v8733_v40, 5  ;;  %v10043_v41 = vshll.u32 %v9991_v30, 16  ;;  %v10042_v60 = vrot.slane %v10040_v56, 4  ;;  %v10049_v18 = vshll.u32 %v18201_v25, 16  ;;  %v18232_v10 = vpop.f32.mrf.mxu0  ;;  %v8398_v40 = vld [vmem:[#allocation2 + $0xc0] sm:$0xf] }
 0x35f   : > { %13844 = vmatprep.mubr.bf16.mxu1 %v18154_v31  ;;  %v8721_v6 = vrot.slane %v8720_v16, 4  ;;  %v10053_v48 = vshrl.u32 %v18201_v25, 16  ;;  %v8731_v28 = vrot.slane %v8730_v52, 4  ;;  %v10059_v22 = vshll.u32 %v18206_v49, 16 }
 0x360   : > { %v10045_v2 = vrot.slane %v10043_v41, 5  ;;  %v8738_v62 = vshrl.u32 %v8395_v37, 16  ;;  %v10051_v27 = vrot.slane %v10049_v18, 5  ;;  %v8741_v57 = vshll.u32 %v8395_v37, 16  ;;  %v18243_v18 = vpop.f32.mrf.mxu1 }
 0x361   : > { %v8726_v54 = vsel %vm14518_vm11, %v8721_v6, %v8725_v51  ;;  %v10055_v31 = vrot.slane %v10053_v48, 4  ;;  %v8736_v9 = vsel %vm14518_vm11, %v8731_v28, %v8735_v35  ;;  %v10061_v63 = vrot.slane %v10059_v22, 5  ;;  %v18245_v48 = vpop.f32.mrf.mxu0 }
 0x362   : > { %13901 = vmatmul.mubr.bf16.gmra.mxu0 %v12378_v36  ;;  %v10046_v59 = vor.u32 %v10045_v2, %v10042_v60  ;;  %v8740_v20 = vrot.slane %v8738_v62, 4  ;;  %v12320_v61 = vcombine.low %v8726_v54, %v8736_v9  ;;  %v8743_v3 = vrot.slane %v8741_v57, 5 }
 0x363   : > { %v10056_v32 = vor.u32 %v10055_v31, %v10051_v27  ;;  %v8747_v1 = vshll.u32 %v18136_v17, 16  ;;  %v8751_v26 = vshrl.u32 %v18136_v17, 16  ;;  %v8757_v34 = vshll.u32 %v18144_v14, 16 }
 0x364   : > { %v10047_v21 = vrot.slane %v10046_v59, 4  ;;  %v10064_v24 = vshrl.u32 %v9994_v58, 16  ;;  %v8744_v30 = vor.u32 %v8743_v3, %v8740_v20  ;;  %v10067_v38 = vshll.u32 %v9994_v58, 16  ;;  %v9997_v58 = vld [vmem:[#allocation2 + $0x30] sm:$0xf] }
 0x365   : > { %v10057_v33 = vrot.slane %v10056_v32, 4  ;;  %v8749_v23 = vrot.slane %v8747_v1, 5  ;;  %v8753_v14 = vrot.slane %v8751_v26, 4  ;;  %v8759_v51 = vrot.slane %v8757_v34, 5  ;;  %v18252_v32 = vld [vmem:[#allocation2 + $0x34] sm:$0xf] }
 0x366   : > { %13845 = vmatmul.mubr.bf16.gmra.mxu1 %v18180_v5  ;;  %v10052_v17 = vsel %vm14518_vm11, %v10047_v21, %v10051_v27  ;;  %v10066_v55 = vrot.slane %v10064_v24, 4  ;;  %v8745_v47 = vrot.slane %v8744_v30, 4  ;;  %v10069_v36 = vrot.slane %v10067_v38, 5  ;;  %v18256_v34 = vld [vmem:[#allocation2 + $0x38] sm:$0x1]  ;;  %v18260_v24 = vpop.f32.mrf.mxu0 }
 0x367   : > { %13848 = vmatprep.mubr.bf16.mxu1 %v12319_v45  ;;  %v10062_v5 = vsel %vm14518_vm11, %v10057_v33, %v10061_v63  ;;  %v10073_v16 = vshll.u32 %v18225_v12, 16  ;;  %v8754_v37 = vor.u32 %v8753_v14, %v8749_v23  ;;  %v10077_v52 = vshrl.u32 %v18225_v12, 16 }
 0x368   : > { %v12443_v56 = vcombine.low %v10052_v17, %v10062_v5  ;;  %v10083_v45 = vshll.u32 %v18228_v39, 16  ;;  %v8750_v35 = vsel %vm14518_vm11, %v8745_v47, %v8749_v23  ;;  %v10070_v41 = vor.u32 %v10069_v36, %v10066_v55  ;;  %v18267_v36 = vld [vmem:[#allocation2 + $0x40] sm:$0xf] }
 0x369   : > { %v10075_v6 = vrot.slane %v10073_v16, 5  ;;  %v8762_v60 = vshrl.u32 %v8398_v40, 16  ;;  %v8755_v28 = vrot.slane %v8754_v37, 4  ;;  %v10079_v2 = vrot.slane %v10077_v52, 4 }
 0x36a   : > { %13968 = vmatprep.mubr.bf16.mxu0 %v12443_v56  ;;  %v10085_v22 = vrot.slane %v10083_v45, 5  ;;  %v8765_v62 = vshll.u32 %v8398_v40, 16  ;;  %v10071_v54 = vrot.slane %v10070_v41, 4  ;;  %v8771_v31 = vshll.u32 %v18164_v4, 16 }
 0x36b   : > { %v8764_v27 = vrot.slane %v8762_v60, 4  ;;  %v8775_v57 = vshrl.u32 %v18164_v4, 16  ;;  %v8760_v9 = vsel %vm14518_vm11, %v8755_v28, %v8759_v51  ;;  %v10080_v59 = vor.u32 %v10079_v2, %v10075_v6  ;;  %v18258_v4 = vpop.f32.mrf.mxu1  ;;  %v10000_v51 = vld [vmem:[#allocation2 + $0x3c] sm:$0xf]  ;;  %v18275_v28 = vld [vmem:[#allocation2 + $0x44] sm:$0x1] }
 0x36c   : > { %v8767_v63 = vrot.slane %v8765_v62, 5  ;;  %v8781_v20 = vshll.u32 %v18170_v8, 16  ;;  %v12321_v3 = vcombine.low %v8750_v35, %v8760_v9  ;;  %v10076_v1 = vsel %vm14518_vm11, %v10071_v54, %v10075_v6  ;;  %v18271_v35 = vpop.f32.mrf.mxu0  ;;  %v14273_v9 = vld [vmem:[#allocation2 + $0x18] sm:$0xff]  }
 0x36d   : > { %v8773_v21 = vrot.slane %v8771_v31, 5  ;;  %v8777_v26 = vrot.slane %v8775_v57, 4  ;;  %v10081_v33 = vrot.slane %v10080_v59, 4  ;;  %v10088_v38 = vshrl.u32 %v9997_v58, 16  ;;  %v18269_v45 = vpop.f32.mrf.mxu1  ;;  %v10003_v31 = vld [vmem:[#allocation2 + $0x48] sm:$0xf] }
 0x36e   : > { %13849 = vmatmul.mubr.bf16.gmra.mxu1 %v12320_v61  ;;  %v8768_v30 = vor.u32 %v8767_v63, %v8764_v27  ;;  %v8783_v23 = vrot.slane %v8781_v20, 5  ;;  %v10091_v17 = vshll.u32 %v9997_v58, 16  ;;  %v10097_v61 = vshll.u32 %v18252_v32, 16 }
 0x36f   : > { %13852 = vmatprep.mubr.bf16.mxu1 %v12321_v3  ;;  %v8778_v8 = vor.u32 %v8777_v26, %v8773_v21  ;;  %v10101_v14 = vshrl.u32 %v18252_v32, 16  ;;  %v10086_v55 = vsel %vm14518_vm11, %v10081_v33, %v10085_v22  ;;  %v10090_v5 = vrot.slane %v10088_v38, 4  ;;  %v18282_v26 = vld [vmem:[#allocation2 + $0x4c] sm:$0xf]  ;;  %v18284_v33 = vpop.f32.mrf.mxu1 }
 0x370   : > { %v8769_v40 = vrot.slane %v8768_v30, 4  ;;  %v10107_v47 = vshll.u32 %v18256_v34, 16  ;;  %v12444_v16 = vcombine.low %v10076_v1, %v10086_v55  ;;  %v10093_v37 = vrot.slane %v10091_v17, 5  ;;  %v18294_v55 = vld [vmem:[#allocation2 + $0x50] sm:$0x1] }
 0x371   : > { %v8779_v56 = vrot.slane %v8778_v8, 4  ;;  %v10099_v52 = vrot.slane %v10097_v61, 5  ;;  %v10103_v6 = vrot.slane %v10101_v14, 4  ;;  %v10112_v2 = vshrl.u32 %v10000_v51, 16 }
 0x372   : > { %v8774_v41 = vsel %vm14518_vm11, %v8769_v40, %v8773_v21  ;;  %v10109_v60 = vrot.slane %v10107_v47, 5  ;;  %13969 = vmatmul.mubr.bf16.vlgmr.msra.gmra.mxu0 %v12444_v16  ;;  %v10094_v62 = vor.u32 %v10093_v37, %v10090_v5  ;;  %v10115_v54 = vshll.u32 %v10000_v51, 16 }
 0x373   : > { %v8784_v22 = vsel %vm14518_vm11, %v8779_v56, %v8783_v23  ;;  %v10121_v27 = vshll.u32 %v18267_v36, 16  ;;  %v10104_v58 = vor.u32 %v10103_v6, %v10099_v52  ;;  %v10114_v59 = vrot.slane %v10112_v2, 4  ;;  %v18286_v30 = vpop.f32.mrf.mxu0  ;;  %v10006_v6 = vld [vmem:[#allocation2 + $0x54] sm:$0xf] }
 0x374   : > { %v12322_v57 = vcombine.low %v8774_v41, %v8784_v22  ;;  %v10125_v63 = vshrl.u32 %v18267_v36, 16  ;;  %v10095_v20 = vrot.slane %v10094_v62, 4  ;;  %v10117_v3 = vrot.slane %v10115_v54, 5 }
 0x375   : > { %v10123_v1 = vrot.slane %v10121_v27, 5  ;;  %v10131_v21 = vshll.u32 %v18275_v28, 16  ;;  %v10105_v23 = vrot.slane %v10104_v58, 4  ;;  %v18290_v8 = vadd.f32 %v18081_v50, %v18216_v15  ;;  %v18302_v2 = vpop.f32.mrf.mxu0  ;;  %v18313_v58 = vld [vmem:[#allocation2 + $0x58] sm:$0xf] }
 0x376   : > { %13853 = vmatmul.mubr.bf16.gmra.mxu1 %v12322_v57  ;;  %v10127_v38 = vrot.slane %v10125_v63, 4  ;;  %v10136_v17 = vshrl.u32 %v10003_v31, 16  ;;  %v10100_v61 = vsel %vm14518_vm11, %v10095_v20, %v10099_v52  ;;  %v10118_v14 = vor.u32 %v10117_v3, %v10114_v59  ;;  %v18300_v52 = vpop.f32.mrf.mxu1  ;;  %v14274_v20 = vld [vmem:[#allocation2 + $0x24] sm:$0xff]  }
 0x377   : > { %13920 = vmatprep.mubr.bf16.mxu1 %v14273_v9  ;;  %v10133_v51 = vrot.slane %v10131_v21, 5  ;;  %v10139_v40 = vshll.u32 %v10003_v31, 16  ;;  %v10110_v5 = vsel %vm14518_vm11, %v10105_v23, %v10109_v60  ;;  %v10145_v56 = vshll.u32 %v18282_v26, 16  ;;  %v18315_v9 = vld [vmem:[#allocation2 + $0x5c] sm:$0x1] }
 0x378   : > { %v10128_v47 = vor.u32 %v10127_v38, %v10123_v1  ;;  %v10138_v16 = vrot.slane %v10136_v17, 4  ;;  %v12445_v37 = vcombine.low %v10100_v61, %v10110_v5  ;;  %v10119_v50 = vrot.slane %v10118_v14, 4  ;;  %v14276_v38 = vld [vmem:[#allocation2 + $0x30] sm:$0xff]   ;;  %v18324_v61 = vpop.f32.mrf.mxu1  ;;  %v18326_v14 = vpop.f32.mrf.mxu0 }
 0x379   : > { %v10141_v15 = vrot.slane %v10139_v40, 5  ;;  %v10149_v41 = vshrl.u32 %v18282_v26, 16  ;;  %v10147_v62 = vrot.slane %v10145_v56, 5  ;;  %v10155_v54 = vshll.u32 %v18294_v55, 16  ;;  %19691 = vst [vmem:[#allocation10_spill] sm:$0xff] %v18324_v61 }
 0x37a   : > { %v10129_v22 = vrot.slane %v10128_v47, 4  ;;  %v18307_v60 = vadd.f32 %v18103_v46, %v18230_v44  ;;  %13972 = vmatprep.mubr.bf16.mxu0 %v12445_v37  ;;  %v18311_v57 = vadd.f32 %v18125_v53, %v18243_v18  ;;  %v10124_v59 = vsel %vm14518_vm11, %v10119_v50, %v10123_v1  ;;  %v10009_v53 = vld [vmem:[#allocation2 + $0x60] sm:$0xf]  ;;  %v14278_v18 = vld [vmem:[%s19464_s2 + $0x230] sm:$0xff]   ;;  %v18331_v47 = vld [vmem:[#allocation2 + $0x64] sm:$0xf] }
 0x37b   : > { %v10142_v27 = vor.u32 %v10141_v15, %v10138_v16  ;;  %v10151_v31 = vrot.slane %v10149_v41, 4  ;;  %v10157_v46 = vrot.slane %v10155_v54, 5  ;;  %v10160_v44 = vshrl.u32 %v10006_v6, 16 }
 0x37c   : > { %v10134_v63 = vsel %vm14518_vm11, %v10129_v22, %v10133_v51  ;;  %v10163_v17 = vshll.u32 %v10006_v6, 16  ;;  %v10169_v51 = vshll.u32 %v18313_v58, 16  ;;  %v10173_v40 = vshrl.u32 %v18313_v58, 16  ;;  %v18340_v22 = vld [vmem:[#allocation2 + $0x68] sm:$0x1] }
 0x37d   : > { %v12446_v3 = vcombine.low %v10124_v59, %v10134_v63  ;;  %v10143_v21 = vrot.slane %v10142_v27, 4  ;;  %v10152_v23 = vor.u32 %v10151_v31, %v10147_v62  ;;  %v10162_v1 = vrot.slane %v10160_v44, 4 }
 0x37e   : > { %13921 = vmatmul.mubr.bf16.vlgmr.msra.gmra.mxu1 %v14274_v20  ;;  %v10179_v5 = vshll.u32 %v18315_v9, 16  ;;  %v10165_v37 = vrot.slane %v10163_v17, 5  ;;  %v18337_v50 = vadd.f32 %v18172_v0, %v18269_v45  ;;  %v10171_v15 = vrot.slane %v10169_v51, 5  ;;  %v14281_v0 = vld [vmem:[%s19464_s2 + $0x228] sm:$0xff]   ;;  %v14277_v51 = vld [vmem:[#allocation2 + $0x3c] sm:$0xff]  }
 0x37f   : > { %13973 = vmatmul.mubr.bf16.gmra.mxu0 %v12446_v3  ;;  %v10148_v16 = vsel %vm14518_vm11, %v10143_v21, %v10147_v62  ;;  %v10153_v56 = vrot.slane %v10152_v23, 4  ;;  %13924 = vmatprep.mubr.bf16.mxu1 %v14276_v38  ;;  %v10175_v41 = vrot.slane %v10173_v40, 4  ;;  %v10184_v54 = vshrl.u32 %v10009_v53, 16  ;;  %v10012_v17 = vld [vmem:[#allocation2 + $0x6c] sm:$0xf] }
 0x380   : > { %19692 = vst [vmem:[#allocation17_spill] sm:$0xff] %v18337_v50  ;;  %14001 = vmatpush3.bf16.msra.mxu1 %v18185_v11  ;;  %v10181_v6 = vrot.slane %v10179_v5, 5  ;;  %v10166_v31 = vor.u32 %v10165_v37, %v10162_v1  ;;  %v10187_v62 = vshll.u32 %v10009_v53, 16  ;;  %v10193_v59 = vshll.u32 %v18331_v47, 16  ;;  %v13642_v63 = vpop.f32.mrf.mxu1  ;;  %v18348_v11 = vpop.f32.mrf.mxu0  ;;  %v10018_v50 = vld [vmem:[#allocation2 + $0x84] sm:$0xf] }
 0x381   : > { %v10158_v27 = vsel %vm14518_vm11, %v10153_v56, %v10157_v46  ;;  %14002 = vmatprep.subr.bf16.mxu1 %v14278_v18  ;;  %v10176_v20 = vor.u32 %v10175_v41, %v10171_v15  ;;  %v10186_v44 = vrot.slane %v10184_v54, 4  ;;  %v10197_v3 = vshrl.u32 %v18331_v47, 16  ;;  %v18362_v56 = vld [vmem:[#allocation2 + $0x70] sm:$0xf] }
 0x382   : > { %v12447_v45 = vcombine.low %v10148_v16, %v10158_v27  ;;  %v10167_v21 = vrot.slane %v10166_v31, 4  ;;  %v10189_v23 = vrot.slane %v10187_v62, 5  ;;  %v10195_v46 = vrot.slane %v10193_v59, 5  ;;  %v18352_v53 = vpop.f32.mrf.mxu1  ;;  %v14279_v27 = vld [vmem:[#allocation2 + $0x48] sm:$0xff]   ;;  %v18366_v31 = vld [vmem:[#allocation2 + $0x74] sm:$0x1] }
 0x383   : > { %v10203_v38 = vshll.u32 %v18340_v22, 16  ;;  %v10177_v1 = vrot.slane %v10176_v20, 4  ;;  %v10199_v40 = vrot.slane %v10197_v3, 4  ;;  %v18356_v5 = vadd.f32 %v18189_v13, %v18284_v33  ;;  %v14284_v13 = vld [vmem:[%s19464_s2 + $0x220] sm:$0xff]  }
 0x384   : > { %13976 = vmatprep.mubr.bf16.mxu0 %v12447_v45  ;;  %14003 = vmatpush3.bf16.msra.mxu1 %v14278_v18  ;;  %v18360_v16 = vadd.f32 %v18208_v42, %v18300_v52  ;;  %v10172_v37 = vsel %vm14518_vm11, %v10167_v21, %v10171_v15  ;;  %v10190_v41 = vor.u32 %v10189_v23, %v10186_v44  ;;  %v18368_v18 = vpop.f32.mrf.mxu0  ;;  %v10208_v52 = vshrl.u32 %v10012_v17, 16  ;;  %v10015_v44 = vld [vmem:[#allocation2 + $0x78] sm:$0xf]  ;;  %v13643_v3 = vpop.f32.mrf.mxu1 }
 0x385   : > { %19693 = vst [vmem:[#allocation14_spill] sm:$0xff] %v18356_v5  ;;  %v10205_v54 = vrot.slane %v10203_v38, 5  ;;  %14004 = vmatprep.subr.bf16.mxu1 %v14281_v0  ;;  %v10182_v42 = vsel %vm14518_vm11, %v10177_v1, %v10181_v6  ;;  %v10200_v33 = vor.u32 %v10199_v40, %v10195_v46  ;;  %v10211_v62 = vshll.u32 %v10012_v17, 16  ;;  %v18380_v1 = vld [vmem:[#allocation2 + $0x7c] sm:$0xf] }
 0x386   : > { %19694 = vst [vmem:[#allocation24_spill] sm:$0xff] %v18360_v16  ;;  %13925 = vmatmul.mubr.bf16.gmra.mxu1 %v14277_v51  ;;  %v12448_v15 = vcombine.low %v10172_v37, %v10182_v42  ;;  %v10191_v59 = vrot.slane %v10190_v41, 4  ;;  %v10217_v45 = vshll.u32 %v18362_v56, 16  ;;  %v10221_v20 = vshrl.u32 %v18362_v56, 16  ;;  %v18377_v21 = vpop.f32.mrf.mxu0  ;;  %v18387_v41 = vld [vmem:[#allocation2 + $0x80] sm:$0x1] }
 0x387   : > { %13928 = vmatprep.mubr.bf16.mxu1 %v14279_v27  ;;  %v10201_v23 = vrot.slane %v10200_v33, 4  ;;  %v10210_v38 = vrot.slane %v10208_v52, 4  ;;  %v10213_v16 = vrot.slane %v10211_v62, 5  ;;  %v10227_v6 = vshll.u32 %v18366_v31, 16  ;;  %v14287_v42 = vld [vmem:[%s19464_s2 + $0x218] sm:$0xff]  }
 0x388   : > { %14005 = vmatpush3.bf16.msra.mxu1 %v14281_v0  ;;  %13977 = vmatmul.mubr.bf16.gmra.mxu0 %v12448_v15  ;;  %v10196_v17 = vsel %vm14518_vm11, %v10191_v59, %v10195_v46  ;;  %v10219_v51 = vrot.slane %v10217_v45, 5  ;;  %v10223_v40 = vrot.slane %v10221_v20, 4  ;;  %v18385_v37 = vadd.f32 %v18232_v10, %v13642_v63  ;;  %v18389_v27 = vpop.f32.mrf.mxu0  ;;  %v14280_v59 = vld [vmem:[#allocation2 + $0x54] sm:$0xff]   ;;  %v14282_v45 = vld [vmem:[#allocation2 + $0x60] sm:$0xff]   ;;  %v7088_v20 = vpop.f32.mrf.mxu1 }
 0x389   : > { %14006 = vmatprep.subr.bf16.mxu1 %v14284_v13  ;;  %v10206_v0 = vsel %vm14518_vm11, %v10201_v23, %v10205_v54  ;;  %v10214_v33 = vor.u32 %v10213_v16, %v10210_v38  ;;  %v10229_v52 = vrot.slane %v10227_v6, 5  ;;  %v10232_v46 = vshrl.u32 %v10015_v44, 16 }
 0x38a   : > { %19695 = vst [vmem:[#allocation22_spill] sm:$0xff] %v18385_v37  ;;  %v12449_v62 = vcombine.low %v10196_v17, %v10206_v0  ;;  %v10224_v15 = vor.u32 %v10223_v40, %v10219_v51  ;;  %v10235_v10 = vshll.u32 %v10015_v44, 16  ;;  %v10241_v63 = vshll.u32 %v18380_v1, 16  ;;  %v18403_v44 = vld [vmem:[#allocation2 + $0x88] sm:$0xf]  ;;  %v18405_v6 = vpop.f32.mrf.mxu0  ;;  %v14290_v17 = vld [vmem:[%s19464_s2 + $0x210] sm:$0xff]  }
 0x38b   : > { %v10215_v37 = vrot.slane %v10214_v33, 4  ;;  %v10234_v43 = vrot.slane %v10232_v46, 4  ;;  %v10245_v61 = vshrl.u32 %v18380_v1, 16  ;;  %v10251_v5 = vshll.u32 %v18387_v41, 16 }
 0x38c   : > { %14007 = vmatpush3.bf16.msra.mxu1 %v14284_v13  ;;  %13980 = vmatprep.mubr.bf16.mxu0 %v12449_v62  ;;  %v10225_v16 = vrot.slane %v10224_v15, 4  ;;  %v10237_v54 = vrot.slane %v10235_v10, 5  ;;  %v10243_v23 = vrot.slane %v10241_v63, 5  ;;  %v18401_v38 = vadd.f32 %v18245_v48, %v18352_v53  ;;  %v18415_v48 = vld [vmem:[#allocation2 + $0x8c] sm:$0x1] }
 0x38d   : > { %14008 = vmatprep.subr.bf16.mxu1 %v14287_v42  ;;  %v10220_v13 = vsel %vm14518_vm11, %v10215_v37, %v10219_v51  ;;  %v10247_v40 = vrot.slane %v10245_v61, 4  ;;  %v10253_v0 = vrot.slane %v10251_v5, 5  ;;  %v18413_v33 = vadd.f32 %v18260_v24, %v13643_v3  ;;  %19698 = vst [vmem:[#allocation37_spill] sm:$0xff] %v18415_v48  ;;  %v10021_v5 = vld [vmem:[#allocation2 + $0x90] sm:$0xf] }
 0x38e   : > { %19696 = vst [vmem:[#allocation36_spill] sm:$0xff] %v18401_v38  ;;  %13929 = vmatmul.mubr.bf16.gmra.mxu1 %v14280_v59  ;;  %v10230_v53 = vsel %vm14518_vm11, %v10225_v16, %v10229_v52  ;;  %v10238_v46 = vor.u32 %v10237_v54, %v10234_v43  ;;  %v18420_v62 = vadd.f32 %v18271_v35, %v7088_v20  ;;  %v10256_v15 = vshrl.u32 %v10018_v50, 16  ;;  %v18423_v24 = vld [vmem:[#allocation2 + $0x94] sm:$0xf] }
 0x38f   : > { %19697 = vst [vmem:[#allocation34_spill] sm:$0xff] %v18413_v33  ;;  %13932 = vmatprep.mubr.bf16.mxu1 %v14282_v45  ;;  %v13646_v10 = vpop.f32.mrf.mxu1  ;;  %v12450_v63 = vcombine.low %v10220_v13, %v10230_v53  ;;  %v10248_v51 = vor.u32 %v10247_v40, %v10243_v23  ;;  %v10259_v37 = vshll.u32 %v10018_v50, 16  ;;  %v10265_v61 = vshll.u32 %v18403_v44, 16  ;;  %19700 = vst [vmem:[#allocation26_spill] sm:$0xff] %v18423_v24  ;;  %v14293_v50 = vld [vmem:[%s19464_s2 + $0x208] sm:$0xff]  }
 0x390   : > { %19699 = vst [vmem:[#allocation13_spill] sm:$0xff] %v18420_v62  ;;  %14009 = vmatpush3.bf16.msra.mxu1 %v14287_v42  ;;  %v10239_v3 = vrot.slane %v10238_v46, 4  ;;  %v10258_v59 = vrot.slane %v10256_v15, 4  ;;  %v10269_v52 = vshrl.u32 %v18403_v44, 16  ;;  %v10275_v43 = vshll.u32 %v18415_v48, 16  ;;  %v18427_v35 = vpop.f32.mrf.mxu0 }
 0x391   : > { %v7101_v45 = vpop.f32.mrf.mxu1  ;;  %14010 = vmatprep.subr.bf16.mxu1 %v14290_v17  ;;  %13981 = vmatmul.mubr.bf16.gmra.mxu0 %v12450_v63  ;;  %v10249_v20 = vrot.slane %v10248_v51, 4  ;;  %v10261_v16 = vrot.slane %v10259_v37, 5  ;;  %v10267_v54 = vrot.slane %v10265_v61, 5  ;;  %v18433_v42 = vadd.f32 %v18286_v30, %v13646_v10  ;;  %v18437_v46 = vld [vmem:[#allocation2 + $0x98] sm:$0x1]  ;;  %v14283_v37 = vld [vmem:[#allocation2 + $0x6c] sm:$0xff]  }
 0x392   : > { %v10244_v13 = vsel %vm14518_vm11, %v10239_v3, %v10243_v23  ;;  %v10271_v40 = vrot.slane %v10269_v52, 4  ;;  %v10277_v53 = vrot.slane %v10275_v43, 5  ;;  %19702 = vst [vmem:[#allocation16_spill] sm:$0xff] %v18437_v46  ;;  %v10280_v15 = vshrl.u32 %v10021_v5, 16  ;;  %v18439_v33 = vpop.f32.mrf.mxu0  ;;  %v14285_v52 = vld [vmem:[#allocation2 + $0x78] sm:$0xff]  }
 0x393   : > { %19701 = vst [vmem:[#allocation12_spill] sm:$0xff] %v18433_v42  ;;  %v13647_v62 = vpop.f32.mrf.mxu1  ;;  %v10254_v63 = vsel %vm14518_vm11, %v10249_v20, %v10253_v0  ;;  %v10262_v51 = vor.u32 %v10261_v16, %v10258_v59  ;;  %v10283_v61 = vshll.u32 %v10021_v5, 16  ;;  %v10289_v30 = vshll.u32 %v18423_v24, 16  ;;  %v14296_v0 = vld [vmem:[%s19464_s2 + $0x200] sm:$0xff]   ;;  %v10024_v16 = vld [vmem:[#allocation2 + $0x9c] sm:$0xf] }
 0x394   : > { %14011 = vmatpush3.bf16.msra.mxu1 %v14290_v17  ;;  %v12451_v10 = vcombine.low %v10244_v13, %v10254_v63  ;;  %v10272_v42 = vor.u32 %v10271_v40, %v10267_v54  ;;  %v10282_v23 = vrot.slane %v10280_v15, 4  ;;  %v10293_v3 = vshrl.u32 %v18423_v24, 16  ;;  %v18445_v38 = vpop.f32.mrf.mxu0  ;;  %v18457_v24 = vld [vmem:[#allocation2 + $0xa0] sm:$0xf] }
 0x395   : > { %v7104_v43 = vpop.f32.mrf.mxu1  ;;  %14012 = vmatprep.subr.bf16.mxu1 %v14293_v50  ;;  %v10263_v59 = vrot.slane %v10262_v51, 4  ;;  %v10285_v5 = vrot.slane %v10283_v61, 5  ;;  %v10291_v20 = vrot.slane %v10289_v30, 5  ;;  %v10299_v17 = vshll.u32 %v18437_v46, 16  ;;  %19705 = vst [vmem:[#allocation29_spill] sm:$0xff] %v18457_v24 }
 0x396   : > { %13933 = vmatmul.mubr.bf16.gmra.mxu1 %v14283_v37  ;;  %13984 = vmatprep.mubr.bf16.mxu0 %v12451_v10  ;;  %v10273_v13 = vrot.slane %v10272_v42, 4  ;;  %v10295_v40 = vrot.slane %v10293_v3, 4  ;;  %v18452_v15 = vadd.f32 %v18302_v2, %v7101_v45  ;;  %v18455_v63 = vadd.f32 %v18326_v14, %v13647_v62  ;;  %v18459_v48 = vpop.f32.mrf.mxu0  ;;  %v18466_v42 = vld [vmem:[#allocation2 + $0xa4] sm:$0x1] }
 0x397   : > { %13936 = vmatprep.mubr.bf16.mxu1 %v14285_v52  ;;  %v10268_v51 = vsel %vm14518_vm11, %v10263_v59, %v10267_v54  ;;  %v10286_v37 = vor.u32 %v10285_v5, %v10282_v23  ;;  %v10301_v61 = vrot.slane %v10299_v17, 5  ;;  %v18464_v30 = vadd.f32 %v18348_v11, %v7104_v43  ;;  %19707 = vst [vmem:[#allocation21_spill] sm:$0xff] %v18466_v42  ;;  %v10027_v43 = vld [vmem:[#allocation2 + $0xa8] sm:$0xf] }
 0x398   : > { %19703 = vst [vmem:[#allocation15_spill] sm:$0xff] %v18452_v15  ;;  %19704 = vst [vmem:[#allocation31_spill] sm:$0xff] %v18455_v63  ;;  %14013 = vmatpush3.bf16.msra.mxu1 %v14293_v50  ;;  %v10278_v2 = vsel %vm14518_vm11, %v10273_v13, %v10277_v53  ;;  %v10296_v14 = vor.u32 %v10295_v40, %v10291_v20  ;;  %v10304_v62 = vshrl.u32 %v10024_v16, 16  ;;  %v10307_v45 = vshll.u32 %v10024_v16, 16  ;;  %v18475_v53 = vld [vmem:[#allocation2 + $0xac] sm:$0xf] }
 0x399   : > { %19706 = vst [vmem:[#allocation35_spill] sm:$0xff] %v18464_v30  ;;  %v18470_v10 = vpop.f32.mrf.mxu0  ;;  %14014 = vmatprep.subr.bf16.mxu1 %v14296_v0  ;;  %v12452_v3 = vcombine.low %v10268_v51, %v10278_v2  ;;  %v10287_v52 = vrot.slane %v10286_v37, 4  ;;  %v10313_v54 = vshll.u32 %v18457_v24, 16  ;;  %v10317_v23 = vshrl.u32 %v18457_v24, 16  ;;  %19708 = vst [vmem:[#allocation28_spill] sm:$0xff] %v18475_v53  ;;  %v14286_v2 = vld [vmem:[#allocation2 + $0x84] sm:$0xff]  }
 0x39a   : > { %v13650_v11 = vpop.f32.mrf.mxu1  ;;  %v10297_v59 = vrot.slane %v10296_v14, 4  ;;  %v10306_v5 = vrot.slane %v10304_v62, 4  ;;  %v10309_v50 = vrot.slane %v10307_v45, 5  ;;  %v10323_v17 = vshll.u32 %v18466_v42, 16  ;;  %v18484_v30 = vld [vmem:[#allocation2 + $0xb0] sm:$0x1] }
 0x39b   : > { %v18477_v13 = vpop.f32.mrf.mxu0  ;;  %13985 = vmatmul.mubr.bf16.gmra.mxu0 %v12452_v3  ;;  %v10292_v16 = vsel %vm14518_vm11, %v10287_v52, %v10291_v20  ;;  %v10315_v40 = vrot.slane %v10313_v54, 5  ;;  %v10319_v51 = vrot.slane %v10317_v23, 4  ;;  %v18482_v37 = vadd.f32 %v18368_v18, %v13650_v11  ;;  %19710 = vst [vmem:[#allocation40_spill] sm:$0xff] %v18484_v30  ;;  %v14288_v3 = vld [vmem:[#allocation2 + $0x90] sm:$0xff]  }
 0x39c   : > { %v7117_v14 = vpop.f32.mrf.mxu1  ;;  %14015 = vmatpush3.bf16.msra.mxu1 %v14296_v0  ;;  %v10302_v62 = vsel %vm14518_vm11, %v10297_v59, %v10301_v61  ;;  %v10310_v45 = vor.u32 %v10309_v50, %v10306_v5  ;;  %v10325_v63 = vrot.slane %v10323_v17, 5  ;;  %v10328_v15 = vshrl.u32 %v10027_v43, 16  ;;  %v10030_v61 = vld [vmem:[#allocation2 + $0xb4] sm:$0xf] }
 0x39d   : > { %19709 = vst [vmem:[#allocation38_spill] sm:$0xff] %v18482_v37  ;;  %v18488_v42 = vpop.f32.mrf.mxu0  ;;  %v12453_v20 = vcombine.low %v10292_v16, %v10302_v62  ;;  %v10320_v52 = vor.u32 %v10319_v51, %v10315_v40  ;;  %v10331_v54 = vshll.u32 %v10027_v43, 16  ;;  %v10337_v18 = vshll.u32 %v18475_v53, 16  ;;  %v18498_v51 = vld [vmem:[#allocation2 + $0xb8] sm:$0xf] }
 0x39e   : > { %13937 = vmatmul.mubr.bf16.gmra.mxu1 %v14286_v2  ;;  %v13651_v23 = vpop.f32.mrf.mxu1  ;;  %v10311_v11 = vrot.slane %v10310_v45, 4  ;;  %v10330_v37 = vrot.slane %v10328_v15, 4  ;;  %v10341_v0 = vshrl.u32 %v18475_v53, 16  ;;  %v10347_v46 = vshll.u32 %v18484_v30, 16  ;;  %19712 = vst [vmem:[#allocation44_spill] sm:$0xff] %v18498_v51 }
 0x39f   : > { %13940 = vmatprep.mubr.bf16.mxu1 %v14288_v3  ;;  %v18493_v59 = vpop.f32.mrf.mxu0  ;;  %13988 = vmatprep.mubr.bf16.mxu0 %v12453_v20  ;;  %v10321_v5 = vrot.slane %v10320_v52, 4  ;;  %v10333_v50 = vrot.slane %v10331_v54, 5  ;;  %v10339_v17 = vrot.slane %v10337_v18, 5  ;;  %v18496_v16 = vadd.f32 %v18377_v21, %v7117_v14  ;;  %v18505_v3 = vld [vmem:[#allocation2 + $0xbc] sm:$0x1] }
 0x3a0   : > { %v7120_v43 = vpop.f32.mrf.mxu1  ;;  %v10316_v15 = vsel %vm14518_vm11, %v10311_v11, %v10315_v40  ;;  %v10343_v2 = vrot.slane %v10341_v0, 4  ;;  %v10349_v62 = vrot.slane %v10347_v46, 5  ;;  %v18503_v45 = vadd.f32 %v18389_v27, %v13651_v23  ;;  %19714 = vst [vmem:[#allocation25_spill] sm:$0xff] %v18505_v3  ;;  %v14289_v11 = vld [vmem:[#allocation2 + $0x9c] sm:$0xff]  }
 0x3a1   : > { %19711 = vst [vmem:[#allocation42_spill] sm:$0xff] %v18496_v16  ;;  %v10326_v20 = vsel %vm14518_vm11, %v10321_v5, %v10325_v63  ;;  %v10334_v52 = vor.u32 %v10333_v50, %v10330_v37  ;;  %v18510_v21 = vadd.f32 %v18405_v6, %v7120_v43  ;;  %v10352_v14 = vshrl.u32 %v10030_v61, 16  ;;  %v10033_v27 = vld [vmem:[#allocation2 + $0xc0] sm:$0xf]  ;;  %v18517_v5 = vld [vmem:[#allocation2 + $0xc4] sm:$0xf] }
 0x3a2   : > { %19713 = vst [vmem:[#allocation46_spill] sm:$0xff] %v18503_v45  ;;  %v18512_v54 = vpop.f32.mrf.mxu0  ;;  %v12454_v18 = vcombine.low %v10316_v15, %v10326_v20  ;;  %v10344_v30 = vor.u32 %v10343_v2, %v10339_v17  ;;  %v10355_v40 = vshll.u32 %v10030_v61, 16  ;;  %v10361_v46 = vshll.u32 %v18498_v51, 16  ;;  %v14291_v2 = vld [vmem:[#allocation2 + $0xa8] sm:$0xff]  }
 0x3a3   : > { %19715 = vst [vmem:[#allocation27_spill] sm:$0xff] %v18510_v21  ;;  %v10335_v23 = vrot.slane %v10334_v52, 4  ;;  %v10354_v0 = vrot.slane %v10352_v14, 4  ;;  %v10365_v45 = vshrl.u32 %v18498_v51, 16  ;;  %v10371_v63 = vshll.u32 %v18505_v3, 16 }
 0x3a4   : > { %v13654_v37 = vpop.f32.mrf.mxu1  ;;  %v18519_v6 = vpop.f32.mrf.mxu0  ;;  %13989 = vmatmul.mubr.bf16.gmra.mxu0 %v12454_v18  ;;  %v10345_v50 = vrot.slane %v10344_v30, 4  ;;  %v10357_v43 = vrot.slane %v10355_v40, 5  ;;  %v10363_v15 = vrot.slane %v10361_v46, 5  ;;  %v18526_v21 = vld [vmem:[#allocation2 + $0xc8] sm:$0x1]  ;;  %v10376_v16 = vshrl.u32 %v10033_v27, 16 }
 0x3a5   : > { %v18522_v61 = vadd.f32 %v18427_v35, %v13654_v37  ;;  %v10340_v20 = vsel %vm14518_vm11, %v10335_v23, %v10339_v17  ;;  %v10367_v52 = vrot.slane %v10365_v45, 4  ;;  %v10373_v14 = vrot.slane %v10371_v63, 5 }
 0x3a6   : > { %13941 = vmatmul.mubr.bf16.gmra.mxu1 %v14289_v11  ;;  %v7133_v53 = vpop.f32.mrf.mxu1  ;;  %v18528_v3 = vpop.f32.mrf.mxu0  ;;  %v10350_v30 = vsel %vm14518_vm11, %v10345_v50, %v10349_v62  ;;  %v10358_v18 = vor.u32 %v10357_v43, %v10354_v0  ;;  %v10379_v40 = vshll.u32 %v10033_v27, 16  ;;  %v10385_v35 = vshll.u32 %v18517_v5, 16 }
 0x3a7   : > { %19716 = vst [vmem:[#allocation18_spill] sm:$0xff] %v18522_v61  ;;  %13944 = vmatprep.mubr.bf16.mxu1 %v14291_v2  ;;  %v12455_v46 = vcombine.low %v10340_v20, %v10350_v30  ;;  %v10368_v37 = vor.u32 %v10367_v52, %v10363_v15  ;;  %v10378_v17 = vrot.slane %v10376_v16, 4  ;;  %v10389_v45 = vshrl.u32 %v18517_v5, 16  ;;  %v10745_v2 = vld [vmem:[#allocation2 + $0x18] sm:$0xe] }
 0x3a8   : > { %v13655_v11 = vpop.f32.mrf.mxu1  ;;  %v18534_v23 = vpop.f32.mrf.mxu0  ;;  %v10359_v63 = vrot.slane %v10358_v18, 4  ;;  %v10381_v61 = vrot.slane %v10379_v40, 5  ;;  %v10387_v51 = vrot.slane %v10385_v35, 5  ;;  %v10395_v24 = vshll.u32 %v18526_v21, 16  ;;  %v10036_v20 = vld [vmem:[#allocation2 + $0xcc] sm:$0xf] }
 0x3a9   : > { %13992 = vmatprep.mubr.bf16.mxu0 %v12455_v46  ;;  %v10369_v62 = vrot.slane %v10368_v37, 4  ;;  %v10391_v0 = vrot.slane %v10389_v45, 4  ;;  %v18538_v27 = vadd.f32 %v18439_v33, %v7133_v53  ;;  %v18541_v50 = vadd.f32 %v18445_v38, %v13655_v11  ;;  %v14292_v35 = vld [vmem:[#allocation2 + $0xb4] sm:$0xff]   ;;  %v18555_v37 = vld [vmem:[#allocation2 + $0xd0] sm:$0xf] }
 0x3aa   : > { %v7136_v16 = vpop.f32.mrf.mxu1  ;;  %v18543_v43 = vpop.f32.mrf.mxu0  ;;  %v10364_v52 = vsel %vm14518_vm11, %v10359_v63, %v10363_v15  ;;  %v10382_v30 = vor.u32 %v10381_v61, %v10378_v17  ;;  %v10397_v53 = vrot.slane %v10395_v24, 5  ;;  %v10811_v46 = vrot.slane %v18201_v25, 5  ;;  %v14294_v15 = vld [vmem:[#allocation2 + $0xc0] sm:$0xff]  }
 0x3ab   : > { %19717 = vst [vmem:[#allocation48_spill] sm:$0xff] %v18541_v50  ;;  %v18548_v18 = vadd.f32 %v18459_v48, %v7136_v16  ;;  %v10374_v40 = vsel %vm14518_vm11, %v10369_v62, %v10373_v14  ;;  %v10392_v33 = vor.u32 %v10391_v0, %v10387_v51  ;;  %v12467_v61 = vrot.slane %v10745_v2, 9  ;;  %v18565_v16 = vld [vmem:[#allocation2 + $0xd4] sm:$0x1] }
 0x3ac   : > { %v18552_v38 = vpop.f32.mrf.mxu0  ;;  %v12456_v45 = vcombine.low %v10364_v52, %v10374_v40  ;;  %v10383_v11 = vrot.slane %v10382_v30, 4  ;;  %v10400_v17 = vshrl.u32 %v10036_v20, 16  ;;  %v10813_v14 = vrot.slane %v10811_v46, 4 }
 0x3ad   : > { %v13658_v50 = vpop.f32.mrf.mxu1  ;;  %v10393_v48 = vrot.slane %v10392_v33, 4  ;;  %v10814_v24 = vrot.slane %v18206_v49, 5  ;;  %v10403_v52 = vshll.u32 %v10036_v20, 16  ;;  %v10409_v30 = vshll.u32 %v18555_v37, 16  ;;  %v10746_v33 = vld [vmem:[#allocation2 + $0x24] sm:$0xe] }
 0x3ae   : > { %v18558_v63 = vadd.f32 %v18470_v10, %v13658_v50  ;;  %13945 = vmatmul.mubr.bf16.gmra.mxu1 %v14292_v35  ;;  %v18561_v62 = vpop.f32.mrf.mxu0  ;;  %13993 = vmatmul.mubr.bf16.gmra.mxu0 %v12456_v45  ;;  %v10388_v25 = vsel %vm14518_vm11, %v10383_v11, %v10387_v51  ;;  %v10402_v2 = vrot.slane %v10400_v17, 4  ;;  %v10413_v40 = vshrl.u32 %v18555_v37, 16 }
 0x3af   : > { %13948 = vmatprep.mubr.bf16.mxu1 %v14294_v15  ;;  %v7149_v0 = vpop.f32.mrf.mxu1  ;;  %v10398_v10 = vsel %vm14518_vm11, %v10393_v48, %v10397_v53  ;;  %v10815_v49 = vsel %vm14917_vm14, %v10813_v14, %v10814_v24  ;;  %v18580_v35 = vadd.f32 %v18149_v19, %v18258_v4  ;;  %v10405_v11 = vrot.slane %v10403_v52, 5 }
 0x3b0   : > { %19718 = vst [vmem:[#allocation19_spill] sm:$0xff] %v18558_v63  ;;  %v18571_v50 = vadd.f32 %v18477_v13, %v7149_v0  ;;  %v18576_v51 = vpop.f32.mrf.mxu0  ;;  %v12457_v20 = vcombine.low %v10388_v25, %v10398_v10  ;;  %v10411_v15 = vrot.slane %v10409_v30, 5  ;;  %v14295_v13 = vld [vmem:[#allocation2 + $0xcc] sm:$0xff]   ;;  %v10812_v17 = vsel %vm14917_vm14, %v12467_v61, %v10811_v46 }
 0x3b1   : > { %v13659_v45 = vpop.f32.mrf.mxu1  ;;  %v10415_v48 = vrot.slane %v10413_v40, 4  ;;  %v10419_v14 = vshll.u32 %v18565_v16, 16  ;;  %v10747_v0 = vld [vmem:[#allocation2 + $0x30] sm:$0xe]  ;;  %v12499_v4 = vcombine.low %v10812_v17, %v10815_v49  ;;  %v10406_v25 = vor.u32 %v10405_v11, %v10402_v2  ;;  %v10748_v11 = vld [vmem:[#allocation2 + $0x3c] sm:$0xe] }
 0x3b2   : > { %19719 = vst [vmem:[#allocation32_spill] sm:$0xff] %v18571_v50  ;;  %v18583_v53 = vadd.f32 %v18488_v42, %v13659_v45  ;;  %v18588_v24 = vpop.f32.mrf.mxu0  ;;  %13996 = vmatprep.mubr.bf16.mxu0 %v12457_v20  ;;  %v12468_v10 = vrot.slane %v10746_v33, 9  ;;  %v10818_v52 = vrot.slane %v18225_v12, 5  ;;  %v10825_v46 = vrot.slane %v18252_v32, 5 }
 0x3b3   : > { %v7152_v19 = vpop.f32.mrf.mxu1  ;;  %v10416_v30 = vor.u32 %v10415_v48, %v10411_v15  ;;  %v10421_v45 = vrot.slane %v10419_v14, 5  ;;  %v10407_v40 = vrot.slane %v10406_v25, 4  ;;  %v10821_v20 = vrot.slane %v18228_v39, 5 }
 0x3b4   : > { %19720 = vst [vmem:[#allocation20_spill] sm:$0xff] %v18583_v53  ;;  %v18592_v42 = vadd.f32 %v18493_v59, %v7152_v19  ;;  %v18594_v53 = vpop.f32.mrf.mxu0  ;;  %v10820_v50 = vrot.slane %v10818_v52, 4  ;;  %v12469_v63 = vrot.slane %v10747_v0, 9  ;;  %v10827_v49 = vrot.slane %v10825_v46, 4  ;;  %v10749_v19 = vld [vmem:[#allocation2 + $0x48] sm:$0xe] }
 0x3b5   : > { %v13662_v61 = vpop.f32.mrf.mxu1  ;;  %v10417_v12 = vrot.slane %v10416_v30, 4  ;;  %v10828_v59 = vrot.slane %v18256_v34, 5  ;;  %v10412_v32 = vsel %vm14518_vm11, %v10407_v40, %v10411_v15  ;;  %v10819_v39 = vsel %vm14917_vm14, %v12468_v10, %v10818_v52  ;;  %v10750_v52 = vld [vmem:[#allocation2 + $0x54] sm:$0xe] }
 0x3b6   : > { %v18599_v2 = vadd.f32 %v18512_v54, %v13662_v61  ;;  %13949 = vmatmul.mubr.bf16.gmra.mxu1 %v14295_v13  ;;  %v18602_v33 = vpop.f32.mrf.mxu0  ;;  %v10822_v54 = vsel %vm14917_vm14, %v10820_v50, %v10821_v20  ;;  %v10832_v13 = vrot.slane %v18267_v36, 5  ;;  %v10826_v14 = vsel %vm14917_vm14, %v12469_v63, %v10825_v46 }
 0x3b7   : > { %14016 = vmatprep.mubr.bf16.mxu1 %v12499_v4  ;;  %v7165_v17 = vpop.f32.mrf.mxu1  ;;  %v10422_v34 = vsel %vm14518_vm11, %v10417_v12, %v10421_v45  ;;  %v10829_v15 = vsel %vm14917_vm14, %v10827_v49, %v10828_v59  ;;  %v12500_v50 = vcombine.low %v10819_v39, %v10822_v54  ;;  %v12470_v10 = vrot.slane %v10748_v11, 9  ;;  %v10751_v49 = vld [vmem:[#allocation2 + $0x60] sm:$0xe] }
 0x3b8   : > { %v18612_v48 = vadd.f32 %v18519_v6, %v7165_v17  ;;  %v18620_v0 = vpop.f32.mrf.mxu0  ;;  %v12458_v4 = vcombine.low %v10412_v32, %v10422_v34  ;;  %v10834_v36 = vrot.slane %v10832_v13, 4  ;;  %v12501_v7 = vcombine.low %v10826_v14, %v10829_v15  ;;  %v10752_v17 = vld [vmem:[#allocation2 + $0x6c] sm:$0xe] }
 0x3b9   : > { %v13663_v25 = vpop.f32.mrf.mxu1  ;;  %v10835_v63 = vrot.slane %v18275_v28, 5  ;;  %v10839_v45 = vrot.slane %v18282_v26, 5  ;;  %v10833_v61 = vsel %vm14917_vm14, %v12470_v10, %v10832_v13  ;;  %v12471_v40 = vrot.slane %v10749_v19, 9 }
 0x3ba   : > { %19721 = vst [vmem:[#allocation33_spill] sm:$0xff] %v18612_v48  ;;  %v18623_v6 = vadd.f32 %v18528_v3, %v13663_v25  ;;  %v18625_v30 = vpop.f32.mrf.mxu0  ;;  %13997 = vmatmul.mubr.bf16.gmra.mxu0 %v12458_v4  ;;  %v10842_v20 = vrot.slane %v18294_v55, 5  ;;  %v10846_v12 = vrot.slane %v18313_v58, 5  ;;  %v12472_v11 = vrot.slane %v10750_v52, 9  ;;  %v19736_v48 = vld [vmem:[#allocation22_spill] sm:$0xff] }
 0x3bb   : > { %v7168_v46 = vpop.f32.mrf.mxu1  ;;  %v10836_v59 = vsel %vm14917_vm14, %v10834_v36, %v10835_v63  ;;  %v10841_v26 = vrot.slane %v10839_v45, 4  ;;  %v10840_v54 = vsel %vm14917_vm14, %v12471_v40, %v10839_v45  ;;  %v10849_v58 = vrot.slane %v18315_v9, 5 }
 0x3bc   : > { %19722 = vst [vmem:[#allocation23_spill] sm:$0xff] %v18623_v6  ;;  %v18634_v3 = vadd.f32 %v18534_v23, %v7168_v46  ;;  %v18638_v28 = vpop.f32.mrf.mxu0  ;;  %v12502_v39 = vcombine.low %v10833_v61, %v10836_v59  ;;  %v10848_v55 = vrot.slane %v10846_v12, 4  ;;  %v18650_v34 = vsel %vm14917_vm14, %v12472_v11, %v10846_v12  ;;  %v10754_v61 = vld [vmem:[#allocation2 + $0x84] sm:$0xe] }
 0x3bd   : > { %v13730_v32 = vpop.f32.mrf.mxu1  ;;  %v12473_v14 = vrot.slane %v10751_v49, 9  ;;  %v10853_v15 = vrot.slane %v18331_v47, 5  ;;  %v10843_v4 = vsel %vm14917_vm14, %v10841_v26, %v10842_v20  ;;  %v10860_v25 = vrot.slane %v18362_v56, 5 }
 0x3be   : > { %19723 = vst [vmem:[#allocation30_spill] sm:$0xff] %v18634_v3  ;;  %v18644_v13 = vadd.f32 %v13730_v32, %v18290_v8  ;;  %14017 = vmatmul.mubr.bf16.vlgmr.msra.gmra.mxu1 %v12500_v50  ;;  %v18646_v23 = vpop.f32.mrf.mxu0  ;;  %v18657_v9 = vsel %vm14917_vm14, %v10848_v55, %v10849_v58  ;;  %v12474_v8 = vrot.slane %v10752_v17, 9  ;;  %v10753_v50 = vld [vmem:[#allocation2 + $0x78] sm:$0xe]  ;;  %v10867_v49 = vrot.slane %v18380_v1, 5  ;;  %v19733_v55 = vld [vmem:[#allocation24_spill] sm:$0xff] }
 0x3bf   : > { %14020 = vmatprep.mubr.bf16.mxu1 %v12501_v7  ;;  %v7808_v19 = vpop.f32.mrf.mxu1  ;;  %v10855_v52 = vrot.slane %v10853_v15, 4  ;;  %v10856_v7 = vrot.slane %v18340_v22, 5  ;;  %v18670_v45 = vsel %vm14917_vm14, %v12473_v14, %v10853_v15  ;;  %v10862_v46 = vrot.slane %v10860_v25, 4  ;;  %v10755_v14 = vld [vmem:[#allocation2 + $0x90] sm:$0xe] }
 0x3c0   : > { %v18661_v10 = vadd.f32 %v7808_v19, %v18307_v60  ;;  %v18663_v36 = vpop.f32.mrf.mxu0  ;;  %v18674_v56 = vsel %vm14917_vm14, %v12474_v8, %v10860_v25  ;;  %v10863_v60 = vrot.slane %v18366_v31, 5  ;;  %v12475_v12 = vrot.slane %v10753_v50, 9  ;;  %v19724_v25 = vld [vmem:[#allocation37_spill] sm:$0xff] }
 0x3c1   : > { %v13731_v63 = vpop.f32.mrf.mxu1  ;;  %v10857_v22 = vsel %vm14917_vm14, %v10855_v52, %v10856_v7  ;;  %v10870_v31 = vrot.slane %v18387_v41, 5  ;;  %v10869_v1 = vrot.slane %v10867_v49, 4  ;;  %v12476_v58 = vrot.slane %v10754_v61, 9  ;;  %v19725_v50 = vld [vmem:[#allocation17_spill] sm:$0xff] }
 0x3c2   : > { %v18678_v40 = vadd.f32 %v13731_v63, %v18311_v57  ;;  %v18680_v20 = vpop.f32.mrf.mxu0  ;;  %v12505_v26 = vcombine.low %v18670_v45, %v10857_v22  ;;  %v18688_v11 = vsel %vm14917_vm14, %v10862_v46, %v10863_v60  ;;  %v10874_v57 = vrot.slane %v18403_v44, 5  ;;  %v10756_v45 = vld [vmem:[#allocation2 + $0x9c] sm:$0xe]  ;;  %v19727_v22 = vld [vmem:[#allocation29_spill] sm:$0xff] }
 0x3c3   : > { %v7811_v59 = vpop.f32.mrf.mxu1  ;;  %v12503_v19 = vcombine.low %v10840_v54, %v10843_v4  ;;  %v18701_v8 = vsel %vm14917_vm14, %v12475_v12, %v10867_v49  ;;  %v10877_v44 = vrot.slane %v19724_v25, 5  ;;  %v18709_v7 = vsel %vm14917_vm14, %v10869_v1, %v10870_v31  ;;  %v19726_v54 = vld [vmem:[#allocation26_spill] sm:$0xff] }
 0x3c4   : > { %v18693_v17 = vadd.f32 %v7811_v59, %v18580_v35  ;;  %v18695_v32 = vpop.f32.mrf.mxu0  ;;  %v10876_v41 = vrot.slane %v10874_v57, 4  ;;  %v18713_v63 = vsel %vm14917_vm14, %v12476_v58, %v10874_v57  ;;  %v10881_v4 = vrot.slane %v19726_v54, 5  ;;  %v19728_v49 = vld [vmem:[#allocation14_spill] sm:$0xff]  ;;  %v19729_v58 = vld [vmem:[#allocation16_spill] sm:$0xff]  ;;  %v19730_v54 = vld [vmem:[#allocation21_spill] sm:$0xff] }
 0x3c5   : > { %v13734_v15 = vpop.f32.mrf.mxu1  ;;  %v12477_v61 = vrot.slane %v10755_v14, 9  ;;  %v10888_v12 = vrot.slane %v19727_v22, 5  ;;  %v12478_v25 = vrot.slane %v10756_v45, 9  ;;  %v10891_v60 = vrot.slane %v19730_v54, 5  ;;  %v19735_v54 = vld [vmem:[#allocation25_spill] sm:$0xff] }
 0x3c6   : > { %v7941_v35 = vadd.f32 %v13734_v15, %v19725_v50  ;;  %14021 = vmatmul.mubr.bf16.gmra.mxu1 %v12502_v39  ;;  %v18705_v52 = vpop.f32.mrf.mxu0  ;;  %v18720_v39 = vsel %vm14917_vm14, %v10876_v41, %v10877_v44  ;;  %v10883_v1 = vrot.slane %v10881_v4, 4  ;;  %v10884_v15 = vrot.slane %v19729_v58, 5  ;;  %v19731_v41 = vld [vmem:[#allocation10_spill] sm:$0xff]  ;;  %v19732_v44 = vld [vmem:[#allocation11_spill] sm:$0xff] }
 0x3c7   : > { %14024 = vmatprep.mubr.bf16.mxu1 %v12503_v19  ;;  %v7824_v46 = vpop.f32.mrf.mxu1  ;;  %v10890_v50 = vrot.slane %v10888_v12, 4  ;;  %v7378_v14 = vadd.f32 %v19732_v44, %v19731_v41  ;;  %v10758_v58 = vld [vmem:[#allocation2 + $0xb4] sm:$0xe]  ;;  %v18747_v41 = vsel %vm14917_vm14, %v12478_v25, %v10888_v12  ;;  %v10905_v6 = vrot.slane %v19735_v54, 5 }
 0x3c8   : > { %v7939_v59 = vadd.f32 %v7824_v46, %v19728_v49  ;;  %v18724_v31 = vpop.f32.mrf.mxu0  ;;  %v18737_v46 = vsel %vm14917_vm14, %v12477_v61, %v10881_v4  ;;  %v18741_v49 = vsel %vm14917_vm14, %v10883_v1, %v10884_v15  ;;  %v12480_v57 = vrot.slane %v10758_v58, 9 }
 0x3c9   : > { %v13735_v19 = vpop.f32.mrf.mxu1  ;;  %v19737_v25 = vcombine.low %v18650_v34, %v18657_v9  ;;  %v18780_v9 = vadd.f32 %v18543_v43, %v18644_v13  ;;  %v18798_v43 = vadd.f32 %v18588_v24, %v7941_v35  ;;  %v19740_v13 = vld [vmem:[#allocation13_spill] sm:$0xff] }
 0x3ca   : > { %v7942_v22 = vadd.f32 %v13735_v19, %v19733_v55  ;;  %v18733_v47 = vpop.f32.mrf.mxu0  ;;  %v18751_v55 = vsel %vm14917_vm14, %v10890_v50, %v10891_v60  ;;  %v19734_v19 = vld [vmem:[#allocation44_spill] sm:$0xff] }
 0x3cb   : > { %v7827_v45 = vpop.f32.mrf.mxu1  ;;  %v10902_v4 = vrot.slane %v19734_v19, 5  ;;  %v12510_v1 = vcombine.low %v18747_v41, %v18751_v55 }
 0x3cc   : > { %v7940_v61 = vadd.f32 %v7827_v45, %v7378_v14  ;;  %v18754_v44 = vpop.f32.mrf.mxu0  ;;  %v19738_v45 = vld [vmem:[#allocation36_spill] sm:$0xff] }
 0x3cd   : > { %v13738_v15 = vpop.f32.mrf.mxu1  ;;  %v10904_v3 = vrot.slane %v10902_v4, 4  ;;  %v18767_v14 = vsel %vm14917_vm14, %v12480_v57, %v10902_v4 }
 0x3ce   : > { %v7945_v12 = vadd.f32 %v13738_v15, %v19736_v48  ;;  %14025 = vmatmul.mubr.bf16.gmra.mxu1 %v19737_v25  ;;  %v18763_v60 = vpop.f32.mrf.mxu0  ;;  %v18795_v25 = vadd.f32 %v18576_v51, %v18693_v17  ;;  %v19741_v17 = vld [vmem:[#allocation12_spill] sm:$0xff] }
 0x3cf   : > { %14028 = vmatprep.mubr.bf16.mxu1 %v12505_v26  ;;  %v7840_v50 = vpop.f32.mrf.mxu1  ;;  %v18771_v58 = vsel %vm14917_vm14, %v10904_v3, %v10905_v6  ;;  %v19739_v26 = vld [vmem:[#allocation34_spill] sm:$0xff]  ;;  %v18787_v6 = vadd.f32 %v18552_v38, %v18661_v10  ;;  %v18791_v3 = vadd.f32 %v18561_v62, %v18678_v40  ;;  %v18807_v38 = vadd.f32 %v18602_v33, %v7942_v22 }
 0x3d0   : > { %v7943_v54 = vadd.f32 %v7840_v50, %v19738_v45  ;;  %v18774_v19 = vpop.f32.mrf.mxu0  ;;  %v12512_v48 = vcombine.low %v18767_v14, %v18771_v58  ;;  %v18810_v10 = vadd.f32 %v18620_v0, %v7940_v61  ;;  %v18813_v51 = vadd.f32 %v18625_v30, %v7945_v12 }
 0x3d1   : > { %v13739_v34 = vpop.f32.mrf.mxu1  ;;  %v19743_v30 = vcombine.low %v18701_v8, %v18709_v7  ;;  %v19747_v7 = vld [vmem:[#allocation35_spill] sm:$0xff] }
 0x3d2   : > { %v7946_v15 = vadd.f32 %v13739_v34, %v19739_v26  ;;  %v18783_v57 = vpop.f32.mrf.mxu0  ;;  %v18804_v34 = vadd.f32 %v18594_v53, %v7939_v59  ;;  %v18816_v24 = vadd.f32 %v18638_v28, %v7943_v54  ;;  %v19742_v53 = vcombine.low %v18674_v56, %v18688_v11  ;;  %v19744_v59 = vld [vmem:[#allocation15_spill] sm:$0xff]  ;;  %v19746_v26 = vld [vmem:[#allocation28_spill] sm:$0xff] }
 0x3d3   : > { %v7843_v4 = vpop.f32.mrf.mxu1  ;;  %v19745_v56 = vld [vmem:[#allocation31_spill] sm:$0xff] }
 0x3d4   : > { %v7944_v50 = vadd.f32 %v7843_v4, %v19740_v13  ;;  %v18801_v45 = vpop.f32.mrf.mxu0  ;;  %v18819_v40 = vadd.f32 %v18646_v23, %v7946_v15 }
 0x3d5   : > { %v13742_v62 = vpop.f32.mrf.mxu1 }
 0x3d6   : > { %v7949_v35 = vadd.f32 %v13742_v62, %v19741_v17  ;;  %14029 = vmatmul.mubr.bf16.gmra.mxu1 %v19742_v53  ;;  %v18825_v33 = vpop.f32.mrf.mxu0  ;;  %v18828_v0 = vadd.f32 %v18663_v36, %v7944_v50  ;;  %v10895_v36 = vrot.slane %v19746_v26, 5  ;;  %v19748_v62 = vld [vmem:[#allocation38_spill] sm:$0xff]  ;;  %v10757_v53 = vld [vmem:[#allocation2 + $0xa8] sm:$0xe] }
 0x3d7   : > { %14032 = vmatprep.mubr.bf16.mxu1 %v19743_v30  ;;  %v7856_v28 = vpop.f32.mrf.mxu1 }
 0x3d8   : > { %v7947_v22 = vadd.f32 %v7856_v28, %v19744_v59  ;;  %v18834_v23 = vpop.f32.mrf.mxu0  ;;  %v18837_v61 = vadd.f32 %v18680_v20, %v7949_v35  ;;  %v19749_v35 = vcombine.low %v18713_v63, %v18720_v39  ;;  %v10897_v30 = vrot.slane %v10895_v36, 4 }
 0x3d9   : > { %v13743_v12 = vpop.f32.mrf.mxu1  ;;  %v19750_v59 = vcombine.low %v18737_v46, %v18741_v49  ;;  %v10909_v46 = vrot.slane %v18517_v5, 5 }
 0x3da   : > { %v7950_v11 = vadd.f32 %v13743_v12, %v19745_v56  ;;  %v18840_v54 = vpop.f32.mrf.mxu0  ;;  %v18844_v15 = vadd.f32 %v18695_v32, %v7947_v22  ;;  %v19751_v22 = vld [vmem:[#allocation42_spill] sm:$0xff]  ;;  %v19752_v56 = vld [vmem:[#allocation40_spill] sm:$0xff] }
 0x3db   : > { %v7859_v8 = vpop.f32.mrf.mxu1  ;;  %v10911_v5 = vrot.slane %v10909_v46, 4 }
 0x3dc   : > { %v7948_v4 = vadd.f32 %v7859_v8, %v19747_v7  ;;  %v18847_v13 = vpop.f32.mrf.mxu0  ;;  %v18850_v50 = vadd.f32 %v18705_v52, %v7950_v11  ;;  %v10898_v11 = vrot.slane %v19752_v56, 5  ;;  %v12479_v8 = vrot.slane %v10757_v53, 9  ;;  %v19753_v7 = vld [vmem:[#allocation46_spill] sm:$0xff] }
 0x3dd   : > { %v13746_v20 = vpop.f32.mrf.mxu1 }
 0x3de   : > { %v7953_v17 = vadd.f32 %v13746_v20, %v19748_v62  ;;  %14033 = vmatmul.mubr.bf16.gmra.mxu1 %v19749_v35  ;;  %v18856_v28 = vpop.f32.mrf.mxu0  ;;  %v18859_v32 = vadd.f32 %v18724_v31, %v7948_v4  ;;  %v10899_v31 = vsel %vm14917_vm14, %v10897_v30, %v10898_v11  ;;  %v19754_v35 = vld [vmem:[#allocation27_spill] sm:$0xff]  ;;  %v10759_v11 = vld [vmem:[#allocation2 + $0xc0] sm:$0xe] }
 0x3df   : > { %14036 = vmatprep.mubr.bf16.mxu1 %v19750_v59  ;;  %v7872_v52 = vpop.f32.mrf.mxu1 }
 0x3e0   : > { %v7951_v12 = vadd.f32 %v7872_v52, %v19751_v22  ;;  %v18866_v26 = vpop.f32.mrf.mxu0  ;;  %v18869_v63 = vadd.f32 %v18733_v47, %v7953_v17  ;;  %v10896_v47 = vsel %vm14917_vm14, %v12479_v8, %v10895_v36  ;;  %v19755_v22 = vld [vmem:[#allocation18_spill] sm:$0xff]  ;;  %v10912_v8 = vrot.slane %v18526_v21, 5 }
 0x3e1   : > { %v13747_v39 = vpop.f32.mrf.mxu1  ;;  %v12511_v30 = vcombine.low %v10896_v47, %v10899_v31  ;;  %v10919_v21 = vrot.slane %v18565_v16, 5 }
 0x3e2   : > { %v7954_v20 = vadd.f32 %v13747_v39, %v19753_v7  ;;  %v18874_v4 = vpop.f32.mrf.mxu0  ;;  %v18878_v49 = vadd.f32 %v18754_v44, %v7951_v12 }
 0x3e3   : > { %v7875_v62 = vpop.f32.mrf.mxu1 }
 0x3e4   : > { %v7952_v59 = vadd.f32 %v7875_v62, %v19754_v35  ;;  %v18883_v17 = vpop.f32.mrf.mxu0  ;;  %v18886_v53 = vadd.f32 %v18763_v60, %v7954_v20  ;;  %v10916_v60 = vrot.slane %v18555_v37, 5  ;;  %v10760_v20 = vld [vmem:[#allocation2 + $0xcc] sm:$0xe]  ;;  %v12481_v62 = vrot.slane %v10759_v11, 9 }
 0x3e5   : > { %v13750_v52 = vpop.f32.mrf.mxu1 }
 0x3e6   : > { %v7957_v56 = vadd.f32 %v13750_v52, %v19755_v22  ;;  %14037 = vmatmul.mubr.bf16.gmra.mxu1 %v12510_v1  ;;  %v18892_v44 = vpop.f32.mrf.mxu0  ;;  %v18895_v12 = vadd.f32 %v18774_v19, %v7952_v59  ;;  %v19756_v1 = vld [vmem:[#allocation48_spill] sm:$0xff]  ;;  %v10913_v19 = vsel %vm14917_vm14, %v10911_v5, %v10912_v8  ;;  %v10918_v47 = vrot.slane %v10916_v60, 4 }
 0x3e7   : > { %14040 = vmatprep.mubr.bf16.mxu1 %v12511_v30  ;;  %v7888_v36 = vpop.f32.mrf.mxu1 }
 0x3e8   : > { %v7955_v39 = vadd.f32 %v7888_v36, %v18538_v27  ;;  %v8309_v7 = vpop.f32.mrf.mxu0  ;;  %v18901_v41 = vadd.f32 %v18783_v57, %v7957_v56  ;;  %v12482_v27 = vrot.slane %v10760_v20, 9  ;;  %v10910_v57 = vsel %vm14917_vm14, %v12481_v62, %v10909_v46  ;;  %v19757_v36 = vld [vmem:[#allocation19_spill] sm:$0xff] }
 0x3e9   : > { %v13751_v55 = vpop.f32.mrf.mxu1  ;;  %v12513_v5 = vcombine.low %v10910_v57, %v10913_v19 }
 0x3ea   : > { %v7958_v31 = vadd.f32 %v13751_v55, %v19756_v1  ;;  %v13874_v35 = vpop.f32.mrf.mxu0  ;;  %v18907_v59 = vadd.f32 %v18801_v45, %v7955_v39  ;;  %v10917_v46 = vsel %vm14917_vm14, %v12482_v27, %v10916_v60  ;;  %v19758_v39 = vld [vmem:[#allocation32_spill] sm:$0xff] }
 0x3eb   : > { %v7891_v37 = vpop.f32.mrf.mxu1 }
 0x3ec   : > { %v7956_v52 = vadd.f32 %v7891_v37, %v18548_v18  ;;  %v9446_v30 = vpop.f32.mrf.mxu0  ;;  %v18914_v22 = vadd.f32 %v18825_v33, %v7958_v31  ;;  %v10920_v33 = vsel %vm14917_vm14, %v10918_v47, %v10919_v21 }
 0x3ed   : > { %v13754_v56 = vpop.f32.mrf.mxu1 }
 0x3ee   : > { %v7961_v11 = vadd.f32 %v13754_v56, %v19757_v36  ;;  %14041 = vmatmul.mubr.bf16.gmra.mxu1 %v12512_v48  ;;  %v18920_v45 = vpop.f32.mrf.mxu0  ;;  %v18923_v16 = vadd.f32 %v18834_v23, %v7956_v52  ;;  %v19759_v48 = vld [vmem:[#allocation20_spill] sm:$0xff]  ;;  %v12514_v23 = vcombine.low %v10917_v46, %v10920_v33  ;;  %v19760_v52 = vld [vmem:[#allocation33_spill] sm:$0xff] }
 0x3ef   : > { %14044 = vmatprep.mubr.bf16.mxu1 %v12513_v5  ;;  %v7904_v18 = vpop.f32.mrf.mxu1 }
 0x3f0   : > { %v7959_v8 = vadd.f32 %v7904_v18, %v19758_v39  ;;  %v18930_v20 = vpop.f32.mrf.mxu0  ;;  %v18933_v14 = vadd.f32 %v18840_v54, %v7961_v11  ;;  %v19762_v18 = vld [vmem:[#allocation30_spill] sm:$0xff] }
 0x3f1   : > { %v13755_v58 = vpop.f32.mrf.mxu1 }
 0x3f2   : > { %v7962_v55 = vadd.f32 %v13755_v58, %v19759_v48  ;;  %v13878_v1 = vpop.f32.mrf.mxu0  ;;  %v18937_v31 = vadd.f32 %v18847_v13, %v7959_v8 }
 0x3f3   : > { %v7907_v62 = vpop.f32.mrf.mxu1 }
 0x3f4   : > { %v7960_v60 = vadd.f32 %v7907_v62, %v18592_v42  ;;  %v9462_v29 = vpop.f32.mrf.mxu0  ;;  %v18941_v19 = vadd.f32 %v18856_v28, %v7962_v55  ;;  %v19761_v28 = vld [vmem:[#allocation23_spill] sm:$0xff] }
 0x3f6   : > { %v13758_v37 = vpop.f32.mrf.mxu1  ;;  %14045 = vmatmul.mubr.bf16.gmra.mxu1 %v12514_v23  ;;  %v18944_v54 = vpop.f32.mrf.mxu0  ;;  %v18947_v47 = vadd.f32 %v18866_v26, %v7960_v60 }
 0x3f7   : > { %v7965_v27 = vadd.f32 %v13758_v37, %v18599_v2 }
 0x3f8   : > { %v7920_v21 = vpop.f32.mrf.mxu1  ;;  %v18950_v57 = vpop.f32.mrf.mxu0 }
 0x3f9   : > { %v7963_v13 = vadd.f32 %v7920_v21, %v19760_v52  ;;  %v18953_v42 = vadd.f32 %v18874_v4, %v7965_v27 }
 0x3fa   : > { %v13759_v56 = vpop.f32.mrf.mxu1  ;;  %v13882_v36 = vpop.f32.mrf.mxu0 }
 0x3fb   : > { %v7966_v5 = vadd.f32 %v13759_v56, %v19761_v28  ;;  %v18957_v2 = vadd.f32 %v18883_v17, %v7963_v13 }
 0x3fc   : > { %v7923_v11 = vpop.f32.mrf.mxu1  ;;  %v9478_v26 = vpop.f32.mrf.mxu0 }
 0x3fd   : > { %v7964_v46 = vadd.f32 %v7923_v11, %v19762_v18  ;;  %v18961_v33 = vadd.f32 %v18892_v44, %v7966_v5 }
 0x3fe   : > { %v13826_v39 = vpop.f32.mrf.mxu1  ;;  %v18964_v58 = vpop.f32.mrf.mxu0 }
 0x3ff   : > { %v9077_v8 = vadd.f32 %v13826_v39, %v18780_v9  ;;  %v18966_v4 = vadd.f32 %v8309_v7, %v7964_v46 }
 0x400   : > { %v8948_v48 = vpop.f32.mrf.mxu1  ;;  %v18969_v23 = vpop.f32.mrf.mxu0 }
 0x401   : > { %v9075_v55 = vadd.f32 %v8948_v48, %v18787_v6  ;;  %v18971_v17 = vadd.f32 %v13874_v35, %v9077_v8 }
 0x402   : > { %v13827_v62 = vpop.f32.mrf.mxu1  ;;  %v13886_v44 = vpop.f32.mrf.mxu0 }
 0x403   : > { %v18974_v60 = vadd.f32 %v13827_v62, %v18791_v3  ;;  %v18976_v37 = vadd.f32 %v9446_v30, %v9075_v55 }
 0x404   : > { %v8951_v27 = vpop.f32.mrf.mxu1  ;;  %v9494_v7 = vpop.f32.mrf.mxu0 }
 0x405   : > { %v18979_v9 = vadd.f32 %v8951_v27, %v18795_v25 }
 0x406   : > { %v13830_v21 = vpop.f32.mrf.mxu1  ;;  %v18982_v6 = vpop.f32.mrf.mxu0 }
 0x407   : > { %v9081_v52 = vadd.f32 %v13830_v21, %v18798_v43 }
 0x408   : > { %v8964_v13 = vpop.f32.mrf.mxu1  ;;  %v18985_v56 = vpop.f32.mrf.mxu0 }
 0x409   : > { %v9079_v35 = vadd.f32 %v8964_v13, %v18804_v34  ;;  %v18987_v3 = vadd.f32 %v13878_v1, %v9081_v52 }
 0x40a   : > { %v13831_v28 = vpop.f32.mrf.mxu1  ;;  %v13890_v5 = vpop.f32.mrf.mxu0 }
 0x40b   : > { %v18990_v30 = vadd.f32 %v13831_v28, %v18807_v38  ;;  %v18992_v25 = vadd.f32 %v9462_v29, %v9079_v35 }
 0x40c   : > { %v8967_v11 = vpop.f32.mrf.mxu1  ;;  %v9510_v43 = vpop.f32.mrf.mxu0 }
 0x40d   : > { %v18995_v18 = vadd.f32 %v8967_v11, %v18810_v10 }
 0x40e   : > { %v13834_v46 = vpop.f32.mrf.mxu1  ;;  %v18998_v34 = vpop.f32.mrf.mxu0 }
 0x40f   : > { %v9085_v39 = vadd.f32 %v13834_v46, %v18813_v51 }
 0x410   : > { %v8980_v8 = vpop.f32.mrf.mxu1  ;;  %v19001_v48 = vpop.f32.mrf.mxu0 }
 0x411   : > { %v9083_v1 = vadd.f32 %v8980_v8, %v18816_v24  ;;  %v19003_v38 = vadd.f32 %v13882_v36, %v9085_v39 }
 0x412   : > { %v13835_v55 = vpop.f32.mrf.mxu1  ;;  %v13894_v62 = vpop.f32.mrf.mxu0 }
 0x413   : > { %v19006_v29 = vadd.f32 %v13835_v55, %v18819_v40  ;;  %v19008_v10 = vadd.f32 %v9478_v26, %v9083_v1 }
 0x414   : > { %v8983_v27 = vpop.f32.mrf.mxu1  ;;  %v9526_v51 = vpop.f32.mrf.mxu0 }
 0x415   : > { %v19011_v21 = vadd.f32 %v8983_v27, %v18828_v0 }
 0x416   : > { %v13838_v52 = vpop.f32.mrf.mxu1  ;;  %v19014_v35 = vpop.f32.mrf.mxu0 }
 0x417   : > { %v9089_v13 = vadd.f32 %v13838_v52, %v18837_v61 }
 0x418   : > { %v8996_v24 = vpop.f32.mrf.mxu1  ;;  %v19024_v0 = vpop.f32.mrf.mxu0 }
 0x419   : > { %v9087_v36 = vadd.f32 %v8996_v24, %v18844_v15  ;;  %v19017_v28 = vadd.f32 %v13886_v44, %v9089_v13 }
 0x41a   : > { %v13839_v40 = vpop.f32.mrf.mxu1  ;;  %v13898_v55 = vpop.f32.mrf.mxu0 }
 0x41b   : > { %v19020_v11 = vadd.f32 %v13839_v40, %v18850_v50  ;;  %v19022_v26 = vadd.f32 %v9494_v7, %v9087_v36 }
 0x41c   : > { %v8999_v46 = vpop.f32.mrf.mxu1  ;;  %v9542_v13 = vpop.f32.mrf.mxu0 }
 0x41d   : > { %v19027_v39 = vadd.f32 %v8999_v46, %v18859_v32 }
 0x41e   : > { %v13842_v61 = vpop.f32.mrf.mxu1  ;;  %v19042_v40 = vpop.f32.mrf.mxu0 }
 0x41f   : > { %v9093_v8 = vadd.f32 %v13842_v61, %v18869_v63 }
 0x420   : > { %v9012_v1 = vpop.f32.mrf.mxu1  ;;  %v19052_v61 = vpop.f32.mrf.mxu0 }
 0x421   : > { %v9091_v15 = vadd.f32 %v9012_v1, %v18878_v49  ;;  %v19031_v44 = vadd.f32 %v13890_v5, %v9093_v8 }
 0x422   : > { %v13843_v27 = vpop.f32.mrf.mxu1 }
 0x423   : > { %v19034_v50 = vadd.f32 %v13843_v27, %v18886_v53  ;;  %v19036_v7 = vadd.f32 %v9510_v43, %v9091_v15  ;;  %v13902_v15 = vpop.f32.mrf.mxu0 }
 0x424   : > { %v9015_v52 = vpop.f32.mrf.mxu1 }
 0x425   : > { %v19039_v32 = vadd.f32 %v9015_v52, %v18895_v12 }
 0x426   : > { %v13846_v24 = vpop.f32.mrf.mxu1 }
 0x427   : > { %v9097_v63 = vadd.f32 %v13846_v24, %v18901_v41  ;;  %v9558_v24 = vpop.f32.mrf.mxu0 }
 0x428   : > { %v9028_v36 = vpop.f32.mrf.mxu1 }
 0x429   : > { %v9095_v49 = vadd.f32 %v9028_v36, %v18907_v59  ;;  %v19045_v5 = vadd.f32 %v13894_v62, %v9097_v63 }
 0x42a   : > { %v13847_v46 = vpop.f32.mrf.mxu1 }
 0x42b   : > { %v19048_v53 = vadd.f32 %v13847_v46, %v18914_v22  ;;  %v19050_v43 = vadd.f32 %v9526_v51, %v9095_v49  ;;  %v19069_v49 = vpop.f32.mrf.mxu0 }
 0x42c   : > { %v9031_v12 = vpop.f32.mrf.mxu1  ;;  %19763 = vst [vmem:[#allocation39_spill] sm:$0xff] %v19069_v49 }
 0x42d   : > { %v19055_v8 = vadd.f32 %v9031_v12, %v18923_v16 }
 0x42e   : > { %v13850_v41 = vpop.f32.mrf.mxu1 }
 0x42f   : > { %v9101_v1 = vadd.f32 %v13850_v41, %v18933_v14 }
 0x430   : > { %v9044_v27 = vpop.f32.mrf.mxu1 }
 0x431   : > { %v9099_v59 = vadd.f32 %v9044_v27, %v18937_v31  ;;  %v19059_v62 = vadd.f32 %v13898_v55, %v9101_v1 }
 0x432   : > { %v13851_v52 = vpop.f32.mrf.mxu1 }
 0x433   : > { %v19062_v22 = vadd.f32 %v13851_v52, %v18941_v19  ;;  %v19064_v51 = vadd.f32 %v9542_v13, %v9099_v59  ;;  %v19075_v19 = vpop.f32.mrf.mxu0 }
 0x434   : > { %v9047_v63 = vpop.f32.mrf.mxu1  ;;  %19764 = vst [vmem:[#allocation41_spill] sm:$0xff] %v19075_v19 }
 0x435   : > { %v19067_v16 = vadd.f32 %v9047_v63, %v18947_v47  ;;  %v19085_v59 = vpop.f32.mrf.mxu0 }
 0x436   : > { %v13854_v36 = vpop.f32.mrf.mxu1 }
 0x437   : > { %v9105_v14 = vadd.f32 %v13854_v36, %v18953_v42  ;;  %v19093_v63 = vpop.f32.mrf.mxu0 }
 0x438   : > { %v9060_v46 = vpop.f32.mrf.mxu1 }
 0x439   : > { %v9103_v31 = vadd.f32 %v9060_v46, %v18957_v2  ;;  %v19073_v55 = vadd.f32 %v13902_v15, %v9105_v14  ;;  %v19097_v36 = vpop.f32.mrf.mxu0 }
 0x43a   : > { %v13855_v12 = vpop.f32.mrf.mxu1 }
 0x43b   : > { %v19078_v13 = vadd.f32 %v13855_v12, %v18961_v33  ;;  %v19080_v41 = vadd.f32 %v9558_v24, %v9103_v31  ;;  %v19107_v31 = vpop.f32.mrf.mxu0 }
 0x43c   : > { %v9063_v47 = vpop.f32.mrf.mxu1 }
 0x43d   : > { %v19083_v1 = vadd.f32 %v9063_v47, %v18966_v4 }
 0x43e   : > { %v13922_v27 = vpop.f32.mrf.mxu1 }
 0x43f   : > { %19765 = vst [vmem:[#allocation43_spill] sm:$0xff] %v19083_v1  ;;  %v19088_v42 = vadd.f32 %v13922_v27, %v18971_v17  ;;  %v19111_v47 = vpop.f32.mrf.mxu0 }
 0x440   : > { %v9832_v2 = vpop.f32.mrf.mxu1 }
 0x441   : > { %v19091_v15 = vadd.f32 %v9832_v2, %v18976_v37 }
 0x442   : > { %v13923_v52 = vpop.f32.mrf.mxu1 }
 0x444   : > { %v19095_v33 = vpop.f32.mrf.mxu1 }
 0x446   : > { %v13926_v24 = vpop.f32.mrf.mxu1 }
 0x447   : > { %v19100_v4 = vadd.f32 %v13926_v24, %v18987_v3 }
 0x448   : > { %v9848_v14 = vpop.f32.mrf.mxu1 }
 0x449   : > { %v19103_v46 = vadd.f32 %v9848_v14, %v18992_v25  ;;  %v19121_v25 = vpop.f32.mrf.mxu0 }
 0x44a   : > { %v19105_v17 = vpop.f32.mrf.mxu1 }
 0x44b   : > { %19766 = vst [vmem:[#allocation45_spill] sm:$0xff] %v19103_v46  ;;  %v19125_v19 = vpop.f32.mrf.mxu0 }
 0x44c   : > { %v19109_v37 = vpop.f32.mrf.mxu1 }
 0x44e   : > { %v13930_v12 = vpop.f32.mrf.mxu1 }
 0x44f   : > { %v19114_v27 = vadd.f32 %v13930_v12, %v19003_v38 }
 0x450   : > { %v9864_v2 = vpop.f32.mrf.mxu1 }
 0x451   : > { %19767 = vst [vmem:[#allocation47_spill] sm:$0xff] %v19114_v27  ;;  %v19117_v3 = vadd.f32 %v9864_v2, %v19008_v10  ;;  %v19135_v10 = vpop.f32.mrf.mxu0 }
 0x452   : > { %v19119_v24 = vpop.f32.mrf.mxu1 }
 0x453   : > { %19768 = vst [vmem:[#allocation49_spill] sm:$0xff] %v19117_v3  ;;  %19769 = vst [vmem:[#allocation52_spill] sm:$0xff] %v19119_v24  ;;  %v19139_v24 = vpop.f32.mrf.mxu0 }
 0x454   : > { %v19123_v14 = vpop.f32.mrf.mxu1 }
 0x455   : > { %19770 = vst [vmem:[#allocation50_spill] sm:$0xff] %v19123_v14 }
 0x456   : > { %v13934_v46 = vpop.f32.mrf.mxu1 }
 0x457   : > { %v19128_v1 = vadd.f32 %v13934_v46, %v19017_v28 }
 0x458   : > { %v9880_v49 = vpop.f32.mrf.mxu1 }
 0x459   : > { %19771 = vst [vmem:[#allocation54_spill] sm:$0xff] %v19128_v1  ;;  %v19131_v38 = vadd.f32 %v9880_v49, %v19022_v26  ;;  %v19149_v26 = vpop.f32.mrf.mxu0 }
 0x45a   : > { %v19133_v12 = vpop.f32.mrf.mxu1 }
 0x45b   : > { %19772 = vst [vmem:[#allocation51_spill] sm:$0xff] %v19131_v38  ;;  %19773 = vst [vmem:[#allocation53_spill] sm:$0xff] %v19133_v12  ;;  %v19153_v1 = vpop.f32.mrf.mxu0 }
 0x45c   : > { %v19137_v2 = vpop.f32.mrf.mxu1 }
 0x45d   : > { %19774 = vst [vmem:[#allocation56_spill] sm:$0xff] %v19137_v2 }
 0x45e   : > { %v13938_v3 = vpop.f32.mrf.mxu1 }
 0x45f   : > { %v19142_v14 = vadd.f32 %v13938_v3, %v19031_v44 }
 0x460   : > { %v9896_v27 = vpop.f32.mrf.mxu1 }
 0x461   : > { %19775 = vst [vmem:[#allocation55_spill] sm:$0xff] %v19142_v14  ;;  %v19145_v28 = vadd.f32 %v9896_v27, %v19036_v7  ;;  %v19163_v7 = vpop.f32.mrf.mxu0 }
 0x462   : > { %v19147_v46 = vpop.f32.mrf.mxu1 }
 0x463   : > { %19776 = vst [vmem:[#allocation58_spill] sm:$0xff] %v19145_v28  ;;  %19777 = vst [vmem:[#allocation57_spill] sm:$0xff] %v19147_v46  ;;  %v19167_v14 = vpop.f32.mrf.mxu0 }
 0x464   : > { %v19151_v49 = vpop.f32.mrf.mxu1 }
 0x465   : > { %19778 = vst [vmem:[#allocation60_spill] sm:$0xff] %v19151_v49 }
 0x466   : > { %v13942_v38 = vpop.f32.mrf.mxu1 }
 0x467   : > { %v19156_v2 = vadd.f32 %v13942_v38, %v19045_v5 }
 0x468   : > { %v9912_v12 = vpop.f32.mrf.mxu1 }
 0x469   : > { %19779 = vst [vmem:[#allocation59_spill] sm:$0xff] %v19156_v2  ;;  %v19159_v44 = vadd.f32 %v9912_v12, %v19050_v43  ;;  %v19177_v43 = vpop.f32.mrf.mxu0 }
 0x46a   : > { %v19161_v3 = vpop.f32.mrf.mxu1 }
 0x46b   : > { %19780 = vst [vmem:[#allocation61_spill] sm:$0xff] %v19159_v44  ;;  %19781 = vst [vmem:[#allocation62_spill] sm:$0xff] %v19161_v3  ;;  %v19181_v3 = vpop.f32.mrf.mxu0 }
 0x46c   : > { %v19165_v27 = vpop.f32.mrf.mxu1 }
 0x46d   : > { %19782 = vst [vmem:[#allocation63_spill] sm:$0xff] %v19165_v27 }
 0x46e   : > { %v13946_v28 = vpop.f32.mrf.mxu1 }
 0x46f   : > { %v19170_v49 = vadd.f32 %v13946_v28, %v19059_v62 }
 0x470   : > { %v9928_v46 = vpop.f32.mrf.mxu1 }
 0x471   : > { %v19173_v5 = vadd.f32 %v9928_v46, %v19064_v51  ;;  %v9576_v51 = vadd.f32 %v18920_v45, %v18974_v60  ;;  %v19193_v46 = vpop.f32.mrf.mxu0 }
 0x472   : > { %v19175_v38 = vpop.f32.mrf.mxu1 }
 0x473   : > { %19783 = vst [vmem:[#allocation9_spill] sm:$0xff] %v19173_v5  ;;  %19784 = vst [vmem:[#allocation8_spill] sm:$0xff] %v19175_v38  ;;  %v9574_v38 = vadd.f32 %v18930_v20, %v18979_v9  ;;  %v19207_v45 = vpop.f32.mrf.mxu0  ;;  %v9580_v20 = vadd.f32 %v18944_v54, %v18990_v30  ;;  %v9578_v9 = vadd.f32 %v18950_v57, %v18995_v18  ;;  %v11323_v18 = vld [vmem:[%s14432_s9 + $0x10] sm:$0xff] }
 0x474   : > { %v19179_v12 = vpop.f32.mrf.mxu1  ;;  %v19226_v54 = vadd.f32 %v18969_v23, %v19011_v21  ;;  %v19230_v57 = vadd.f32 %v18982_v6, %v19020_v11  ;;  %v19234_v30 = vadd.f32 %v18985_v56, %v19027_v39  ;;  %v19254_v39 = vadd.f32 %v19014_v35, %v19048_v53 }
 0x475   : > { %19785 = vst [vmem:[#allocation64_spill] sm:$0xff] %v19179_v12  ;;  %v9962_v12 = vadd.f32 %v13923_v52, %v9576_v51  ;;  %v10713_v52 = vadd.f32 %v19093_v63, %v19091_v15  ;;  %v19241_v63 = vpop.f32.mrf.mxu0  ;;  %v9966_v11 = vadd.f32 %v19105_v17, %v9580_v20  ;;  %v9964_v56 = vadd.f32 %v19109_v37, %v9578_v9  ;;  %v19788_v9 = vld [vmem:[#allocation41_spill] sm:$0xff] }
 0x476   : > { %v13950_v44 = vpop.f32.mrf.mxu1  ;;  %v19261_v17 = vadd.f32 %v19024_v0, %v19055_v8  ;;  %v19269_v35 = vadd.f32 %v19052_v61, %v19067_v16  ;;  %v10719_v53 = vadd.f32 %v19111_v47, %v19100_v4  ;;  %v19789_v47 = vld [vmem:[#allocation45_spill] sm:$0xff] }
 0x477   : > { %v19184_v27 = vadd.f32 %v13950_v44, %v19073_v55  ;;  %v10715_v55 = vadd.f32 %v19085_v59, %v19088_v42  ;;  %v19218_v59 = vld [vmem:[%s19468_s6] ss:$0 sm:$0xff]  ;;  %v10716_v15 = vadd.f32 %v19097_v36, %v9962_v12 }
 0x478   : > { %v9944_v2 = vpop.f32.mrf.mxu1 }
 0x479   : > { %v19187_v62 = vadd.f32 %v9944_v2, %v19080_v41  ;;  %v19204_v41 = vld [vmem:[%s19467_s5] ss:$0 sm:$0xff]  ;;  %v9960_v2 = vadd.f32 %v19095_v33, %v9574_v38  ;;  %v9584_v33 = vadd.f32 %v18964_v58, %v19006_v29  ;;  %v19238_v58 = vadd.f32 %v18998_v34, %v19034_v50 }
 0x47a   : > { %v19189_v28 = vpop.f32.mrf.mxu1  ;;  %v19250_v34 = vadd.f32 %v19001_v48, %v19039_v32  ;;  %v11321_v50 = vld [vmem:[%s14432_s9] sm:$0xff]  ;;  %v19265_v48 = vadd.f32 %v19042_v40, %v19062_v22  ;;  %v11324_v32 = vld [vmem:[%s14432_s9 + $0x18] sm:$0xff] }
 0x47b   : > { %v10714_v6 = vadd.f32 %v19107_v31, %v9960_v2  ;;  %v19787_v22 = vld [vmem:[#allocation43_spill] sm:$0xff] }
 0x47c   : > { %v19195_v5 = vpop.f32.mrf.mxu1  ;;  %v19284_v61 = vadd.f32 %v19788_v9, %v19787_v22 }
 0x47e   : > { %v14018_v44 = vpop.f32.mrf.mxu1 }
 0x47f   : > { %v11213_v60 = vadd.f32 %v14018_v44, %v10715_v55 }
 0x480   : > { %v11084_v42 = vpop.f32.mrf.mxu1 }
 0x481   : > { %v11252_v38 = vmul.f32 %v19204_v41, %v11213_v60  ;;  %v11211_v51 = vadd.f32 %v11084_v42, %v10713_v52  ;;  %v19274_v60 = vpop.f32.mrf.mxu0  ;;  %v19786_v52 = vld [vmem:[#allocation39_spill] sm:$0xff]  ;;  %v11322_v42 = vld [vmem:[%s14432_s9 + $0x8] sm:$0xff] }
 0x482   : > { %v14019_v29 = vpop.f32.mrf.mxu1  ;;  %v19278_v20 = vadd.f32 %v19786_v52, %v19078_v13  ;;  %v19792_v52 = vld [vmem:[#allocation49_spill] sm:$0xff] }
 0x483   : > { %v11291_v36 = vadd.f32 %v19218_v59, %v11252_v38  ;;  %v11250_v23 = vmul.f32 %v19204_v41, %v11211_v51  ;;  %v11214_v21 = vadd.f32 %v14019_v29, %v10716_v15  ;;  %v10717_v38 = vadd.f32 %v19121_v25, %v19789_v47 }
 0x484   : > { %v11087_v12 = vpop.f32.mrf.mxu1  ;;  %v10718_v29 = vadd.f32 %v19135_v10, %v9964_v56 }
 0x485   : > { %v11355_v55 = vadd.f32 %v11323_v18, %v11291_v36  ;;  %v11289_v44 = vadd.f32 %v19218_v59, %v11250_v23  ;;  %v11253_v31 = vmul.f32 %v19204_v41, %v11214_v21  ;;  %v11212_v2 = vadd.f32 %v11087_v12, %v10714_v6 }
 0x486   : > { %v14022_v37 = vpop.f32.mrf.mxu1  ;;  %v10720_v18 = vadd.f32 %v19125_v19, %v9966_v11 }
 0x487   : > { %v11353_v0 = vadd.f32 %v11321_v50, %v11289_v44  ;;  %v11292_v8 = vadd.f32 %v19218_v59, %v11253_v31  ;;  %v11251_v40 = vmul.f32 %v19204_v41, %v11212_v2  ;;  %v11387_v16 = vmul.f32 0.1, %v11355_v55  ;;  %v19790_v50 = vld [vmem:[#allocation47_spill] sm:$0xff]  ;;  %v19791_v44 = vld [vmem:[#allocation52_spill] sm:$0xff]  ;;  %v19296_v31 = vpop.f32.mrf.mxu0 }
 0x488   : > { %v11217_v4 = vadd.f32 %v14022_v37, %v10719_v53  ;;  %v11100_v51 = vpop.f32.mrf.mxu1  ;;  %v10723_v12 = vadd.f32 %v19139_v24, %v19790_v50  ;;  %v9970_v25 = vadd.f32 %v19791_v44, %v9584_v33  ;;  %v11327_v53 = vld [vmem:[%s14432_s9 + $0x30] sm:$0xff]  ;;  %v11325_v33 = vld [vmem:[%s14432_s9 + $0x20] sm:$0xff] }
 0x489   : > { %v11356_v13 = vadd.f32 %v11324_v32, %v11292_v8  ;;  %v11290_v15 = vadd.f32 %v19218_v59, %v11251_v40  ;;  %v11385_v36 = vmul.f32 0.1, %v11353_v0  ;;  %v11215_v21 = vadd.f32 %v11100_v51, %v10717_v38  ;;  %v19315_v51 = vpop.f32.mrf.mxu0 }
 0x48a   : > { %v11256_v23 = vmul.f32 %v19204_v41, %v11217_v4  ;;  %v14023_v6 = vpop.f32.mrf.mxu1  ;;  %v11419_v10 = vmax.f32 %v11355_v55, %v11387_v16  ;;  %v10721_v8 = vadd.f32 %v19149_v26, %v19792_v52  ;;  %v11328_v16 = vld [vmem:[%s14432_s9 + $0x38] sm:$0xff]  ;;  %v11331_v52 = vld [vmem:[%s14432_s9 + $0x50] sm:$0xff] }
 0x48b   : > { %v11388_v2 = vmul.f32 0.1, %v11356_v13  ;;  %v11354_v32 = vadd.f32 %v11322_v42, %v11290_v15  ;;  %v11218_v19 = vadd.f32 %v14023_v6, %v10720_v18  ;;  %v11254_v56 = vmul.f32 %v19204_v41, %v11215_v21  ;;  %v19793_v42 = vld [vmem:[#allocation50_spill] sm:$0xff] }
 0x48c   : > { %v11295_v11 = vadd.f32 %v19218_v59, %v11256_v23  ;;  %v11103_v37 = vpop.f32.mrf.mxu1  ;;  %v9968_v4 = vadd.f32 %v19793_v42, %v19226_v54  ;;  %v11417_v47 = vmax.f32 %v11353_v0, %v11385_v36  ;;  %v11326_v36 = vld [vmem:[%s14432_s9 + $0x28] sm:$0xff]  ;;  %v10724_v6 = vadd.f32 %v19153_v1, %v9970_v25  ;;  %v19796_v42 = vld [vmem:[#allocation54_spill] sm:$0xff] }
 0x48d   : > { %v11420_v24 = vmax.f32 %v11356_v13, %v11388_v2  ;;  %v11386_v40 = vmul.f32 0.1, %v11354_v32  ;;  %v11257_v22 = vmul.f32 %v19204_v41, %v11218_v19  ;;  %v11216_v9 = vadd.f32 %v11103_v37, %v10718_v29 }
 0x48e   : > { %v11359_v55 = vadd.f32 %v11327_v53, %v11295_v11  ;;  %v11293_v26 = vadd.f32 %v19218_v59, %v11254_v56  ;;  %v14026_v38 = vpop.f32.mrf.mxu1  ;;  %v10722_v37 = vadd.f32 %v19163_v7, %v9968_v4  ;;  %v10727_v7 = vadd.f32 %v19167_v14, %v19796_v42 }
 0x48f   : > { %v12665_v13 = vpack.c.bf16 %v11420_v24, %v11419_v10  ;;  %v11418_v15 = vmax.f32 %v11354_v32, %v11386_v40  ;;  %v11296_v18 = vadd.f32 %v19218_v59, %v11257_v22  ;;  %v11255_v54 = vmul.f32 %v19204_v41, %v11216_v9  ;;  %v19794_v32 = vld [vmem:[#allocation53_spill] sm:$0xff]  ;;  %v19795_v40 = vld [vmem:[#allocation56_spill] sm:$0xff] }
 0x490   : > { %v11391_v0 = vmul.f32 0.1, %v11359_v55  ;;  %v11357_v29 = vadd.f32 %v11325_v33, %v11293_v26  ;;  %v11221_v23 = vadd.f32 %v14026_v38, %v10723_v12  ;;  %v11116_v21 = vpop.f32.mrf.mxu1  ;;  %v9974_v19 = vadd.f32 %v19794_v32, %v19230_v57  ;;  %v19327_v12 = vpop.f32.mrf.mxu0 }
 0x491   : > { %12737 = vst [vmem:[%s19311_s12 + $0x8] sm:$0xff] %v12665_v13   ;;  %v12660_v50 = vpack.c.bf16 %v11418_v15, %v11417_v47  ;;  %v11360_v44 = vadd.f32 %v11328_v16, %v11296_v18  ;;  %v11294_v2 = vadd.f32 %v19218_v59, %v11255_v54  ;;  %v11219_v53 = vadd.f32 %v11116_v21, %v10721_v8  ;;  %v11329_v16 = vld [vmem:[%s14432_s9 + $0x40] sm:$0xff]  ;;  %v11332_v15 = vld [vmem:[%s14432_s9 + $0x58] sm:$0xff] }
 0x492   : > { %v11389_v10 = vmul.f32 0.1, %v11357_v29  ;;  %v11260_v11 = vmul.f32 %v19204_v41, %v11221_v23  ;;  %v14027_v56 = vpop.f32.mrf.mxu1  ;;  %v9972_v57 = vadd.f32 %v19795_v40, %v19234_v30  ;;  %v11423_v33 = vmax.f32 %v11359_v55, %v11391_v0  ;;  %v19797_v30 = vld [vmem:[#allocation51_spill] sm:$0xff]  ;;  %v19800_v40 = vld [vmem:[#allocation60_spill] sm:$0xff] }
 0x493   : > { %12661 = vst [vmem:[%s19311_s12] sm:$0xff] %v12660_v50   ;;  %v11392_v1 = vmul.f32 0.1, %v11360_v44  ;;  %v11358_v25 = vadd.f32 %v11326_v36, %v11294_v2  ;;  %v11258_v24 = vmul.f32 %v19204_v41, %v11219_v53  ;;  %v11222_v8 = vadd.f32 %v14027_v56, %v10724_v6  ;;  %v19344_v36 = vpop.f32.mrf.mxu0  ;;  %v11330_v56 = vld [vmem:[%s14432_s9 + $0x48] sm:$0xff] }
 0x494   : > { %v11299_v22 = vadd.f32 %v19218_v59, %v11260_v11  ;;  %v11119_v9 = vpop.f32.mrf.mxu1  ;;  %v10725_v55 = vadd.f32 %v19177_v43, %v19797_v30  ;;  %v10728_v0 = vadd.f32 %v19181_v3, %v9974_v19  ;;  %v11421_v14 = vmax.f32 %v11357_v29, %v11389_v10  ;;  %v19798_v29 = vld [vmem:[#allocation57_spill] sm:$0xff] }
 0x495   : > { %v11424_v4 = vmax.f32 %v11360_v44, %v11392_v1  ;;  %v11390_v47 = vmul.f32 0.1, %v11358_v25  ;;  %v11297_v26 = vadd.f32 %v19218_v59, %v11258_v24  ;;  %v11261_v38 = vmul.f32 %v19204_v41, %v11222_v8  ;;  %v19357_v8 = vpop.f32.mrf.mxu0 }
 0x496   : > { %v11363_v13 = vadd.f32 %v11331_v52, %v11299_v22  ;;  %v11220_v18 = vadd.f32 %v11119_v9, %v10722_v37  ;;  %v14030_v54 = vpop.f32.mrf.mxu1  ;;  %v10726_v19 = vadd.f32 %v19193_v46, %v9972_v57  ;;  %v9978_v10 = vadd.f32 %v19798_v29, %v19238_v58  ;;  %v19799_v52 = vld [vmem:[#allocation55_spill] sm:$0xff]  ;;  %v11335_v46 = vld [vmem:[%s14432_s9 + $0x70] sm:$0xff] }
 0x497   : > { %v12675_v23 = vpack.c.bf16 %v11424_v4, %v11423_v33  ;;  %v11422_v21 = vmax.f32 %v11358_v25, %v11390_v47  ;;  %v11300_v6 = vadd.f32 %v19218_v59, %v11261_v38  ;;  %v11361_v44 = vadd.f32 %v11329_v16, %v11297_v26  ;;  %v11333_v47 = vld [vmem:[%s14432_s9 + $0x60] sm:$0xff] }
 0x498   : > { %v11395_v50 = vmul.f32 0.1, %v11363_v13  ;;  %v11259_v2 = vmul.f32 %v19204_v41, %v11220_v18  ;;  %v11225_v53 = vadd.f32 %v14030_v54, %v10727_v7  ;;  %v11132_v32 = vpop.f32.mrf.mxu1  ;;  %v10731_v24 = vadd.f32 %v19207_v45, %v19799_v52  ;;  %v11336_v54 = vld [vmem:[%s14432_s9 + $0x78] sm:$0xff] }
 0x499   : > { %12739 = vst [vmem:[%s19311_s12 + $0x18] sm:$0xff] %v12675_v23   ;;  %v12670_v11 = vpack.c.bf16 %v11422_v21, %v11421_v14  ;;  %v11364_v43 = vadd.f32 %v11332_v15, %v11300_v6  ;;  %v11223_v3 = vadd.f32 %v11132_v32, %v10725_v55  ;;  %v9976_v33 = vadd.f32 %v19800_v40, %v19250_v34  ;;  %v19801_v55 = vld [vmem:[#allocation58_spill] sm:$0xff]  ;;  %v13994_v14 = vpop.f32.mrf.mxu0 }
 0x49a   : > { %v11298_v37 = vadd.f32 %v19218_v59, %v11259_v2  ;;  %v11264_v1 = vmul.f32 %v19204_v41, %v11225_v53  ;;  %v14031_v25 = vpop.f32.mrf.mxu1  ;;  %v11427_v9 = vmax.f32 %v11363_v13, %v11395_v50  ;;  %v11393_v42 = vmul.f32 0.1, %v11361_v44 }
 0x49b   : > { %12738 = vst [vmem:[%s19311_s12 + $0x10] sm:$0xff] %v12670_v11   ;;  %v11396_v22 = vmul.f32 0.1, %v11364_v43  ;;  %v11262_v58 = vmul.f32 %v19204_v41, %v11223_v3  ;;  %v11226_v57 = vadd.f32 %v14031_v25, %v10728_v0  ;;  %v10729_v13 = vadd.f32 %v19241_v63, %v19801_v55  ;;  %v11334_v11 = vld [vmem:[%s14432_s9 + $0x68] sm:$0xff]  ;;  %v10682_v52 = vpop.f32.mrf.mxu0 }
 0x49c   : > { %v11362_v7 = vadd.f32 %v11330_v56, %v11298_v37  ;;  %v11303_v4 = vadd.f32 %v19218_v59, %v11264_v1  ;;  %v11135_v26 = vpop.f32.mrf.mxu1  ;;  %v10732_v0 = vadd.f32 %v19274_v60, %v9978_v10  ;;  %v11425_v2 = vmax.f32 %v11361_v44, %v11393_v42  ;;  %v19802_v1 = vld [vmem:[#allocation59_spill] sm:$0xff] }
 0x49d   : > { %v11428_v45 = vmax.f32 %v11364_v43, %v11396_v22  ;;  %v11301_v16 = vadd.f32 %v19218_v59, %v11262_v58  ;;  %v11265_v38 = vmul.f32 %v19204_v41, %v11226_v57  ;;  %v11224_v34 = vadd.f32 %v11135_v26, %v10726_v19  ;;  %v11339_v58 = vld [vmem:[%s14432_s9 + $0x90] sm:$0xff] }
 0x49e   : > { %v11394_v15 = vmul.f32 0.1, %v11362_v7  ;;  %v11367_v18 = vadd.f32 %v11335_v46, %v11303_v4  ;;  %v14034_v30 = vpop.f32.mrf.mxu1  ;;  %v10730_v19 = vadd.f32 %v19296_v31, %v9976_v33  ;;  %v10735_v25 = vadd.f32 %v19315_v51, %v19802_v1  ;;  %v19804_v31 = vld [vmem:[#allocation63_spill] sm:$0xff] }
 0x49f   : > { %v12685_v23 = vpack.c.bf16 %v11428_v45, %v11427_v9  ;;  %v11365_v21 = vadd.f32 %v11333_v47, %v11301_v16  ;;  %v11304_v6 = vadd.f32 %v19218_v59, %v11265_v38  ;;  %v11263_v50 = vmul.f32 %v19204_v41, %v11224_v34 }
 0x4a0   : > { %v11426_v53 = vmax.f32 %v11362_v7, %v11394_v15  ;;  %v11399_v32 = vmul.f32 0.1, %v11367_v18  ;;  %v11229_v43 = vadd.f32 %v14034_v30, %v10731_v24  ;;  %v11148_v56 = vpop.f32.mrf.mxu1  ;;  %v19803_v24 = vld [vmem:[#allocation62_spill] sm:$0xff]  ;;  %v9980_v33 = vadd.f32 %v19804_v31, %v19261_v17  ;;  %v11337_v7 = vld [vmem:[%s14432_s9 + $0x80] sm:$0xff]  ;;  %v19805_v15 = vld [vmem:[#allocation61_spill] sm:$0xff] }
 0x4a1   : > { %12741 = vst [vmem:[%s19311_s12 + $0x28] sm:$0xff] %v12685_v23   ;;  %v11368_v3 = vadd.f32 %v11336_v54, %v11304_v6  ;;  %v11302_v63 = vadd.f32 %v19218_v59, %v11263_v50  ;;  %v11227_v60 = vadd.f32 %v11148_v56, %v10729_v13  ;;  %v11397_v10 = vmul.f32 0.1, %v11365_v21  ;;  %v13995_v54 = vpop.f32.mrf.mxu0  ;;  %v11338_v50 = vld [vmem:[%s14432_s9 + $0x88] sm:$0xff] }
 0x4a2   : > { %v12680_v29 = vpack.c.bf16 %v11426_v53, %v11425_v2  ;;  %v11268_v37 = vmul.f32 %v19204_v41, %v11229_v43  ;;  %v14035_v44 = vpop.f32.mrf.mxu1  ;;  %v9982_v40 = vadd.f32 %v19803_v24, %v19254_v39  ;;  %v11431_v9 = vmax.f32 %v11367_v18, %v11399_v32  ;;  %v19807_v24 = vld [vmem:[#allocation64_spill] sm:$0xff] }
 0x4a3   : > { %v11400_v22 = vmul.f32 0.1, %v11368_v3  ;;  %v11366_v46 = vadd.f32 %v11334_v11, %v11302_v63  ;;  %v11266_v57 = vmul.f32 %v19204_v41, %v11227_v60  ;;  %v11230_v4 = vadd.f32 %v14035_v44, %v10732_v0  ;;  %v11340_v0 = vld [vmem:[%s14432_s9 + $0x98] sm:$0xff]  ;;  %v11343_v44 = vld [vmem:[%s14432_s9 + $0xb0] sm:$0xff] }
 0x4a4   : > { %12740 = vst [vmem:[%s19311_s12 + $0x20] sm:$0xff] %v12680_v29   ;;  %v11307_v42 = vadd.f32 %v19218_v59, %v11268_v37  ;;  %v11151_v51 = vpop.f32.mrf.mxu1  ;;  %v11429_v16 = vmax.f32 %v11365_v21, %v11397_v10  ;;  %v10733_v18 = vadd.f32 %v19327_v12, %v19805_v15  ;;  %v10736_v53 = vadd.f32 %v19344_v36, %v9982_v40  ;;  %v10685_v10 = vpop.f32.mrf.mxu0  ;;  %v19806_v36 = vld [vmem:[#allocation8_spill] sm:$0xff]  ;;  %v11342_v15 = vld [vmem:[%s14432_s9 + $0xa8] sm:$0xff] }
 0x4a5   : > { %v11432_v47 = vmax.f32 %v11368_v3, %v11400_v22  ;;  %v11398_v26 = vmul.f32 0.1, %v11366_v46  ;;  %v11305_v39 = vadd.f32 %v19218_v59, %v11266_v57  ;;  %v11228_v45 = vadd.f32 %v11151_v51, %v10730_v19  ;;  %v11341_v22 = vld [vmem:[%s14432_s9 + $0xa0] sm:$0xff] }
 0x4a6   : > { %v11371_v38 = vadd.f32 %v11339_v58, %v11307_v42  ;;  %v11269_v34 = vmul.f32 %v19204_v41, %v11230_v4  ;;  %v14038_v17 = vpop.f32.mrf.mxu1  ;;  %v10734_v32 = vadd.f32 %v19357_v8, %v9980_v33  ;;  %v10739_v56 = vadd.f32 %v13994_v14, %v19170_v49  ;;  %v19808_v58 = vld [vmem:[#allocation9_spill] sm:$0xff]  ;;  %v13998_v31 = vpop.f32.mrf.mxu0 }
 0x4a7   : > { %v12695_v30 = vpack.c.bf16 %v11432_v47, %v11431_v9  ;;  %v11430_v55 = vmax.f32 %v11366_v46, %v11398_v26  ;;  %v11369_v13 = vadd.f32 %v11337_v7, %v11305_v39  ;;  %v11267_v23 = vmul.f32 %v19204_v41, %v11228_v45 }
 0x4a8   : > { %v11308_v6 = vadd.f32 %v19218_v59, %v11269_v34  ;;  %v11233_v2 = vadd.f32 %v14038_v17, %v10735_v25  ;;  %v11164_v21 = vpop.f32.mrf.mxu1  ;;  %v11403_v3 = vmul.f32 0.1, %v11371_v38  ;;  %v9986_v37 = vadd.f32 %v19806_v36, %v19265_v48  ;;  %v11345_v36 = vld [vmem:[%s14432_s9 + $0xc0] sm:$0xff] }
 0x4a9   : > { %12743 = vst [vmem:[%s19311_s12 + $0x38] sm:$0xff] %v12695_v30   ;;  %v12690_v12 = vpack.c.bf16 %v11430_v55, %v11429_v16  ;;  %v11306_v11 = vadd.f32 %v19218_v59, %v11267_v23  ;;  %v11231_v43 = vadd.f32 %v11164_v21, %v10733_v18  ;;  %v11401_v63 = vmul.f32 0.1, %v11369_v13 }
 0x4aa   : > { %v11372_v60 = vadd.f32 %v11340_v0, %v11308_v6  ;;  %v11272_v19 = vmul.f32 %v19204_v41, %v11233_v2  ;;  %v14039_v29 = vpop.f32.mrf.mxu1  ;;  %v9984_v49 = vadd.f32 %v19807_v24, %v19269_v35  ;;  %v10737_v57 = vadd.f32 %v10682_v52, %v19808_v58  ;;  %v11344_v35 = vld [vmem:[%s14432_s9 + $0xb8] sm:$0xff] }
 0x4ab   : > { %12742 = vst [vmem:[%s19311_s12 + $0x30] sm:$0xff] %v12690_v12   ;;  %v11370_v8 = vadd.f32 %v11338_v50, %v11306_v11  ;;  %v11270_v1 = vmul.f32 %v19204_v41, %v11231_v43  ;;  %v11234_v25 = vadd.f32 %v14039_v29, %v10736_v53  ;;  %v11435_v7 = vmax.f32 %v11371_v38, %v11403_v3  ;;  %v10698_v38 = vpop.f32.mrf.mxu0  ;;  %v11347_v43 = vld [vmem:[%s14432_s9 + $0xd0] sm:$0xff] }
 0x4ac   : > { %v11404_v14 = vmul.f32 0.1, %v11372_v60  ;;  %v11311_v40 = vadd.f32 %v19218_v59, %v11272_v19  ;;  %v11167_v46 = vpop.f32.mrf.mxu1  ;;  %v11433_v4 = vmax.f32 %v11369_v13, %v11401_v63  ;;  %v10740_v55 = vadd.f32 %v13995_v54, %v9986_v37 }
 0x4ad   : > { %v11402_v33 = vmul.f32 0.1, %v11370_v8  ;;  %v11309_v48 = vadd.f32 %v19218_v59, %v11270_v1  ;;  %v11273_v9 = vmul.f32 %v19204_v41, %v11234_v25  ;;  %v11232_v42 = vadd.f32 %v11167_v46, %v10734_v32  ;;  %v13999_v19 = vpop.f32.mrf.mxu0 }
 0x4ae   : > { %v11436_v51 = vmax.f32 %v11372_v60, %v11404_v14  ;;  %v11375_v47 = vadd.f32 %v11343_v44, %v11311_v40  ;;  %v14042_v26 = vpop.f32.mrf.mxu1  ;;  %v10738_v6 = vadd.f32 %v10685_v10, %v9984_v49  ;;  %v9990_v50 = vadd.f32 %v19189_v28, %v19278_v20 }
 0x4af   : > { %v11434_v39 = vmax.f32 %v11370_v8, %v11402_v33  ;;  %v11373_v45 = vadd.f32 %v11341_v22, %v11309_v48  ;;  %v11312_v16 = vadd.f32 %v19218_v59, %v11273_v9  ;;  %v11271_v52 = vmul.f32 %v19204_v41, %v11232_v42  ;;  %v10701_v33 = vpop.f32.mrf.mxu0 }
 0x4b0   : > { %v12705_v34 = vpack.c.bf16 %v11436_v51, %v11435_v7  ;;  %v11407_v17 = vmul.f32 0.1, %v11375_v47  ;;  %v11237_v18 = vadd.f32 %v14042_v26, %v10739_v56  ;;  %v11180_v30 = vpop.f32.mrf.mxu1  ;;  %v10743_v12 = vadd.f32 %v13998_v31, %v19184_v27 }
 0x4b1   : > { %v12700_v13 = vpack.c.bf16 %v11434_v39, %v11433_v4  ;;  %v11376_v0 = vadd.f32 %v11344_v35, %v11312_v16  ;;  %v11310_v23 = vadd.f32 %v19218_v59, %v11271_v52  ;;  %v11405_v2 = vmul.f32 0.1, %v11373_v45  ;;  %v11351_v39 = vld [vmem:[%s14432_s9 + $0xf0] sm:$0xff] }
 0x4b2   : > { %12745 = vst [vmem:[%s19311_s12 + $0x48] sm:$0xff] %v12705_v34   ;;  %v11276_v21 = vmul.f32 %v19204_v41, %v11237_v18  ;;  %v11235_v53 = vadd.f32 %v11180_v30, %v10737_v57  ;;  %v14043_v32 = vpop.f32.mrf.mxu1  ;;  %v9988_v3 = vadd.f32 %v19195_v5, %v19284_v61  ;;  %v11439_v63 = vmax.f32 %v11375_v47, %v11407_v17  ;;  %v11348_v61 = vld [vmem:[%s14432_s9 + $0xd8] sm:$0xff]  ;;  %v11346_v57 = vld [vmem:[%s14432_s9 + $0xc8] sm:$0xff] }
 0x4b3   : > { %12744 = vst [vmem:[%s19311_s12 + $0x40] sm:$0xff] %v12700_v13   ;;  %v11408_v54 = vmul.f32 0.1, %v11376_v0  ;;  %v11374_v11 = vadd.f32 %v11342_v15, %v11310_v23  ;;  %v11238_v56 = vadd.f32 %v14043_v32, %v10740_v55  ;;  %v10741_v8 = vadd.f32 %v10698_v38, %v19187_v62  ;;  %v11349_v38 = vld [vmem:[%s14432_s9 + $0xe0] sm:$0xff]  ;;  %v11352_v23 = vld [vmem:[%s14432_s9 + $0xf8] sm:$0xff] }
 0x4b4   : > { %v11315_v28 = vadd.f32 %v19218_v59, %v11276_v21  ;;  %v11274_v20 = vmul.f32 %v19204_v41, %v11235_v53  ;;  %v11183_v60 = vpop.f32.mrf.mxu1  ;;  %v11437_v44 = vmax.f32 %v11373_v45, %v11405_v2  ;;  %v10744_v22 = vadd.f32 %v13999_v19, %v9990_v50 }
 0x4b5   : > { %v11440_v29 = vmax.f32 %v11376_v0, %v11408_v54  ;;  %v11406_v10 = vmul.f32 0.1, %v11374_v11  ;;  %v11277_v27 = vmul.f32 %v19204_v41, %v11238_v56  ;;  %v11236_v37 = vadd.f32 %v11183_v60, %v10738_v6  ;;  %v11350_v56 = vld [vmem:[%s14432_s9 + $0xe8] sm:$0xff] }
 0x4b6   : > { %v11379_v1 = vadd.f32 %v11347_v43, %v11315_v28  ;;  %v11313_v5 = vadd.f32 %v19218_v59, %v11274_v20  ;;  %v14046_v25 = vpop.f32.mrf.mxu1  ;;  %v10742_v52 = vadd.f32 %v10701_v33, %v9988_v3 }
 0x4b7   : > { %v12715_v24 = vpack.c.bf16 %v11440_v29, %v11439_v63  ;;  %v11438_v49 = vmax.f32 %v11374_v11, %v11406_v10  ;;  %v11316_v14 = vadd.f32 %v19218_v59, %v11277_v27  ;;  %v11275_v40 = vmul.f32 %v19204_v41, %v11236_v37 }
 0x4b8   : > { %v11411_v46 = vmul.f32 0.1, %v11379_v1  ;;  %v11377_v58 = vadd.f32 %v11345_v36, %v11313_v5  ;;  %v11241_v62 = vadd.f32 %v14046_v25, %v10743_v12  ;;  %v11196_v31 = vpop.f32.mrf.mxu1 }
 0x4b9   : > { %12747 = vst [vmem:[%s19311_s12 + $0x58] sm:$0xff] %v12715_v24   ;;  %v12710_v48 = vpack.c.bf16 %v11438_v49, %v11437_v44  ;;  %v11380_v9 = vadd.f32 %v11348_v61, %v11316_v14  ;;  %v11314_v42 = vadd.f32 %v19218_v59, %v11275_v40  ;;  %v11239_v7 = vadd.f32 %v11196_v31, %v10741_v8 }
 0x4ba   : > { %v11409_v4 = vmul.f32 0.1, %v11377_v58  ;;  %v11280_v51 = vmul.f32 %v19204_v41, %v11241_v62  ;;  %v14047_v47 = vpop.f32.mrf.mxu1  ;;  %v11443_v34 = vmax.f32 %v11379_v1, %v11411_v46 }
 0x4bb   : > { %12746 = vst [vmem:[%s19311_s12 + $0x50] sm:$0xff] %v12710_v48   ;;  %v11412_v35 = vmul.f32 0.1, %v11380_v9  ;;  %v11378_v26 = vadd.f32 %v11346_v57, %v11314_v42  ;;  %v11278_v45 = vmul.f32 %v19204_v41, %v11239_v7  ;;  %v11242_v16 = vadd.f32 %v14047_v47, %v10744_v22 }
 0x4bc   : > { %v11319_v17 = vadd.f32 %v19218_v59, %v11280_v51  ;;  %v11199_v15 = vpop.f32.mrf.mxu1  ;;  %v11441_v50 = vmax.f32 %v11377_v58, %v11409_v4 }
 0x4bd   : > { %v11444_v18 = vmax.f32 %v11380_v9, %v11412_v35  ;;  %v11410_v30 = vmul.f32 0.1, %v11378_v26  ;;  %v11317_v55 = vadd.f32 %v19218_v59, %v11278_v45  ;;  %v11281_v13 = vmul.f32 %v19204_v41, %v11242_v16 }
 0x4be   : > { %v11383_v0 = vadd.f32 %v11351_v39, %v11319_v17  ;;  %v11240_v6 = vadd.f32 %v11199_v15, %v10742_v52 }
 0x4bf   : > { %v12725_v2 = vpack.c.bf16 %v11444_v18, %v11443_v34  ;;  %v11442_v21 = vmax.f32 %v11378_v26, %v11410_v30  ;;  %v11320_v53 = vadd.f32 %v19218_v59, %v11281_v13  ;;  %v11381_v32 = vadd.f32 %v11349_v38, %v11317_v55 }
 0x4c0   : > { %v11279_v12 = vmul.f32 %v19204_v41, %v11240_v6  ;;  %v11415_v11 = vmul.f32 0.1, %v11383_v0 }
 0x4c1   : > { %12749 = vst [vmem:[%s19311_s12 + $0x68] sm:$0xff] %v12725_v2   ;;  %v12720_v54 = vpack.c.bf16 %v11442_v21, %v11441_v50  ;;  %v11384_v43 = vadd.f32 %v11352_v23, %v11320_v53  ;;  %v11413_v28 = vmul.f32 0.1, %v11381_v32 }
 0x4c2   : > { %v11318_v3 = vadd.f32 %v19218_v59, %v11279_v12  ;;  %v11447_v60 = vmax.f32 %v11383_v0, %v11415_v11 }
 0x4c3   : > { %12748 = vst [vmem:[%s19311_s12 + $0x60] sm:$0xff] %v12720_v54   ;;  %v11416_v63 = vmul.f32 0.1, %v11384_v43  ;;  %v11445_v36 = vmax.f32 %v11381_v32, %v11413_v28 }
 0x4c4   : > { %v11382_v20 = vadd.f32 %v11350_v56, %v11318_v3 }
 0x4c5   : > { %v11448_v19 = vmax.f32 %v11384_v43, %v11416_v63 }
 0x4c6   : > { %v11414_v29 = vmul.f32 0.1, %v11382_v20 }
 0x4c7   : > { %v12735_v10 = vpack.c.bf16 %v11448_v19, %v11447_v60 }
 0x4c8   : > { %v11446_v27 = vmax.f32 %v11382_v20, %v11414_v29 }
 0x4c9   : > { %12751 = vst [vmem:[%s19311_s12 + $0x78] sm:$0xff] %v12735_v10  }
 0x4ca   : > { %v12730_v41 = vpack.c.bf16 %v11446_v27, %v11445_v36 }
 0x4cc   : > { %12750 = vst [vmem:[%s19311_s12 + $0x70] sm:$0xff] %v12730_v41  }
 0x4cd PF: > { %s17_s24 = sadd.s32 1, %s14339_s24  }
 0x4ce   : > { %p14_p4 = scmp.ge.s32.totalorder %s17_s24, 4  }
 0x4d0   :  { %16 = sbr.rel (!%p14_p4) target bundleno = 1 (0x1), region = 97 }

</bundles_post_ra>
